<compile_context>
chip_gen: v7x
topology: tpu7x:2x2x1
jax: 0.10.0
libtpu: 0.0.40
codegen_flags: <defaults>
</compile_context>

<pallas_src>
import math
import functools

import jax
import jax.numpy as jnp
from jax.experimental import pallas as pl
from jax.experimental.pallas import tpu as pltpu


# ----------------------------------------------------------------------------
# helpers (reference code semantics)
# ----------------------------------------------------------------------------
def make_divisible(v, divisor=8, min_value=1):
    new_v = max(min_value, int(v + divisor / 2) // divisor * divisor)
    if new_v < 0.9 * v:
        new_v += divisor
    return new_v


def _pick_tile_m(M, target=512):
    """Largest M-tile <= target that divides M (no pad / slice round-trip).
    Tiles smaller than the full extent must be sublane-aligned (x8)."""
    if M <= target:
        return M
    for t in range(target, 7, -1):
        if t % 8 == 0 and M % t == 0:
            return t
    return M  # fall back to a single full block


# ----------------------------------------------------------------------------
# Pallas kernels
# ----------------------------------------------------------------------------
def _mm_kernel(x_ref, w_ref, b_ref, o_ref, *, relu):
    """(tm,K)@(K,N) on the MXU, f32 accumulate, fused bias (+ReLU) epilogue."""
    acc = jnp.dot(x_ref[...], w_ref[...],
                  preferred_element_type=jnp.float32) + b_ref[...]
    if relu:
        acc = jnp.maximum(acc, 0.0)
    o_ref[...] = acc.astype(o_ref.dtype)


def _mm_res_kernel(x_ref, w_ref, b_ref, r_ref, o_ref):
    """Bottleneck tail: matmul + folded-BN bias + residual add + ReLU, fused."""
    acc = (jnp.dot(x_ref[...], w_ref[...],
                   preferred_element_type=jnp.float32)
           + b_ref[...] + r_ref[...].astype(jnp.float32))
    o_ref[...] = jnp.maximum(acc, 0.0).astype(o_ref.dtype)


def _conv3x3_s1_kernel(x_ref, w_ref, b_ref, o_ref, *, wp):
    """Stride-1 3x3 conv without im2col: the padded image is flattened to
    (Lp, Cin) in VMEM; each tap is a statically shifted (Mout, Cin) window,
    accumulated over 9 MXU dots in f32, with fused bias + ReLU epilogue."""
    mout, cout = o_ref.shape
    acc = jnp.zeros((mout, cout), jnp.float32)
    for t in range(9):
        off = (t // 3) * wp + (t % 3)          # static element offset
        acc = acc + jnp.dot(x_ref[off:off + mout, :], w_ref[t],
                            preferred_element_type=jnp.float32)
    o_ref[...] = jnp.maximum(acc + b_ref[...], 0.0).astype(o_ref.dtype)


def _head_kernel(x_ref, w_ref, b_ref, o_ref):
    """AdaptiveAvgPool2d((1,1)) + Linear fused (tiny)."""
    pooled = jnp.mean(x_ref[...].astype(jnp.float32), axis=1)       # (N, C)
    o_ref[...] = (jnp.dot(pooled, w_ref[...],
                          preferred_element_type=jnp.float32) + b_ref[...])


# ----------------------------------------------------------------------------
# Pallas wrappers
# ----------------------------------------------------------------------------
def matmul_epilogue(x, w, b, res=None, relu=True,
                    out_dtype=jnp.bfloat16, target_tile=512):
    """(M,K)@(K,N) + bias (+residual) (+ReLU), grid over M tiles."""
    M, K = x.shape
    _, Nc = w.shape
    tm = _pick_tile_m(M, target_tile)
    x = x.astype(jnp.bfloat16)
    w = w.astype(jnp.bfloat16)
    b2 = b.reshape(1, Nc).astype(jnp.float32)

    in_specs = [pl.BlockSpec((tm, K), lambda i: (i, 0)),
                pl.BlockSpec((K, Nc), lambda i: (0, 0)),
                pl.BlockSpec((1, Nc), lambda i: (0, 0))]
    args = [x, w, b2]
    if res is None:
        kernel = functools.partial(_mm_kernel, relu=relu)
    else:
        kernel = _mm_res_kernel
        in_specs.append(pl.BlockSpec((tm, Nc), lambda i: (i, 0)))
        args.append(res)

    return pl.pallas_call(
        kernel,
        out_shape=jax.ShapeDtypeStruct((M, Nc), out_dtype),
        grid=(M // tm,),
        in_specs=in_specs,
        out_specs=pl.BlockSpec((tm, Nc), lambda i: (i, 0)),
        compiler_params=pltpu.CompilerParams(
            dimension_semantics=("parallel",)),
    )(*args)


def conv1x1(x, w_11io, bias, stride=1, relu=True, res=None):
    if stride > 1:
        x = x[:, ::stride, ::stride, :]
    N, H, W, Cin = x.shape
    Cout = w_11io.shape[-1]
    out = matmul_epilogue(x.reshape(N * H * W, Cin),
                          w_11io.reshape(Cin, Cout), bias,
                          res=res, relu=relu)
    return out.reshape(N, H, W, Cout)


def conv_im2col(x, w_hwio, bias, stride, padding, relu=True):
    """Strided conv via im2col (JAX data movement) + fused-epilogue matmul.
    Only used for the 7x7/s2 stem and the (tiny) stride-2 3x3 convs."""
    N, H, W, Cin = x.shape
    Kh, Kw, _, Cout = w_hwio.shape
    Ho = (H + 2 * padding - Kh) // stride + 1
    Wo = (W + 2 * padding - Kw) // stride + 1
    xp = jnp.pad(x, ((0, 0), (padding, padding), (padding, padding), (0, 0)))
    cols = []
    for di in range(Kh):
        for dj in range(Kw):
            cols.append(xp[:, di:di + stride * (Ho - 1) + 1:stride,
                              dj:dj + stride * (Wo - 1) + 1:stride, :])
    patches = jnp.concatenate(cols, axis=-1).reshape(N * Ho * Wo, Kh * Kw * Cin)
    out = matmul_epilogue(patches, w_hwio.reshape(Kh * Kw * Cin, Cout), bias,
                          relu=relu)
    return out.reshape(N, Ho, Wo, Cout)


def conv3x3_s1_fused(x, w_hwio, bias):
    """Stride-1 3x3 conv, pad=1, fused BN-bias + ReLU, no im2col materialization."""
    N, H, W, Cin = x.shape
    Cout = w_hwio.shape[-1]
    Wp = W + 2                       # padded width
    Lp = (H + 3) * Wp                # H padded by (1, 2) so tap reads stay in range
    Mout = H * Wp                    # computed (incl. garbage W-boundary cols)
    xp = jnp.pad(x, ((0, 0), (1, 2), (1, 1), (0, 0))).reshape(N, Lp, Cin)
    w9 = w_hwio.reshape(9, Cin, Cout).astype(jnp.bfloat16)
    b2 = bias.reshape(1, Cout).astype(jnp.float32)

    out = pl.pallas_call(
        functools.partial(_conv3x3_s1_kernel, wp=Wp),
        out_shape=jax.ShapeDtypeStruct((N, Mout, Cout), jnp.bfloat16),
        grid=(N,),
        in_specs=[pl.BlockSpec((None, Lp, Cin), lambda n: (n, 0, 0)),
                  pl.BlockSpec((9, Cin, Cout), lambda n: (0, 0, 0)),
                  pl.BlockSpec((1, Cout), lambda n: (0, 0))],
        out_specs=pl.BlockSpec((None, Mout, Cout), lambda n: (n, 0, 0)),
        compiler_params=pltpu.CompilerParams(
            dimension_semantics=("parallel",)),
    )(xp.astype(jnp.bfloat16), w9, b2)

    # drop the invalid W-boundary columns (small output-only copy)
    return out.reshape(N, H, Wp, Cout)[:, :, :W, :]


def maxpool_3x3_s2_p1(x):
    # Plain-JAX maximum tree (XLA fuses it); replaces the previous 9x HBM tap
    # stack.  One tiny op on the stem output only.
    N, H, W, C = x.shape
    Ho = (H + 2 - 3) // 2 + 1
    Wo = (W + 2 - 3) // 2 + 1
    xp = jnp.pad(x, ((0, 0), (1, 1), (1, 1), (0, 0)),
                 constant_values=-jnp.inf)
    out = None
    for di in range(3):
        for dj in range(3):
            tap = xp[:, di:di + 2 * (Ho - 1) + 1:2,
                        dj:dj + 2 * (Wo - 1) + 1:2, :]
            out = tap if out is None else jnp.maximum(out, tap)
    return out


def head(x, fc_w, fc_b):
    """Fused global average pool + classifier."""
    N, H, W, C = x.shape
    ncls = fc_w.shape[1]
    x3 = x.reshape(N, H * W, C)
    return pl.pallas_call(
        _head_kernel,
        out_shape=jax.ShapeDtypeStruct((N, ncls), jnp.float32),
        grid=(1,),
        in_specs=[pl.BlockSpec((N, H * W, C), lambda i: (0, 0, 0)),
                  pl.BlockSpec((C, ncls), lambda i: (0, 0)),
                  pl.BlockSpec((1, ncls), lambda i: (0, 0))],
        out_specs=pl.BlockSpec((N, ncls), lambda i: (0, 0)),
    )(x3, fc_w, fc_b.reshape(1, ncls))


# ----------------------------------------------------------------------------
# deterministic parameter construction (BN folded per domain)
# ----------------------------------------------------------------------------
def init_conv(key, kh, kw, cin, cout):
    std = math.sqrt(2.0 / (kh * kw * cout))      # reset_parameters() rule
    return std * jax.random.normal(key, (kh, kw, cin, cout), jnp.float32)


def init_dsbn(key, c, num_domains=2, eps=1e-5):
    kg, kb, km, kv = jax.random.split(key, 4)
    gamma = 1.0 + 0.1 * jax.random.normal(kg, (num_domains, c), jnp.float32)
    beta = 0.1 * jax.random.normal(kb, (num_domains, c), jnp.float32)
    mean = 0.1 * jax.random.normal(km, (num_domains, c), jnp.float32)
    var = 1.0 + 0.1 * jax.random.uniform(kv, (num_domains, c), jnp.float32)
    scale = gamma / jnp.sqrt(var + eps)
    shift = beta - mean * scale
    return scale, shift                          # each (num_domains, C)


def fold_bn(w, scale, shift):
    """Fold y = scale*conv(x;W) + shift into per-domain (W', bias)."""
    folded = []
    for d in range(scale.shape[0]):
        folded.append(((w * scale[d]).astype(jnp.bfloat16),
                       shift[d].astype(jnp.float32)))
    return folded


def build_model(key, num_classes=10, input_size=64, depth=50, depth_mult=1.0 / 3.0,
                init_channel=16, feats=(16, 32, 64, 128)):
    assert input_size % 32 == 0
    block_setting_dict = {18: [2, 2, 2, 2], 34: [3, 4, 6, 3], 50: [3, 4, 6, 3],
                          101: [3, 4, 23, 3], 152: [3, 8, 36, 3]}
    block_setting = block_setting_dict[depth]
    keys = iter(jax.random.split(key, 512))

    channels = make_divisible(init_channel)
    params = {
        "stem": fold_bn(init_conv(next(keys), 7, 7, 3, channels),
                        *init_dsbn(next(keys), channels)),
    }

    # construct block metadata exactly like the reference __init__
    blocks_meta = []
    ch = channels
    for stage_id, n in enumerate(block_setting):
        outp = make_divisible(feats[stage_id] * 4)
        for i in range(n):
            stride = 2 if (i == 0 and stage_id != 0) else 1
            blocks_meta.append((ch, outp, stride))
            ch = outp
    final_channels = ch

    # forward-time depth gating (reference Block.forward hard-codes 0/3/7/13)
    depth_rt = [int(v * depth_mult) for v in block_setting]
    starts = (0, 3, 7, 13)
    active = set()
    for s, d in zip(starts, depth_rt):
        active.update(range(s, s + d))

    block_params = []
    for bid, (inp, outp, stride) in enumerate(blocks_meta):
        if bid not in active:
            block_params.append(None)            # skipped block: identity
            continue
        midp = make_divisible(outp // 4)
        p = {
            "conv1": fold_bn(init_conv(next(keys), 1, 1, inp, midp),
                             *init_dsbn(next(keys), midp)),
            "conv2": fold_bn(init_conv(next(keys), 3, 3, midp, midp),
                             *init_dsbn(next(keys), midp)),
            "conv3": fold_bn(init_conv(next(keys), 1, 1, midp, outp),
                             *init_dsbn(next(keys), outp)),
            "stride": stride,
            "residual": (stride == 1 and inp == outp),
        }
        if not p["residual"]:
            p["shortcut"] = fold_bn(init_conv(next(keys), 1, 1, inp, outp),
                                    *init_dsbn(next(keys), outp))
        block_params.append(p)

    params["blocks"] = block_params
    params["fc_w"] = 0.01 * jax.random.normal(next(keys),
                                              (final_channels, num_classes),
                                              jnp.float32)
    params["fc_b"] = jnp.zeros((num_classes,), jnp.float32)
    return params


# ----------------------------------------------------------------------------
# forward pass
# ----------------------------------------------------------------------------
def block_forward(x, p, d):
    stride = p["stride"]
    w1, b1 = p["conv1"][d]
    h = conv1x1(x, w1, b1, relu=True)                       # 1x1 + BN + ReLU
    w2, b2 = p["conv2"][d]
    if stride == 1:
        h = conv3x3_s1_fused(h, w2, b2)                     # 3x3 + BN + ReLU
    else:
        h = conv_im2col(h, w2, b2, stride=stride, padding=1, relu=True)
    N, Hh, Wh, Cm = h.shape
    w3, b3 = p["conv3"][d]
    outp = w3.shape[-1]
    if p["residual"]:
        res = x.reshape(N * Hh * Wh, outp)                  # identity shortcut
    else:
        ws, bs = p["shortcut"][d]
        res = conv1x1(x, ws, bs, stride=stride,
                      relu=False).reshape(N * Hh * Wh, outp)
    # 1x1 conv + BN(body) + shortcut add + post ReLU, fused in one kernel
    out = matmul_epilogue(h.reshape(N * Hh * Wh, Cm),
                          w3.reshape(Cm, outp), b3, res=res, relu=True)
    return out.reshape(N, Hh, Wh, outp)


def forward(params, x_nchw, dom=(0,)):
    d = int(dom[0])
    x = jnp.transpose(x_nchw, (0, 2, 3, 1)).astype(jnp.bfloat16)  # NCHW -> NHWC
    # features_ini: 7x7/s2 conv (+folded DSBN + ReLU) -> MaxPool(3,2,1)
    ws, bs = params["stem"][d]
    x = conv_im2col(x, ws, bs, stride=2, padding=3, relu=True)
    x = maxpool_3x3_s2_p1(x)
    # features_blks (depth-gated bottleneck blocks)
    for p in params["blocks"]:
        if p is None:
            continue
        x = block_forward(x, p, d)
    # features_last + classifier (fused pool + fc)
    return head(x, params["fc_w"], params["fc_b"])


# ----------------------------------------------------------------------------
if __name__ == "__main__":
    key = jax.random.PRNGKey(0)
    pkey, xkey = jax.random.split(key)
    params = build_model(pkey, num_classes=10, input_size=64)
    x = jax.random.normal(xkey, (2, 3, 64, 64), jnp.float32)      # NCHW input

    fwd = jax.jit(functools.partial(forward, params))
    out = jax.block_until_ready(fwd(x))

    assert out.shape == (2, 10), out.shape
    assert bool(jnp.all(jnp.isfinite(out)))
    print("KERNEL_OK")
</pallas_src>

<mosaic_0001>
module attributes {stable_mosaic.version = 11 : i64} {
  func.func @_mm_kernel(%arg0: i32, %arg1: memref<512x147xbf16, #tpu.memory_space<vmem>>, %arg2: memref<147x16xbf16, #tpu.memory_space<vmem>>, %arg3: memref<1x16xf32, #tpu.memory_space<vmem>>, %arg4: memref<512x16xbf16, #tpu.memory_space<vmem>>) attributes {dimension_semantics = [#tpu.dimension_semantics<parallel>], iteration_bounds = array<i64: 4>, scalar_prefetch = 0 : i64, scratch_operands = 0 : i64, tpu.core_type = #tpu.core_type<tc>, window_params = [{transform_indices = @transform_0, window_bounds = array<i64: 512, 147>}, {pipeline_mode = #tpu.pipeline_mode<synchronous>, transform_indices = @transform_1, window_bounds = array<i64: 147, 16>}, {pipeline_mode = #tpu.pipeline_mode<synchronous>, transform_indices = @transform_2, window_bounds = array<i64: 1, 16>}, {transform_indices = @transform_3, window_bounds = array<i64: 512, 16>}]} {
    %c0 = arith.constant 0 : index
    %c0_0 = arith.constant 0 : index
    %0 = vector.load %arg1[%c0, %c0_0] : memref<512x147xbf16, #tpu.memory_space<vmem>>, vector<512x147xbf16>
    %c0_1 = arith.constant 0 : index
    %c0_2 = arith.constant 0 : index
    %1 = vector.load %arg2[%c0_1, %c0_2] : memref<147x16xbf16, #tpu.memory_space<vmem>>, vector<147x16xbf16>
    %cst = arith.constant dense<0.000000e+00> : vector<512x16xf32>
    %2 = tpu.matmul %0, %1, %cst {dimension_numbers = #tpu.dot_dimension_numbers<[1], [0], [0], [1], [0, 0, 1, 1], [], []>} : vector<512x147xbf16>, vector<147x16xbf16>, vector<512x16xf32> -> vector<512x16xf32>
    %c0_3 = arith.constant 0 : index
    %c0_4 = arith.constant 0 : index
    %3 = vector.load %arg3[%c0_3, %c0_4] : memref<1x16xf32, #tpu.memory_space<vmem>>, vector<1x16xf32>
    %4 = vector.broadcast %3 : vector<1x16xf32> to vector<512x16xf32>
    %5 = arith.addf %2, %4 : vector<512x16xf32>
    %cst_5 = arith.constant 0.000000e+00 : f32
    %6 = vector.broadcast %cst_5 : f32 to vector<512x16xf32>
    %7 = arith.maximumf %5, %6 : vector<512x16xf32>
    %8 = arith.truncf %7 : vector<512x16xf32> to vector<512x16xbf16>
    %c0_6 = arith.constant 0 : index
    %c0_7 = arith.constant 0 : index
    %9 = vector.load %arg4[%c0_6, %c0_7] : memref<512x16xbf16, #tpu.memory_space<vmem>>, vector<512x16xbf16>
    tpu.vector_store %arg4[%c0_6, %c0_7], %8 {strides = array<i32>} : memref<512x16xbf16, #tpu.memory_space<vmem>>, vector<512x16xbf16>,
    return
  }
  func.func @transform_0(%arg0: i32) -> (i32, i32) {
    %c0_i32 = arith.constant 0 : i32
    %c0_i32_0 = arith.constant 0 : i32
    return %arg0, %c0_i32 : i32, i32
  }
  func.func @transform_1(%arg0: i32) -> (i32, i32) {
    %c0_i32 = arith.constant 0 : i32
    %c0_i32_0 = arith.constant 0 : i32
    %c0_i32_1 = arith.constant 0 : i32
    return %c0_i32, %c0_i32_0 : i32, i32
  }
  func.func @transform_2(%arg0: i32) -> (i32, i32) {
    %c0_i32 = arith.constant 0 : i32
    %c0_i32_0 = arith.constant 0 : i32
    %c0_i32_1 = arith.constant 0 : i32
    return %c0_i32, %c0_i32_0 : i32, i32
  }
  func.func @transform_3(%arg0: i32) -> (i32, i32) {
    %c0_i32 = arith.constant 0 : i32
    %c0_i32_0 = arith.constant 0 : i32
    return %arg0, %c0_i32 : i32, i32
  }
}

module attributes {stable_mosaic.version = 11 : i64} {
  func.func @_mm_kernel(%arg0: i32, %arg1: memref<512x16xbf16, #tpu.memory_space<vmem>>, %arg2: memref<16x16xbf16, #tpu.memory_space<vmem>>, %arg3: memref<1x16xf32, #tpu.memory_space<vmem>>, %arg4: memref<512x16xbf16, #tpu.memory_space<vmem>>) attributes {dimension_semantics = [#tpu.dimension_semantics<parallel>], iteration_bounds = array<i64: 1>, scalar_prefetch = 0 : i64, scratch_operands = 0 : i64, tpu.core_type = #tpu.core_type<tc>, window_params = [{transform_indices = @transform_0, window_bounds = array<i64: 512, 16>}, {pipeline_mode = #tpu.pipeline_mode<synchronous>, transform_indices = @transform_1, window_bounds = array<i64: 16, 16>}, {pipeline_mode = #tpu.pipeline_mode<synchronous>, transform_indices = @transform_2, window_bounds = array<i64: 1, 16>}, {transform_indices = @transform_3, window_bounds = array<i64: 512, 16>}]} {
    %c0 = arith.constant 0 : index
    %c0_0 = arith.constant 0 : index
    %0 = vector.load %arg1[%c0, %c0_0] : memref<512x16xbf16, #tpu.memory_space<vmem>>, vector<512x16xbf16>
    %c0_1 = arith.constant 0 : index
    %c0_2 = arith.constant 0 : index
    %1 = vector.load %arg2[%c0_1, %c0_2] : memref<16x16xbf16, #tpu.memory_space<vmem>>, vector<16x16xbf16>
    %cst = arith.constant dense<0.000000e+00> : vector<512x16xf32>
    %2 = tpu.matmul %0, %1, %cst {dimension_numbers = #tpu.dot_dimension_numbers<[1], [0], [0], [1], [0, 0, 1, 1], [], []>} : vector<512x16xbf16>, vector<16x16xbf16>, vector<512x16xf32> -> vector<512x16xf32>
    %c0_3 = arith.constant 0 : index
    %c0_4 = arith.constant 0 : index
    %3 = vector.load %arg3[%c0_3, %c0_4] : memref<1x16xf32, #tpu.memory_space<vmem>>, vector<1x16xf32>
    %4 = vector.broadcast %3 : vector<1x16xf32> to vector<512x16xf32>
    %5 = arith.addf %2, %4 : vector<512x16xf32>
    %cst_5 = arith.constant 0.000000e+00 : f32
    %6 = vector.broadcast %cst_5 : f32 to vector<512x16xf32>
    %7 = arith.maximumf %5, %6 : vector<512x16xf32>
    %8 = arith.truncf %7 : vector<512x16xf32> to vector<512x16xbf16>
    %c0_6 = arith.constant 0 : index
    %c0_7 = arith.constant 0 : index
    %9 = vector.load %arg4[%c0_6, %c0_7] : memref<512x16xbf16, #tpu.memory_space<vmem>>, vector<512x16xbf16>
    tpu.vector_store %arg4[%c0_6, %c0_7], %8 {strides = array<i32>} : memref<512x16xbf16, #tpu.memory_space<vmem>>, vector<512x16xbf16>,
    return
  }
  func.func @transform_0(%arg0: i32) -> (i32, i32) {
    %c0_i32 = arith.constant 0 : i32
    %c0_i32_0 = arith.constant 0 : i32
    return %arg0, %c0_i32 : i32, i32
  }
  func.func @transform_1(%arg0: i32) -> (i32, i32) {
    %c0_i32 = arith.constant 0 : i32
    %c0_i32_0 = arith.constant 0 : i32
    %c0_i32_1 = arith.constant 0 : i32
    return %c0_i32, %c0_i32_0 : i32, i32
  }
  func.func @transform_2(%arg0: i32) -> (i32, i32) {
    %c0_i32 = arith.constant 0 : i32
    %c0_i32_0 = arith.constant 0 : i32
    %c0_i32_1 = arith.constant 0 : i32
    return %c0_i32, %c0_i32_0 : i32, i32
  }
  func.func @transform_3(%arg0: i32) -> (i32, i32) {
    %c0_i32 = arith.constant 0 : i32
    %c0_i32_0 = arith.constant 0 : i32
    return %arg0, %c0_i32 : i32, i32
  }
}

module attributes {stable_mosaic.version = 11 : i64} {
  func.func @_conv3x3_s1_kernel(%arg0: i32, %arg1: memref<1x342x16xbf16, #tpu.memory_space<vmem>>, %arg2: memref<9x16x16xbf16, #tpu.memory_space<vmem>>, %arg3: memref<1x16xf32, #tpu.memory_space<vmem>>, %arg4: memref<1x288x16xbf16, #tpu.memory_space<vmem>>) attributes {dimension_semantics = [#tpu.dimension_semantics<parallel>], iteration_bounds = array<i64: 2>, scalar_prefetch = 0 : i64, scratch_operands = 0 : i64, tpu.core_type = #tpu.core_type<tc>, window_params = [{transform_indices = @transform_0, window_bounds = array<i64: 1, 342, 16>}, {pipeline_mode = #tpu.pipeline_mode<synchronous>, transform_indices = @transform_1, window_bounds = array<i64: 9, 16, 16>}, {pipeline_mode = #tpu.pipeline_mode<synchronous>, transform_indices = @transform_2, window_bounds = array<i64: 1, 16>}, {transform_indices = @transform_3, window_bounds = array<i64: 1, 288, 16>}]} {
    %cst = arith.constant 0.000000e+00 : f32
    %0 = vector.broadcast %cst : f32 to vector<288x16xf32>
    %c0 = arith.constant 0 : index
    %c0_0 = arith.constant 0 : index
    %c0_1 = arith.constant 0 : index
    %1 = vector.load %arg1[%c0, %c0_0, %c0_1] : memref<1x342x16xbf16, #tpu.memory_space<vmem>>, vector<1x288x16xbf16>
    %2 = vector.shape_cast %1 : vector<1x288x16xbf16> to vector<288x16xbf16>
    %c0_2 = arith.constant 0 : index
    %c0_3 = arith.constant 0 : index
    %c0_4 = arith.constant 0 : index
    %3 = vector.load %arg2[%c0_2, %c0_3, %c0_4] : memref<9x16x16xbf16, #tpu.memory_space<vmem>>, vector<1x16x16xbf16>
    %4 = vector.shape_cast %3 : vector<1x16x16xbf16> to vector<16x16xbf16>
    %cst_5 = arith.constant dense<0.000000e+00> : vector<288x16xf32>
    %5 = tpu.matmul %2, %4, %cst_5 {dimension_numbers = #tpu.dot_dimension_numbers<[1], [0], [0], [1], [0, 0, 1, 1], [], []>} : vector<288x16xbf16>, vector<16x16xbf16>, vector<288x16xf32> -> vector<288x16xf32>
    %6 = arith.addf %0, %5 : vector<288x16xf32>
    %c0_6 = arith.constant 0 : index
    %c1 = arith.constant 1 : index
    %c0_7 = arith.constant 0 : index
    %7 = vector.load %arg1[%c0_6, %c1, %c0_7] : memref<1x342x16xbf16, #tpu.memory_space<vmem>>, vector<1x288x16xbf16>
    %8 = vector.shape_cast %7 : vector<1x288x16xbf16> to vector<288x16xbf16>
    %c1_8 = arith.constant 1 : index
    %c0_9 = arith.constant 0 : index
    %c0_10 = arith.constant 0 : index
    %9 = vector.load %arg2[%c1_8, %c0_9, %c0_10] : memref<9x16x16xbf16, #tpu.memory_space<vmem>>, vector<1x16x16xbf16>
    %10 = vector.shape_cast %9 : vector<1x16x16xbf16> to vector<16x16xbf16>
    %cst_11 = arith.constant dense<0.000000e+00> : vector<288x16xf32>
    %11 = tpu.matmul %8, %10, %cst_11 {dimension_numbers = #tpu.dot_dimension_numbers<[1], [0], [0], [1], [0, 0, 1, 1], [], []>} : vector<288x16xbf16>, vector<16x16xbf16>, vector<288x16xf32> -> vector<288x16xf32>
    %12 = arith.addf %6, %11 : vector<288x16xf32>
    %c0_12 = arith.constant 0 : index
    %c2 = arith.constant 2 : index
    %c0_13 = arith.constant 0 : index
    %13 = vector.load %arg1[%c0_12, %c2, %c0_13] : memref<1x342x16xbf16, #tpu.memory_space<vmem>>, vector<1x288x16xbf16>
    %14 = vector.shape_cast %13 : vector<1x288x16xbf16> to vector<288x16xbf16>
    %c2_14 = arith.constant 2 : index
    %c0_15 = arith.constant 0 : index
    %c0_16 = arith.constant 0 : index
    %15 = vector.load %arg2[%c2_14, %c0_15, %c0_16] : memref<9x16x16xbf16, #tpu.memory_space<vmem>>, vector<1x16x16xbf16>
    %16 = vector.shape_cast %15 : vector<1x16x16xbf16> to vector<16x16xbf16>
    %cst_17 = arith.constant dense<0.000000e+00> : vector<288x16xf32>
    %17 = tpu.matmul %14, %16, %cst_17 {dimension_numbers = #tpu.dot_dimension_numbers<[1], [0], [0], [1], [0, 0, 1, 1], [], []>} : vector<288x16xbf16>, vector<16x16xbf16>, vector<288x16xf32> -> vector<288x16xf32>
    %18 = arith.addf %12, %17 : vector<288x16xf32>
    %c0_18 = arith.constant 0 : index
    %c18 = arith.constant 18 : index
    %c0_19 = arith.constant 0 : index
    %19 = vector.load %arg1[%c0_18, %c18, %c0_19] : memref<1x342x16xbf16, #tpu.memory_space<vmem>>, vector<1x288x16xbf16>
    %20 = vector.shape_cast %19 : vector<1x288x16xbf16> to vector<288x16xbf16>
    %c3 = arith.constant 3 : index
    %c0_20 = arith.constant 0 : index
    %c0_21 = arith.constant 0 : index
    %21 = vector.load %arg2[%c3, %c0_20, %c0_21] : memref<9x16x16xbf16, #tpu.memory_space<vmem>>, vector<1x16x16xbf16>
    %22 = vector.shape_cast %21 : vector<1x16x16xbf16> to vector<16x16xbf16>
    %cst_22 = arith.constant dense<0.000000e+00> : vector<288x16xf32>
    %23 = tpu.matmul %20, %22, %cst_22 {dimension_numbers = #tpu.dot_dimension_numbers<[1], [0], [0], [1], [0, 0, 1, 1], [], []>} : vector<288x16xbf16>, vector<16x16xbf16>, vector<288x16xf32> -> vector<288x16xf32>
    %24 = arith.addf %18, %23 : vector<288x16xf32>
    %c0_23 = arith.constant 0 : index
    %c19 = arith.constant 19 : index
    %c0_24 = arith.constant 0 : index
    %25 = vector.load %arg1[%c0_23, %c19, %c0_24] : memref<1x342x16xbf16, #tpu.memory_space<vmem>>, vector<1x288x16xbf16>
    %26 = vector.shape_cast %25 : vector<1x288x16xbf16> to vector<288x16xbf16>
    %c4 = arith.constant 4 : index
    %c0_25 = arith.constant 0 : index
    %c0_26 = arith.constant 0 : index
    %27 = vector.load %arg2[%c4, %c0_25, %c0_26] : memref<9x16x16xbf16, #tpu.memory_space<vmem>>, vector<1x16x16xbf16>
    %28 = vector.shape_cast %27 : vector<1x16x16xbf16> to vector<16x16xbf16>
    %cst_27 = arith.constant dense<0.000000e+00> : vector<288x16xf32>
    %29 = tpu.matmul %26, %28, %cst_27 {dimension_numbers = #tpu.dot_dimension_numbers<[1], [0], [0], [1], [0, 0, 1, 1], [], []>} : vector<288x16xbf16>, vector<16x16xbf16>, vector<288x16xf32> -> vector<288x16xf32>
    %30 = arith.addf %24, %29 : vector<288x16xf32>
    %c0_28 = arith.constant 0 : index
    %c20 = arith.constant 20 : index
    %c0_29 = arith.constant 0 : index
    %31 = vector.load %arg1[%c0_28, %c20, %c0_29] : memref<1x342x16xbf16, #tpu.memory_space<vmem>>, vector<1x288x16xbf16>
    %32 = vector.shape_cast %31 : vector<1x288x16xbf16> to vector<288x16xbf16>
    %c5 = arith.constant 5 : index
    %c0_30 = arith.constant 0 : index
    %c0_31 = arith.constant 0 : index
    %33 = vector.load %arg2[%c5, %c0_30, %c0_31] : memref<9x16x16xbf16, #tpu.memory_space<vmem>>, vector<1x16x16xbf16>
    %34 = vector.shape_cast %33 : vector<1x16x16xbf16> to vector<16x16xbf16>
    %cst_32 = arith.constant dense<0.000000e+00> : vector<288x16xf32>
    %35 = tpu.matmul %32, %34, %cst_32 {dimension_numbers = #tpu.dot_dimension_numbers<[1], [0], [0], [1], [0, 0, 1, 1], [], []>} : vector<288x16xbf16>, vector<16x16xbf16>, vector<288x16xf32> -> vector<288x16xf32>
    %36 = arith.addf %30, %35 : vector<288x16xf32>
    %c0_33 = arith.constant 0 : index
    %c36 = arith.constant 36 : index
    %c0_34 = arith.constant 0 : index
    %37 = vector.load %arg1[%c0_33, %c36, %c0_34] : memref<1x342x16xbf16, #tpu.memory_space<vmem>>, vector<1x288x16xbf16>
    %38 = vector.shape_cast %37 : vector<1x288x16xbf16> to vector<288x16xbf16>
    %c6 = arith.constant 6 : index
    %c0_35 = arith.constant 0 : index
    %c0_36 = arith.constant 0 : index
    %39 = vector.load %arg2[%c6, %c0_35, %c0_36] : memref<9x16x16xbf16, #tpu.memory_space<vmem>>, vector<1x16x16xbf16>
    %40 = vector.shape_cast %39 : vector<1x16x16xbf16> to vector<16x16xbf16>
    %cst_37 = arith.constant dense<0.000000e+00> : vector<288x16xf32>
    %41 = tpu.matmul %38, %40, %cst_37 {dimension_numbers = #tpu.dot_dimension_numbers<[1], [0], [0], [1], [0, 0, 1, 1], [], []>} : vector<288x16xbf16>, vector<16x16xbf16>, vector<288x16xf32> -> vector<288x16xf32>
    %42 = arith.addf %36, %41 : vector<288x16xf32>
    %c0_38 = arith.constant 0 : index
    %c37 = arith.constant 37 : index
    %c0_39 = arith.constant 0 : index
    %43 = vector.load %arg1[%c0_38, %c37, %c0_39] : memref<1x342x16xbf16, #tpu.memory_space<vmem>>, vector<1x288x16xbf16>
    %44 = vector.shape_cast %43 : vector<1x288x16xbf16> to vector<288x16xbf16>
    %c7 = arith.constant 7 : index
    %c0_40 = arith.constant 0 : index
    %c0_41 = arith.constant 0 : index
    %45 = vector.load %arg2[%c7, %c0_40, %c0_41] : memref<9x16x16xbf16, #tpu.memory_space<vmem>>, vector<1x16x16xbf16>
    %46 = vector.shape_cast %45 : vector<1x16x16xbf16> to vector<16x16xbf16>
    %cst_42 = arith.constant dense<0.000000e+00> : vector<288x16xf32>
    %47 = tpu.matmul %44, %46, %cst_42 {dimension_numbers = #tpu.dot_dimension_numbers<[1], [0], [0], [1], [0, 0, 1, 1], [], []>} : vector<288x16xbf16>, vector<16x16xbf16>, vector<288x16xf32> -> vector<288x16xf32>
    %48 = arith.addf %42, %47 : vector<288x16xf32>
    %c0_43 = arith.constant 0 : index
    %c38 = arith.constant 38 : index
    %c0_44 = arith.constant 0 : index
    %49 = vector.load %arg1[%c0_43, %c38, %c0_44] : memref<1x342x16xbf16, #tpu.memory_space<vmem>>, vector<1x288x16xbf16>
    %50 = vector.shape_cast %49 : vector<1x288x16xbf16> to vector<288x16xbf16>
    %c8 = arith.constant 8 : index
    %c0_45 = arith.constant 0 : index
    %c0_46 = arith.constant 0 : index
    %51 = vector.load %arg2[%c8, %c0_45, %c0_46] : memref<9x16x16xbf16, #tpu.memory_space<vmem>>, vector<1x16x16xbf16>
    %52 = vector.shape_cast %51 : vector<1x16x16xbf16> to vector<16x16xbf16>
    %cst_47 = arith.constant dense<0.000000e+00> : vector<288x16xf32>
    %53 = tpu.matmul %50, %52, %cst_47 {dimension_numbers = #tpu.dot_dimension_numbers<[1], [0], [0], [1], [0, 0, 1, 1], [], []>} : vector<288x16xbf16>, vector<16x16xbf16>, vector<288x16xf32> -> vector<288x16xf32>
    %54 = arith.addf %48, %53 : vector<288x16xf32>
    %c0_48 = arith.constant 0 : index
    %c0_49 = arith.constant 0 : index
    %55 = vector.load %arg3[%c0_48, %c0_49] : memref<1x16xf32, #tpu.memory_space<vmem>>, vector<1x16xf32>
    %56 = vector.broadcast %55 : vector<1x16xf32> to vector<288x16xf32>
    %57 = arith.addf %54, %56 : vector<288x16xf32>
    %cst_50 = arith.constant 0.000000e+00 : f32
    %58 = vector.broadcast %cst_50 : f32 to vector<288x16xf32>
    %59 = arith.maximumf %57, %58 : vector<288x16xf32>
    %60 = arith.truncf %59 : vector<288x16xf32> to vector<288x16xbf16>
    %c0_51 = arith.constant 0 : index
    %c0_52 = arith.constant 0 : index
    %c0_53 = arith.constant 0 : index
    %61 = vector.load %arg4[%c0_51, %c0_52, %c0_53] : memref<1x288x16xbf16, #tpu.memory_space<vmem>>, vector<1x288x16xbf16>
    %62 = vector.shape_cast %61 : vector<1x288x16xbf16> to vector<288x16xbf16>
    %63 = vector.shape_cast %60 : vector<288x16xbf16> to vector<1x288x16xbf16>
    tpu.vector_store %arg4[%c0_51, %c0_52, %c0_53], %63 {strides = array<i32>} : memref<1x288x16xbf16, #tpu.memory_space<vmem>>, vector<1x288x16xbf16>,
    return
  }
  func.func @transform_0(%arg0: i32) -> (i32, i32, i32) {
    %c0_i32 = arith.constant 0 : i32
    %c0_i32_0 = arith.constant 0 : i32
    %c0_i32_1 = arith.constant 0 : i32
    return %arg0, %c0_i32, %c0_i32_0 : i32, i32, i32
  }
  func.func @transform_1(%arg0: i32) -> (i32, i32, i32) {
    %c0_i32 = arith.constant 0 : i32
    %c0_i32_0 = arith.constant 0 : i32
    %c0_i32_1 = arith.constant 0 : i32
    %c0_i32_2 = arith.constant 0 : i32
    return %c0_i32, %c0_i32_0, %c0_i32_1 : i32, i32, i32
  }
  func.func @transform_2(%arg0: i32) -> (i32, i32) {
    %c0_i32 = arith.constant 0 : i32
    %c0_i32_0 = arith.constant 0 : i32
    %c0_i32_1 = arith.constant 0 : i32
    return %c0_i32, %c0_i32_0 : i32, i32
  }
  func.func @transform_3(%arg0: i32) -> (i32, i32, i32) {
    %c0_i32 = arith.constant 0 : i32
    %c0_i32_0 = arith.constant 0 : i32
    %c0_i32_1 = arith.constant 0 : i32
    return %arg0, %c0_i32, %c0_i32_0 : i32, i32, i32
  }
}

module attributes {stable_mosaic.version = 11 : i64} {
  func.func @_mm_kernel(%arg0: i32, %arg1: memref<512x16xbf16, #tpu.memory_space<vmem>>, %arg2: memref<16x64xbf16, #tpu.memory_space<vmem>>, %arg3: memref<1x64xf32, #tpu.memory_space<vmem>>, %arg4: memref<512x64xbf16, #tpu.memory_space<vmem>>) attributes {dimension_semantics = [#tpu.dimension_semantics<parallel>], iteration_bounds = array<i64: 1>, scalar_prefetch = 0 : i64, scratch_operands = 0 : i64, tpu.core_type = #tpu.core_type<tc>, window_params = [{transform_indices = @transform_0, window_bounds = array<i64: 512, 16>}, {pipeline_mode = #tpu.pipeline_mode<synchronous>, transform_indices = @transform_1, window_bounds = array<i64: 16, 64>}, {pipeline_mode = #tpu.pipeline_mode<synchronous>, transform_indices = @transform_2, window_bounds = array<i64: 1, 64>}, {transform_indices = @transform_3, window_bounds = array<i64: 512, 64>}]} {
    %c0 = arith.constant 0 : index
    %c0_0 = arith.constant 0 : index
    %0 = vector.load %arg1[%c0, %c0_0] : memref<512x16xbf16, #tpu.memory_space<vmem>>, vector<512x16xbf16>
    %c0_1 = arith.constant 0 : index
    %c0_2 = arith.constant 0 : index
    %1 = vector.load %arg2[%c0_1, %c0_2] : memref<16x64xbf16, #tpu.memory_space<vmem>>, vector<16x64xbf16>
    %cst = arith.constant dense<0.000000e+00> : vector<512x64xf32>
    %2 = tpu.matmul %0, %1, %cst {dimension_numbers = #tpu.dot_dimension_numbers<[1], [0], [0], [1], [0, 0, 1, 1], [], []>} : vector<512x16xbf16>, vector<16x64xbf16>, vector<512x64xf32> -> vector<512x64xf32>
    %c0_3 = arith.constant 0 : index
    %c0_4 = arith.constant 0 : index
    %3 = vector.load %arg3[%c0_3, %c0_4] : memref<1x64xf32, #tpu.memory_space<vmem>>, vector<1x64xf32>
    %4 = vector.broadcast %3 : vector<1x64xf32> to vector<512x64xf32>
    %5 = arith.addf %2, %4 : vector<512x64xf32>
    %6 = arith.truncf %5 : vector<512x64xf32> to vector<512x64xbf16>
    %c0_5 = arith.constant 0 : index
    %c0_6 = arith.constant 0 : index
    %7 = vector.load %arg4[%c0_5, %c0_6] : memref<512x64xbf16, #tpu.memory_space<vmem>>, vector<512x64xbf16>
    tpu.vector_store %arg4[%c0_5, %c0_6], %6 {strides = array<i32>} : memref<512x64xbf16, #tpu.memory_space<vmem>>, vector<512x64xbf16>,
    return
  }
  func.func @transform_0(%arg0: i32) -> (i32, i32) {
    %c0_i32 = arith.constant 0 : i32
    %c0_i32_0 = arith.constant 0 : i32
    return %arg0, %c0_i32 : i32, i32
  }
  func.func @transform_1(%arg0: i32) -> (i32, i32) {
    %c0_i32 = arith.constant 0 : i32
    %c0_i32_0 = arith.constant 0 : i32
    %c0_i32_1 = arith.constant 0 : i32
    return %c0_i32, %c0_i32_0 : i32, i32
  }
  func.func @transform_2(%arg0: i32) -> (i32, i32) {
    %c0_i32 = arith.constant 0 : i32
    %c0_i32_0 = arith.constant 0 : i32
    %c0_i32_1 = arith.constant 0 : i32
    return %c0_i32, %c0_i32_0 : i32, i32
  }
  func.func @transform_3(%arg0: i32) -> (i32, i32) {
    %c0_i32 = arith.constant 0 : i32
    %c0_i32_0 = arith.constant 0 : i32
    return %arg0, %c0_i32 : i32, i32
  }
}

module attributes {stable_mosaic.version = 11 : i64} {
  func.func @_mm_res_kernel(%arg0: i32, %arg1: memref<512x16xbf16, #tpu.memory_space<vmem>>, %arg2: memref<16x64xbf16, #tpu.memory_space<vmem>>, %arg3: memref<1x64xf32, #tpu.memory_space<vmem>>, %arg4: memref<512x64xbf16, #tpu.memory_space<vmem>>, %arg5: memref<512x64xbf16, #tpu.memory_space<vmem>>) attributes {dimension_semantics = [#tpu.dimension_semantics<parallel>], iteration_bounds = array<i64: 1>, scalar_prefetch = 0 : i64, scratch_operands = 0 : i64, tpu.core_type = #tpu.core_type<tc>, window_params = [{transform_indices = @transform_0, window_bounds = array<i64: 512, 16>}, {pipeline_mode = #tpu.pipeline_mode<synchronous>, transform_indices = @transform_1, window_bounds = array<i64: 16, 64>}, {pipeline_mode = #tpu.pipeline_mode<synchronous>, transform_indices = @transform_2, window_bounds = array<i64: 1, 64>}, {transform_indices = @transform_3, window_bounds = array<i64: 512, 64>}, {transform_indices = @transform_4, window_bounds = array<i64: 512, 64>}]} {
    %c0 = arith.constant 0 : index
    %c0_0 = arith.constant 0 : index
    %0 = vector.load %arg1[%c0, %c0_0] : memref<512x16xbf16, #tpu.memory_space<vmem>>, vector<512x16xbf16>
    %c0_1 = arith.constant 0 : index
    %c0_2 = arith.constant 0 : index
    %1 = vector.load %arg2[%c0_1, %c0_2] : memref<16x64xbf16, #tpu.memory_space<vmem>>, vector<16x64xbf16>
    %cst = arith.constant dense<0.000000e+00> : vector<512x64xf32>
    %2 = tpu.matmul %0, %1, %cst {dimension_numbers = #tpu.dot_dimension_numbers<[1], [0], [0], [1], [0, 0, 1, 1], [], []>} : vector<512x16xbf16>, vector<16x64xbf16>, vector<512x64xf32> -> vector<512x64xf32>
    %c0_3 = arith.constant 0 : index
    %c0_4 = arith.constant 0 : index
    %3 = vector.load %arg3[%c0_3, %c0_4] : memref<1x64xf32, #tpu.memory_space<vmem>>, vector<1x64xf32>
    %4 = vector.broadcast %3 : vector<1x64xf32> to vector<512x64xf32>
    %5 = arith.addf %2, %4 : vector<512x64xf32>
    %c0_5 = arith.constant 0 : index
    %c0_6 = arith.constant 0 : index
    %6 = vector.load %arg4[%c0_5, %c0_6] : memref<512x64xbf16, #tpu.memory_space<vmem>>, vector<512x64xbf16>
    %7 = arith.extf %6 : vector<512x64xbf16> to vector<512x64xf32>
    %8 = arith.addf %5, %7 : vector<512x64xf32>
    %cst_7 = arith.constant 0.000000e+00 : f32
    %9 = vector.broadcast %cst_7 : f32 to vector<512x64xf32>
    %10 = arith.maximumf %8, %9 : vector<512x64xf32>
    %11 = arith.truncf %10 : vector<512x64xf32> to vector<512x64xbf16>
    %c0_8 = arith.constant 0 : index
    %c0_9 = arith.constant 0 : index
    %12 = vector.load %arg5[%c0_8, %c0_9] : memref<512x64xbf16, #tpu.memory_space<vmem>>, vector<512x64xbf16>
    tpu.vector_store %arg5[%c0_8, %c0_9], %11 {strides = array<i32>} : memref<512x64xbf16, #tpu.memory_space<vmem>>, vector<512x64xbf16>,
    return
  }
  func.func @transform_0(%arg0: i32) -> (i32, i32) {
    %c0_i32 = arith.constant 0 : i32
    %c0_i32_0 = arith.constant 0 : i32
    return %arg0, %c0_i32 : i32, i32
  }
  func.func @transform_1(%arg0: i32) -> (i32, i32) {
    %c0_i32 = arith.constant 0 : i32
    %c0_i32_0 = arith.constant 0 : i32
    %c0_i32_1 = arith.constant 0 : i32
    return %c0_i32, %c0_i32_0 : i32, i32
  }
  func.func @transform_2(%arg0: i32) -> (i32, i32) {
    %c0_i32 = arith.constant 0 : i32
    %c0_i32_0 = arith.constant 0 : i32
    %c0_i32_1 = arith.constant 0 : i32
    return %c0_i32, %c0_i32_0 : i32, i32
  }
  func.func @transform_3(%arg0: i32) -> (i32, i32) {
    %c0_i32 = arith.constant 0 : i32
    %c0_i32_0 = arith.constant 0 : i32
    return %arg0, %c0_i32 : i32, i32
  }
  func.func @transform_4(%arg0: i32) -> (i32, i32) {
    %c0_i32 = arith.constant 0 : i32
    %c0_i32_0 = arith.constant 0 : i32
    return %arg0, %c0_i32 : i32, i32
  }
}

module attributes {stable_mosaic.version = 11 : i64} {
  func.func @_mm_kernel(%arg0: i32, %arg1: memref<512x64xbf16, #tpu.memory_space<vmem>>, %arg2: memref<64x32xbf16, #tpu.memory_space<vmem>>, %arg3: memref<1x32xf32, #tpu.memory_space<vmem>>, %arg4: memref<512x32xbf16, #tpu.memory_space<vmem>>) attributes {dimension_semantics = [#tpu.dimension_semantics<parallel>], iteration_bounds = array<i64: 1>, scalar_prefetch = 0 : i64, scratch_operands = 0 : i64, tpu.core_type = #tpu.core_type<tc>, window_params = [{transform_indices = @transform_0, window_bounds = array<i64: 512, 64>}, {pipeline_mode = #tpu.pipeline_mode<synchronous>, transform_indices = @transform_1, window_bounds = array<i64: 64, 32>}, {pipeline_mode = #tpu.pipeline_mode<synchronous>, transform_indices = @transform_2, window_bounds = array<i64: 1, 32>}, {transform_indices = @transform_3, window_bounds = array<i64: 512, 32>}]} {
    %c0 = arith.constant 0 : index
    %c0_0 = arith.constant 0 : index
    %0 = vector.load %arg1[%c0, %c0_0] : memref<512x64xbf16, #tpu.memory_space<vmem>>, vector<512x64xbf16>
    %c0_1 = arith.constant 0 : index
    %c0_2 = arith.constant 0 : index
    %1 = vector.load %arg2[%c0_1, %c0_2] : memref<64x32xbf16, #tpu.memory_space<vmem>>, vector<64x32xbf16>
    %cst = arith.constant dense<0.000000e+00> : vector<512x32xf32>
    %2 = tpu.matmul %0, %1, %cst {dimension_numbers = #tpu.dot_dimension_numbers<[1], [0], [0], [1], [0, 0, 1, 1], [], []>} : vector<512x64xbf16>, vector<64x32xbf16>, vector<512x32xf32> -> vector<512x32xf32>
    %c0_3 = arith.constant 0 : index
    %c0_4 = arith.constant 0 : index
    %3 = vector.load %arg3[%c0_3, %c0_4] : memref<1x32xf32, #tpu.memory_space<vmem>>, vector<1x32xf32>
    %4 = vector.broadcast %3 : vector<1x32xf32> to vector<512x32xf32>
    %5 = arith.addf %2, %4 : vector<512x32xf32>
    %cst_5 = arith.constant 0.000000e+00 : f32
    %6 = vector.broadcast %cst_5 : f32 to vector<512x32xf32>
    %7 = arith.maximumf %5, %6 : vector<512x32xf32>
    %8 = arith.truncf %7 : vector<512x32xf32> to vector<512x32xbf16>
    %c0_6 = arith.constant 0 : index
    %c0_7 = arith.constant 0 : index
    %9 = vector.load %arg4[%c0_6, %c0_7] : memref<512x32xbf16, #tpu.memory_space<vmem>>, vector<512x32xbf16>
    tpu.vector_store %arg4[%c0_6, %c0_7], %8 {strides = array<i32>} : memref<512x32xbf16, #tpu.memory_space<vmem>>, vector<512x32xbf16>,
    return
  }
  func.func @transform_0(%arg0: i32) -> (i32, i32) {
    %c0_i32 = arith.constant 0 : i32
    %c0_i32_0 = arith.constant 0 : i32
    return %arg0, %c0_i32 : i32, i32
  }
  func.func @transform_1(%arg0: i32) -> (i32, i32) {
    %c0_i32 = arith.constant 0 : i32
    %c0_i32_0 = arith.constant 0 : i32
    %c0_i32_1 = arith.constant 0 : i32
    return %c0_i32, %c0_i32_0 : i32, i32
  }
  func.func @transform_2(%arg0: i32) -> (i32, i32) {
    %c0_i32 = arith.constant 0 : i32
    %c0_i32_0 = arith.constant 0 : i32
    %c0_i32_1 = arith.constant 0 : i32
    return %c0_i32, %c0_i32_0 : i32, i32
  }
  func.func @transform_3(%arg0: i32) -> (i32, i32) {
    %c0_i32 = arith.constant 0 : i32
    %c0_i32_0 = arith.constant 0 : i32
    return %arg0, %c0_i32 : i32, i32
  }
}

module attributes {stable_mosaic.version = 11 : i64} {
  func.func @_mm_kernel(%arg0: i32, %arg1: memref<128x64xbf16, #tpu.memory_space<vmem>>, %arg2: memref<64x128xbf16, #tpu.memory_space<vmem>>, %arg3: memref<1x128xf32, #tpu.memory_space<vmem>>, %arg4: memref<128x128xbf16, #tpu.memory_space<vmem>>) attributes {dimension_semantics = [#tpu.dimension_semantics<parallel>], iteration_bounds = array<i64: 1>, scalar_prefetch = 0 : i64, scratch_operands = 0 : i64, tpu.core_type = #tpu.core_type<tc>, window_params = [{transform_indices = @transform_0, window_bounds = array<i64: 128, 64>}, {pipeline_mode = #tpu.pipeline_mode<synchronous>, transform_indices = @transform_1, window_bounds = array<i64: 64, 128>}, {pipeline_mode = #tpu.pipeline_mode<synchronous>, transform_indices = @transform_2, window_bounds = array<i64: 1, 128>}, {transform_indices = @transform_3, window_bounds = array<i64: 128, 128>}]} {
    %c0 = arith.constant 0 : index
    %c0_0 = arith.constant 0 : index
    %0 = vector.load %arg1[%c0, %c0_0] : memref<128x64xbf16, #tpu.memory_space<vmem>>, vector<128x64xbf16>
    %c0_1 = arith.constant 0 : index
    %c0_2 = arith.constant 0 : index
    %1 = vector.load %arg2[%c0_1, %c0_2] : memref<64x128xbf16, #tpu.memory_space<vmem>>, vector<64x128xbf16>
    %cst = arith.constant dense<0.000000e+00> : vector<128x128xf32>
    %2 = tpu.matmul %0, %1, %cst {dimension_numbers = #tpu.dot_dimension_numbers<[1], [0], [0], [1], [0, 0, 1, 1], [], []>} : vector<128x64xbf16>, vector<64x128xbf16>, vector<128x128xf32> -> vector<128x128xf32>
    %c0_3 = arith.constant 0 : index
    %c0_4 = arith.constant 0 : index
    %3 = vector.load %arg3[%c0_3, %c0_4] : memref<1x128xf32, #tpu.memory_space<vmem>>, vector<1x128xf32>
    %4 = vector.broadcast %3 : vector<1x128xf32> to vector<128x128xf32>
    %5 = arith.addf %2, %4 : vector<128x128xf32>
    %6 = arith.truncf %5 : vector<128x128xf32> to vector<128x128xbf16>
    %c0_5 = arith.constant 0 : index
    %c0_6 = arith.constant 0 : index
    %7 = vector.load %arg4[%c0_5, %c0_6] : memref<128x128xbf16, #tpu.memory_space<vmem>>, vector<128x128xbf16>
    tpu.vector_store %arg4[%c0_5, %c0_6], %6 {strides = array<i32>} : memref<128x128xbf16, #tpu.memory_space<vmem>>, vector<128x128xbf16>,
    return
  }
  func.func @transform_0(%arg0: i32) -> (i32, i32) {
    %c0_i32 = arith.constant 0 : i32
    %c0_i32_0 = arith.constant 0 : i32
    return %arg0, %c0_i32 : i32, i32
  }
  func.func @transform_1(%arg0: i32) -> (i32, i32) {
    %c0_i32 = arith.constant 0 : i32
    %c0_i32_0 = arith.constant 0 : i32
    %c0_i32_1 = arith.constant 0 : i32
    return %c0_i32, %c0_i32_0 : i32, i32
  }
  func.func @transform_2(%arg0: i32) -> (i32, i32) {
    %c0_i32 = arith.constant 0 : i32
    %c0_i32_0 = arith.constant 0 : i32
    %c0_i32_1 = arith.constant 0 : i32
    return %c0_i32, %c0_i32_0 : i32, i32
  }
  func.func @transform_3(%arg0: i32) -> (i32, i32) {
    %c0_i32 = arith.constant 0 : i32
    %c0_i32_0 = arith.constant 0 : i32
    return %arg0, %c0_i32 : i32, i32
  }
}

module attributes {stable_mosaic.version = 11 : i64} {
  func.func @_mm_kernel(%arg0: i32, %arg1: memref<128x288xbf16, #tpu.memory_space<vmem>>, %arg2: memref<288x32xbf16, #tpu.memory_space<vmem>>, %arg3: memref<1x32xf32, #tpu.memory_space<vmem>>, %arg4: memref<128x32xbf16, #tpu.memory_space<vmem>>) attributes {dimension_semantics = [#tpu.dimension_semantics<parallel>], iteration_bounds = array<i64: 1>, scalar_prefetch = 0 : i64, scratch_operands = 0 : i64, tpu.core_type = #tpu.core_type<tc>, window_params = [{transform_indices = @transform_0, window_bounds = array<i64: 128, 288>}, {pipeline_mode = #tpu.pipeline_mode<synchronous>, transform_indices = @transform_1, window_bounds = array<i64: 288, 32>}, {pipeline_mode = #tpu.pipeline_mode<synchronous>, transform_indices = @transform_2, window_bounds = array<i64: 1, 32>}, {transform_indices = @transform_3, window_bounds = array<i64: 128, 32>}]} {
    %c0 = arith.constant 0 : index
    %c0_0 = arith.constant 0 : index
    %0 = vector.load %arg1[%c0, %c0_0] : memref<128x288xbf16, #tpu.memory_space<vmem>>, vector<128x288xbf16>
    %c0_1 = arith.constant 0 : index
    %c0_2 = arith.constant 0 : index
    %1 = vector.load %arg2[%c0_1, %c0_2] : memref<288x32xbf16, #tpu.memory_space<vmem>>, vector<288x32xbf16>
    %cst = arith.constant dense<0.000000e+00> : vector<128x32xf32>
    %2 = tpu.matmul %0, %1, %cst {dimension_numbers = #tpu.dot_dimension_numbers<[1], [0], [0], [1], [0, 0, 1, 1], [], []>} : vector<128x288xbf16>, vector<288x32xbf16>, vector<128x32xf32> -> vector<128x32xf32>
    %c0_3 = arith.constant 0 : index
    %c0_4 = arith.constant 0 : index
    %3 = vector.load %arg3[%c0_3, %c0_4] : memref<1x32xf32, #tpu.memory_space<vmem>>, vector<1x32xf32>
    %4 = vector.broadcast %3 : vector<1x32xf32> to vector<128x32xf32>
    %5 = arith.addf %2, %4 : vector<128x32xf32>
    %cst_5 = arith.constant 0.000000e+00 : f32
    %6 = vector.broadcast %cst_5 : f32 to vector<128x32xf32>
    %7 = arith.maximumf %5, %6 : vector<128x32xf32>
    %8 = arith.truncf %7 : vector<128x32xf32> to vector<128x32xbf16>
    %c0_6 = arith.constant 0 : index
    %c0_7 = arith.constant 0 : index
    %9 = vector.load %arg4[%c0_6, %c0_7] : memref<128x32xbf16, #tpu.memory_space<vmem>>, vector<128x32xbf16>
    tpu.vector_store %arg4[%c0_6, %c0_7], %8 {strides = array<i32>} : memref<128x32xbf16, #tpu.memory_space<vmem>>, vector<128x32xbf16>,
    return
  }
  func.func @transform_0(%arg0: i32) -> (i32, i32) {
    %c0_i32 = arith.constant 0 : i32
    %c0_i32_0 = arith.constant 0 : i32
    return %arg0, %c0_i32 : i32, i32
  }
  func.func @transform_1(%arg0: i32) -> (i32, i32) {
    %c0_i32 = arith.constant 0 : i32
    %c0_i32_0 = arith.constant 0 : i32
    %c0_i32_1 = arith.constant 0 : i32
    return %c0_i32, %c0_i32_0 : i32, i32
  }
  func.func @transform_2(%arg0: i32) -> (i32, i32) {
    %c0_i32 = arith.constant 0 : i32
    %c0_i32_0 = arith.constant 0 : i32
    %c0_i32_1 = arith.constant 0 : i32
    return %c0_i32, %c0_i32_0 : i32, i32
  }
  func.func @transform_3(%arg0: i32) -> (i32, i32) {
    %c0_i32 = arith.constant 0 : i32
    %c0_i32_0 = arith.constant 0 : i32
    return %arg0, %c0_i32 : i32, i32
  }
}

module attributes {stable_mosaic.version = 11 : i64} {
  func.func @_mm_res_kernel(%arg0: i32, %arg1: memref<128x32xbf16, #tpu.memory_space<vmem>>, %arg2: memref<32x128xbf16, #tpu.memory_space<vmem>>, %arg3: memref<1x128xf32, #tpu.memory_space<vmem>>, %arg4: memref<128x128xbf16, #tpu.memory_space<vmem>>, %arg5: memref<128x128xbf16, #tpu.memory_space<vmem>>) attributes {dimension_semantics = [#tpu.dimension_semantics<parallel>], iteration_bounds = array<i64: 1>, scalar_prefetch = 0 : i64, scratch_operands = 0 : i64, tpu.core_type = #tpu.core_type<tc>, window_params = [{transform_indices = @transform_0, window_bounds = array<i64: 128, 32>}, {pipeline_mode = #tpu.pipeline_mode<synchronous>, transform_indices = @transform_1, window_bounds = array<i64: 32, 128>}, {pipeline_mode = #tpu.pipeline_mode<synchronous>, transform_indices = @transform_2, window_bounds = array<i64: 1, 128>}, {transform_indices = @transform_3, window_bounds = array<i64: 128, 128>}, {transform_indices = @transform_4, window_bounds = array<i64: 128, 128>}]} {
    %c0 = arith.constant 0 : index
    %c0_0 = arith.constant 0 : index
    %0 = vector.load %arg1[%c0, %c0_0] : memref<128x32xbf16, #tpu.memory_space<vmem>>, vector<128x32xbf16>
    %c0_1 = arith.constant 0 : index
    %c0_2 = arith.constant 0 : index
    %1 = vector.load %arg2[%c0_1, %c0_2] : memref<32x128xbf16, #tpu.memory_space<vmem>>, vector<32x128xbf16>
    %cst = arith.constant dense<0.000000e+00> : vector<128x128xf32>
    %2 = tpu.matmul %0, %1, %cst {dimension_numbers = #tpu.dot_dimension_numbers<[1], [0], [0], [1], [0, 0, 1, 1], [], []>} : vector<128x32xbf16>, vector<32x128xbf16>, vector<128x128xf32> -> vector<128x128xf32>
    %c0_3 = arith.constant 0 : index
    %c0_4 = arith.constant 0 : index
    %3 = vector.load %arg3[%c0_3, %c0_4] : memref<1x128xf32, #tpu.memory_space<vmem>>, vector<1x128xf32>
    %4 = vector.broadcast %3 : vector<1x128xf32> to vector<128x128xf32>
    %5 = arith.addf %2, %4 : vector<128x128xf32>
    %c0_5 = arith.constant 0 : index
    %c0_6 = arith.constant 0 : index
    %6 = vector.load %arg4[%c0_5, %c0_6] : memref<128x128xbf16, #tpu.memory_space<vmem>>, vector<128x128xbf16>
    %7 = arith.extf %6 : vector<128x128xbf16> to vector<128x128xf32>
    %8 = arith.addf %5, %7 : vector<128x128xf32>
    %cst_7 = arith.constant 0.000000e+00 : f32
    %9 = vector.broadcast %cst_7 : f32 to vector<128x128xf32>
    %10 = arith.maximumf %8, %9 : vector<128x128xf32>
    %11 = arith.truncf %10 : vector<128x128xf32> to vector<128x128xbf16>
    %c0_8 = arith.constant 0 : index
    %c0_9 = arith.constant 0 : index
    %12 = vector.load %arg5[%c0_8, %c0_9] : memref<128x128xbf16, #tpu.memory_space<vmem>>, vector<128x128xbf16>
    tpu.vector_store %arg5[%c0_8, %c0_9], %11 {strides = array<i32>} : memref<128x128xbf16, #tpu.memory_space<vmem>>, vector<128x128xbf16>,
    return
  }
  func.func @transform_0(%arg0: i32) -> (i32, i32) {
    %c0_i32 = arith.constant 0 : i32
    %c0_i32_0 = arith.constant 0 : i32
    return %arg0, %c0_i32 : i32, i32
  }
  func.func @transform_1(%arg0: i32) -> (i32, i32) {
    %c0_i32 = arith.constant 0 : i32
    %c0_i32_0 = arith.constant 0 : i32
    %c0_i32_1 = arith.constant 0 : i32
    return %c0_i32, %c0_i32_0 : i32, i32
  }
  func.func @transform_2(%arg0: i32) -> (i32, i32) {
    %c0_i32 = arith.constant 0 : i32
    %c0_i32_0 = arith.constant 0 : i32
    %c0_i32_1 = arith.constant 0 : i32
    return %c0_i32, %c0_i32_0 : i32, i32
  }
  func.func @transform_3(%arg0: i32) -> (i32, i32) {
    %c0_i32 = arith.constant 0 : i32
    %c0_i32_0 = arith.constant 0 : i32
    return %arg0, %c0_i32 : i32, i32
  }
  func.func @transform_4(%arg0: i32) -> (i32, i32) {
    %c0_i32 = arith.constant 0 : i32
    %c0_i32_0 = arith.constant 0 : i32
    return %arg0, %c0_i32 : i32, i32
  }
}

module attributes {stable_mosaic.version = 11 : i64} {
  func.func @_mm_kernel(%arg0: i32, %arg1: memref<128x128xbf16, #tpu.memory_space<vmem>>, %arg2: memref<128x64xbf16, #tpu.memory_space<vmem>>, %arg3: memref<1x64xf32, #tpu.memory_space<vmem>>, %arg4: memref<128x64xbf16, #tpu.memory_space<vmem>>) attributes {dimension_semantics = [#tpu.dimension_semantics<parallel>], iteration_bounds = array<i64: 1>, scalar_prefetch = 0 : i64, scratch_operands = 0 : i64, tpu.core_type = #tpu.core_type<tc>, window_params = [{transform_indices = @transform_0, window_bounds = array<i64: 128, 128>}, {pipeline_mode = #tpu.pipeline_mode<synchronous>, transform_indices = @transform_1, window_bounds = array<i64: 128, 64>}, {pipeline_mode = #tpu.pipeline_mode<synchronous>, transform_indices = @transform_2, window_bounds = array<i64: 1, 64>}, {transform_indices = @transform_3, window_bounds = array<i64: 128, 64>}]} {
    %c0 = arith.constant 0 : index
    %c0_0 = arith.constant 0 : index
    %0 = vector.load %arg1[%c0, %c0_0] : memref<128x128xbf16, #tpu.memory_space<vmem>>, vector<128x128xbf16>
    %c0_1 = arith.constant 0 : index
    %c0_2 = arith.constant 0 : index
    %1 = vector.load %arg2[%c0_1, %c0_2] : memref<128x64xbf16, #tpu.memory_space<vmem>>, vector<128x64xbf16>
    %cst = arith.constant dense<0.000000e+00> : vector<128x64xf32>
    %2 = tpu.matmul %0, %1, %cst {dimension_numbers = #tpu.dot_dimension_numbers<[1], [0], [0], [1], [0, 0, 1, 1], [], []>} : vector<128x128xbf16>, vector<128x64xbf16>, vector<128x64xf32> -> vector<128x64xf32>
    %c0_3 = arith.constant 0 : index
    %c0_4 = arith.constant 0 : index
    %3 = vector.load %arg3[%c0_3, %c0_4] : memref<1x64xf32, #tpu.memory_space<vmem>>, vector<1x64xf32>
    %4 = vector.broadcast %3 : vector<1x64xf32> to vector<128x64xf32>
    %5 = arith.addf %2, %4 : vector<128x64xf32>
    %cst_5 = arith.constant 0.000000e+00 : f32
    %6 = vector.broadcast %cst_5 : f32 to vector<128x64xf32>
    %7 = arith.maximumf %5, %6 : vector<128x64xf32>
    %8 = arith.truncf %7 : vector<128x64xf32> to vector<128x64xbf16>
    %c0_6 = arith.constant 0 : index
    %c0_7 = arith.constant 0 : index
    %9 = vector.load %arg4[%c0_6, %c0_7] : memref<128x64xbf16, #tpu.memory_space<vmem>>, vector<128x64xbf16>
    tpu.vector_store %arg4[%c0_6, %c0_7], %8 {strides = array<i32>} : memref<128x64xbf16, #tpu.memory_space<vmem>>, vector<128x64xbf16>,
    return
  }
  func.func @transform_0(%arg0: i32) -> (i32, i32) {
    %c0_i32 = arith.constant 0 : i32
    %c0_i32_0 = arith.constant 0 : i32
    return %arg0, %c0_i32 : i32, i32
  }
  func.func @transform_1(%arg0: i32) -> (i32, i32) {
    %c0_i32 = arith.constant 0 : i32
    %c0_i32_0 = arith.constant 0 : i32
    %c0_i32_1 = arith.constant 0 : i32
    return %c0_i32, %c0_i32_0 : i32, i32
  }
  func.func @transform_2(%arg0: i32) -> (i32, i32) {
    %c0_i32 = arith.constant 0 : i32
    %c0_i32_0 = arith.constant 0 : i32
    %c0_i32_1 = arith.constant 0 : i32
    return %c0_i32, %c0_i32_0 : i32, i32
  }
  func.func @transform_3(%arg0: i32) -> (i32, i32) {
    %c0_i32 = arith.constant 0 : i32
    %c0_i32_0 = arith.constant 0 : i32
    return %arg0, %c0_i32 : i32, i32
  }
}

module attributes {stable_mosaic.version = 11 : i64} {
  func.func @_mm_kernel(%arg0: i32, %arg1: memref<32x576xbf16, #tpu.memory_space<vmem>>, %arg2: memref<576x64xbf16, #tpu.memory_space<vmem>>, %arg3: memref<1x64xf32, #tpu.memory_space<vmem>>, %arg4: memref<32x64xbf16, #tpu.memory_space<vmem>>) attributes {dimension_semantics = [#tpu.dimension_semantics<parallel>], iteration_bounds = array<i64: 1>, scalar_prefetch = 0 : i64, scratch_operands = 0 : i64, tpu.core_type = #tpu.core_type<tc>, window_params = [{transform_indices = @transform_0, window_bounds = array<i64: 32, 576>}, {pipeline_mode = #tpu.pipeline_mode<synchronous>, transform_indices = @transform_1, window_bounds = array<i64: 576, 64>}, {pipeline_mode = #tpu.pipeline_mode<synchronous>, transform_indices = @transform_2, window_bounds = array<i64: 1, 64>}, {transform_indices = @transform_3, window_bounds = array<i64: 32, 64>}]} {
    %c0 = arith.constant 0 : index
    %c0_0 = arith.constant 0 : index
    %0 = vector.load %arg1[%c0, %c0_0] : memref<32x576xbf16, #tpu.memory_space<vmem>>, vector<32x576xbf16>
    %c0_1 = arith.constant 0 : index
    %c0_2 = arith.constant 0 : index
    %1 = vector.load %arg2[%c0_1, %c0_2] : memref<576x64xbf16, #tpu.memory_space<vmem>>, vector<576x64xbf16>
    %cst = arith.constant dense<0.000000e+00> : vector<32x64xf32>
    %2 = tpu.matmul %0, %1, %cst {dimension_numbers = #tpu.dot_dimension_numbers<[1], [0], [0], [1], [0, 0, 1, 1], [], []>} : vector<32x576xbf16>, vector<576x64xbf16>, vector<32x64xf32> -> vector<32x64xf32>
    %c0_3 = arith.constant 0 : index
    %c0_4 = arith.constant 0 : index
    %3 = vector.load %arg3[%c0_3, %c0_4] : memref<1x64xf32, #tpu.memory_space<vmem>>, vector<1x64xf32>
    %4 = vector.broadcast %3 : vector<1x64xf32> to vector<32x64xf32>
    %5 = arith.addf %2, %4 : vector<32x64xf32>
    %cst_5 = arith.constant 0.000000e+00 : f32
    %6 = vector.broadcast %cst_5 : f32 to vector<32x64xf32>
    %7 = arith.maximumf %5, %6 : vector<32x64xf32>
    %8 = arith.truncf %7 : vector<32x64xf32> to vector<32x64xbf16>
    %c0_6 = arith.constant 0 : index
    %c0_7 = arith.constant 0 : index
    %9 = vector.load %arg4[%c0_6, %c0_7] : memref<32x64xbf16, #tpu.memory_space<vmem>>, vector<32x64xbf16>
    tpu.vector_store %arg4[%c0_6, %c0_7], %8 {strides = array<i32>} : memref<32x64xbf16, #tpu.memory_space<vmem>>, vector<32x64xbf16>,
    return
  }
  func.func @transform_0(%arg0: i32) -> (i32, i32) {
    %c0_i32 = arith.constant 0 : i32
    %c0_i32_0 = arith.constant 0 : i32
    return %arg0, %c0_i32 : i32, i32
  }
  func.func @transform_1(%arg0: i32) -> (i32, i32) {
    %c0_i32 = arith.constant 0 : i32
    %c0_i32_0 = arith.constant 0 : i32
    %c0_i32_1 = arith.constant 0 : i32
    return %c0_i32, %c0_i32_0 : i32, i32
  }
  func.func @transform_2(%arg0: i32) -> (i32, i32) {
    %c0_i32 = arith.constant 0 : i32
    %c0_i32_0 = arith.constant 0 : i32
    %c0_i32_1 = arith.constant 0 : i32
    return %c0_i32, %c0_i32_0 : i32, i32
  }
  func.func @transform_3(%arg0: i32) -> (i32, i32) {
    %c0_i32 = arith.constant 0 : i32
    %c0_i32_0 = arith.constant 0 : i32
    return %arg0, %c0_i32 : i32, i32
  }
}

module attributes {stable_mosaic.version = 11 : i64} {
  func.func @_mm_res_kernel(%arg0: i32, %arg1: memref<32x64xbf16, #tpu.memory_space<vmem>>, %arg2: memref<64x256xbf16, #tpu.memory_space<vmem>>, %arg3: memref<1x256xf32, #tpu.memory_space<vmem>>, %arg4: memref<32x256xbf16, #tpu.memory_space<vmem>>, %arg5: memref<32x256xbf16, #tpu.memory_space<vmem>>) attributes {dimension_semantics = [#tpu.dimension_semantics<parallel>], iteration_bounds = array<i64: 1>, scalar_prefetch = 0 : i64, scratch_operands = 0 : i64, tpu.core_type = #tpu.core_type<tc>, window_params = [{transform_indices = @transform_0, window_bounds = array<i64: 32, 64>}, {pipeline_mode = #tpu.pipeline_mode<synchronous>, transform_indices = @transform_1, window_bounds = array<i64: 64, 256>}, {pipeline_mode = #tpu.pipeline_mode<synchronous>, transform_indices = @transform_2, window_bounds = array<i64: 1, 256>}, {transform_indices = @transform_3, window_bounds = array<i64: 32, 256>}, {transform_indices = @transform_4, window_bounds = array<i64: 32, 256>}]} {
    %c0 = arith.constant 0 : index
    %c0_0 = arith.constant 0 : index
    %0 = vector.load %arg1[%c0, %c0_0] : memref<32x64xbf16, #tpu.memory_space<vmem>>, vector<32x64xbf16>
    %c0_1 = arith.constant 0 : index
    %c0_2 = arith.constant 0 : index
    %1 = vector.load %arg2[%c0_1, %c0_2] : memref<64x256xbf16, #tpu.memory_space<vmem>>, vector<64x256xbf16>
    %cst = arith.constant dense<0.000000e+00> : vector<32x256xf32>
    %2 = tpu.matmul %0, %1, %cst {dimension_numbers = #tpu.dot_dimension_numbers<[1], [0], [0], [1], [0, 0, 1, 1], [], []>} : vector<32x64xbf16>, vector<64x256xbf16>, vector<32x256xf32> -> vector<32x256xf32>
    %c0_3 = arith.constant 0 : index
    %c0_4 = arith.constant 0 : index
    %3 = vector.load %arg3[%c0_3, %c0_4] : memref<1x256xf32, #tpu.memory_space<vmem>>, vector<1x256xf32>
    %4 = vector.broadcast %3 : vector<1x256xf32> to vector<32x256xf32>
    %5 = arith.addf %2, %4 : vector<32x256xf32>
    %c0_5 = arith.constant 0 : index
    %c0_6 = arith.constant 0 : index
    %6 = vector.load %arg4[%c0_5, %c0_6] : memref<32x256xbf16, #tpu.memory_space<vmem>>, vector<32x256xbf16>
    %7 = arith.extf %6 : vector<32x256xbf16> to vector<32x256xf32>
    %8 = arith.addf %5, %7 : vector<32x256xf32>
    %cst_7 = arith.constant 0.000000e+00 : f32
    %9 = vector.broadcast %cst_7 : f32 to vector<32x256xf32>
    %10 = arith.maximumf %8, %9 : vector<32x256xf32>
    %11 = arith.truncf %10 : vector<32x256xf32> to vector<32x256xbf16>
    %c0_8 = arith.constant 0 : index
    %c0_9 = arith.constant 0 : index
    %12 = vector.load %arg5[%c0_8, %c0_9] : memref<32x256xbf16, #tpu.memory_space<vmem>>, vector<32x256xbf16>
    tpu.vector_store %arg5[%c0_8, %c0_9], %11 {strides = array<i32>} : memref<32x256xbf16, #tpu.memory_space<vmem>>, vector<32x256xbf16>,
    return
  }
  func.func @transform_0(%arg0: i32) -> (i32, i32) {
    %c0_i32 = arith.constant 0 : i32
    %c0_i32_0 = arith.constant 0 : i32
    return %arg0, %c0_i32 : i32, i32
  }
  func.func @transform_1(%arg0: i32) -> (i32, i32) {
    %c0_i32 = arith.constant 0 : i32
    %c0_i32_0 = arith.constant 0 : i32
    %c0_i32_1 = arith.constant 0 : i32
    return %c0_i32, %c0_i32_0 : i32, i32
  }
  func.func @transform_2(%arg0: i32) -> (i32, i32) {
    %c0_i32 = arith.constant 0 : i32
    %c0_i32_0 = arith.constant 0 : i32
    %c0_i32_1 = arith.constant 0 : i32
    return %c0_i32, %c0_i32_0 : i32, i32
  }
  func.func @transform_3(%arg0: i32) -> (i32, i32) {
    %c0_i32 = arith.constant 0 : i32
    %c0_i32_0 = arith.constant 0 : i32
    return %arg0, %c0_i32 : i32, i32
  }
  func.func @transform_4(%arg0: i32) -> (i32, i32) {
    %c0_i32 = arith.constant 0 : i32
    %c0_i32_0 = arith.constant 0 : i32
    return %arg0, %c0_i32 : i32, i32
  }
}

module attributes {stable_mosaic.version = 11 : i64} {
  func.func @_mm_kernel(%arg0: i32, %arg1: memref<32x128xbf16, #tpu.memory_space<vmem>>, %arg2: memref<128x256xbf16, #tpu.memory_space<vmem>>, %arg3: memref<1x256xf32, #tpu.memory_space<vmem>>, %arg4: memref<32x256xbf16, #tpu.memory_space<vmem>>) attributes {dimension_semantics = [#tpu.dimension_semantics<parallel>], iteration_bounds = array<i64: 1>, scalar_prefetch = 0 : i64, scratch_operands = 0 : i64, tpu.core_type = #tpu.core_type<tc>, window_params = [{transform_indices = @transform_0, window_bounds = array<i64: 32, 128>}, {pipeline_mode = #tpu.pipeline_mode<synchronous>, transform_indices = @transform_1, window_bounds = array<i64: 128, 256>}, {pipeline_mode = #tpu.pipeline_mode<synchronous>, transform_indices = @transform_2, window_bounds = array<i64: 1, 256>}, {transform_indices = @transform_3, window_bounds = array<i64: 32, 256>}]} {
    %c0 = arith.constant 0 : index
    %c0_0 = arith.constant 0 : index
    %0 = vector.load %arg1[%c0, %c0_0] : memref<32x128xbf16, #tpu.memory_space<vmem>>, vector<32x128xbf16>
    %c0_1 = arith.constant 0 : index
    %c0_2 = arith.constant 0 : index
    %1 = vector.load %arg2[%c0_1, %c0_2] : memref<128x256xbf16, #tpu.memory_space<vmem>>, vector<128x256xbf16>
    %cst = arith.constant dense<0.000000e+00> : vector<32x256xf32>
    %2 = tpu.matmul %0, %1, %cst {dimension_numbers = #tpu.dot_dimension_numbers<[1], [0], [0], [1], [0, 0, 1, 1], [], []>} : vector<32x128xbf16>, vector<128x256xbf16>, vector<32x256xf32> -> vector<32x256xf32>
    %c0_3 = arith.constant 0 : index
    %c0_4 = arith.constant 0 : index
    %3 = vector.load %arg3[%c0_3, %c0_4] : memref<1x256xf32, #tpu.memory_space<vmem>>, vector<1x256xf32>
    %4 = vector.broadcast %3 : vector<1x256xf32> to vector<32x256xf32>
    %5 = arith.addf %2, %4 : vector<32x256xf32>
    %6 = arith.truncf %5 : vector<32x256xf32> to vector<32x256xbf16>
    %c0_5 = arith.constant 0 : index
    %c0_6 = arith.constant 0 : index
    %7 = vector.load %arg4[%c0_5, %c0_6] : memref<32x256xbf16, #tpu.memory_space<vmem>>, vector<32x256xbf16>
    tpu.vector_store %arg4[%c0_5, %c0_6], %6 {strides = array<i32>} : memref<32x256xbf16, #tpu.memory_space<vmem>>, vector<32x256xbf16>,
    return
  }
  func.func @transform_0(%arg0: i32) -> (i32, i32) {
    %c0_i32 = arith.constant 0 : i32
    %c0_i32_0 = arith.constant 0 : i32
    return %arg0, %c0_i32 : i32, i32
  }
  func.func @transform_1(%arg0: i32) -> (i32, i32) {
    %c0_i32 = arith.constant 0 : i32
    %c0_i32_0 = arith.constant 0 : i32
    %c0_i32_1 = arith.constant 0 : i32
    return %c0_i32, %c0_i32_0 : i32, i32
  }
  func.func @transform_2(%arg0: i32) -> (i32, i32) {
    %c0_i32 = arith.constant 0 : i32
    %c0_i32_0 = arith.constant 0 : i32
    %c0_i32_1 = arith.constant 0 : i32
    return %c0_i32, %c0_i32_0 : i32, i32
  }
  func.func @transform_3(%arg0: i32) -> (i32, i32) {
    %c0_i32 = arith.constant 0 : i32
    %c0_i32_0 = arith.constant 0 : i32
    return %arg0, %c0_i32 : i32, i32
  }
}

module attributes {stable_mosaic.version = 11 : i64} {
  func.func @_mm_kernel(%arg0: i32, %arg1: memref<32x256xbf16, #tpu.memory_space<vmem>>, %arg2: memref<256x64xbf16, #tpu.memory_space<vmem>>, %arg3: memref<1x64xf32, #tpu.memory_space<vmem>>, %arg4: memref<32x64xbf16, #tpu.memory_space<vmem>>) attributes {dimension_semantics = [#tpu.dimension_semantics<parallel>], iteration_bounds = array<i64: 1>, scalar_prefetch = 0 : i64, scratch_operands = 0 : i64, tpu.core_type = #tpu.core_type<tc>, window_params = [{transform_indices = @transform_0, window_bounds = array<i64: 32, 256>}, {pipeline_mode = #tpu.pipeline_mode<synchronous>, transform_indices = @transform_1, window_bounds = array<i64: 256, 64>}, {pipeline_mode = #tpu.pipeline_mode<synchronous>, transform_indices = @transform_2, window_bounds = array<i64: 1, 64>}, {transform_indices = @transform_3, window_bounds = array<i64: 32, 64>}]} {
    %c0 = arith.constant 0 : index
    %c0_0 = arith.constant 0 : index
    %0 = vector.load %arg1[%c0, %c0_0] : memref<32x256xbf16, #tpu.memory_space<vmem>>, vector<32x256xbf16>
    %c0_1 = arith.constant 0 : index
    %c0_2 = arith.constant 0 : index
    %1 = vector.load %arg2[%c0_1, %c0_2] : memref<256x64xbf16, #tpu.memory_space<vmem>>, vector<256x64xbf16>
    %cst = arith.constant dense<0.000000e+00> : vector<32x64xf32>
    %2 = tpu.matmul %0, %1, %cst {dimension_numbers = #tpu.dot_dimension_numbers<[1], [0], [0], [1], [0, 0, 1, 1], [], []>} : vector<32x256xbf16>, vector<256x64xbf16>, vector<32x64xf32> -> vector<32x64xf32>
    %c0_3 = arith.constant 0 : index
    %c0_4 = arith.constant 0 : index
    %3 = vector.load %arg3[%c0_3, %c0_4] : memref<1x64xf32, #tpu.memory_space<vmem>>, vector<1x64xf32>
    %4 = vector.broadcast %3 : vector<1x64xf32> to vector<32x64xf32>
    %5 = arith.addf %2, %4 : vector<32x64xf32>
    %cst_5 = arith.constant 0.000000e+00 : f32
    %6 = vector.broadcast %cst_5 : f32 to vector<32x64xf32>
    %7 = arith.maximumf %5, %6 : vector<32x64xf32>
    %8 = arith.truncf %7 : vector<32x64xf32> to vector<32x64xbf16>
    %c0_6 = arith.constant 0 : index
    %c0_7 = arith.constant 0 : index
    %9 = vector.load %arg4[%c0_6, %c0_7] : memref<32x64xbf16, #tpu.memory_space<vmem>>, vector<32x64xbf16>
    tpu.vector_store %arg4[%c0_6, %c0_7], %8 {strides = array<i32>} : memref<32x64xbf16, #tpu.memory_space<vmem>>, vector<32x64xbf16>,
    return
  }
  func.func @transform_0(%arg0: i32) -> (i32, i32) {
    %c0_i32 = arith.constant 0 : i32
    %c0_i32_0 = arith.constant 0 : i32
    return %arg0, %c0_i32 : i32, i32
  }
  func.func @transform_1(%arg0: i32) -> (i32, i32) {
    %c0_i32 = arith.constant 0 : i32
    %c0_i32_0 = arith.constant 0 : i32
    %c0_i32_1 = arith.constant 0 : i32
    return %c0_i32, %c0_i32_0 : i32, i32
  }
  func.func @transform_2(%arg0: i32) -> (i32, i32) {
    %c0_i32 = arith.constant 0 : i32
    %c0_i32_0 = arith.constant 0 : i32
    %c0_i32_1 = arith.constant 0 : i32
    return %c0_i32, %c0_i32_0 : i32, i32
  }
  func.func @transform_3(%arg0: i32) -> (i32, i32) {
    %c0_i32 = arith.constant 0 : i32
    %c0_i32_0 = arith.constant 0 : i32
    return %arg0, %c0_i32 : i32, i32
  }
}

module attributes {stable_mosaic.version = 11 : i64} {
  func.func @_conv3x3_s1_kernel(%arg0: i32, %arg1: memref<1x42x64xbf16, #tpu.memory_space<vmem>>, %arg2: memref<9x64x64xbf16, #tpu.memory_space<vmem>>, %arg3: memref<1x64xf32, #tpu.memory_space<vmem>>, %arg4: memref<1x24x64xbf16, #tpu.memory_space<vmem>>) attributes {dimension_semantics = [#tpu.dimension_semantics<parallel>], iteration_bounds = array<i64: 2>, scalar_prefetch = 0 : i64, scratch_operands = 0 : i64, tpu.core_type = #tpu.core_type<tc>, window_params = [{transform_indices = @transform_0, window_bounds = array<i64: 1, 42, 64>}, {pipeline_mode = #tpu.pipeline_mode<synchronous>, transform_indices = @transform_1, window_bounds = array<i64: 9, 64, 64>}, {pipeline_mode = #tpu.pipeline_mode<synchronous>, transform_indices = @transform_2, window_bounds = array<i64: 1, 64>}, {transform_indices = @transform_3, window_bounds = array<i64: 1, 24, 64>}]} {
    %cst = arith.constant 0.000000e+00 : f32
    %0 = vector.broadcast %cst : f32 to vector<24x64xf32>
    %c0 = arith.constant 0 : index
    %c0_0 = arith.constant 0 : index
    %c0_1 = arith.constant 0 : index
    %1 = vector.load %arg1[%c0, %c0_0, %c0_1] : memref<1x42x64xbf16, #tpu.memory_space<vmem>>, vector<1x24x64xbf16>
    %2 = vector.shape_cast %1 : vector<1x24x64xbf16> to vector<24x64xbf16>
    %c0_2 = arith.constant 0 : index
    %c0_3 = arith.constant 0 : index
    %c0_4 = arith.constant 0 : index
    %3 = vector.load %arg2[%c0_2, %c0_3, %c0_4] : memref<9x64x64xbf16, #tpu.memory_space<vmem>>, vector<1x64x64xbf16>
    %4 = vector.shape_cast %3 : vector<1x64x64xbf16> to vector<64x64xbf16>
    %cst_5 = arith.constant dense<0.000000e+00> : vector<24x64xf32>
    %5 = tpu.matmul %2, %4, %cst_5 {dimension_numbers = #tpu.dot_dimension_numbers<[1], [0], [0], [1], [0, 0, 1, 1], [], []>} : vector<24x64xbf16>, vector<64x64xbf16>, vector<24x64xf32> -> vector<24x64xf32>
    %6 = arith.addf %0, %5 : vector<24x64xf32>
    %c0_6 = arith.constant 0 : index
    %c1 = arith.constant 1 : index
    %c0_7 = arith.constant 0 : index
    %7 = vector.load %arg1[%c0_6, %c1, %c0_7] : memref<1x42x64xbf16, #tpu.memory_space<vmem>>, vector<1x24x64xbf16>
    %8 = vector.shape_cast %7 : vector<1x24x64xbf16> to vector<24x64xbf16>
    %c1_8 = arith.constant 1 : index
    %c0_9 = arith.constant 0 : index
    %c0_10 = arith.constant 0 : index
    %9 = vector.load %arg2[%c1_8, %c0_9, %c0_10] : memref<9x64x64xbf16, #tpu.memory_space<vmem>>, vector<1x64x64xbf16>
    %10 = vector.shape_cast %9 : vector<1x64x64xbf16> to vector<64x64xbf16>
    %cst_11 = arith.constant dense<0.000000e+00> : vector<24x64xf32>
    %11 = tpu.matmul %8, %10, %cst_11 {dimension_numbers = #tpu.dot_dimension_numbers<[1], [0], [0], [1], [0, 0, 1, 1], [], []>} : vector<24x64xbf16>, vector<64x64xbf16>, vector<24x64xf32> -> vector<24x64xf32>
    %12 = arith.addf %6, %11 : vector<24x64xf32>
    %c0_12 = arith.constant 0 : index
    %c2 = arith.constant 2 : index
    %c0_13 = arith.constant 0 : index
    %13 = vector.load %arg1[%c0_12, %c2, %c0_13] : memref<1x42x64xbf16, #tpu.memory_space<vmem>>, vector<1x24x64xbf16>
    %14 = vector.shape_cast %13 : vector<1x24x64xbf16> to vector<24x64xbf16>
    %c2_14 = arith.constant 2 : index
    %c0_15 = arith.constant 0 : index
    %c0_16 = arith.constant 0 : index
    %15 = vector.load %arg2[%c2_14, %c0_15, %c0_16] : memref<9x64x64xbf16, #tpu.memory_space<vmem>>, vector<1x64x64xbf16>
    %16 = vector.shape_cast %15 : vector<1x64x64xbf16> to vector<64x64xbf16>
    %cst_17 = arith.constant dense<0.000000e+00> : vector<24x64xf32>
    %17 = tpu.matmul %14, %16, %cst_17 {dimension_numbers = #tpu.dot_dimension_numbers<[1], [0], [0], [1], [0, 0, 1, 1], [], []>} : vector<24x64xbf16>, vector<64x64xbf16>, vector<24x64xf32> -> vector<24x64xf32>
    %18 = arith.addf %12, %17 : vector<24x64xf32>
    %c0_18 = arith.constant 0 : index
    %c6 = arith.constant 6 : index
    %c0_19 = arith.constant 0 : index
    %19 = vector.load %arg1[%c0_18, %c6, %c0_19] : memref<1x42x64xbf16, #tpu.memory_space<vmem>>, vector<1x24x64xbf16>
    %20 = vector.shape_cast %19 : vector<1x24x64xbf16> to vector<24x64xbf16>
    %c3 = arith.constant 3 : index
    %c0_20 = arith.constant 0 : index
    %c0_21 = arith.constant 0 : index
    %21 = vector.load %arg2[%c3, %c0_20, %c0_21] : memref<9x64x64xbf16, #tpu.memory_space<vmem>>, vector<1x64x64xbf16>
    %22 = vector.shape_cast %21 : vector<1x64x64xbf16> to vector<64x64xbf16>
    %cst_22 = arith.constant dense<0.000000e+00> : vector<24x64xf32>
    %23 = tpu.matmul %20, %22, %cst_22 {dimension_numbers = #tpu.dot_dimension_numbers<[1], [0], [0], [1], [0, 0, 1, 1], [], []>} : vector<24x64xbf16>, vector<64x64xbf16>, vector<24x64xf32> -> vector<24x64xf32>
    %24 = arith.addf %18, %23 : vector<24x64xf32>
    %c0_23 = arith.constant 0 : index
    %c7 = arith.constant 7 : index
    %c0_24 = arith.constant 0 : index
    %25 = vector.load %arg1[%c0_23, %c7, %c0_24] : memref<1x42x64xbf16, #tpu.memory_space<vmem>>, vector<1x24x64xbf16>
    %26 = vector.shape_cast %25 : vector<1x24x64xbf16> to vector<24x64xbf16>
    %c4 = arith.constant 4 : index
    %c0_25 = arith.constant 0 : index
    %c0_26 = arith.constant 0 : index
    %27 = vector.load %arg2[%c4, %c0_25, %c0_26] : memref<9x64x64xbf16, #tpu.memory_space<vmem>>, vector<1x64x64xbf16>
    %28 = vector.shape_cast %27 : vector<1x64x64xbf16> to vector<64x64xbf16>
    %cst_27 = arith.constant dense<0.000000e+00> : vector<24x64xf32>
    %29 = tpu.matmul %26, %28, %cst_27 {dimension_numbers = #tpu.dot_dimension_numbers<[1], [0], [0], [1], [0, 0, 1, 1], [], []>} : vector<24x64xbf16>, vector<64x64xbf16>, vector<24x64xf32> -> vector<24x64xf32>
    %30 = arith.addf %24, %29 : vector<24x64xf32>
    %c0_28 = arith.constant 0 : index
    %c8 = arith.constant 8 : index
    %c0_29 = arith.constant 0 : index
    %31 = vector.load %arg1[%c0_28, %c8, %c0_29] : memref<1x42x64xbf16, #tpu.memory_space<vmem>>, vector<1x24x64xbf16>
    %32 = vector.shape_cast %31 : vector<1x24x64xbf16> to vector<24x64xbf16>
    %c5 = arith.constant 5 : index
    %c0_30 = arith.constant 0 : index
    %c0_31 = arith.constant 0 : index
    %33 = vector.load %arg2[%c5, %c0_30, %c0_31] : memref<9x64x64xbf16, #tpu.memory_space<vmem>>, vector<1x64x64xbf16>
    %34 = vector.shape_cast %33 : vector<1x64x64xbf16> to vector<64x64xbf16>
    %cst_32 = arith.constant dense<0.000000e+00> : vector<24x64xf32>
    %35 = tpu.matmul %32, %34, %cst_32 {dimension_numbers = #tpu.dot_dimension_numbers<[1], [0], [0], [1], [0, 0, 1, 1], [], []>} : vector<24x64xbf16>, vector<64x64xbf16>, vector<24x64xf32> -> vector<24x64xf32>
    %36 = arith.addf %30, %35 : vector<24x64xf32>
    %c0_33 = arith.constant 0 : index
    %c12 = arith.constant 12 : index
    %c0_34 = arith.constant 0 : index
    %37 = vector.load %arg1[%c0_33, %c12, %c0_34] : memref<1x42x64xbf16, #tpu.memory_space<vmem>>, vector<1x24x64xbf16>
    %38 = vector.shape_cast %37 : vector<1x24x64xbf16> to vector<24x64xbf16>
    %c6_35 = arith.constant 6 : index
    %c0_36 = arith.constant 0 : index
    %c0_37 = arith.constant 0 : index
    %39 = vector.load %arg2[%c6_35, %c0_36, %c0_37] : memref<9x64x64xbf16, #tpu.memory_space<vmem>>, vector<1x64x64xbf16>
    %40 = vector.shape_cast %39 : vector<1x64x64xbf16> to vector<64x64xbf16>
    %cst_38 = arith.constant dense<0.000000e+00> : vector<24x64xf32>
    %41 = tpu.matmul %38, %40, %cst_38 {dimension_numbers = #tpu.dot_dimension_numbers<[1], [0], [0], [1], [0, 0, 1, 1], [], []>} : vector<24x64xbf16>, vector<64x64xbf16>, vector<24x64xf32> -> vector<24x64xf32>
    %42 = arith.addf %36, %41 : vector<24x64xf32>
    %c0_39 = arith.constant 0 : index
    %c13 = arith.constant 13 : index
    %c0_40 = arith.constant 0 : index
    %43 = vector.load %arg1[%c0_39, %c13, %c0_40] : memref<1x42x64xbf16, #tpu.memory_space<vmem>>, vector<1x24x64xbf16>
    %44 = vector.shape_cast %43 : vector<1x24x64xbf16> to vector<24x64xbf16>
    %c7_41 = arith.constant 7 : index
    %c0_42 = arith.constant 0 : index
    %c0_43 = arith.constant 0 : index
    %45 = vector.load %arg2[%c7_41, %c0_42, %c0_43] : memref<9x64x64xbf16, #tpu.memory_space<vmem>>, vector<1x64x64xbf16>
    %46 = vector.shape_cast %45 : vector<1x64x64xbf16> to vector<64x64xbf16>
    %cst_44 = arith.constant dense<0.000000e+00> : vector<24x64xf32>
    %47 = tpu.matmul %44, %46, %cst_44 {dimension_numbers = #tpu.dot_dimension_numbers<[1], [0], [0], [1], [0, 0, 1, 1], [], []>} : vector<24x64xbf16>, vector<64x64xbf16>, vector<24x64xf32> -> vector<24x64xf32>
    %48 = arith.addf %42, %47 : vector<24x64xf32>
    %c0_45 = arith.constant 0 : index
    %c14 = arith.constant 14 : index
    %c0_46 = arith.constant 0 : index
    %49 = vector.load %arg1[%c0_45, %c14, %c0_46] : memref<1x42x64xbf16, #tpu.memory_space<vmem>>, vector<1x24x64xbf16>
    %50 = vector.shape_cast %49 : vector<1x24x64xbf16> to vector<24x64xbf16>
    %c8_47 = arith.constant 8 : index
    %c0_48 = arith.constant 0 : index
    %c0_49 = arith.constant 0 : index
    %51 = vector.load %arg2[%c8_47, %c0_48, %c0_49] : memref<9x64x64xbf16, #tpu.memory_space<vmem>>, vector<1x64x64xbf16>
    %52 = vector.shape_cast %51 : vector<1x64x64xbf16> to vector<64x64xbf16>
    %cst_50 = arith.constant dense<0.000000e+00> : vector<24x64xf32>
    %53 = tpu.matmul %50, %52, %cst_50 {dimension_numbers = #tpu.dot_dimension_numbers<[1], [0], [0], [1], [0, 0, 1, 1], [], []>} : vector<24x64xbf16>, vector<64x64xbf16>, vector<24x64xf32> -> vector<24x64xf32>
    %54 = arith.addf %48, %53 : vector<24x64xf32>
    %c0_51 = arith.constant 0 : index
    %c0_52 = arith.constant 0 : index
    %55 = vector.load %arg3[%c0_51, %c0_52] : memref<1x64xf32, #tpu.memory_space<vmem>>, vector<1x64xf32>
    %56 = vector.broadcast %55 : vector<1x64xf32> to vector<24x64xf32>
    %57 = arith.addf %54, %56 : vector<24x64xf32>
    %cst_53 = arith.constant 0.000000e+00 : f32
    %58 = vector.broadcast %cst_53 : f32 to vector<24x64xf32>
    %59 = arith.maximumf %57, %58 : vector<24x64xf32>
    %60 = arith.truncf %59 : vector<24x64xf32> to vector<24x64xbf16>
    %c0_54 = arith.constant 0 : index
    %c0_55 = arith.constant 0 : index
    %c0_56 = arith.constant 0 : index
    %61 = vector.load %arg4[%c0_54, %c0_55, %c0_56] : memref<1x24x64xbf16, #tpu.memory_space<vmem>>, vector<1x24x64xbf16>
    %62 = vector.shape_cast %61 : vector<1x24x64xbf16> to vector<24x64xbf16>
    %63 = vector.shape_cast %60 : vector<24x64xbf16> to vector<1x24x64xbf16>
    tpu.vector_store %arg4[%c0_54, %c0_55, %c0_56], %63 {strides = array<i32>} : memref<1x24x64xbf16, #tpu.memory_space<vmem>>, vector<1x24x64xbf16>,
    return
  }
  func.func @transform_0(%arg0: i32) -> (i32, i32, i32) {
    %c0_i32 = arith.constant 0 : i32
    %c0_i32_0 = arith.constant 0 : i32
    %c0_i32_1 = arith.constant 0 : i32
    return %arg0, %c0_i32, %c0_i32_0 : i32, i32, i32
  }
  func.func @transform_1(%arg0: i32) -> (i32, i32, i32) {
    %c0_i32 = arith.constant 0 : i32
    %c0_i32_0 = arith.constant 0 : i32
    %c0_i32_1 = arith.constant 0 : i32
    %c0_i32_2 = arith.constant 0 : i32
    return %c0_i32, %c0_i32_0, %c0_i32_1 : i32, i32, i32
  }
  func.func @transform_2(%arg0: i32) -> (i32, i32) {
    %c0_i32 = arith.constant 0 : i32
    %c0_i32_0 = arith.constant 0 : i32
    %c0_i32_1 = arith.constant 0 : i32
    return %c0_i32, %c0_i32_0 : i32, i32
  }
  func.func @transform_3(%arg0: i32) -> (i32, i32, i32) {
    %c0_i32 = arith.constant 0 : i32
    %c0_i32_0 = arith.constant 0 : i32
    %c0_i32_1 = arith.constant 0 : i32
    return %arg0, %c0_i32, %c0_i32_0 : i32, i32, i32
  }
}

module attributes {stable_mosaic.version = 11 : i64} {
  func.func @_mm_kernel(%arg0: i32, %arg1: memref<8x256xbf16, #tpu.memory_space<vmem>>, %arg2: memref<256x512xbf16, #tpu.memory_space<vmem>>, %arg3: memref<1x512xf32, #tpu.memory_space<vmem>>, %arg4: memref<8x512xbf16, #tpu.memory_space<vmem>>) attributes {dimension_semantics = [#tpu.dimension_semantics<parallel>], iteration_bounds = array<i64: 1>, scalar_prefetch = 0 : i64, scratch_operands = 0 : i64, tpu.core_type = #tpu.core_type<tc>, window_params = [{transform_indices = @transform_0, window_bounds = array<i64: 8, 256>}, {pipeline_mode = #tpu.pipeline_mode<synchronous>, transform_indices = @transform_1, window_bounds = array<i64: 256, 512>}, {pipeline_mode = #tpu.pipeline_mode<synchronous>, transform_indices = @transform_2, window_bounds = array<i64: 1, 512>}, {transform_indices = @transform_3, window_bounds = array<i64: 8, 512>}]} {
    %c0 = arith.constant 0 : index
    %c0_0 = arith.constant 0 : index
    %0 = vector.load %arg1[%c0, %c0_0] : memref<8x256xbf16, #tpu.memory_space<vmem>>, vector<8x256xbf16>
    %c0_1 = arith.constant 0 : index
    %c0_2 = arith.constant 0 : index
    %1 = vector.load %arg2[%c0_1, %c0_2] : memref<256x512xbf16, #tpu.memory_space<vmem>>, vector<256x512xbf16>
    %cst = arith.constant dense<0.000000e+00> : vector<8x512xf32>
    %2 = tpu.matmul %0, %1, %cst {dimension_numbers = #tpu.dot_dimension_numbers<[1], [0], [0], [1], [0, 0, 1, 1], [], []>} : vector<8x256xbf16>, vector<256x512xbf16>, vector<8x512xf32> -> vector<8x512xf32>
    %c0_3 = arith.constant 0 : index
    %c0_4 = arith.constant 0 : index
    %3 = vector.load %arg3[%c0_3, %c0_4] : memref<1x512xf32, #tpu.memory_space<vmem>>, vector<1x512xf32>
    %4 = vector.broadcast %3 : vector<1x512xf32> to vector<8x512xf32>
    %5 = arith.addf %2, %4 : vector<8x512xf32>
    %6 = arith.truncf %5 : vector<8x512xf32> to vector<8x512xbf16>
    %c0_5 = arith.constant 0 : index
    %c0_6 = arith.constant 0 : index
    %7 = vector.load %arg4[%c0_5, %c0_6] : memref<8x512xbf16, #tpu.memory_space<vmem>>, vector<8x512xbf16>
    tpu.vector_store %arg4[%c0_5, %c0_6], %6 {strides = array<i32>} : memref<8x512xbf16, #tpu.memory_space<vmem>>, vector<8x512xbf16>,
    return
  }
  func.func @transform_0(%arg0: i32) -> (i32, i32) {
    %c0_i32 = arith.constant 0 : i32
    %c0_i32_0 = arith.constant 0 : i32
    return %arg0, %c0_i32 : i32, i32
  }
  func.func @transform_1(%arg0: i32) -> (i32, i32) {
    %c0_i32 = arith.constant 0 : i32
    %c0_i32_0 = arith.constant 0 : i32
    %c0_i32_1 = arith.constant 0 : i32
    return %c0_i32, %c0_i32_0 : i32, i32
  }
  func.func @transform_2(%arg0: i32) -> (i32, i32) {
    %c0_i32 = arith.constant 0 : i32
    %c0_i32_0 = arith.constant 0 : i32
    %c0_i32_1 = arith.constant 0 : i32
    return %c0_i32, %c0_i32_0 : i32, i32
  }
  func.func @transform_3(%arg0: i32) -> (i32, i32) {
    %c0_i32 = arith.constant 0 : i32
    %c0_i32_0 = arith.constant 0 : i32
    return %arg0, %c0_i32 : i32, i32
  }
}

module attributes {stable_mosaic.version = 11 : i64} {
  func.func @_mm_kernel(%arg0: i32, %arg1: memref<32x256xbf16, #tpu.memory_space<vmem>>, %arg2: memref<256x128xbf16, #tpu.memory_space<vmem>>, %arg3: memref<1x128xf32, #tpu.memory_space<vmem>>, %arg4: memref<32x128xbf16, #tpu.memory_space<vmem>>) attributes {dimension_semantics = [#tpu.dimension_semantics<parallel>], iteration_bounds = array<i64: 1>, scalar_prefetch = 0 : i64, scratch_operands = 0 : i64, tpu.core_type = #tpu.core_type<tc>, window_params = [{transform_indices = @transform_0, window_bounds = array<i64: 32, 256>}, {pipeline_mode = #tpu.pipeline_mode<synchronous>, transform_indices = @transform_1, window_bounds = array<i64: 256, 128>}, {pipeline_mode = #tpu.pipeline_mode<synchronous>, transform_indices = @transform_2, window_bounds = array<i64: 1, 128>}, {transform_indices = @transform_3, window_bounds = array<i64: 32, 128>}]} {
    %c0 = arith.constant 0 : index
    %c0_0 = arith.constant 0 : index
    %0 = vector.load %arg1[%c0, %c0_0] : memref<32x256xbf16, #tpu.memory_space<vmem>>, vector<32x256xbf16>
    %c0_1 = arith.constant 0 : index
    %c0_2 = arith.constant 0 : index
    %1 = vector.load %arg2[%c0_1, %c0_2] : memref<256x128xbf16, #tpu.memory_space<vmem>>, vector<256x128xbf16>
    %cst = arith.constant dense<0.000000e+00> : vector<32x128xf32>
    %2 = tpu.matmul %0, %1, %cst {dimension_numbers = #tpu.dot_dimension_numbers<[1], [0], [0], [1], [0, 0, 1, 1], [], []>} : vector<32x256xbf16>, vector<256x128xbf16>, vector<32x128xf32> -> vector<32x128xf32>
    %c0_3 = arith.constant 0 : index
    %c0_4 = arith.constant 0 : index
    %3 = vector.load %arg3[%c0_3, %c0_4] : memref<1x128xf32, #tpu.memory_space<vmem>>, vector<1x128xf32>
    %4 = vector.broadcast %3 : vector<1x128xf32> to vector<32x128xf32>
    %5 = arith.addf %2, %4 : vector<32x128xf32>
    %cst_5 = arith.constant 0.000000e+00 : f32
    %6 = vector.broadcast %cst_5 : f32 to vector<32x128xf32>
    %7 = arith.maximumf %5, %6 : vector<32x128xf32>
    %8 = arith.truncf %7 : vector<32x128xf32> to vector<32x128xbf16>
    %c0_6 = arith.constant 0 : index
    %c0_7 = arith.constant 0 : index
    %9 = vector.load %arg4[%c0_6, %c0_7] : memref<32x128xbf16, #tpu.memory_space<vmem>>, vector<32x128xbf16>
    tpu.vector_store %arg4[%c0_6, %c0_7], %8 {strides = array<i32>} : memref<32x128xbf16, #tpu.memory_space<vmem>>, vector<32x128xbf16>,
    return
  }
  func.func @transform_0(%arg0: i32) -> (i32, i32) {
    %c0_i32 = arith.constant 0 : i32
    %c0_i32_0 = arith.constant 0 : i32
    return %arg0, %c0_i32 : i32, i32
  }
  func.func @transform_1(%arg0: i32) -> (i32, i32) {
    %c0_i32 = arith.constant 0 : i32
    %c0_i32_0 = arith.constant 0 : i32
    %c0_i32_1 = arith.constant 0 : i32
    return %c0_i32, %c0_i32_0 : i32, i32
  }
  func.func @transform_2(%arg0: i32) -> (i32, i32) {
    %c0_i32 = arith.constant 0 : i32
    %c0_i32_0 = arith.constant 0 : i32
    %c0_i32_1 = arith.constant 0 : i32
    return %c0_i32, %c0_i32_0 : i32, i32
  }
  func.func @transform_3(%arg0: i32) -> (i32, i32) {
    %c0_i32 = arith.constant 0 : i32
    %c0_i32_0 = arith.constant 0 : i32
    return %arg0, %c0_i32 : i32, i32
  }
}

module attributes {stable_mosaic.version = 11 : i64} {
  func.func @_mm_kernel(%arg0: i32, %arg1: memref<8x1152xbf16, #tpu.memory_space<vmem>>, %arg2: memref<1152x128xbf16, #tpu.memory_space<vmem>>, %arg3: memref<1x128xf32, #tpu.memory_space<vmem>>, %arg4: memref<8x128xbf16, #tpu.memory_space<vmem>>) attributes {dimension_semantics = [#tpu.dimension_semantics<parallel>], iteration_bounds = array<i64: 1>, scalar_prefetch = 0 : i64, scratch_operands = 0 : i64, tpu.core_type = #tpu.core_type<tc>, window_params = [{transform_indices = @transform_0, window_bounds = array<i64: 8, 1152>}, {pipeline_mode = #tpu.pipeline_mode<synchronous>, transform_indices = @transform_1, window_bounds = array<i64: 1152, 128>}, {pipeline_mode = #tpu.pipeline_mode<synchronous>, transform_indices = @transform_2, window_bounds = array<i64: 1, 128>}, {transform_indices = @transform_3, window_bounds = array<i64: 8, 128>}]} {
    %c0 = arith.constant 0 : index
    %c0_0 = arith.constant 0 : index
    %0 = vector.load %arg1[%c0, %c0_0] : memref<8x1152xbf16, #tpu.memory_space<vmem>>, vector<8x1152xbf16>
    %c0_1 = arith.constant 0 : index
    %c0_2 = arith.constant 0 : index
    %1 = vector.load %arg2[%c0_1, %c0_2] : memref<1152x128xbf16, #tpu.memory_space<vmem>>, vector<1152x128xbf16>
    %cst = arith.constant dense<0.000000e+00> : vector<8x128xf32>
    %2 = tpu.matmul %0, %1, %cst {dimension_numbers = #tpu.dot_dimension_numbers<[1], [0], [0], [1], [0, 0, 1, 1], [], []>} : vector<8x1152xbf16>, vector<1152x128xbf16>, vector<8x128xf32> -> vector<8x128xf32>
    %c0_3 = arith.constant 0 : index
    %c0_4 = arith.constant 0 : index
    %3 = vector.load %arg3[%c0_3, %c0_4] : memref<1x128xf32, #tpu.memory_space<vmem>>, vector<1x128xf32>
    %4 = vector.broadcast %3 : vector<1x128xf32> to vector<8x128xf32>
    %5 = arith.addf %2, %4 : vector<8x128xf32>
    %cst_5 = arith.constant 0.000000e+00 : f32
    %6 = vector.broadcast %cst_5 : f32 to vector<8x128xf32>
    %7 = arith.maximumf %5, %6 : vector<8x128xf32>
    %8 = arith.truncf %7 : vector<8x128xf32> to vector<8x128xbf16>
    %c0_6 = arith.constant 0 : index
    %c0_7 = arith.constant 0 : index
    %9 = vector.load %arg4[%c0_6, %c0_7] : memref<8x128xbf16, #tpu.memory_space<vmem>>, vector<8x128xbf16>
    tpu.vector_store %arg4[%c0_6, %c0_7], %8 {strides = array<i32>} : memref<8x128xbf16, #tpu.memory_space<vmem>>, vector<8x128xbf16>,
    return
  }
  func.func @transform_0(%arg0: i32) -> (i32, i32) {
    %c0_i32 = arith.constant 0 : i32
    %c0_i32_0 = arith.constant 0 : i32
    return %arg0, %c0_i32 : i32, i32
  }
  func.func @transform_1(%arg0: i32) -> (i32, i32) {
    %c0_i32 = arith.constant 0 : i32
    %c0_i32_0 = arith.constant 0 : i32
    %c0_i32_1 = arith.constant 0 : i32
    return %c0_i32, %c0_i32_0 : i32, i32
  }
  func.func @transform_2(%arg0: i32) -> (i32, i32) {
    %c0_i32 = arith.constant 0 : i32
    %c0_i32_0 = arith.constant 0 : i32
    %c0_i32_1 = arith.constant 0 : i32
    return %c0_i32, %c0_i32_0 : i32, i32
  }
  func.func @transform_3(%arg0: i32) -> (i32, i32) {
    %c0_i32 = arith.constant 0 : i32
    %c0_i32_0 = arith.constant 0 : i32
    return %arg0, %c0_i32 : i32, i32
  }
}

module attributes {stable_mosaic.version = 11 : i64} {
  func.func @_mm_res_kernel(%arg0: i32, %arg1: memref<8x128xbf16, #tpu.memory_space<vmem>>, %arg2: memref<128x512xbf16, #tpu.memory_space<vmem>>, %arg3: memref<1x512xf32, #tpu.memory_space<vmem>>, %arg4: memref<8x512xbf16, #tpu.memory_space<vmem>>, %arg5: memref<8x512xbf16, #tpu.memory_space<vmem>>) attributes {dimension_semantics = [#tpu.dimension_semantics<parallel>], iteration_bounds = array<i64: 1>, scalar_prefetch = 0 : i64, scratch_operands = 0 : i64, tpu.core_type = #tpu.core_type<tc>, window_params = [{transform_indices = @transform_0, window_bounds = array<i64: 8, 128>}, {pipeline_mode = #tpu.pipeline_mode<synchronous>, transform_indices = @transform_1, window_bounds = array<i64: 128, 512>}, {pipeline_mode = #tpu.pipeline_mode<synchronous>, transform_indices = @transform_2, window_bounds = array<i64: 1, 512>}, {transform_indices = @transform_3, window_bounds = array<i64: 8, 512>}, {transform_indices = @transform_4, window_bounds = array<i64: 8, 512>}]} {
    %c0 = arith.constant 0 : index
    %c0_0 = arith.constant 0 : index
    %0 = vector.load %arg1[%c0, %c0_0] : memref<8x128xbf16, #tpu.memory_space<vmem>>, vector<8x128xbf16>
    %c0_1 = arith.constant 0 : index
    %c0_2 = arith.constant 0 : index
    %1 = vector.load %arg2[%c0_1, %c0_2] : memref<128x512xbf16, #tpu.memory_space<vmem>>, vector<128x512xbf16>
    %cst = arith.constant dense<0.000000e+00> : vector<8x512xf32>
    %2 = tpu.matmul %0, %1, %cst {dimension_numbers = #tpu.dot_dimension_numbers<[1], [0], [0], [1], [0, 0, 1, 1], [], []>} : vector<8x128xbf16>, vector<128x512xbf16>, vector<8x512xf32> -> vector<8x512xf32>
    %c0_3 = arith.constant 0 : index
    %c0_4 = arith.constant 0 : index
    %3 = vector.load %arg3[%c0_3, %c0_4] : memref<1x512xf32, #tpu.memory_space<vmem>>, vector<1x512xf32>
    %4 = vector.broadcast %3 : vector<1x512xf32> to vector<8x512xf32>
    %5 = arith.addf %2, %4 : vector<8x512xf32>
    %c0_5 = arith.constant 0 : index
    %c0_6 = arith.constant 0 : index
    %6 = vector.load %arg4[%c0_5, %c0_6] : memref<8x512xbf16, #tpu.memory_space<vmem>>, vector<8x512xbf16>
    %7 = arith.extf %6 : vector<8x512xbf16> to vector<8x512xf32>
    %8 = arith.addf %5, %7 : vector<8x512xf32>
    %cst_7 = arith.constant 0.000000e+00 : f32
    %9 = vector.broadcast %cst_7 : f32 to vector<8x512xf32>
    %10 = arith.maximumf %8, %9 : vector<8x512xf32>
    %11 = arith.truncf %10 : vector<8x512xf32> to vector<8x512xbf16>
    %c0_8 = arith.constant 0 : index
    %c0_9 = arith.constant 0 : index
    %12 = vector.load %arg5[%c0_8, %c0_9] : memref<8x512xbf16, #tpu.memory_space<vmem>>, vector<8x512xbf16>
    tpu.vector_store %arg5[%c0_8, %c0_9], %11 {strides = array<i32>} : memref<8x512xbf16, #tpu.memory_space<vmem>>, vector<8x512xbf16>,
    return
  }
  func.func @transform_0(%arg0: i32) -> (i32, i32) {
    %c0_i32 = arith.constant 0 : i32
    %c0_i32_0 = arith.constant 0 : i32
    return %arg0, %c0_i32 : i32, i32
  }
  func.func @transform_1(%arg0: i32) -> (i32, i32) {
    %c0_i32 = arith.constant 0 : i32
    %c0_i32_0 = arith.constant 0 : i32
    %c0_i32_1 = arith.constant 0 : i32
    return %c0_i32, %c0_i32_0 : i32, i32
  }
  func.func @transform_2(%arg0: i32) -> (i32, i32) {
    %c0_i32 = arith.constant 0 : i32
    %c0_i32_0 = arith.constant 0 : i32
    %c0_i32_1 = arith.constant 0 : i32
    return %c0_i32, %c0_i32_0 : i32, i32
  }
  func.func @transform_3(%arg0: i32) -> (i32, i32) {
    %c0_i32 = arith.constant 0 : i32
    %c0_i32_0 = arith.constant 0 : i32
    return %arg0, %c0_i32 : i32, i32
  }
  func.func @transform_4(%arg0: i32) -> (i32, i32) {
    %c0_i32 = arith.constant 0 : i32
    %c0_i32_0 = arith.constant 0 : i32
    return %arg0, %c0_i32 : i32, i32
  }
}

module attributes {stable_mosaic.version = 11 : i64} {
  func.func @_head_kernel(%arg0: i32, %arg1: memref<2x4x512xbf16, #tpu.memory_space<vmem>>, %arg2: memref<512x10xf32, #tpu.memory_space<vmem>>, %arg3: memref<1x10xf32, #tpu.memory_space<vmem>>, %arg4: memref<2x10xf32, #tpu.memory_space<vmem>>) attributes {dimension_semantics = [#tpu.dimension_semantics<arbitrary>], iteration_bounds = array<i64: 1>, scalar_prefetch = 0 : i64, scratch_operands = 0 : i64, tpu.core_type = #tpu.core_type<tc>, window_params = [{pipeline_mode = #tpu.pipeline_mode<synchronous>, transform_indices = @transform_0, window_bounds = array<i64: 2, 4, 512>}, {pipeline_mode = #tpu.pipeline_mode<synchronous>, transform_indices = @transform_1, window_bounds = array<i64: 512, 10>}, {pipeline_mode = #tpu.pipeline_mode<synchronous>, transform_indices = @transform_2, window_bounds = array<i64: 1, 10>}, {pipeline_mode = #tpu.pipeline_mode<synchronous>, transform_indices = @transform_3, window_bounds = array<i64: 2, 10>}]} {
    %c0 = arith.constant 0 : index
    %c0_0 = arith.constant 0 : index
    %c0_1 = arith.constant 0 : index
    %0 = vector.load %arg1[%c0, %c0_0, %c0_1] : memref<2x4x512xbf16, #tpu.memory_space<vmem>>, vector<2x4x512xbf16>
    %1 = arith.extf %0 : vector<2x4x512xbf16> to vector<2x4x512xf32>
    %cst = arith.constant dense<0.000000e+00> : vector<2x512xf32>
    %2 = vector.multi_reduction <add>, %1, %cst [1] : vector<2x4x512xf32> to vector<2x512xf32>
    %cst_2 = arith.constant 4.000000e+00 : f32
    %3 = vector.broadcast %cst_2 : f32 to vector<2x512xf32>
    %4 = arith.divf %2, %3 : vector<2x512xf32>
    %c0_3 = arith.constant 0 : index
    %c0_4 = arith.constant 0 : index
    %5 = vector.load %arg2[%c0_3, %c0_4] : memref<512x10xf32, #tpu.memory_space<vmem>>, vector<512x10xf32>
    %cst_5 = arith.constant dense<0.000000e+00> : vector<2x10xf32>
    %6 = tpu.matmul %4, %5, %cst_5 {dimension_numbers = #tpu.dot_dimension_numbers<[1], [0], [0], [1], [0, 0, 1, 1], [], []>} : vector<2x512xf32>, vector<512x10xf32>, vector<2x10xf32> -> vector<2x10xf32>
    %c0_6 = arith.constant 0 : index
    %c0_7 = arith.constant 0 : index
    %7 = vector.load %arg3[%c0_6, %c0_7] : memref<1x10xf32, #tpu.memory_space<vmem>>, vector<1x10xf32>
    %8 = vector.broadcast %7 : vector<1x10xf32> to vector<2x10xf32>
    %9 = arith.addf %6, %8 : vector<2x10xf32>
    %c0_8 = arith.constant 0 : index
    %c0_9 = arith.constant 0 : index
    %10 = vector.load %arg4[%c0_8, %c0_9] : memref<2x10xf32, #tpu.memory_space<vmem>>, vector<2x10xf32>
    tpu.vector_store %arg4[%c0_8, %c0_9], %9 {strides = array<i32>} : memref<2x10xf32, #tpu.memory_space<vmem>>, vector<2x10xf32>,
    return
  }
  func.func @transform_0(%arg0: i32) -> (i32, i32, i32) {
    %c0_i32 = arith.constant 0 : i32
    %c0_i32_0 = arith.constant 0 : i32
    %c0_i32_1 = arith.constant 0 : i32
    %c0_i32_2 = arith.constant 0 : i32
    return %c0_i32, %c0_i32_0, %c0_i32_1 : i32, i32, i32
  }
  func.func @transform_1(%arg0: i32) -> (i32, i32) {
    %c0_i32 = arith.constant 0 : i32
    %c0_i32_0 = arith.constant 0 : i32
    %c0_i32_1 = arith.constant 0 : i32
    return %c0_i32, %c0_i32_0 : i32, i32
  }
  func.func @transform_2(%arg0: i32) -> (i32, i32) {
    %c0_i32 = arith.constant 0 : i32
    %c0_i32_0 = arith.constant 0 : i32
    %c0_i32_1 = arith.constant 0 : i32
    return %c0_i32, %c0_i32_0 : i32, i32
  }
  func.func @transform_3(%arg0: i32) -> (i32, i32) {
    %c0_i32 = arith.constant 0 : i32
    %c0_i32_0 = arith.constant 0 : i32
    %c0_i32_1 = arith.constant 0 : i32
    return %c0_i32, %c0_i32_0 : i32, i32
  }
}

</mosaic_0001>

<bundles_post_ra>
// kernel: forward.21
= control target key start
LH: loop header
LB: loop body
LE: loop exit
PB: predicated region body
PF: predicated region fallthrough
CT: control target
= control target key end

     0   :  { %s1861_s12 = smov 0   ;;  %s2209_s0 = inlined_call_operand.vmem [shape: bf16[2048,147], index: 0, kind: input, shape index: {}]   ;;  %s2210_s1 = inlined_call_operand.vmem [shape: bf16[147,16], index: 1, kind: input, shape index: {}]   ;;  %s2211_s2 = inlined_call_operand.vmem [shape: f32[1,16], index: 2, kind: input, shape index: {}]   ;;  %s2212_s3 = inlined_call_operand.vmem [shape: bf16[2048,16], index: 3, kind: output, shape index: {}]  }
   0x1 LB: > { %s1447_s13 = sadd.s32 4294967295, %s1837_s12   ;;  %p1451_p0 = scmp.ge.s32.totalorder %s1837_s12, 1  ;;  %s1837_s12 = sphi %s1861_s12, %s13_s12  }
   0x2   : > { %p139_p1 = scmp.lt.s32.totalorder %s1837_s12, 5 }
   0x4   : > { %p140_p2 = pnand %p1451_p0, %p139_p1 }
   0x5   : > { %v1725_v0 = vld [vmem:[%s2210_s1] sm:$0xff] (!%p140_p2)   ;;  %v1839_v1 = vmov (!%p140_p2), 0   ;;  %v1726_v2 = vld [vmem:[%s2210_s1 + $0x8] sm:$0xff] (!%p140_p2)   ;;  %v1727_v3 = vld [vmem:[%s2210_s1 + $0x10] sm:$0xff] (!%p140_p2)   ;;  %s1452_s20 = sshll.u32 (!%p140_p2), %s1447_s13, 6  ;;  %vm613_vm0 = vcmask (!%p140_p2), 154624  }
   0x6   : > { %143 = sbr.rel (%p140_p2) target bundleno = 387 (0x183), region = 32  ;;  %717 = vmatprep.subr.bf16.mxu0 (!%p140_p2), %v1839_v1  ;;  %1695 = vmatprep.subr.bf16.mxu1 (!%p140_p2), %v1839_v1  ;;  %p165_p3 = scmp.lt.s32.totalorder (!%p140_p2), %s1452_s20, 255  ;;  %v1728_v4 = vld [vmem:[%s2210_s1 + $0x18] sm:$0xff] (!%p140_p2)   ;;  %v1729_v5 = vld [vmem:[%s2210_s1 + $0x20] sm:$0xff] (!%p140_p2)   ;;  %v1730_v8 = vld [vmem:[%s2210_s1 + $0x28] sm:$0xff] (!%p140_p2)   ;;  %vm710_vm1 = vcmask (!%p140_p2), 1040384  }
   0x7   : > { %718 = vmatpush1.bf16.msra.mxu0 (!%p140_p2), %v1725_v0  ;;  %1705 = vmatpush1.bf16.msra.mxu1 (!%p140_p2), %v1725_v0  ;;  %v1731_v9 = vld [vmem:[%s2210_s1 + $0x30] sm:$0xff] (!%p140_p2)   ;;  %v1732_v10 = vld [vmem:[%s2210_s1 + $0x38] sm:$0xff] (!%p140_p2)   ;;  %vm711_vm2 = vcmask (!%p140_p2), 1041408   ;;  %v1840_v11 = vmov (!%p140_p2), 65535   ;;  %v1733_v13 = vld [vmem:[%s2210_s1 + $0x40] sm:$0xff] (!%p140_p2)   ;;  %vm1326_vm3 = vcmask (!%p140_p2), 125952  }
   0x8   : > { %719 = vmatprep.subr.bf16.mxu0 (!%p140_p2), %v1839_v1  ;;  %1696 = vmatprep.subr.bf16.mxu1 (!%p140_p2), %v1839_v1  ;;  %v712_v12 = vsel (!%p140_p2), %vm710_vm1, 4294967295, %v1840_v11  ;;  %v1734_v14 = vld [vmem:[%s2210_s1 + $0x48] ss:$0 sps:$4 sm:$0x33] (!%p140_p2)  }
   0x9   : > { %v713_v15 = vsel (!%p140_p2), %vm711_vm2, %v712_v12, 0 }
   0xa   : > { %v715_v16 = vand.u32 (!%p140_p2), %v1734_v14, %v713_v15  ;;  %v2006_v15 = vld [vmem:[%s2211_s2] ss:$0 sm:$0xff] (!%p140_p2) }
   0xb   : > { %720 = vmatpush1.bf16.msra.mxu0 (!%p140_p2), %v1726_v2  ;;  %1706 = vmatpush1.bf16.msra.mxu1 (!%p140_p2), %v1726_v2 }
   0xc   : > { %721 = vmatprep.subr.bf16.mxu0 (!%p140_p2), %v1839_v1  ;;  %1697 = vmatprep.subr.bf16.mxu1 (!%p140_p2), %v1839_v1 }
   0xd   : > { %s2214_s20 = smov (!%p165_p3, %s1452_s20), 255 }
   0xe   : > { %s1630_s23 = sshll.u32 %s2214_s20, 3  ;;  %s1456_s15 = sshll.u32 %s2214_s20, 2 }
   0xf   : > { %722 = vmatpush1.bf16.msra.mxu0 %v1727_v3  ;;  %1707 = vmatpush1.bf16.msra.mxu1 %v1727_v3  ;;  %s1887_s26 = scalar_lea.vmem %s2209_s0, %s1630_s23  ;;  %s2016_s18 = scalar_lea.vmem %s2212_s3, %s1456_s15 }
  0x10   : > { %723 = vmatprep.subr.bf16.mxu0 %v1839_v1  ;;  %1698 = vmatprep.subr.bf16.mxu1 %v1839_v1  ;;  %v1737_v6 = vld [vmem:[%s1887_s26 + $0x4] ss:$8 sps:$4 sm:$0xff]   ;;  %v1735_v17 = vld [vmem:[%s1887_s26] ss:$8 sps:$4 sm:$0xff]   ;;  %v1741_v19 = vld [vmem:[%s1887_s26 + $0x14] ss:$8 sps:$4 sm:$0xff]  }
  0x11   : > { %v1740_v7 = vld [vmem:[%s1887_s26 + $0x104] ss:$8 sps:$4 sm:$0xff]   ;;  %1532 = vmatprep.mubr.msk.bf16.mxu0 %vm613_vm0, %v1737_v6  ;;  %v1738_v18 = vld [vmem:[%s1887_s26 + $0x100] ss:$8 sps:$4 sm:$0xff]   ;;  %v1743_v20 = vld [vmem:[%s1887_s26 + $0x114] ss:$8 sps:$4 sm:$0xff]  }
  0x12   : > { %1548 = vmatprep.mubr.msk.bf16.mxu1 %vm613_vm0, %v1740_v7  ;;  %v1745_v21 = vld [vmem:[%s1887_s26 + $0x10] ss:$8 sps:$4 sm:$0xff]   ;;  %v1747_v23 = vld [vmem:[%s1887_s26 + $0x24] ss:$8 sps:$4 sm:$0xff]   ;;  %v1751_v25 = vld [vmem:[%s1887_s26 + $0x20] ss:$8 sps:$4 sm:$0xff]  }
  0x13   : > { %724 = vmatpush1.bf16.msra.mxu0 %v1728_v4  ;;  %1708 = vmatpush1.bf16.msra.mxu1 %v1728_v4  ;;  %v1746_v22 = vld [vmem:[%s1887_s26 + $0x110] ss:$8 sps:$4 sm:$0xff]   ;;  %v1749_v24 = vld [vmem:[%s1887_s26 + $0x124] ss:$8 sps:$4 sm:$0xff]   ;;  %v1752_v26 = vld [vmem:[%s1887_s26 + $0x120] ss:$8 sps:$4 sm:$0xff]  }
  0x14   : > { %725 = vmatprep.subr.bf16.mxu0 %v1839_v1  ;;  %1699 = vmatprep.subr.bf16.mxu1 %v1839_v1  ;;  %v1753_v27 = vld [vmem:[%s1887_s26 + $0x34] ss:$8 sps:$4 sm:$0xff]   ;;  %v1757_v29 = vld [vmem:[%s1887_s26 + $0x30] ss:$8 sps:$4 sm:$0xff]   ;;  %v1759_v31 = vld [vmem:[%s1887_s26 + $0x44] ss:$8 sps:$4 sm:$0xff]  }
  0x15   : > { %v1755_v28 = vld [vmem:[%s1887_s26 + $0x134] ss:$8 sps:$4 sm:$0xff]   ;;  %v1758_v30 = vld [vmem:[%s1887_s26 + $0x130] ss:$8 sps:$4 sm:$0xff]   ;;  %v1761_v32 = vld [vmem:[%s1887_s26 + $0x144] ss:$8 sps:$4 sm:$0xff]  }
  0x16   : > { %v1763_v33 = vld [vmem:[%s1887_s26 + $0x40] ss:$8 sps:$4 sm:$0xff]   ;;  %v1765_v35 = vld [vmem:[%s1887_s26 + $0x54] ss:$8 sps:$4 sm:$0xff]   ;;  %v1769_v37 = vld [vmem:[%s1887_s26 + $0x50] ss:$8 sps:$4 sm:$0xff]  }
  0x17   : > { %726 = vmatpush1.bf16.msra.mxu0 %v1729_v5  ;;  %1709 = vmatpush1.bf16.msra.mxu1 %v1729_v5  ;;  %v1764_v34 = vld [vmem:[%s1887_s26 + $0x140] ss:$8 sps:$4 sm:$0xff]   ;;  %v1767_v36 = vld [vmem:[%s1887_s26 + $0x154] ss:$8 sps:$4 sm:$0xff]   ;;  %v1770_v38 = vld [vmem:[%s1887_s26 + $0x150] ss:$8 sps:$4 sm:$0xff]  }
  0x18   : > { %727 = vmatprep.subr.bf16.mxu0 %v1839_v1  ;;  %1700 = vmatprep.subr.bf16.mxu1 %v1839_v1  ;;  %v1771_v39 = vld [vmem:[%s1887_s26 + $0x64] ss:$8 sps:$4 sm:$0xff]   ;;  %v1775_v41 = vld [vmem:[%s1887_s26 + $0x60] ss:$8 sps:$4 sm:$0xff]   ;;  %v1777_v43 = vld [vmem:[%s1887_s26 + $0x74] ss:$8 sps:$4 sm:$0xff]  }
  0x19   : > { %v1773_v40 = vld [vmem:[%s1887_s26 + $0x164] ss:$8 sps:$4 sm:$0xff]   ;;  %v1776_v42 = vld [vmem:[%s1887_s26 + $0x160] ss:$8 sps:$4 sm:$0xff]   ;;  %v1779_v44 = vld [vmem:[%s1887_s26 + $0x174] ss:$8 sps:$4 sm:$0xff]  }
  0x1a   : > { %v1781_v45 = vld [vmem:[%s1887_s26 + $0x70] ss:$8 sps:$4 sm:$0xff]   ;;  %v1783_v47 = vld [vmem:[%s1887_s26 + $0x84] ss:$8 sps:$4 sm:$0xff]   ;;  %v1787_v49 = vld [vmem:[%s1887_s26 + $0x80] ss:$8 sps:$4 sm:$0xff]  }
  0x1b   : > { %728 = vmatpush1.bf16.msra.mxu0 %v1730_v8  ;;  %1710 = vmatpush1.bf16.msra.mxu1 %v1730_v8  ;;  %v1782_v46 = vld [vmem:[%s1887_s26 + $0x170] ss:$8 sps:$4 sm:$0xff]   ;;  %v1785_v48 = vld [vmem:[%s1887_s26 + $0x184] ss:$8 sps:$4 sm:$0xff]   ;;  %v1788_v50 = vld [vmem:[%s1887_s26 + $0x180] ss:$8 sps:$4 sm:$0xff]  }
  0x1c   : > { %729 = vmatprep.subr.bf16.mxu0 %v1839_v1  ;;  %1701 = vmatprep.subr.bf16.mxu1 %v1839_v1  ;;  %v1789_v51 = vld [vmem:[%s1887_s26 + $0x94] ss:$8 sps:$4 sm:$0xff]   ;;  %v1793_v53 = vld [vmem:[%s1887_s26 + $0x90] ss:$8 sps:$4 sm:$0xff]   ;;  %v1795_v55 = vld [vmem:[%s1887_s26 + $0xa4] ss:$8 sps:$4 sm:$0xff]  }
  0x1d   : > { %v1791_v52 = vld [vmem:[%s1887_s26 + $0x194] ss:$8 sps:$4 sm:$0xff]   ;;  %v1794_v54 = vld [vmem:[%s1887_s26 + $0x190] ss:$8 sps:$4 sm:$0xff]   ;;  %v1797_v56 = vld [vmem:[%s1887_s26 + $0x1a4] ss:$8 sps:$4 sm:$0xff]  }
  0x1e   : > { %v1799_v57 = vld [vmem:[%s1887_s26 + $0xa0] ss:$8 sps:$4 sm:$0xff]   ;;  %v1801_v59 = vld [vmem:[%s1887_s26 + $0xb4] ss:$8 sps:$4 sm:$0xff]   ;;  %v1805_v61 = vld [vmem:[%s1887_s26 + $0xb0] ss:$8 sps:$4 sm:$0xff]  }
  0x1f   : > { %730 = vmatpush1.bf16.msra.mxu0 %v1731_v9  ;;  %1711 = vmatpush1.bf16.msra.mxu1 %v1731_v9  ;;  %v1800_v58 = vld [vmem:[%s1887_s26 + $0x1a0] ss:$8 sps:$4 sm:$0xff]   ;;  %v1803_v60 = vld [vmem:[%s1887_s26 + $0x1b4] ss:$8 sps:$4 sm:$0xff]   ;;  %v1806_v62 = vld [vmem:[%s1887_s26 + $0x1b0] ss:$8 sps:$4 sm:$0xff]  }
  0x20   : > { %731 = vmatprep.subr.bf16.mxu0 %v1839_v1  ;;  %1702 = vmatprep.subr.bf16.mxu1 %v1839_v1  ;;  %v1807_v63 = vld [vmem:[%s1887_s26 + $0xc4] ss:$8 sps:$4 sm:$0xff]   ;;  %v1812_v2 = vld [vmem:[%s1887_s26 + $0x1c0] ss:$8 sps:$4 sm:$0xff]   ;;  %v1813_v3 = vld [vmem:[%s1887_s26 + $0xd4] ss:$8 sps:$4 sm:$0xff]  }
  0x21   : > { %v1809_v0 = vld [vmem:[%s1887_s26 + $0x1c4] ss:$8 sps:$4 sm:$0xff]   ;;  %v1815_v4 = vld [vmem:[%s1887_s26 + $0x1d4] ss:$8 sps:$4 sm:$0xff]   ;;  %v1817_v5 = vld [vmem:[%s1887_s26 + $0xd0] ss:$8 sps:$4 sm:$0xff]  }
  0x22   : > { %v1818_v6 = vld [vmem:[%s1887_s26 + $0x1d0] ss:$8 sps:$4 sm:$0xff]   ;;  %v1819_v7 = vld [vmem:[%s1887_s26 + $0xe4] ss:$8 sps:$4 sm:$0xff]   ;;  %v1823_v9 = vld [vmem:[%s1887_s26 + $0xe0] ss:$8 sps:$4 sm:$0xff]  }
  0x23   : > { %732 = vmatpush1.bf16.msra.mxu0 %v1732_v10  ;;  %1712 = vmatpush1.bf16.msra.mxu1 %v1732_v10  ;;  %v1821_v8 = vld [vmem:[%s1887_s26 + $0x1e4] ss:$8 sps:$4 sm:$0xff]   ;;  %v1824_v10 = vld [vmem:[%s1887_s26 + $0x1e0] ss:$8 sps:$4 sm:$0xff]   ;;  %v1825_v11 = vld [vmem:[%s1887_s26 + $0xf4] ss:$8 sps:$4 sm:$0xff]  }
  0x24   : > { %733 = vmatprep.subr.bf16.mxu0 %v1839_v1  ;;  %1703 = vmatprep.subr.bf16.mxu1 %v1839_v1  ;;  %v1827_v12 = vld [vmem:[%s1887_s26 + $0x1f4] ss:$8 sps:$4 sm:$0xff]   ;;  %v1830_v14 = vld [vmem:[%s1887_s26 + $0x1f0] ss:$8 sps:$4 sm:$0xff]  }
  0x27   : > { %734 = vmatpush1.bf16.msra.mxu0 %v1733_v13  ;;  %1713 = vmatpush1.bf16.msra.mxu1 %v1733_v13  ;;  %v1829_v13 = vld [vmem:[%s1887_s26 + $0xf0] ss:$8 sps:$4 sm:$0xff]  }
  0x28   : > { %735 = vmatprep.subr.bf16.mxu0 %v1839_v1  ;;  %1704 = vmatprep.subr.bf16.mxu1 %v1839_v1  ;;  %v1811_v1 = vld [vmem:[%s1887_s26 + $0xc0] ss:$8 sps:$4 sm:$0xff]  }
  0x2b   : > { %736 = vmatpush1.bf16.msra.mxu0 %v715_v16  ;;  %1714 = vmatpush1.bf16.msra.mxu1 %v715_v16 }
  0x2e   : > { %750 = vmatmul.mubr.bf16.vlgmr.msra.gmra.mrb[0].mxu0 %v1735_v17  ;;  %878 = vmatmul.mubr.bf16.vlgmr.msra.gmra.mrb[0].mxu1 %v1738_v18 }
  0x2f   : > { %1533 = vmatprep.mubr.msk.bf16.mxu0 %vm613_vm0, %v1741_v19  ;;  %1549 = vmatprep.mubr.msk.bf16.mxu1 %vm613_vm0, %v1743_v20 }
  0x36   : > { %758 = vmatmul.mubr.bf16.gmra.mrb[4].mxu0 %v1745_v21  ;;  %886 = vmatmul.mubr.bf16.gmra.mrb[4].mxu1 %v1746_v22 }
  0x37   : > { %1534 = vmatprep.mubr.msk.bf16.mxu0 %vm613_vm0, %v1747_v23  ;;  %1550 = vmatprep.mubr.msk.bf16.mxu1 %vm613_vm0, %v1749_v24 }
  0x3e   : > { %766 = vmatmul.mubr.bf16.gmra.mrb[8].mxu0 %v1751_v25  ;;  %894 = vmatmul.mubr.bf16.gmra.mrb[8].mxu1 %v1752_v26 }
  0x3f   : > { %1535 = vmatprep.mubr.msk.bf16.mxu0 %vm613_vm0, %v1753_v27  ;;  %1551 = vmatprep.mubr.msk.bf16.mxu1 %vm613_vm0, %v1755_v28 }
  0x46   : > { %774 = vmatmul.mubr.bf16.gmra.mrb[12].mxu0 %v1757_v29  ;;  %902 = vmatmul.mubr.bf16.gmra.mrb[12].mxu1 %v1758_v30 }
  0x47   : > { %1536 = vmatprep.mubr.msk.bf16.mxu0 %vm613_vm0, %v1759_v31  ;;  %1552 = vmatprep.mubr.msk.bf16.mxu1 %vm613_vm0, %v1761_v32 }
  0x4e   : > { %782 = vmatmul.mubr.bf16.gmra.mrb[16].mxu0 %v1763_v33  ;;  %910 = vmatmul.mubr.bf16.gmra.mrb[16].mxu1 %v1764_v34 }
  0x4f   : > { %1537 = vmatprep.mubr.msk.bf16.mxu0 %vm613_vm0, %v1765_v35  ;;  %1553 = vmatprep.mubr.msk.bf16.mxu1 %vm613_vm0, %v1767_v36 }
  0x56   : > { %790 = vmatmul.mubr.bf16.gmra.mrb[20].mxu0 %v1769_v37  ;;  %918 = vmatmul.mubr.bf16.gmra.mrb[20].mxu1 %v1770_v38 }
  0x57   : > { %1538 = vmatprep.mubr.msk.bf16.mxu0 %vm613_vm0, %v1771_v39  ;;  %1554 = vmatprep.mubr.msk.bf16.mxu1 %vm613_vm0, %v1773_v40 }
  0x5e   : > { %798 = vmatmul.mubr.bf16.gmra.mrb[24].mxu0 %v1775_v41  ;;  %926 = vmatmul.mubr.bf16.gmra.mrb[24].mxu1 %v1776_v42 }
  0x5f   : > { %1539 = vmatprep.mubr.msk.bf16.mxu0 %vm613_vm0, %v1777_v43  ;;  %1555 = vmatprep.mubr.msk.bf16.mxu1 %vm613_vm0, %v1779_v44 }
  0x66   : > { %806 = vmatmul.mubr.bf16.gmra.mrb[28].mxu0 %v1781_v45  ;;  %934 = vmatmul.mubr.bf16.gmra.mrb[28].mxu1 %v1782_v46 }
  0x67   : > { %1540 = vmatprep.mubr.msk.bf16.mxu0 %vm613_vm0, %v1783_v47  ;;  %1556 = vmatprep.mubr.msk.bf16.mxu1 %vm613_vm0, %v1785_v48 }
  0x6e   : > { %814 = vmatmul.mubr.bf16.gmra.mrb[32].mxu0 %v1787_v49  ;;  %942 = vmatmul.mubr.bf16.gmra.mrb[32].mxu1 %v1788_v50 }
  0x6f   : > { %1541 = vmatprep.mubr.msk.bf16.mxu0 %vm613_vm0, %v1789_v51  ;;  %1557 = vmatprep.mubr.msk.bf16.mxu1 %vm613_vm0, %v1791_v52 }
  0x76   : > { %822 = vmatmul.mubr.bf16.gmra.mrb[36].mxu0 %v1793_v53  ;;  %950 = vmatmul.mubr.bf16.gmra.mrb[36].mxu1 %v1794_v54 }
  0x77   : > { %1542 = vmatprep.mubr.msk.bf16.mxu0 %vm613_vm0, %v1795_v55  ;;  %1558 = vmatprep.mubr.msk.bf16.mxu1 %vm613_vm0, %v1797_v56 }
  0x7e   : > { %830 = vmatmul.mubr.bf16.gmra.mrb[40].mxu0 %v1799_v57  ;;  %958 = vmatmul.mubr.bf16.gmra.mrb[40].mxu1 %v1800_v58 }
  0x7f   : > { %1543 = vmatprep.mubr.msk.bf16.mxu0 %vm613_vm0, %v1801_v59  ;;  %1559 = vmatprep.mubr.msk.bf16.mxu1 %vm613_vm0, %v1803_v60 }
  0x86   : > { %838 = vmatmul.mubr.bf16.gmra.mrb[44].mxu0 %v1805_v61  ;;  %966 = vmatmul.mubr.bf16.gmra.mrb[44].mxu1 %v1806_v62 }
  0x87   : > { %1544 = vmatprep.mubr.msk.bf16.mxu0 %vm613_vm0, %v1807_v63  ;;  %1560 = vmatprep.mubr.msk.bf16.mxu1 %vm613_vm0, %v1809_v0 }
  0x8e   : > { %846 = vmatmul.mubr.bf16.gmra.mrb[48].mxu0 %v1811_v1  ;;  %974 = vmatmul.mubr.bf16.gmra.mrb[48].mxu1 %v1812_v2 }
  0x8f   : > { %1545 = vmatprep.mubr.msk.bf16.mxu0 %vm613_vm0, %v1813_v3  ;;  %1561 = vmatprep.mubr.msk.bf16.mxu1 %vm613_vm0, %v1815_v4 }
  0x96   : > { %854 = vmatmul.mubr.bf16.gmra.mrb[52].mxu0 %v1817_v5  ;;  %982 = vmatmul.mubr.bf16.gmra.mrb[52].mxu1 %v1818_v6 }
  0x97   : > { %1546 = vmatprep.mubr.msk.bf16.mxu0 %vm613_vm0, %v1819_v7  ;;  %1562 = vmatprep.mubr.msk.bf16.mxu1 %vm613_vm0, %v1821_v8 }
  0x9e   : > { %862 = vmatmul.mubr.bf16.gmra.mrb[56].mxu0 %v1823_v9  ;;  %990 = vmatmul.mubr.bf16.gmra.mrb[56].mxu1 %v1824_v10 }
  0x9f   : > { %1547 = vmatprep.mubr.msk.bf16.mxu0 %vm613_vm0, %v1825_v11  ;;  %1563 = vmatprep.mubr.msk.bf16.mxu1 %vm613_vm0, %v1827_v12 }
  0xa6   : > { %870 = vmatmul.mubr.bf16.gmra.mrb[60].mxu0 %v1829_v13  ;;  %998 = vmatmul.mubr.bf16.gmra.mrb[60].mxu1 %v1830_v14 }
 0x101   : > { %v751_v16 = vpop.f32.mrb[0].mxu0  ;;  %v879_v17 = vpop.f32.mrb[0].mxu1 }
 0x102   : > { %v752_v18 = vadd.f32 %v2006_v15, %v751_v16  ;;  %v880_v19 = vadd.f32 %v2006_v15, %v879_v17  ;;  %v753_v20 = vpop.f32.mrb[1].mxu0  ;;  %v881_v21 = vpop.f32.mrb[1].mxu1 }
 0x103   : > { %v754_v22 = vpop.f32.mrb[2].mxu0  ;;  %v882_v23 = vpop.f32.mrb[2].mxu1 }
 0x104   : > { %v1006_v24 = vmax.f32 %v752_v18, 0.0  ;;  %v1038_v25 = vmax.f32 %v880_v19, 0.0  ;;  %v755_v26 = vadd.f32 %v2006_v15, %v754_v22  ;;  %v883_v27 = vadd.f32 %v2006_v15, %v882_v23  ;;  %v756_v28 = vpop.f32.mrb[3].mxu0  ;;  %v884_v29 = vpop.f32.mrb[3].mxu1 }
 0x106   : > { %v1631_v30 = vpack.c.bf16 %v1006_v24, %v1006_v24  ;;  %v1663_v31 = vpack.c.bf16 %v1038_v25, %v1038_v25  ;;  %v1007_v32 = vmax.f32 %v755_v26, 0.0  ;;  %v1039_v33 = vmax.f32 %v883_v27, 0.0 }
 0x108   : > { %1327 = vst.msk [vmem:[%s2016_s18] sm:$0xf] %vm1326_vm3, %v1631_v30  ;;  %1359 = vst.msk [vmem:[%s2016_s18 + $0x80] sm:$0xf] %vm1326_vm3, %v1663_v31  ;;  %v1632_v34 = vpack.c.bf16 %v1007_v32, %v1007_v32  ;;  %v1664_v35 = vpack.c.bf16 %v1039_v33, %v1039_v33 }
 0x109   : > { %v759_v36 = vpop.f32.mrb[4].mxu0  ;;  %v887_v37 = vpop.f32.mrb[4].mxu1 }
 0x10a   : > { %1328 = vst.msk [vmem:[%s2016_s18 + $0x4] sm:$0xf] %vm1326_vm3, %v1632_v34  ;;  %1360 = vst.msk [vmem:[%s2016_s18 + $0x84] sm:$0xf] %vm1326_vm3, %v1664_v35  ;;  %v760_v38 = vadd.f32 %v2006_v15, %v759_v36  ;;  %v888_v39 = vadd.f32 %v2006_v15, %v887_v37  ;;  %v761_v40 = vpop.f32.mrb[5].mxu0  ;;  %v889_v41 = vpop.f32.mrb[5].mxu1 }
 0x10b   : > { %v762_v42 = vpop.f32.mrb[6].mxu0  ;;  %v890_v43 = vpop.f32.mrb[6].mxu1 }
 0x10c   : > { %v1008_v44 = vmax.f32 %v760_v38, 0.0  ;;  %v1040_v45 = vmax.f32 %v888_v39, 0.0  ;;  %v763_v46 = vadd.f32 %v2006_v15, %v762_v42  ;;  %v891_v47 = vadd.f32 %v2006_v15, %v890_v43  ;;  %v764_v48 = vpop.f32.mrb[7].mxu0  ;;  %v892_v49 = vpop.f32.mrb[7].mxu1 }
 0x10e   : > { %v1633_v50 = vpack.c.bf16 %v1008_v44, %v1008_v44  ;;  %v1665_v51 = vpack.c.bf16 %v1040_v45, %v1040_v45  ;;  %v1009_v52 = vmax.f32 %v763_v46, 0.0  ;;  %v1041_v53 = vmax.f32 %v891_v47, 0.0 }
 0x110   : > { %1329 = vst.msk [vmem:[%s2016_s18 + $0x8] sm:$0xf] %vm1326_vm3, %v1633_v50  ;;  %1361 = vst.msk [vmem:[%s2016_s18 + $0x88] sm:$0xf] %vm1326_vm3, %v1665_v51  ;;  %v1634_v54 = vpack.c.bf16 %v1009_v52, %v1009_v52  ;;  %v1666_v55 = vpack.c.bf16 %v1041_v53, %v1041_v53 }
 0x111   : > { %v767_v56 = vpop.f32.mrb[8].mxu0  ;;  %v895_v57 = vpop.f32.mrb[8].mxu1 }
 0x112   : > { %1330 = vst.msk [vmem:[%s2016_s18 + $0xc] sm:$0xf] %vm1326_vm3, %v1634_v54  ;;  %1362 = vst.msk [vmem:[%s2016_s18 + $0x8c] sm:$0xf] %vm1326_vm3, %v1666_v55  ;;  %v768_v58 = vadd.f32 %v2006_v15, %v767_v56  ;;  %v896_v59 = vadd.f32 %v2006_v15, %v895_v57  ;;  %v769_v60 = vpop.f32.mrb[9].mxu0  ;;  %v897_v61 = vpop.f32.mrb[9].mxu1 }
 0x113   : > { %v770_v62 = vpop.f32.mrb[10].mxu0  ;;  %v898_v63 = vpop.f32.mrb[10].mxu1 }
 0x114   : > { %v1010_v0 = vmax.f32 %v768_v58, 0.0  ;;  %v1042_v1 = vmax.f32 %v896_v59, 0.0  ;;  %v771_v2 = vadd.f32 %v2006_v15, %v770_v62  ;;  %v899_v3 = vadd.f32 %v2006_v15, %v898_v63  ;;  %v772_v4 = vpop.f32.mrb[11].mxu0  ;;  %v900_v5 = vpop.f32.mrb[11].mxu1 }
 0x116   : > { %v1635_v6 = vpack.c.bf16 %v1010_v0, %v1010_v0  ;;  %v1667_v7 = vpack.c.bf16 %v1042_v1, %v1042_v1  ;;  %v1011_v8 = vmax.f32 %v771_v2, 0.0  ;;  %v1043_v9 = vmax.f32 %v899_v3, 0.0 }
 0x118   : > { %1331 = vst.msk [vmem:[%s2016_s18 + $0x10] sm:$0xf] %vm1326_vm3, %v1635_v6  ;;  %1363 = vst.msk [vmem:[%s2016_s18 + $0x90] sm:$0xf] %vm1326_vm3, %v1667_v7  ;;  %v1636_v10 = vpack.c.bf16 %v1011_v8, %v1011_v8  ;;  %v1668_v11 = vpack.c.bf16 %v1043_v9, %v1043_v9 }
 0x119   : > { %v775_v12 = vpop.f32.mrb[12].mxu0  ;;  %v903_v13 = vpop.f32.mrb[12].mxu1 }
 0x11a   : > { %1332 = vst.msk [vmem:[%s2016_s18 + $0x14] sm:$0xf] %vm1326_vm3, %v1636_v10  ;;  %1364 = vst.msk [vmem:[%s2016_s18 + $0x94] sm:$0xf] %vm1326_vm3, %v1668_v11  ;;  %v776_v14 = vadd.f32 %v2006_v15, %v775_v12  ;;  %v904_v16 = vadd.f32 %v2006_v15, %v903_v13  ;;  %v777_v17 = vpop.f32.mrb[13].mxu0  ;;  %v905_v18 = vpop.f32.mrb[13].mxu1 }
 0x11b   : > { %v778_v19 = vpop.f32.mrb[14].mxu0  ;;  %v906_v20 = vpop.f32.mrb[14].mxu1 }
 0x11c   : > { %v1012_v21 = vmax.f32 %v776_v14, 0.0  ;;  %v1044_v22 = vmax.f32 %v904_v16, 0.0  ;;  %v779_v23 = vadd.f32 %v2006_v15, %v778_v19  ;;  %v907_v24 = vadd.f32 %v2006_v15, %v906_v20  ;;  %v780_v25 = vpop.f32.mrb[15].mxu0  ;;  %v908_v26 = vpop.f32.mrb[15].mxu1 }
 0x11e   : > { %v1637_v27 = vpack.c.bf16 %v1012_v21, %v1012_v21  ;;  %v1669_v28 = vpack.c.bf16 %v1044_v22, %v1044_v22  ;;  %v1013_v29 = vmax.f32 %v779_v23, 0.0  ;;  %v1045_v30 = vmax.f32 %v907_v24, 0.0 }
 0x120   : > { %1333 = vst.msk [vmem:[%s2016_s18 + $0x18] sm:$0xf] %vm1326_vm3, %v1637_v27  ;;  %1365 = vst.msk [vmem:[%s2016_s18 + $0x98] sm:$0xf] %vm1326_vm3, %v1669_v28  ;;  %v1638_v31 = vpack.c.bf16 %v1013_v29, %v1013_v29  ;;  %v1670_v32 = vpack.c.bf16 %v1045_v30, %v1045_v30 }
 0x121   : > { %v783_v33 = vpop.f32.mrb[16].mxu0  ;;  %v911_v34 = vpop.f32.mrb[16].mxu1 }
 0x122   : > { %1334 = vst.msk [vmem:[%s2016_s18 + $0x1c] sm:$0xf] %vm1326_vm3, %v1638_v31  ;;  %1366 = vst.msk [vmem:[%s2016_s18 + $0x9c] sm:$0xf] %vm1326_vm3, %v1670_v32  ;;  %v784_v35 = vadd.f32 %v2006_v15, %v783_v33  ;;  %v912_v36 = vadd.f32 %v2006_v15, %v911_v34  ;;  %v785_v37 = vpop.f32.mrb[17].mxu0  ;;  %v913_v38 = vpop.f32.mrb[17].mxu1 }
 0x123   : > { %v786_v39 = vpop.f32.mrb[18].mxu0  ;;  %v914_v40 = vpop.f32.mrb[18].mxu1 }
 0x124   : > { %v1014_v41 = vmax.f32 %v784_v35, 0.0  ;;  %v1046_v42 = vmax.f32 %v912_v36, 0.0  ;;  %v787_v43 = vadd.f32 %v2006_v15, %v786_v39  ;;  %v915_v44 = vadd.f32 %v2006_v15, %v914_v40  ;;  %v788_v45 = vpop.f32.mrb[19].mxu0  ;;  %v916_v46 = vpop.f32.mrb[19].mxu1 }
 0x126   : > { %v1639_v47 = vpack.c.bf16 %v1014_v41, %v1014_v41  ;;  %v1671_v48 = vpack.c.bf16 %v1046_v42, %v1046_v42  ;;  %v1015_v49 = vmax.f32 %v787_v43, 0.0  ;;  %v1047_v50 = vmax.f32 %v915_v44, 0.0 }
 0x128   : > { %1335 = vst.msk [vmem:[%s2016_s18 + $0x20] sm:$0xf] %vm1326_vm3, %v1639_v47  ;;  %1367 = vst.msk [vmem:[%s2016_s18 + $0xa0] sm:$0xf] %vm1326_vm3, %v1671_v48  ;;  %v1640_v51 = vpack.c.bf16 %v1015_v49, %v1015_v49  ;;  %v1672_v52 = vpack.c.bf16 %v1047_v50, %v1047_v50 }
 0x129   : > { %v791_v53 = vpop.f32.mrb[20].mxu0  ;;  %v919_v54 = vpop.f32.mrb[20].mxu1 }
 0x12a   : > { %1336 = vst.msk [vmem:[%s2016_s18 + $0x24] sm:$0xf] %vm1326_vm3, %v1640_v51  ;;  %1368 = vst.msk [vmem:[%s2016_s18 + $0xa4] sm:$0xf] %vm1326_vm3, %v1672_v52  ;;  %v792_v55 = vadd.f32 %v2006_v15, %v791_v53  ;;  %v920_v56 = vadd.f32 %v2006_v15, %v919_v54  ;;  %v793_v57 = vpop.f32.mrb[21].mxu0  ;;  %v921_v58 = vpop.f32.mrb[21].mxu1 }
 0x12b   : > { %v794_v59 = vpop.f32.mrb[22].mxu0  ;;  %v922_v60 = vpop.f32.mrb[22].mxu1 }
 0x12c   : > { %v1016_v61 = vmax.f32 %v792_v55, 0.0  ;;  %v1048_v62 = vmax.f32 %v920_v56, 0.0  ;;  %v795_v63 = vadd.f32 %v2006_v15, %v794_v59  ;;  %v923_v0 = vadd.f32 %v2006_v15, %v922_v60  ;;  %v796_v1 = vpop.f32.mrb[23].mxu0  ;;  %v924_v2 = vpop.f32.mrb[23].mxu1 }
 0x12e   : > { %v1641_v3 = vpack.c.bf16 %v1016_v61, %v1016_v61  ;;  %v1673_v4 = vpack.c.bf16 %v1048_v62, %v1048_v62  ;;  %v1017_v5 = vmax.f32 %v795_v63, 0.0  ;;  %v1049_v6 = vmax.f32 %v923_v0, 0.0 }
 0x130   : > { %1337 = vst.msk [vmem:[%s2016_s18 + $0x28] sm:$0xf] %vm1326_vm3, %v1641_v3  ;;  %1369 = vst.msk [vmem:[%s2016_s18 + $0xa8] sm:$0xf] %vm1326_vm3, %v1673_v4  ;;  %v1642_v7 = vpack.c.bf16 %v1017_v5, %v1017_v5  ;;  %v1674_v8 = vpack.c.bf16 %v1049_v6, %v1049_v6 }
 0x131   : > { %v799_v9 = vpop.f32.mrb[24].mxu0  ;;  %v927_v10 = vpop.f32.mrb[24].mxu1 }
 0x132   : > { %1338 = vst.msk [vmem:[%s2016_s18 + $0x2c] sm:$0xf] %vm1326_vm3, %v1642_v7  ;;  %1370 = vst.msk [vmem:[%s2016_s18 + $0xac] sm:$0xf] %vm1326_vm3, %v1674_v8  ;;  %v800_v11 = vadd.f32 %v2006_v15, %v799_v9  ;;  %v928_v12 = vadd.f32 %v2006_v15, %v927_v10  ;;  %v801_v13 = vpop.f32.mrb[25].mxu0  ;;  %v929_v14 = vpop.f32.mrb[25].mxu1 }
 0x133   : > { %v802_v16 = vpop.f32.mrb[26].mxu0  ;;  %v930_v17 = vpop.f32.mrb[26].mxu1 }
 0x134   : > { %v1018_v18 = vmax.f32 %v800_v11, 0.0  ;;  %v1050_v19 = vmax.f32 %v928_v12, 0.0  ;;  %v803_v20 = vadd.f32 %v2006_v15, %v802_v16  ;;  %v931_v21 = vadd.f32 %v2006_v15, %v930_v17  ;;  %v804_v22 = vpop.f32.mrb[27].mxu0  ;;  %v932_v23 = vpop.f32.mrb[27].mxu1 }
 0x136   : > { %v1643_v24 = vpack.c.bf16 %v1018_v18, %v1018_v18  ;;  %v1675_v25 = vpack.c.bf16 %v1050_v19, %v1050_v19  ;;  %v1019_v26 = vmax.f32 %v803_v20, 0.0  ;;  %v1051_v27 = vmax.f32 %v931_v21, 0.0 }
 0x138   : > { %1339 = vst.msk [vmem:[%s2016_s18 + $0x30] sm:$0xf] %vm1326_vm3, %v1643_v24  ;;  %1371 = vst.msk [vmem:[%s2016_s18 + $0xb0] sm:$0xf] %vm1326_vm3, %v1675_v25  ;;  %v1644_v28 = vpack.c.bf16 %v1019_v26, %v1019_v26  ;;  %v1676_v29 = vpack.c.bf16 %v1051_v27, %v1051_v27 }
 0x139   : > { %v807_v30 = vpop.f32.mrb[28].mxu0  ;;  %v935_v31 = vpop.f32.mrb[28].mxu1 }
 0x13a   : > { %1340 = vst.msk [vmem:[%s2016_s18 + $0x34] sm:$0xf] %vm1326_vm3, %v1644_v28  ;;  %1372 = vst.msk [vmem:[%s2016_s18 + $0xb4] sm:$0xf] %vm1326_vm3, %v1676_v29  ;;  %v808_v32 = vadd.f32 %v2006_v15, %v807_v30  ;;  %v936_v33 = vadd.f32 %v2006_v15, %v935_v31  ;;  %v809_v34 = vpop.f32.mrb[29].mxu0  ;;  %v937_v35 = vpop.f32.mrb[29].mxu1 }
 0x13b   : > { %v810_v36 = vpop.f32.mrb[30].mxu0  ;;  %v938_v37 = vpop.f32.mrb[30].mxu1 }
 0x13c   : > { %v1020_v38 = vmax.f32 %v808_v32, 0.0  ;;  %v1052_v39 = vmax.f32 %v936_v33, 0.0  ;;  %v811_v40 = vadd.f32 %v2006_v15, %v810_v36  ;;  %v939_v41 = vadd.f32 %v2006_v15, %v938_v37  ;;  %v812_v42 = vpop.f32.mrb[31].mxu0  ;;  %v940_v43 = vpop.f32.mrb[31].mxu1 }
 0x13e   : > { %v1645_v44 = vpack.c.bf16 %v1020_v38, %v1020_v38  ;;  %v1677_v45 = vpack.c.bf16 %v1052_v39, %v1052_v39  ;;  %v1021_v46 = vmax.f32 %v811_v40, 0.0  ;;  %v1053_v47 = vmax.f32 %v939_v41, 0.0 }
 0x140   : > { %1341 = vst.msk [vmem:[%s2016_s18 + $0x38] sm:$0xf] %vm1326_vm3, %v1645_v44  ;;  %1373 = vst.msk [vmem:[%s2016_s18 + $0xb8] sm:$0xf] %vm1326_vm3, %v1677_v45  ;;  %v1646_v48 = vpack.c.bf16 %v1021_v46, %v1021_v46  ;;  %v1678_v49 = vpack.c.bf16 %v1053_v47, %v1053_v47 }
 0x141   : > { %v815_v50 = vpop.f32.mrb[32].mxu0  ;;  %v943_v51 = vpop.f32.mrb[32].mxu1 }
 0x142   : > { %1342 = vst.msk [vmem:[%s2016_s18 + $0x3c] sm:$0xf] %vm1326_vm3, %v1646_v48  ;;  %1374 = vst.msk [vmem:[%s2016_s18 + $0xbc] sm:$0xf] %vm1326_vm3, %v1678_v49  ;;  %v816_v52 = vadd.f32 %v2006_v15, %v815_v50  ;;  %v944_v53 = vadd.f32 %v2006_v15, %v943_v51  ;;  %v817_v54 = vpop.f32.mrb[33].mxu0  ;;  %v945_v55 = vpop.f32.mrb[33].mxu1 }
 0x143   : > { %v818_v56 = vpop.f32.mrb[34].mxu0  ;;  %v946_v57 = vpop.f32.mrb[34].mxu1 }
 0x144   : > { %v1022_v58 = vmax.f32 %v816_v52, 0.0  ;;  %v1054_v59 = vmax.f32 %v944_v53, 0.0  ;;  %v819_v60 = vadd.f32 %v2006_v15, %v818_v56  ;;  %v947_v61 = vadd.f32 %v2006_v15, %v946_v57  ;;  %v820_v62 = vpop.f32.mrb[35].mxu0  ;;  %v948_v63 = vpop.f32.mrb[35].mxu1 }
 0x146   : > { %v1647_v0 = vpack.c.bf16 %v1022_v58, %v1022_v58  ;;  %v1679_v1 = vpack.c.bf16 %v1054_v59, %v1054_v59  ;;  %v1023_v2 = vmax.f32 %v819_v60, 0.0  ;;  %v1055_v3 = vmax.f32 %v947_v61, 0.0 }
 0x148   : > { %1343 = vst.msk [vmem:[%s2016_s18 + $0x40] sm:$0xf] %vm1326_vm3, %v1647_v0  ;;  %1375 = vst.msk [vmem:[%s2016_s18 + $0xc0] sm:$0xf] %vm1326_vm3, %v1679_v1  ;;  %v1648_v4 = vpack.c.bf16 %v1023_v2, %v1023_v2  ;;  %v1680_v5 = vpack.c.bf16 %v1055_v3, %v1055_v3 }
 0x149   : > { %v823_v6 = vpop.f32.mrb[36].mxu0  ;;  %v951_v7 = vpop.f32.mrb[36].mxu1 }
 0x14a   : > { %1344 = vst.msk [vmem:[%s2016_s18 + $0x44] sm:$0xf] %vm1326_vm3, %v1648_v4  ;;  %1376 = vst.msk [vmem:[%s2016_s18 + $0xc4] sm:$0xf] %vm1326_vm3, %v1680_v5  ;;  %v824_v8 = vadd.f32 %v2006_v15, %v823_v6  ;;  %v952_v9 = vadd.f32 %v2006_v15, %v951_v7  ;;  %v825_v10 = vpop.f32.mrb[37].mxu0  ;;  %v953_v11 = vpop.f32.mrb[37].mxu1 }
 0x14b   : > { %v826_v12 = vpop.f32.mrb[38].mxu0  ;;  %v954_v13 = vpop.f32.mrb[38].mxu1 }
 0x14c   : > { %v1024_v14 = vmax.f32 %v824_v8, 0.0  ;;  %v1056_v16 = vmax.f32 %v952_v9, 0.0  ;;  %v827_v17 = vadd.f32 %v2006_v15, %v826_v12  ;;  %v955_v18 = vadd.f32 %v2006_v15, %v954_v13  ;;  %v828_v19 = vpop.f32.mrb[39].mxu0  ;;  %v956_v20 = vpop.f32.mrb[39].mxu1 }
 0x14e   : > { %v1649_v21 = vpack.c.bf16 %v1024_v14, %v1024_v14  ;;  %v1681_v22 = vpack.c.bf16 %v1056_v16, %v1056_v16  ;;  %v1025_v23 = vmax.f32 %v827_v17, 0.0  ;;  %v1057_v24 = vmax.f32 %v955_v18, 0.0 }
 0x150   : > { %1345 = vst.msk [vmem:[%s2016_s18 + $0x48] sm:$0xf] %vm1326_vm3, %v1649_v21  ;;  %1377 = vst.msk [vmem:[%s2016_s18 + $0xc8] sm:$0xf] %vm1326_vm3, %v1681_v22  ;;  %v1650_v25 = vpack.c.bf16 %v1025_v23, %v1025_v23  ;;  %v1682_v26 = vpack.c.bf16 %v1057_v24, %v1057_v24 }
 0x151   : > { %v831_v27 = vpop.f32.mrb[40].mxu0  ;;  %v959_v28 = vpop.f32.mrb[40].mxu1 }
 0x152   : > { %1346 = vst.msk [vmem:[%s2016_s18 + $0x4c] sm:$0xf] %vm1326_vm3, %v1650_v25  ;;  %1378 = vst.msk [vmem:[%s2016_s18 + $0xcc] sm:$0xf] %vm1326_vm3, %v1682_v26  ;;  %v832_v29 = vadd.f32 %v2006_v15, %v831_v27  ;;  %v960_v30 = vadd.f32 %v2006_v15, %v959_v28  ;;  %v833_v31 = vpop.f32.mrb[41].mxu0  ;;  %v961_v32 = vpop.f32.mrb[41].mxu1 }
 0x153   : > { %v834_v33 = vpop.f32.mrb[42].mxu0  ;;  %v962_v34 = vpop.f32.mrb[42].mxu1 }
 0x154   : > { %v1026_v35 = vmax.f32 %v832_v29, 0.0  ;;  %v1058_v36 = vmax.f32 %v960_v30, 0.0  ;;  %v835_v37 = vadd.f32 %v2006_v15, %v834_v33  ;;  %v963_v38 = vadd.f32 %v2006_v15, %v962_v34  ;;  %v836_v39 = vpop.f32.mrb[43].mxu0  ;;  %v964_v40 = vpop.f32.mrb[43].mxu1 }
 0x156   : > { %v1651_v41 = vpack.c.bf16 %v1026_v35, %v1026_v35  ;;  %v1683_v42 = vpack.c.bf16 %v1058_v36, %v1058_v36  ;;  %v1027_v43 = vmax.f32 %v835_v37, 0.0  ;;  %v1059_v44 = vmax.f32 %v963_v38, 0.0 }
 0x158   : > { %1347 = vst.msk [vmem:[%s2016_s18 + $0x50] sm:$0xf] %vm1326_vm3, %v1651_v41  ;;  %1379 = vst.msk [vmem:[%s2016_s18 + $0xd0] sm:$0xf] %vm1326_vm3, %v1683_v42  ;;  %v1652_v45 = vpack.c.bf16 %v1027_v43, %v1027_v43  ;;  %v1684_v46 = vpack.c.bf16 %v1059_v44, %v1059_v44 }
 0x159   : > { %v839_v47 = vpop.f32.mrb[44].mxu0  ;;  %v967_v48 = vpop.f32.mrb[44].mxu1 }
 0x15a   : > { %1348 = vst.msk [vmem:[%s2016_s18 + $0x54] sm:$0xf] %vm1326_vm3, %v1652_v45  ;;  %1380 = vst.msk [vmem:[%s2016_s18 + $0xd4] sm:$0xf] %vm1326_vm3, %v1684_v46  ;;  %v840_v49 = vadd.f32 %v2006_v15, %v839_v47  ;;  %v968_v50 = vadd.f32 %v2006_v15, %v967_v48  ;;  %v841_v51 = vpop.f32.mrb[45].mxu0  ;;  %v969_v52 = vpop.f32.mrb[45].mxu1 }
 0x15b   : > { %v842_v53 = vpop.f32.mrb[46].mxu0  ;;  %v970_v54 = vpop.f32.mrb[46].mxu1 }
 0x15c   : > { %v1028_v55 = vmax.f32 %v840_v49, 0.0  ;;  %v1060_v56 = vmax.f32 %v968_v50, 0.0  ;;  %v843_v57 = vadd.f32 %v2006_v15, %v842_v53  ;;  %v971_v58 = vadd.f32 %v2006_v15, %v970_v54  ;;  %v844_v59 = vpop.f32.mrb[47].mxu0  ;;  %v972_v60 = vpop.f32.mrb[47].mxu1 }
 0x15e   : > { %v1653_v61 = vpack.c.bf16 %v1028_v55, %v1028_v55  ;;  %v1685_v62 = vpack.c.bf16 %v1060_v56, %v1060_v56  ;;  %v1029_v63 = vmax.f32 %v843_v57, 0.0  ;;  %v1061_v0 = vmax.f32 %v971_v58, 0.0 }
 0x160   : > { %1349 = vst.msk [vmem:[%s2016_s18 + $0x58] sm:$0xf] %vm1326_vm3, %v1653_v61  ;;  %1381 = vst.msk [vmem:[%s2016_s18 + $0xd8] sm:$0xf] %vm1326_vm3, %v1685_v62  ;;  %v1654_v1 = vpack.c.bf16 %v1029_v63, %v1029_v63  ;;  %v1686_v2 = vpack.c.bf16 %v1061_v0, %v1061_v0 }
 0x161   : > { %v847_v3 = vpop.f32.mrb[48].mxu0  ;;  %v975_v4 = vpop.f32.mrb[48].mxu1 }
 0x162   : > { %1350 = vst.msk [vmem:[%s2016_s18 + $0x5c] sm:$0xf] %vm1326_vm3, %v1654_v1  ;;  %1382 = vst.msk [vmem:[%s2016_s18 + $0xdc] sm:$0xf] %vm1326_vm3, %v1686_v2  ;;  %v848_v5 = vadd.f32 %v2006_v15, %v847_v3  ;;  %v976_v6 = vadd.f32 %v2006_v15, %v975_v4  ;;  %v849_v7 = vpop.f32.mrb[49].mxu0  ;;  %v977_v8 = vpop.f32.mrb[49].mxu1 }
 0x163   : > { %v850_v9 = vpop.f32.mrb[50].mxu0  ;;  %v978_v10 = vpop.f32.mrb[50].mxu1 }
 0x164   : > { %v1030_v11 = vmax.f32 %v848_v5, 0.0  ;;  %v1062_v12 = vmax.f32 %v976_v6, 0.0  ;;  %v851_v13 = vadd.f32 %v2006_v15, %v850_v9  ;;  %v979_v14 = vadd.f32 %v2006_v15, %v978_v10  ;;  %v852_v16 = vpop.f32.mrb[51].mxu0  ;;  %v980_v17 = vpop.f32.mrb[51].mxu1 }
 0x166   : > { %v1655_v18 = vpack.c.bf16 %v1030_v11, %v1030_v11  ;;  %v1687_v19 = vpack.c.bf16 %v1062_v12, %v1062_v12  ;;  %v1031_v20 = vmax.f32 %v851_v13, 0.0  ;;  %v1063_v21 = vmax.f32 %v979_v14, 0.0 }
 0x168   : > { %1351 = vst.msk [vmem:[%s2016_s18 + $0x60] sm:$0xf] %vm1326_vm3, %v1655_v18  ;;  %1383 = vst.msk [vmem:[%s2016_s18 + $0xe0] sm:$0xf] %vm1326_vm3, %v1687_v19  ;;  %v1656_v22 = vpack.c.bf16 %v1031_v20, %v1031_v20  ;;  %v1688_v23 = vpack.c.bf16 %v1063_v21, %v1063_v21 }
 0x169   : > { %v855_v24 = vpop.f32.mrb[52].mxu0  ;;  %v983_v25 = vpop.f32.mrb[52].mxu1 }
 0x16a   : > { %1352 = vst.msk [vmem:[%s2016_s18 + $0x64] sm:$0xf] %vm1326_vm3, %v1656_v22  ;;  %1384 = vst.msk [vmem:[%s2016_s18 + $0xe4] sm:$0xf] %vm1326_vm3, %v1688_v23  ;;  %v856_v26 = vadd.f32 %v2006_v15, %v855_v24  ;;  %v984_v27 = vadd.f32 %v2006_v15, %v983_v25  ;;  %v857_v28 = vpop.f32.mrb[53].mxu0  ;;  %v985_v29 = vpop.f32.mrb[53].mxu1 }
 0x16b   : > { %v858_v30 = vpop.f32.mrb[54].mxu0  ;;  %v986_v31 = vpop.f32.mrb[54].mxu1 }
 0x16c   : > { %v1032_v32 = vmax.f32 %v856_v26, 0.0  ;;  %v1064_v33 = vmax.f32 %v984_v27, 0.0  ;;  %v859_v34 = vadd.f32 %v2006_v15, %v858_v30  ;;  %v987_v35 = vadd.f32 %v2006_v15, %v986_v31  ;;  %v860_v36 = vpop.f32.mrb[55].mxu0  ;;  %v988_v37 = vpop.f32.mrb[55].mxu1 }
 0x16e   : > { %v1657_v38 = vpack.c.bf16 %v1032_v32, %v1032_v32  ;;  %v1689_v39 = vpack.c.bf16 %v1064_v33, %v1064_v33  ;;  %v1033_v40 = vmax.f32 %v859_v34, 0.0  ;;  %v1065_v41 = vmax.f32 %v987_v35, 0.0 }
 0x170   : > { %1353 = vst.msk [vmem:[%s2016_s18 + $0x68] sm:$0xf] %vm1326_vm3, %v1657_v38  ;;  %1385 = vst.msk [vmem:[%s2016_s18 + $0xe8] sm:$0xf] %vm1326_vm3, %v1689_v39  ;;  %v1658_v42 = vpack.c.bf16 %v1033_v40, %v1033_v40  ;;  %v1690_v43 = vpack.c.bf16 %v1065_v41, %v1065_v41 }
 0x171   : > { %v863_v44 = vpop.f32.mrb[56].mxu0  ;;  %v991_v45 = vpop.f32.mrb[56].mxu1 }
 0x172   : > { %1354 = vst.msk [vmem:[%s2016_s18 + $0x6c] sm:$0xf] %vm1326_vm3, %v1658_v42  ;;  %1386 = vst.msk [vmem:[%s2016_s18 + $0xec] sm:$0xf] %vm1326_vm3, %v1690_v43  ;;  %v864_v46 = vadd.f32 %v2006_v15, %v863_v44  ;;  %v992_v47 = vadd.f32 %v2006_v15, %v991_v45  ;;  %v865_v48 = vpop.f32.mrb[57].mxu0  ;;  %v993_v49 = vpop.f32.mrb[57].mxu1 }
 0x173   : > { %v866_v50 = vpop.f32.mrb[58].mxu0  ;;  %v994_v51 = vpop.f32.mrb[58].mxu1 }
 0x174   : > { %v1034_v52 = vmax.f32 %v864_v46, 0.0  ;;  %v1066_v53 = vmax.f32 %v992_v47, 0.0  ;;  %v867_v54 = vadd.f32 %v2006_v15, %v866_v50  ;;  %v995_v55 = vadd.f32 %v2006_v15, %v994_v51  ;;  %v868_v56 = vpop.f32.mrb[59].mxu0  ;;  %v996_v57 = vpop.f32.mrb[59].mxu1 }
 0x176   : > { %v1659_v58 = vpack.c.bf16 %v1034_v52, %v1034_v52  ;;  %v1691_v59 = vpack.c.bf16 %v1066_v53, %v1066_v53  ;;  %v1035_v60 = vmax.f32 %v867_v54, 0.0  ;;  %v1067_v61 = vmax.f32 %v995_v55, 0.0 }
 0x178   : > { %1355 = vst.msk [vmem:[%s2016_s18 + $0x70] sm:$0xf] %vm1326_vm3, %v1659_v58  ;;  %1387 = vst.msk [vmem:[%s2016_s18 + $0xf0] sm:$0xf] %vm1326_vm3, %v1691_v59  ;;  %v1660_v62 = vpack.c.bf16 %v1035_v60, %v1035_v60  ;;  %v1692_v63 = vpack.c.bf16 %v1067_v61, %v1067_v61 }
 0x179   : > { %v871_v0 = vpop.f32.mrb[60].mxu0  ;;  %v999_v1 = vpop.f32.mrb[60].mxu1 }
 0x17a   : > { %1356 = vst.msk [vmem:[%s2016_s18 + $0x74] sm:$0xf] %vm1326_vm3, %v1660_v62  ;;  %1388 = vst.msk [vmem:[%s2016_s18 + $0xf4] sm:$0xf] %vm1326_vm3, %v1692_v63  ;;  %v872_v2 = vadd.f32 %v2006_v15, %v871_v0  ;;  %v1000_v3 = vadd.f32 %v2006_v15, %v999_v1  ;;  %v873_v4 = vpop.f32.mrb[61].mxu0  ;;  %v1001_v5 = vpop.f32.mrb[61].mxu1 }
 0x17b   : > { %v874_v6 = vpop.f32.mrb[62].mxu0  ;;  %v1002_v7 = vpop.f32.mrb[62].mxu1 }
 0x17c   : > { %v1036_v8 = vmax.f32 %v872_v2, 0.0  ;;  %v1068_v9 = vmax.f32 %v1000_v3, 0.0  ;;  %v875_v10 = vadd.f32 %v2006_v15, %v874_v6  ;;  %v1003_v11 = vadd.f32 %v2006_v15, %v1002_v7  ;;  %v876_v12 = vpop.f32.mrb[63].mxu0  ;;  %v1004_v13 = vpop.f32.mrb[63].mxu1 }
 0x17e   : > { %v1661_v14 = vpack.c.bf16 %v1036_v8, %v1036_v8  ;;  %v1693_v16 = vpack.c.bf16 %v1068_v9, %v1068_v9  ;;  %v1037_v17 = vmax.f32 %v875_v10, 0.0  ;;  %v1069_v18 = vmax.f32 %v1003_v11, 0.0 }
 0x180   : > { %1357 = vst.msk [vmem:[%s2016_s18 + $0x78] sm:$0xf] %vm1326_vm3, %v1661_v14  ;;  %1389 = vst.msk [vmem:[%s2016_s18 + $0xf8] sm:$0xf] %vm1326_vm3, %v1693_v16  ;;  %v1662_v19 = vpack.c.bf16 %v1037_v17, %v1037_v17  ;;  %v1694_v20 = vpack.c.bf16 %v1069_v18, %v1069_v18 }
 0x182   : > { %1358 = vst.msk [vmem:[%s2016_s18 + $0x7c] sm:$0xf] %vm1326_vm3, %v1662_v19  ;;  %1390 = vst.msk [vmem:[%s2016_s18 + $0xfc] sm:$0xf] %vm1326_vm3, %v1694_v20 }
 0x183 PF: > { %s13_s12 = sadd.s32 1, %s1837_s12  }
 0x184   : > { %p10_p4 = scmp.ge.s32.totalorder %s13_s12, 6  }
 0x186   :  { %12 = sbr.rel (!%p10_p4) target bundleno = 1 (0x1), region = 62 }

// kernel: forward.22
= control target key start
LH: loop header
LB: loop body
LE: loop exit
PB: predicated region body
PF: predicated region fallthrough
CT: control target
= control target key end

     0   :  { %vm254_vm0 = vcmask 130048   ;;  %vm960_vm1 = vcmask 125952   ;;  %s1833_s1 = inlined_call_operand.vmem [shape: bf16[16,16], index: 1, kind: input, shape index: {}]   ;;  %s1834_s0 = inlined_call_operand.vmem [shape: bf16[512,16], index: 0, kind: input, shape index: {}]   ;;  %s1835_s2 = inlined_call_operand.vmem [shape: f32[1,16], index: 2, kind: input, shape index: {}]   ;;  %s1836_s3 = inlined_call_operand.vmem [shape: bf16[512,16], index: 3, kind: output, shape index: {}]  }
   0x1   :  { %v1324_v0 = vld [vmem:[%s1833_s1] sm:$0xff]   ;;  %v1327_v3 = vld [vmem:[%s1834_s0 + $0x8] sm:$0xff]   ;;  %v1329_v5 = vld [vmem:[%s1834_s0 + $0x10] sm:$0xff]  }
   0x2   :  { %v1325_v1 = vld [vmem:[%s1834_s0] sm:$0xff]   ;;  %1256 = vmatprep.subr.bf16.mxu0 %v1324_v0  ;;  %1322 = vmatprep.subr.bf16.mxu1 %v1324_v0  ;;  %v1328_v4 = vld [vmem:[%s1834_s0 + $0x88] sm:$0xff]   ;;  %v1330_v6 = vld [vmem:[%s1834_s0 + $0x90] sm:$0xff]  }
   0x3   :  { %v1326_v2 = vld [vmem:[%s1834_s0 + $0x80] sm:$0xff]   ;;  %1257 = vmatpush3.bf16.msra.mxu0 %v1324_v0  ;;  %1323 = vmatpush3.bf16.msra.mxu1 %v1324_v0  ;;  %v1331_v7 = vld [vmem:[%s1834_s0 + $0x18] sm:$0xff]   ;;  %v1335_v11 = vld [vmem:[%s1834_s0 + $0x28] sm:$0xff]  }
   0x4   :  { %1258 = vmatprep.mubr.msk.bf16.mxu0 %vm254_vm0, %v1325_v1  ;;  %1290 = vmatprep.mubr.msk.bf16.mxu1 %vm254_vm0, %v1326_v2  ;;  %v1332_v8 = vld [vmem:[%s1834_s0 + $0x98] sm:$0xff]   ;;  %v1333_v9 = vld [vmem:[%s1834_s0 + $0x20] sm:$0xff]   ;;  %v1336_v12 = vld [vmem:[%s1834_s0 + $0xa8] sm:$0xff]  }
   0x5   :  { %v1334_v10 = vld [vmem:[%s1834_s0 + $0xa0] sm:$0xff]   ;;  %v1337_v13 = vld [vmem:[%s1834_s0 + $0x30] sm:$0xff]   ;;  %v1339_v15 = vld [vmem:[%s1834_s0 + $0x38] sm:$0xff]  }
   0x6   :  { %1259 = vmatmul.mubr.msk.bf16.vlgmr.msra.gmra.mrb[0].mxu0 %vm254_vm0, %v1327_v3  ;;  %1291 = vmatmul.mubr.msk.bf16.vlgmr.msra.gmra.mrb[0].mxu1 %vm254_vm0, %v1328_v4  ;;  %v1338_v14 = vld [vmem:[%s1834_s0 + $0xb0] sm:$0xff]   ;;  %v1340_v16 = vld [vmem:[%s1834_s0 + $0xb8] sm:$0xff]   ;;  %v1341_v17 = vld [vmem:[%s1834_s0 + $0x40] sm:$0xff]  }
   0x7   :  { %1262 = vmatprep.mubr.msk.bf16.mxu0 %vm254_vm0, %v1329_v5  ;;  %1294 = vmatprep.mubr.msk.bf16.mxu1 %vm254_vm0, %v1330_v6  ;;  %v1342_v18 = vld [vmem:[%s1834_s0 + $0xc0] sm:$0xff]   ;;  %v1343_v19 = vld [vmem:[%s1834_s0 + $0x48] sm:$0xff]   ;;  %v1345_v21 = vld [vmem:[%s1834_s0 + $0x50] sm:$0xff]  }
   0x8   :  { %v1344_v20 = vld [vmem:[%s1834_s0 + $0xc8] sm:$0xff]   ;;  %v1346_v22 = vld [vmem:[%s1834_s0 + $0xd0] sm:$0xff]   ;;  %v1347_v23 = vld [vmem:[%s1834_s0 + $0x58] sm:$0xff]  }
   0x9   :  { %v1348_v24 = vld [vmem:[%s1834_s0 + $0xd8] sm:$0xff]   ;;  %v1349_v25 = vld [vmem:[%s1834_s0 + $0x60] sm:$0xff]   ;;  %v1351_v27 = vld [vmem:[%s1834_s0 + $0x68] sm:$0xff]  }
   0xa   :  { %v1350_v26 = vld [vmem:[%s1834_s0 + $0xe0] sm:$0xff]   ;;  %v1352_v28 = vld [vmem:[%s1834_s0 + $0xe8] sm:$0xff]   ;;  %v1353_v29 = vld [vmem:[%s1834_s0 + $0x70] sm:$0xff]  }
   0xb   :  { %v1354_v30 = vld [vmem:[%s1834_s0 + $0xf0] sm:$0xff]   ;;  %v1355_v31 = vld [vmem:[%s1834_s0 + $0x78] sm:$0xff]   ;;  %v1511_v33 = vld [vmem:[%s1835_s2] ss:$0 sm:$0xff] }
   0xc   :  { %v1356_v32 = vld [vmem:[%s1834_s0 + $0xf8] sm:$0xff]  }
   0xe   :  { %1263 = vmatmul.mubr.msk.bf16.gmra.mrb[4].mxu0 %vm254_vm0, %v1331_v7  ;;  %1295 = vmatmul.mubr.msk.bf16.gmra.mrb[4].mxu1 %vm254_vm0, %v1332_v8 }
   0xf   :  { %1266 = vmatprep.mubr.msk.bf16.mxu0 %vm254_vm0, %v1333_v9  ;;  %1298 = vmatprep.mubr.msk.bf16.mxu1 %vm254_vm0, %v1334_v10 }
  0x16   :  { %1267 = vmatmul.mubr.msk.bf16.gmra.mrb[8].mxu0 %vm254_vm0, %v1335_v11  ;;  %1299 = vmatmul.mubr.msk.bf16.gmra.mrb[8].mxu1 %vm254_vm0, %v1336_v12 }
  0x17   :  { %1270 = vmatprep.mubr.msk.bf16.mxu0 %vm254_vm0, %v1337_v13  ;;  %1302 = vmatprep.mubr.msk.bf16.mxu1 %vm254_vm0, %v1338_v14 }
  0x1e   :  { %1271 = vmatmul.mubr.msk.bf16.gmra.mrb[12].mxu0 %vm254_vm0, %v1339_v15  ;;  %1303 = vmatmul.mubr.msk.bf16.gmra.mrb[12].mxu1 %vm254_vm0, %v1340_v16 }
  0x1f   :  { %1274 = vmatprep.mubr.msk.bf16.mxu0 %vm254_vm0, %v1341_v17  ;;  %1306 = vmatprep.mubr.msk.bf16.mxu1 %vm254_vm0, %v1342_v18 }
  0x26   :  { %1275 = vmatmul.mubr.msk.bf16.gmra.mrb[16].mxu0 %vm254_vm0, %v1343_v19  ;;  %1307 = vmatmul.mubr.msk.bf16.gmra.mrb[16].mxu1 %vm254_vm0, %v1344_v20 }
  0x27   :  { %1278 = vmatprep.mubr.msk.bf16.mxu0 %vm254_vm0, %v1345_v21  ;;  %1310 = vmatprep.mubr.msk.bf16.mxu1 %vm254_vm0, %v1346_v22 }
  0x2e   :  { %1279 = vmatmul.mubr.msk.bf16.gmra.mrb[20].mxu0 %vm254_vm0, %v1347_v23  ;;  %1311 = vmatmul.mubr.msk.bf16.gmra.mrb[20].mxu1 %vm254_vm0, %v1348_v24 }
  0x2f   :  { %1282 = vmatprep.mubr.msk.bf16.mxu0 %vm254_vm0, %v1349_v25  ;;  %1314 = vmatprep.mubr.msk.bf16.mxu1 %vm254_vm0, %v1350_v26 }
  0x36   :  { %1283 = vmatmul.mubr.msk.bf16.gmra.mrb[24].mxu0 %vm254_vm0, %v1351_v27  ;;  %1315 = vmatmul.mubr.msk.bf16.gmra.mrb[24].mxu1 %vm254_vm0, %v1352_v28 }
  0x37   :  { %1286 = vmatprep.mubr.msk.bf16.mxu0 %vm254_vm0, %v1353_v29  ;;  %1318 = vmatprep.mubr.msk.bf16.mxu1 %vm254_vm0, %v1354_v30 }
  0x3e   :  { %1287 = vmatmul.mubr.msk.bf16.gmra.mrb[28].mxu0 %vm254_vm0, %v1355_v31  ;;  %1319 = vmatmul.mubr.msk.bf16.gmra.mrb[28].mxu1 %vm254_vm0, %v1356_v32 }
  0xd9   :  { %v1260_v34 = vpop.f32.mrb[0].mxu0  ;;  %v1292_v35 = vpop.f32.mrb[0].mxu1 }
  0xda   :  { %v394_v36 = vadd.f32 %v1260_v34, %v1511_v33  ;;  %v522_v37 = vadd.f32 %v1292_v35, %v1511_v33  ;;  %v385_v38 = vpop.f32.mrb[1].mxu0  ;;  %v513_v39 = vpop.f32.mrb[1].mxu1 }
  0xdb   :  { %v386_v40 = vadd.f32 %v1511_v33, %v385_v38  ;;  %v514_v41 = vadd.f32 %v1511_v33, %v513_v39  ;;  %v1261_v42 = vpop.f32.mrb[2].mxu0  ;;  %v1293_v43 = vpop.f32.mrb[2].mxu1 }
  0xdc   :  { %v642_v44 = vmax.f32 %v394_v36, 0.0  ;;  %v674_v45 = vmax.f32 %v522_v37, 0.0  ;;  %v397_v46 = vadd.f32 %v1261_v42, %v1511_v33  ;;  %v525_v47 = vadd.f32 %v1293_v43, %v1511_v33  ;;  %v388_v48 = vpop.f32.mrb[3].mxu0  ;;  %v516_v49 = vpop.f32.mrb[3].mxu1 }
  0xdd   :  { %v640_v50 = vmax.f32 %v386_v40, 0.0  ;;  %v672_v51 = vmax.f32 %v514_v41, 0.0  ;;  %v389_v52 = vadd.f32 %v1511_v33, %v388_v48  ;;  %v517_v53 = vadd.f32 %v1511_v33, %v516_v49 }
  0xde   :  { %v1161_v54 = vpack.c.bf16 %v642_v44, %v642_v44  ;;  %v1193_v55 = vpack.c.bf16 %v674_v45, %v674_v45  ;;  %v643_v56 = vmax.f32 %v397_v46, 0.0  ;;  %v675_v57 = vmax.f32 %v525_v47, 0.0 }
  0xdf   :  { %v1159_v58 = vpack.c.bf16 %v640_v50, %v640_v50  ;;  %v1191_v59 = vpack.c.bf16 %v672_v51, %v672_v51  ;;  %v641_v60 = vmax.f32 %v389_v52, 0.0  ;;  %v673_v61 = vmax.f32 %v517_v53, 0.0 }
  0xe0   :  { %963 = vst.msk [vmem:[%s1836_s3 + $0x8] sm:$0xf] %vm960_vm1, %v1161_v54  ;;  %995 = vst.msk [vmem:[%s1836_s3 + $0x88] sm:$0xf] %vm960_vm1, %v1193_v55  ;;  %v1162_v62 = vpack.c.bf16 %v643_v56, %v643_v56  ;;  %v1194_v63 = vpack.c.bf16 %v675_v57, %v675_v57 }
  0xe1   :  { %961 = vst.msk [vmem:[%s1836_s3] sm:$0xf] %vm960_vm1, %v1159_v58  ;;  %993 = vst.msk [vmem:[%s1836_s3 + $0x80] sm:$0xf] %vm960_vm1, %v1191_v59  ;;  %v1160_v0 = vpack.c.bf16 %v641_v60, %v641_v60  ;;  %v1192_v1 = vpack.c.bf16 %v673_v61, %v673_v61  ;;  %v1264_v2 = vpop.f32.mrb[4].mxu0  ;;  %v1296_v3 = vpop.f32.mrb[4].mxu1 }
  0xe2   :  { %964 = vst.msk [vmem:[%s1836_s3 + $0xc] sm:$0xf] %vm960_vm1, %v1162_v62  ;;  %996 = vst.msk [vmem:[%s1836_s3 + $0x8c] sm:$0xf] %vm960_vm1, %v1194_v63  ;;  %v410_v4 = vadd.f32 %v1264_v2, %v1511_v33  ;;  %v538_v5 = vadd.f32 %v1296_v3, %v1511_v33  ;;  %v401_v6 = vpop.f32.mrb[5].mxu0  ;;  %v529_v7 = vpop.f32.mrb[5].mxu1 }
  0xe3   :  { %962 = vst.msk [vmem:[%s1836_s3 + $0x4] sm:$0xf] %vm960_vm1, %v1160_v0  ;;  %994 = vst.msk [vmem:[%s1836_s3 + $0x84] sm:$0xf] %vm960_vm1, %v1192_v1  ;;  %v402_v8 = vadd.f32 %v1511_v33, %v401_v6  ;;  %v530_v9 = vadd.f32 %v1511_v33, %v529_v7  ;;  %v1265_v10 = vpop.f32.mrb[6].mxu0  ;;  %v1297_v11 = vpop.f32.mrb[6].mxu1 }
  0xe4   :  { %v646_v12 = vmax.f32 %v410_v4, 0.0  ;;  %v678_v13 = vmax.f32 %v538_v5, 0.0  ;;  %v413_v14 = vadd.f32 %v1265_v10, %v1511_v33  ;;  %v541_v15 = vadd.f32 %v1297_v11, %v1511_v33  ;;  %v404_v16 = vpop.f32.mrb[7].mxu0  ;;  %v532_v17 = vpop.f32.mrb[7].mxu1 }
  0xe5   :  { %v644_v18 = vmax.f32 %v402_v8, 0.0  ;;  %v676_v19 = vmax.f32 %v530_v9, 0.0  ;;  %v405_v20 = vadd.f32 %v1511_v33, %v404_v16  ;;  %v533_v21 = vadd.f32 %v1511_v33, %v532_v17 }
  0xe6   :  { %v1165_v22 = vpack.c.bf16 %v646_v12, %v646_v12  ;;  %v1197_v23 = vpack.c.bf16 %v678_v13, %v678_v13  ;;  %v647_v24 = vmax.f32 %v413_v14, 0.0  ;;  %v679_v25 = vmax.f32 %v541_v15, 0.0 }
  0xe7   :  { %v1163_v26 = vpack.c.bf16 %v644_v18, %v644_v18  ;;  %v1195_v27 = vpack.c.bf16 %v676_v19, %v676_v19  ;;  %v645_v28 = vmax.f32 %v405_v20, 0.0  ;;  %v677_v29 = vmax.f32 %v533_v21, 0.0 }
  0xe8   :  { %967 = vst.msk [vmem:[%s1836_s3 + $0x18] sm:$0xf] %vm960_vm1, %v1165_v22  ;;  %999 = vst.msk [vmem:[%s1836_s3 + $0x98] sm:$0xf] %vm960_vm1, %v1197_v23  ;;  %v1166_v30 = vpack.c.bf16 %v647_v24, %v647_v24  ;;  %v1198_v31 = vpack.c.bf16 %v679_v25, %v679_v25 }
  0xe9   :  { %965 = vst.msk [vmem:[%s1836_s3 + $0x10] sm:$0xf] %vm960_vm1, %v1163_v26  ;;  %997 = vst.msk [vmem:[%s1836_s3 + $0x90] sm:$0xf] %vm960_vm1, %v1195_v27  ;;  %v1164_v32 = vpack.c.bf16 %v645_v28, %v645_v28  ;;  %v1196_v34 = vpack.c.bf16 %v677_v29, %v677_v29  ;;  %v1268_v35 = vpop.f32.mrb[8].mxu0  ;;  %v1300_v36 = vpop.f32.mrb[8].mxu1 }
  0xea   :  { %968 = vst.msk [vmem:[%s1836_s3 + $0x1c] sm:$0xf] %vm960_vm1, %v1166_v30  ;;  %1000 = vst.msk [vmem:[%s1836_s3 + $0x9c] sm:$0xf] %vm960_vm1, %v1198_v31  ;;  %v426_v37 = vadd.f32 %v1268_v35, %v1511_v33  ;;  %v554_v38 = vadd.f32 %v1300_v36, %v1511_v33  ;;  %v417_v39 = vpop.f32.mrb[9].mxu0  ;;  %v545_v40 = vpop.f32.mrb[9].mxu1 }
  0xeb   :  { %966 = vst.msk [vmem:[%s1836_s3 + $0x14] sm:$0xf] %vm960_vm1, %v1164_v32  ;;  %998 = vst.msk [vmem:[%s1836_s3 + $0x94] sm:$0xf] %vm960_vm1, %v1196_v34  ;;  %v418_v41 = vadd.f32 %v1511_v33, %v417_v39  ;;  %v546_v42 = vadd.f32 %v1511_v33, %v545_v40  ;;  %v1269_v43 = vpop.f32.mrb[10].mxu0  ;;  %v1301_v44 = vpop.f32.mrb[10].mxu1 }
  0xec   :  { %v650_v45 = vmax.f32 %v426_v37, 0.0  ;;  %v682_v46 = vmax.f32 %v554_v38, 0.0  ;;  %v429_v47 = vadd.f32 %v1269_v43, %v1511_v33  ;;  %v557_v48 = vadd.f32 %v1301_v44, %v1511_v33  ;;  %v420_v49 = vpop.f32.mrb[11].mxu0  ;;  %v548_v50 = vpop.f32.mrb[11].mxu1 }
  0xed   :  { %v648_v51 = vmax.f32 %v418_v41, 0.0  ;;  %v680_v52 = vmax.f32 %v546_v42, 0.0  ;;  %v421_v53 = vadd.f32 %v1511_v33, %v420_v49  ;;  %v549_v54 = vadd.f32 %v1511_v33, %v548_v50 }
  0xee   :  { %v1169_v55 = vpack.c.bf16 %v650_v45, %v650_v45  ;;  %v1201_v56 = vpack.c.bf16 %v682_v46, %v682_v46  ;;  %v651_v57 = vmax.f32 %v429_v47, 0.0  ;;  %v683_v58 = vmax.f32 %v557_v48, 0.0 }
  0xef   :  { %v1167_v59 = vpack.c.bf16 %v648_v51, %v648_v51  ;;  %v1199_v60 = vpack.c.bf16 %v680_v52, %v680_v52  ;;  %v649_v61 = vmax.f32 %v421_v53, 0.0  ;;  %v681_v62 = vmax.f32 %v549_v54, 0.0 }
  0xf0   :  { %971 = vst.msk [vmem:[%s1836_s3 + $0x28] sm:$0xf] %vm960_vm1, %v1169_v55  ;;  %1003 = vst.msk [vmem:[%s1836_s3 + $0xa8] sm:$0xf] %vm960_vm1, %v1201_v56  ;;  %v1170_v63 = vpack.c.bf16 %v651_v57, %v651_v57  ;;  %v1202_v0 = vpack.c.bf16 %v683_v58, %v683_v58 }
  0xf1   :  { %969 = vst.msk [vmem:[%s1836_s3 + $0x20] sm:$0xf] %vm960_vm1, %v1167_v59  ;;  %1001 = vst.msk [vmem:[%s1836_s3 + $0xa0] sm:$0xf] %vm960_vm1, %v1199_v60  ;;  %v1168_v1 = vpack.c.bf16 %v649_v61, %v649_v61  ;;  %v1200_v2 = vpack.c.bf16 %v681_v62, %v681_v62  ;;  %v1272_v3 = vpop.f32.mrb[12].mxu0  ;;  %v1304_v4 = vpop.f32.mrb[12].mxu1 }
  0xf2   :  { %972 = vst.msk [vmem:[%s1836_s3 + $0x2c] sm:$0xf] %vm960_vm1, %v1170_v63  ;;  %1004 = vst.msk [vmem:[%s1836_s3 + $0xac] sm:$0xf] %vm960_vm1, %v1202_v0  ;;  %v442_v5 = vadd.f32 %v1272_v3, %v1511_v33  ;;  %v570_v6 = vadd.f32 %v1304_v4, %v1511_v33  ;;  %v433_v7 = vpop.f32.mrb[13].mxu0  ;;  %v561_v8 = vpop.f32.mrb[13].mxu1 }
  0xf3   :  { %970 = vst.msk [vmem:[%s1836_s3 + $0x24] sm:$0xf] %vm960_vm1, %v1168_v1  ;;  %1002 = vst.msk [vmem:[%s1836_s3 + $0xa4] sm:$0xf] %vm960_vm1, %v1200_v2  ;;  %v434_v9 = vadd.f32 %v1511_v33, %v433_v7  ;;  %v562_v10 = vadd.f32 %v1511_v33, %v561_v8  ;;  %v1273_v11 = vpop.f32.mrb[14].mxu0  ;;  %v1305_v12 = vpop.f32.mrb[14].mxu1 }
  0xf4   :  { %v654_v13 = vmax.f32 %v442_v5, 0.0  ;;  %v686_v14 = vmax.f32 %v570_v6, 0.0  ;;  %v445_v15 = vadd.f32 %v1273_v11, %v1511_v33  ;;  %v573_v16 = vadd.f32 %v1305_v12, %v1511_v33  ;;  %v436_v17 = vpop.f32.mrb[15].mxu0  ;;  %v564_v18 = vpop.f32.mrb[15].mxu1 }
  0xf5   :  { %v652_v19 = vmax.f32 %v434_v9, 0.0  ;;  %v684_v20 = vmax.f32 %v562_v10, 0.0  ;;  %v437_v21 = vadd.f32 %v1511_v33, %v436_v17  ;;  %v565_v22 = vadd.f32 %v1511_v33, %v564_v18 }
  0xf6   :  { %v1173_v23 = vpack.c.bf16 %v654_v13, %v654_v13  ;;  %v1205_v24 = vpack.c.bf16 %v686_v14, %v686_v14  ;;  %v655_v25 = vmax.f32 %v445_v15, 0.0  ;;  %v687_v26 = vmax.f32 %v573_v16, 0.0 }
  0xf7   :  { %v1171_v27 = vpack.c.bf16 %v652_v19, %v652_v19  ;;  %v1203_v28 = vpack.c.bf16 %v684_v20, %v684_v20  ;;  %v653_v29 = vmax.f32 %v437_v21, 0.0  ;;  %v685_v30 = vmax.f32 %v565_v22, 0.0 }
  0xf8   :  { %975 = vst.msk [vmem:[%s1836_s3 + $0x38] sm:$0xf] %vm960_vm1, %v1173_v23  ;;  %1007 = vst.msk [vmem:[%s1836_s3 + $0xb8] sm:$0xf] %vm960_vm1, %v1205_v24  ;;  %v1174_v31 = vpack.c.bf16 %v655_v25, %v655_v25  ;;  %v1206_v32 = vpack.c.bf16 %v687_v26, %v687_v26 }
  0xf9   :  { %973 = vst.msk [vmem:[%s1836_s3 + $0x30] sm:$0xf] %vm960_vm1, %v1171_v27  ;;  %1005 = vst.msk [vmem:[%s1836_s3 + $0xb0] sm:$0xf] %vm960_vm1, %v1203_v28  ;;  %v1172_v34 = vpack.c.bf16 %v653_v29, %v653_v29  ;;  %v1204_v35 = vpack.c.bf16 %v685_v30, %v685_v30  ;;  %v1276_v36 = vpop.f32.mrb[16].mxu0  ;;  %v1308_v37 = vpop.f32.mrb[16].mxu1 }
  0xfa   :  { %976 = vst.msk [vmem:[%s1836_s3 + $0x3c] sm:$0xf] %vm960_vm1, %v1174_v31  ;;  %1008 = vst.msk [vmem:[%s1836_s3 + $0xbc] sm:$0xf] %vm960_vm1, %v1206_v32  ;;  %v458_v38 = vadd.f32 %v1276_v36, %v1511_v33  ;;  %v586_v39 = vadd.f32 %v1308_v37, %v1511_v33  ;;  %v449_v40 = vpop.f32.mrb[17].mxu0  ;;  %v577_v41 = vpop.f32.mrb[17].mxu1 }
  0xfb   :  { %974 = vst.msk [vmem:[%s1836_s3 + $0x34] sm:$0xf] %vm960_vm1, %v1172_v34  ;;  %1006 = vst.msk [vmem:[%s1836_s3 + $0xb4] sm:$0xf] %vm960_vm1, %v1204_v35  ;;  %v450_v42 = vadd.f32 %v1511_v33, %v449_v40  ;;  %v578_v43 = vadd.f32 %v1511_v33, %v577_v41  ;;  %v1277_v44 = vpop.f32.mrb[18].mxu0  ;;  %v1309_v45 = vpop.f32.mrb[18].mxu1 }
  0xfc   :  { %v658_v46 = vmax.f32 %v458_v38, 0.0  ;;  %v690_v47 = vmax.f32 %v586_v39, 0.0  ;;  %v461_v48 = vadd.f32 %v1277_v44, %v1511_v33  ;;  %v589_v49 = vadd.f32 %v1309_v45, %v1511_v33  ;;  %v452_v50 = vpop.f32.mrb[19].mxu0  ;;  %v580_v51 = vpop.f32.mrb[19].mxu1 }
  0xfd   :  { %v656_v52 = vmax.f32 %v450_v42, 0.0  ;;  %v688_v53 = vmax.f32 %v578_v43, 0.0  ;;  %v453_v54 = vadd.f32 %v1511_v33, %v452_v50  ;;  %v581_v55 = vadd.f32 %v1511_v33, %v580_v51 }
  0xfe   :  { %v1177_v56 = vpack.c.bf16 %v658_v46, %v658_v46  ;;  %v1209_v57 = vpack.c.bf16 %v690_v47, %v690_v47  ;;  %v659_v58 = vmax.f32 %v461_v48, 0.0  ;;  %v691_v59 = vmax.f32 %v589_v49, 0.0 }
  0xff   :  { %v1175_v60 = vpack.c.bf16 %v656_v52, %v656_v52  ;;  %v1207_v61 = vpack.c.bf16 %v688_v53, %v688_v53  ;;  %v657_v62 = vmax.f32 %v453_v54, 0.0  ;;  %v689_v63 = vmax.f32 %v581_v55, 0.0 }
 0x100   :  { %979 = vst.msk [vmem:[%s1836_s3 + $0x48] sm:$0xf] %vm960_vm1, %v1177_v56  ;;  %1011 = vst.msk [vmem:[%s1836_s3 + $0xc8] sm:$0xf] %vm960_vm1, %v1209_v57  ;;  %v1178_v0 = vpack.c.bf16 %v659_v58, %v659_v58  ;;  %v1210_v1 = vpack.c.bf16 %v691_v59, %v691_v59 }
 0x101   :  { %977 = vst.msk [vmem:[%s1836_s3 + $0x40] sm:$0xf] %vm960_vm1, %v1175_v60  ;;  %1009 = vst.msk [vmem:[%s1836_s3 + $0xc0] sm:$0xf] %vm960_vm1, %v1207_v61  ;;  %v1176_v2 = vpack.c.bf16 %v657_v62, %v657_v62  ;;  %v1208_v3 = vpack.c.bf16 %v689_v63, %v689_v63  ;;  %v1280_v4 = vpop.f32.mrb[20].mxu0  ;;  %v1312_v5 = vpop.f32.mrb[20].mxu1 }
 0x102   :  { %980 = vst.msk [vmem:[%s1836_s3 + $0x4c] sm:$0xf] %vm960_vm1, %v1178_v0  ;;  %1012 = vst.msk [vmem:[%s1836_s3 + $0xcc] sm:$0xf] %vm960_vm1, %v1210_v1  ;;  %v474_v6 = vadd.f32 %v1280_v4, %v1511_v33  ;;  %v602_v7 = vadd.f32 %v1312_v5, %v1511_v33  ;;  %v465_v8 = vpop.f32.mrb[21].mxu0  ;;  %v593_v9 = vpop.f32.mrb[21].mxu1 }
 0x103   :  { %978 = vst.msk [vmem:[%s1836_s3 + $0x44] sm:$0xf] %vm960_vm1, %v1176_v2  ;;  %1010 = vst.msk [vmem:[%s1836_s3 + $0xc4] sm:$0xf] %vm960_vm1, %v1208_v3  ;;  %v466_v10 = vadd.f32 %v1511_v33, %v465_v8  ;;  %v594_v11 = vadd.f32 %v1511_v33, %v593_v9  ;;  %v1281_v12 = vpop.f32.mrb[22].mxu0  ;;  %v1313_v13 = vpop.f32.mrb[22].mxu1 }
 0x104   :  { %v662_v14 = vmax.f32 %v474_v6, 0.0  ;;  %v694_v15 = vmax.f32 %v602_v7, 0.0  ;;  %v477_v16 = vadd.f32 %v1281_v12, %v1511_v33  ;;  %v605_v17 = vadd.f32 %v1313_v13, %v1511_v33  ;;  %v468_v18 = vpop.f32.mrb[23].mxu0  ;;  %v596_v19 = vpop.f32.mrb[23].mxu1 }
 0x105   :  { %v660_v20 = vmax.f32 %v466_v10, 0.0  ;;  %v692_v21 = vmax.f32 %v594_v11, 0.0  ;;  %v469_v22 = vadd.f32 %v1511_v33, %v468_v18  ;;  %v597_v23 = vadd.f32 %v1511_v33, %v596_v19 }
 0x106   :  { %v1181_v24 = vpack.c.bf16 %v662_v14, %v662_v14  ;;  %v1213_v25 = vpack.c.bf16 %v694_v15, %v694_v15  ;;  %v663_v26 = vmax.f32 %v477_v16, 0.0  ;;  %v695_v27 = vmax.f32 %v605_v17, 0.0 }
 0x107   :  { %v1179_v28 = vpack.c.bf16 %v660_v20, %v660_v20  ;;  %v1211_v29 = vpack.c.bf16 %v692_v21, %v692_v21  ;;  %v661_v30 = vmax.f32 %v469_v22, 0.0  ;;  %v693_v31 = vmax.f32 %v597_v23, 0.0 }
 0x108   :  { %983 = vst.msk [vmem:[%s1836_s3 + $0x58] sm:$0xf] %vm960_vm1, %v1181_v24  ;;  %1015 = vst.msk [vmem:[%s1836_s3 + $0xd8] sm:$0xf] %vm960_vm1, %v1213_v25  ;;  %v1182_v32 = vpack.c.bf16 %v663_v26, %v663_v26  ;;  %v1214_v34 = vpack.c.bf16 %v695_v27, %v695_v27 }
 0x109   :  { %981 = vst.msk [vmem:[%s1836_s3 + $0x50] sm:$0xf] %vm960_vm1, %v1179_v28  ;;  %1013 = vst.msk [vmem:[%s1836_s3 + $0xd0] sm:$0xf] %vm960_vm1, %v1211_v29  ;;  %v1180_v35 = vpack.c.bf16 %v661_v30, %v661_v30  ;;  %v1212_v36 = vpack.c.bf16 %v693_v31, %v693_v31  ;;  %v1284_v37 = vpop.f32.mrb[24].mxu0  ;;  %v1316_v38 = vpop.f32.mrb[24].mxu1 }
 0x10a   :  { %984 = vst.msk [vmem:[%s1836_s3 + $0x5c] sm:$0xf] %vm960_vm1, %v1182_v32  ;;  %1016 = vst.msk [vmem:[%s1836_s3 + $0xdc] sm:$0xf] %vm960_vm1, %v1214_v34  ;;  %v490_v39 = vadd.f32 %v1284_v37, %v1511_v33  ;;  %v618_v40 = vadd.f32 %v1316_v38, %v1511_v33  ;;  %v481_v41 = vpop.f32.mrb[25].mxu0  ;;  %v609_v42 = vpop.f32.mrb[25].mxu1 }
 0x10b   :  { %982 = vst.msk [vmem:[%s1836_s3 + $0x54] sm:$0xf] %vm960_vm1, %v1180_v35  ;;  %1014 = vst.msk [vmem:[%s1836_s3 + $0xd4] sm:$0xf] %vm960_vm1, %v1212_v36  ;;  %v482_v43 = vadd.f32 %v1511_v33, %v481_v41  ;;  %v610_v44 = vadd.f32 %v1511_v33, %v609_v42  ;;  %v1285_v45 = vpop.f32.mrb[26].mxu0  ;;  %v1317_v46 = vpop.f32.mrb[26].mxu1 }
 0x10c   :  { %v666_v47 = vmax.f32 %v490_v39, 0.0  ;;  %v698_v48 = vmax.f32 %v618_v40, 0.0  ;;  %v493_v49 = vadd.f32 %v1285_v45, %v1511_v33  ;;  %v621_v50 = vadd.f32 %v1317_v46, %v1511_v33  ;;  %v484_v51 = vpop.f32.mrb[27].mxu0  ;;  %v612_v52 = vpop.f32.mrb[27].mxu1 }
 0x10d   :  { %v664_v53 = vmax.f32 %v482_v43, 0.0  ;;  %v696_v54 = vmax.f32 %v610_v44, 0.0  ;;  %v485_v55 = vadd.f32 %v1511_v33, %v484_v51  ;;  %v613_v56 = vadd.f32 %v1511_v33, %v612_v52 }
 0x10e   :  { %v1185_v57 = vpack.c.bf16 %v666_v47, %v666_v47  ;;  %v1217_v58 = vpack.c.bf16 %v698_v48, %v698_v48  ;;  %v667_v59 = vmax.f32 %v493_v49, 0.0  ;;  %v699_v60 = vmax.f32 %v621_v50, 0.0 }
 0x10f   :  { %v1183_v61 = vpack.c.bf16 %v664_v53, %v664_v53  ;;  %v1215_v62 = vpack.c.bf16 %v696_v54, %v696_v54  ;;  %v665_v63 = vmax.f32 %v485_v55, 0.0  ;;  %v697_v0 = vmax.f32 %v613_v56, 0.0 }
 0x110   :  { %987 = vst.msk [vmem:[%s1836_s3 + $0x68] sm:$0xf] %vm960_vm1, %v1185_v57  ;;  %1019 = vst.msk [vmem:[%s1836_s3 + $0xe8] sm:$0xf] %vm960_vm1, %v1217_v58  ;;  %v1186_v1 = vpack.c.bf16 %v667_v59, %v667_v59  ;;  %v1218_v2 = vpack.c.bf16 %v699_v60, %v699_v60 }
 0x111   :  { %985 = vst.msk [vmem:[%s1836_s3 + $0x60] sm:$0xf] %vm960_vm1, %v1183_v61  ;;  %1017 = vst.msk [vmem:[%s1836_s3 + $0xe0] sm:$0xf] %vm960_vm1, %v1215_v62  ;;  %v1184_v3 = vpack.c.bf16 %v665_v63, %v665_v63  ;;  %v1216_v4 = vpack.c.bf16 %v697_v0, %v697_v0  ;;  %v1288_v5 = vpop.f32.mrb[28].mxu0  ;;  %v1320_v6 = vpop.f32.mrb[28].mxu1 }
 0x112   :  { %988 = vst.msk [vmem:[%s1836_s3 + $0x6c] sm:$0xf] %vm960_vm1, %v1186_v1  ;;  %1020 = vst.msk [vmem:[%s1836_s3 + $0xec] sm:$0xf] %vm960_vm1, %v1218_v2  ;;  %v506_v7 = vadd.f32 %v1288_v5, %v1511_v33  ;;  %v634_v8 = vadd.f32 %v1320_v6, %v1511_v33  ;;  %v497_v9 = vpop.f32.mrb[29].mxu0  ;;  %v625_v10 = vpop.f32.mrb[29].mxu1 }
 0x113   :  { %986 = vst.msk [vmem:[%s1836_s3 + $0x64] sm:$0xf] %vm960_vm1, %v1184_v3  ;;  %1018 = vst.msk [vmem:[%s1836_s3 + $0xe4] sm:$0xf] %vm960_vm1, %v1216_v4  ;;  %v498_v11 = vadd.f32 %v1511_v33, %v497_v9  ;;  %v626_v12 = vadd.f32 %v1511_v33, %v625_v10  ;;  %v1289_v13 = vpop.f32.mrb[30].mxu0  ;;  %v1321_v14 = vpop.f32.mrb[30].mxu1 }
 0x114   :  { %v670_v15 = vmax.f32 %v506_v7, 0.0  ;;  %v702_v16 = vmax.f32 %v634_v8, 0.0  ;;  %v509_v17 = vadd.f32 %v1289_v13, %v1511_v33  ;;  %v637_v18 = vadd.f32 %v1321_v14, %v1511_v33  ;;  %v500_v19 = vpop.f32.mrb[31].mxu0  ;;  %v628_v20 = vpop.f32.mrb[31].mxu1 }
 0x115   :  { %v668_v21 = vmax.f32 %v498_v11, 0.0  ;;  %v700_v22 = vmax.f32 %v626_v12, 0.0  ;;  %v501_v23 = vadd.f32 %v1511_v33, %v500_v19  ;;  %v629_v24 = vadd.f32 %v1511_v33, %v628_v20 }
 0x116   :  { %v1189_v25 = vpack.c.bf16 %v670_v15, %v670_v15  ;;  %v1221_v26 = vpack.c.bf16 %v702_v16, %v702_v16  ;;  %v671_v27 = vmax.f32 %v509_v17, 0.0  ;;  %v703_v28 = vmax.f32 %v637_v18, 0.0 }
 0x117   :  { %v1187_v29 = vpack.c.bf16 %v668_v21, %v668_v21  ;;  %v1219_v30 = vpack.c.bf16 %v700_v22, %v700_v22  ;;  %v669_v31 = vmax.f32 %v501_v23, 0.0  ;;  %v701_v32 = vmax.f32 %v629_v24, 0.0 }
 0x118   :  { %991 = vst.msk [vmem:[%s1836_s3 + $0x78] sm:$0xf] %vm960_vm1, %v1189_v25  ;;  %1023 = vst.msk [vmem:[%s1836_s3 + $0xf8] sm:$0xf] %vm960_vm1, %v1221_v26  ;;  %v1190_v34 = vpack.c.bf16 %v671_v27, %v671_v27  ;;  %v1222_v33 = vpack.c.bf16 %v703_v28, %v703_v28 }
 0x119   :  { %989 = vst.msk [vmem:[%s1836_s3 + $0x70] sm:$0xf] %vm960_vm1, %v1187_v29  ;;  %1021 = vst.msk [vmem:[%s1836_s3 + $0xf0] sm:$0xf] %vm960_vm1, %v1219_v30  ;;  %v1188_v35 = vpack.c.bf16 %v669_v31, %v669_v31  ;;  %v1220_v36 = vpack.c.bf16 %v701_v32, %v701_v32 }
 0x11a   :  { %992 = vst.msk [vmem:[%s1836_s3 + $0x7c] sm:$0xf] %vm960_vm1, %v1190_v34  ;;  %1024 = vst.msk [vmem:[%s1836_s3 + $0xfc] sm:$0xf] %vm960_vm1, %v1222_v33 }
 0x11b   :  { %990 = vst.msk [vmem:[%s1836_s3 + $0x74] sm:$0xf] %vm960_vm1, %v1188_v35  ;;  %1022 = vst.msk [vmem:[%s1836_s3 + $0xf4] sm:$0xf] %vm960_vm1, %v1220_v36 }

// kernel: forward.24
= control target key start
LH: loop header
LB: loop body
LE: loop exit
PB: predicated region body
PF: predicated region fallthrough
CT: control target
= control target key end

     0   :  { %vm254_vm0 = vcmask 130048   ;;  %vm896_vm1 = vcmask 519168   ;;  %s1769_s1 = inlined_call_operand.vmem [shape: bf16[16,64], index: 1, kind: input, shape index: {}]   ;;  %s1770_s0 = inlined_call_operand.vmem [shape: bf16[512,16], index: 0, kind: input, shape index: {}]   ;;  %s1771_s2 = inlined_call_operand.vmem [shape: f32[1,64], index: 2, kind: input, shape index: {}]   ;;  %s1772_s3 = inlined_call_operand.vmem [shape: bf16[512,64], index: 3, kind: output, shape index: {}]  }
   0x1   :  { %v1260_v0 = vld [vmem:[%s1769_s1] sm:$0xff]   ;;  %v1263_v3 = vld [vmem:[%s1770_s0 + $0x8] sm:$0xff]   ;;  %v1265_v5 = vld [vmem:[%s1770_s0 + $0x10] sm:$0xff]  }
   0x2   :  { %v1261_v1 = vld [vmem:[%s1770_s0] sm:$0xff]   ;;  %1192 = vmatprep.subr.bf16.mxu0 %v1260_v0  ;;  %1258 = vmatprep.subr.bf16.mxu1 %v1260_v0  ;;  %v1264_v4 = vld [vmem:[%s1770_s0 + $0x88] sm:$0xff]   ;;  %v1266_v6 = vld [vmem:[%s1770_s0 + $0x90] sm:$0xff]  }
   0x3   :  { %v1262_v2 = vld [vmem:[%s1770_s0 + $0x80] sm:$0xff]   ;;  %1193 = vmatpush3.bf16.msra.mxu0 %v1260_v0  ;;  %1259 = vmatpush3.bf16.msra.mxu1 %v1260_v0  ;;  %v1267_v7 = vld [vmem:[%s1770_s0 + $0x18] sm:$0xff]   ;;  %v1271_v11 = vld [vmem:[%s1770_s0 + $0x28] sm:$0xff]  }
   0x4   :  { %1194 = vmatprep.mubr.msk.bf16.mxu0 %vm254_vm0, %v1261_v1  ;;  %1226 = vmatprep.mubr.msk.bf16.mxu1 %vm254_vm0, %v1262_v2  ;;  %v1268_v8 = vld [vmem:[%s1770_s0 + $0x98] sm:$0xff]   ;;  %v1269_v9 = vld [vmem:[%s1770_s0 + $0x20] sm:$0xff]   ;;  %v1272_v12 = vld [vmem:[%s1770_s0 + $0xa8] sm:$0xff]  }
   0x5   :  { %v1270_v10 = vld [vmem:[%s1770_s0 + $0xa0] sm:$0xff]   ;;  %v1273_v13 = vld [vmem:[%s1770_s0 + $0x30] sm:$0xff]   ;;  %v1275_v15 = vld [vmem:[%s1770_s0 + $0x38] sm:$0xff]  }
   0x6   :  { %1195 = vmatmul.mubr.msk.bf16.vlgmr.msra.gmra.mrb[0].mxu0 %vm254_vm0, %v1263_v3  ;;  %1227 = vmatmul.mubr.msk.bf16.vlgmr.msra.gmra.mrb[0].mxu1 %vm254_vm0, %v1264_v4  ;;  %v1274_v14 = vld [vmem:[%s1770_s0 + $0xb0] sm:$0xff]   ;;  %v1276_v16 = vld [vmem:[%s1770_s0 + $0xb8] sm:$0xff]   ;;  %v1277_v17 = vld [vmem:[%s1770_s0 + $0x40] sm:$0xff]  }
   0x7   :  { %1198 = vmatprep.mubr.msk.bf16.mxu0 %vm254_vm0, %v1265_v5  ;;  %1230 = vmatprep.mubr.msk.bf16.mxu1 %vm254_vm0, %v1266_v6  ;;  %v1278_v18 = vld [vmem:[%s1770_s0 + $0xc0] sm:$0xff]   ;;  %v1279_v19 = vld [vmem:[%s1770_s0 + $0x48] sm:$0xff]   ;;  %v1281_v21 = vld [vmem:[%s1770_s0 + $0x50] sm:$0xff]  }
   0x8   :  { %v1280_v20 = vld [vmem:[%s1770_s0 + $0xc8] sm:$0xff]   ;;  %v1282_v22 = vld [vmem:[%s1770_s0 + $0xd0] sm:$0xff]   ;;  %v1283_v23 = vld [vmem:[%s1770_s0 + $0x58] sm:$0xff]  }
   0x9   :  { %v1284_v24 = vld [vmem:[%s1770_s0 + $0xd8] sm:$0xff]   ;;  %v1285_v25 = vld [vmem:[%s1770_s0 + $0x60] sm:$0xff]   ;;  %v1287_v27 = vld [vmem:[%s1770_s0 + $0x68] sm:$0xff]  }
   0xa   :  { %v1286_v26 = vld [vmem:[%s1770_s0 + $0xe0] sm:$0xff]   ;;  %v1288_v28 = vld [vmem:[%s1770_s0 + $0xe8] sm:$0xff]   ;;  %v1289_v29 = vld [vmem:[%s1770_s0 + $0x70] sm:$0xff]  }
   0xb   :  { %v1290_v30 = vld [vmem:[%s1770_s0 + $0xf0] sm:$0xff]   ;;  %v1291_v31 = vld [vmem:[%s1770_s0 + $0x78] sm:$0xff]   ;;  %v1447_v33 = vld [vmem:[%s1771_s2] ss:$0 sm:$0xff] }
   0xc   :  { %v1292_v32 = vld [vmem:[%s1770_s0 + $0xf8] sm:$0xff]  }
   0xe   :  { %1199 = vmatmul.mubr.msk.bf16.gmra.mrb[4].mxu0 %vm254_vm0, %v1267_v7  ;;  %1231 = vmatmul.mubr.msk.bf16.gmra.mrb[4].mxu1 %vm254_vm0, %v1268_v8 }
   0xf   :  { %1202 = vmatprep.mubr.msk.bf16.mxu0 %vm254_vm0, %v1269_v9  ;;  %1234 = vmatprep.mubr.msk.bf16.mxu1 %vm254_vm0, %v1270_v10 }
  0x16   :  { %1203 = vmatmul.mubr.msk.bf16.gmra.mrb[8].mxu0 %vm254_vm0, %v1271_v11  ;;  %1235 = vmatmul.mubr.msk.bf16.gmra.mrb[8].mxu1 %vm254_vm0, %v1272_v12 }
  0x17   :  { %1206 = vmatprep.mubr.msk.bf16.mxu0 %vm254_vm0, %v1273_v13  ;;  %1238 = vmatprep.mubr.msk.bf16.mxu1 %vm254_vm0, %v1274_v14 }
  0x1e   :  { %1207 = vmatmul.mubr.msk.bf16.gmra.mrb[12].mxu0 %vm254_vm0, %v1275_v15  ;;  %1239 = vmatmul.mubr.msk.bf16.gmra.mrb[12].mxu1 %vm254_vm0, %v1276_v16 }
  0x1f   :  { %1210 = vmatprep.mubr.msk.bf16.mxu0 %vm254_vm0, %v1277_v17  ;;  %1242 = vmatprep.mubr.msk.bf16.mxu1 %vm254_vm0, %v1278_v18 }
  0x26   :  { %1211 = vmatmul.mubr.msk.bf16.gmra.mrb[16].mxu0 %vm254_vm0, %v1279_v19  ;;  %1243 = vmatmul.mubr.msk.bf16.gmra.mrb[16].mxu1 %vm254_vm0, %v1280_v20 }
  0x27   :  { %1214 = vmatprep.mubr.msk.bf16.mxu0 %vm254_vm0, %v1281_v21  ;;  %1246 = vmatprep.mubr.msk.bf16.mxu1 %vm254_vm0, %v1282_v22 }
  0x2e   :  { %1215 = vmatmul.mubr.msk.bf16.gmra.mrb[20].mxu0 %vm254_vm0, %v1283_v23  ;;  %1247 = vmatmul.mubr.msk.bf16.gmra.mrb[20].mxu1 %vm254_vm0, %v1284_v24 }
  0x2f   :  { %1218 = vmatprep.mubr.msk.bf16.mxu0 %vm254_vm0, %v1285_v25  ;;  %1250 = vmatprep.mubr.msk.bf16.mxu1 %vm254_vm0, %v1286_v26 }
  0x36   :  { %1219 = vmatmul.mubr.msk.bf16.gmra.mrb[24].mxu0 %vm254_vm0, %v1287_v27  ;;  %1251 = vmatmul.mubr.msk.bf16.gmra.mrb[24].mxu1 %vm254_vm0, %v1288_v28 }
  0x37   :  { %1222 = vmatprep.mubr.msk.bf16.mxu0 %vm254_vm0, %v1289_v29  ;;  %1254 = vmatprep.mubr.msk.bf16.mxu1 %vm254_vm0, %v1290_v30 }
  0x3e   :  { %1223 = vmatmul.mubr.msk.bf16.gmra.mrb[28].mxu0 %vm254_vm0, %v1291_v31  ;;  %1255 = vmatmul.mubr.msk.bf16.gmra.mrb[28].mxu1 %vm254_vm0, %v1292_v32 }
  0xd9   :  { %v1196_v34 = vpop.f32.mrb[0].mxu0  ;;  %v1228_v35 = vpop.f32.mrb[0].mxu1 }
  0xda   :  { %v394_v36 = vadd.f32 %v1196_v34, %v1447_v33  ;;  %v522_v37 = vadd.f32 %v1228_v35, %v1447_v33  ;;  %v385_v38 = vpop.f32.mrb[1].mxu0  ;;  %v513_v39 = vpop.f32.mrb[1].mxu1 }
  0xdb   :  { %v386_v40 = vadd.f32 %v1447_v33, %v385_v38  ;;  %v514_v41 = vadd.f32 %v1447_v33, %v513_v39  ;;  %v1197_v42 = vpop.f32.mrb[2].mxu0  ;;  %v1229_v43 = vpop.f32.mrb[2].mxu1 }
  0xdc   :  { %v1097_v44 = vpack.c.bf16 %v394_v36, %v394_v36  ;;  %v1129_v45 = vpack.c.bf16 %v522_v37, %v522_v37  ;;  %v397_v46 = vadd.f32 %v1197_v42, %v1447_v33  ;;  %v525_v47 = vadd.f32 %v1229_v43, %v1447_v33  ;;  %v388_v48 = vpop.f32.mrb[3].mxu0  ;;  %v516_v49 = vpop.f32.mrb[3].mxu1 }
  0xdd   :  { %v1095_v50 = vpack.c.bf16 %v386_v40, %v386_v40  ;;  %v1127_v51 = vpack.c.bf16 %v514_v41, %v514_v41  ;;  %v389_v52 = vadd.f32 %v1447_v33, %v388_v48  ;;  %v517_v53 = vadd.f32 %v1447_v33, %v516_v49 }
  0xde   :  { %899 = vst.msk [vmem:[%s1772_s3 + $0x8] sm:$0xf] %vm896_vm1, %v1097_v44  ;;  %931 = vst.msk [vmem:[%s1772_s3 + $0x88] sm:$0xf] %vm896_vm1, %v1129_v45  ;;  %v1098_v54 = vpack.c.bf16 %v397_v46, %v397_v46  ;;  %v1130_v55 = vpack.c.bf16 %v525_v47, %v525_v47 }
  0xdf   :  { %897 = vst.msk [vmem:[%s1772_s3] sm:$0xf] %vm896_vm1, %v1095_v50  ;;  %929 = vst.msk [vmem:[%s1772_s3 + $0x80] sm:$0xf] %vm896_vm1, %v1127_v51  ;;  %v1096_v56 = vpack.c.bf16 %v389_v52, %v389_v52  ;;  %v1128_v57 = vpack.c.bf16 %v517_v53, %v517_v53 }
  0xe0   :  { %900 = vst.msk [vmem:[%s1772_s3 + $0xc] sm:$0xf] %vm896_vm1, %v1098_v54  ;;  %932 = vst.msk [vmem:[%s1772_s3 + $0x8c] sm:$0xf] %vm896_vm1, %v1130_v55 }
  0xe1   :  { %898 = vst.msk [vmem:[%s1772_s3 + $0x4] sm:$0xf] %vm896_vm1, %v1096_v56  ;;  %930 = vst.msk [vmem:[%s1772_s3 + $0x84] sm:$0xf] %vm896_vm1, %v1128_v57  ;;  %v1200_v58 = vpop.f32.mrb[4].mxu0  ;;  %v1232_v59 = vpop.f32.mrb[4].mxu1 }
  0xe2   :  { %v410_v60 = vadd.f32 %v1200_v58, %v1447_v33  ;;  %v538_v61 = vadd.f32 %v1232_v59, %v1447_v33  ;;  %v401_v62 = vpop.f32.mrb[5].mxu0  ;;  %v529_v63 = vpop.f32.mrb[5].mxu1 }
  0xe3   :  { %v402_v0 = vadd.f32 %v1447_v33, %v401_v62  ;;  %v530_v1 = vadd.f32 %v1447_v33, %v529_v63  ;;  %v1201_v2 = vpop.f32.mrb[6].mxu0  ;;  %v1233_v3 = vpop.f32.mrb[6].mxu1 }
  0xe4   :  { %v1101_v4 = vpack.c.bf16 %v410_v60, %v410_v60  ;;  %v1133_v5 = vpack.c.bf16 %v538_v61, %v538_v61  ;;  %v413_v6 = vadd.f32 %v1201_v2, %v1447_v33  ;;  %v541_v7 = vadd.f32 %v1233_v3, %v1447_v33  ;;  %v404_v8 = vpop.f32.mrb[7].mxu0  ;;  %v532_v9 = vpop.f32.mrb[7].mxu1 }
  0xe5   :  { %v1099_v10 = vpack.c.bf16 %v402_v0, %v402_v0  ;;  %v1131_v11 = vpack.c.bf16 %v530_v1, %v530_v1  ;;  %v405_v12 = vadd.f32 %v1447_v33, %v404_v8  ;;  %v533_v13 = vadd.f32 %v1447_v33, %v532_v9 }
  0xe6   :  { %903 = vst.msk [vmem:[%s1772_s3 + $0x18] sm:$0xf] %vm896_vm1, %v1101_v4  ;;  %935 = vst.msk [vmem:[%s1772_s3 + $0x98] sm:$0xf] %vm896_vm1, %v1133_v5  ;;  %v1102_v14 = vpack.c.bf16 %v413_v6, %v413_v6  ;;  %v1134_v15 = vpack.c.bf16 %v541_v7, %v541_v7 }
  0xe7   :  { %901 = vst.msk [vmem:[%s1772_s3 + $0x10] sm:$0xf] %vm896_vm1, %v1099_v10  ;;  %933 = vst.msk [vmem:[%s1772_s3 + $0x90] sm:$0xf] %vm896_vm1, %v1131_v11  ;;  %v1100_v16 = vpack.c.bf16 %v405_v12, %v405_v12  ;;  %v1132_v17 = vpack.c.bf16 %v533_v13, %v533_v13 }
  0xe8   :  { %904 = vst.msk [vmem:[%s1772_s3 + $0x1c] sm:$0xf] %vm896_vm1, %v1102_v14  ;;  %936 = vst.msk [vmem:[%s1772_s3 + $0x9c] sm:$0xf] %vm896_vm1, %v1134_v15 }
  0xe9   :  { %902 = vst.msk [vmem:[%s1772_s3 + $0x14] sm:$0xf] %vm896_vm1, %v1100_v16  ;;  %934 = vst.msk [vmem:[%s1772_s3 + $0x94] sm:$0xf] %vm896_vm1, %v1132_v17  ;;  %v1204_v18 = vpop.f32.mrb[8].mxu0  ;;  %v1236_v19 = vpop.f32.mrb[8].mxu1 }
  0xea   :  { %v426_v20 = vadd.f32 %v1204_v18, %v1447_v33  ;;  %v554_v21 = vadd.f32 %v1236_v19, %v1447_v33  ;;  %v417_v22 = vpop.f32.mrb[9].mxu0  ;;  %v545_v23 = vpop.f32.mrb[9].mxu1 }
  0xeb   :  { %v418_v24 = vadd.f32 %v1447_v33, %v417_v22  ;;  %v546_v25 = vadd.f32 %v1447_v33, %v545_v23  ;;  %v1205_v26 = vpop.f32.mrb[10].mxu0  ;;  %v1237_v27 = vpop.f32.mrb[10].mxu1 }
  0xec   :  { %v1105_v28 = vpack.c.bf16 %v426_v20, %v426_v20  ;;  %v1137_v29 = vpack.c.bf16 %v554_v21, %v554_v21  ;;  %v429_v30 = vadd.f32 %v1205_v26, %v1447_v33  ;;  %v557_v31 = vadd.f32 %v1237_v27, %v1447_v33  ;;  %v420_v32 = vpop.f32.mrb[11].mxu0  ;;  %v548_v34 = vpop.f32.mrb[11].mxu1 }
  0xed   :  { %v1103_v35 = vpack.c.bf16 %v418_v24, %v418_v24  ;;  %v1135_v36 = vpack.c.bf16 %v546_v25, %v546_v25  ;;  %v421_v37 = vadd.f32 %v1447_v33, %v420_v32  ;;  %v549_v38 = vadd.f32 %v1447_v33, %v548_v34 }
  0xee   :  { %907 = vst.msk [vmem:[%s1772_s3 + $0x28] sm:$0xf] %vm896_vm1, %v1105_v28  ;;  %939 = vst.msk [vmem:[%s1772_s3 + $0xa8] sm:$0xf] %vm896_vm1, %v1137_v29  ;;  %v1106_v39 = vpack.c.bf16 %v429_v30, %v429_v30  ;;  %v1138_v40 = vpack.c.bf16 %v557_v31, %v557_v31 }
  0xef   :  { %905 = vst.msk [vmem:[%s1772_s3 + $0x20] sm:$0xf] %vm896_vm1, %v1103_v35  ;;  %937 = vst.msk [vmem:[%s1772_s3 + $0xa0] sm:$0xf] %vm896_vm1, %v1135_v36  ;;  %v1104_v41 = vpack.c.bf16 %v421_v37, %v421_v37  ;;  %v1136_v42 = vpack.c.bf16 %v549_v38, %v549_v38 }
  0xf0   :  { %908 = vst.msk [vmem:[%s1772_s3 + $0x2c] sm:$0xf] %vm896_vm1, %v1106_v39  ;;  %940 = vst.msk [vmem:[%s1772_s3 + $0xac] sm:$0xf] %vm896_vm1, %v1138_v40 }
  0xf1   :  { %906 = vst.msk [vmem:[%s1772_s3 + $0x24] sm:$0xf] %vm896_vm1, %v1104_v41  ;;  %938 = vst.msk [vmem:[%s1772_s3 + $0xa4] sm:$0xf] %vm896_vm1, %v1136_v42  ;;  %v1208_v43 = vpop.f32.mrb[12].mxu0  ;;  %v1240_v44 = vpop.f32.mrb[12].mxu1 }
  0xf2   :  { %v442_v45 = vadd.f32 %v1208_v43, %v1447_v33  ;;  %v570_v46 = vadd.f32 %v1240_v44, %v1447_v33  ;;  %v433_v47 = vpop.f32.mrb[13].mxu0  ;;  %v561_v48 = vpop.f32.mrb[13].mxu1 }
  0xf3   :  { %v434_v49 = vadd.f32 %v1447_v33, %v433_v47  ;;  %v562_v50 = vadd.f32 %v1447_v33, %v561_v48  ;;  %v1209_v51 = vpop.f32.mrb[14].mxu0  ;;  %v1241_v52 = vpop.f32.mrb[14].mxu1 }
  0xf4   :  { %v1109_v53 = vpack.c.bf16 %v442_v45, %v442_v45  ;;  %v1141_v54 = vpack.c.bf16 %v570_v46, %v570_v46  ;;  %v445_v55 = vadd.f32 %v1209_v51, %v1447_v33  ;;  %v573_v56 = vadd.f32 %v1241_v52, %v1447_v33  ;;  %v436_v57 = vpop.f32.mrb[15].mxu0  ;;  %v564_v58 = vpop.f32.mrb[15].mxu1 }
  0xf5   :  { %v1107_v59 = vpack.c.bf16 %v434_v49, %v434_v49  ;;  %v1139_v60 = vpack.c.bf16 %v562_v50, %v562_v50  ;;  %v437_v61 = vadd.f32 %v1447_v33, %v436_v57  ;;  %v565_v62 = vadd.f32 %v1447_v33, %v564_v58 }
  0xf6   :  { %911 = vst.msk [vmem:[%s1772_s3 + $0x38] sm:$0xf] %vm896_vm1, %v1109_v53  ;;  %943 = vst.msk [vmem:[%s1772_s3 + $0xb8] sm:$0xf] %vm896_vm1, %v1141_v54  ;;  %v1110_v63 = vpack.c.bf16 %v445_v55, %v445_v55  ;;  %v1142_v0 = vpack.c.bf16 %v573_v56, %v573_v56 }
  0xf7   :  { %909 = vst.msk [vmem:[%s1772_s3 + $0x30] sm:$0xf] %vm896_vm1, %v1107_v59  ;;  %941 = vst.msk [vmem:[%s1772_s3 + $0xb0] sm:$0xf] %vm896_vm1, %v1139_v60  ;;  %v1108_v1 = vpack.c.bf16 %v437_v61, %v437_v61  ;;  %v1140_v2 = vpack.c.bf16 %v565_v62, %v565_v62 }
  0xf8   :  { %912 = vst.msk [vmem:[%s1772_s3 + $0x3c] sm:$0xf] %vm896_vm1, %v1110_v63  ;;  %944 = vst.msk [vmem:[%s1772_s3 + $0xbc] sm:$0xf] %vm896_vm1, %v1142_v0 }
  0xf9   :  { %910 = vst.msk [vmem:[%s1772_s3 + $0x34] sm:$0xf] %vm896_vm1, %v1108_v1  ;;  %942 = vst.msk [vmem:[%s1772_s3 + $0xb4] sm:$0xf] %vm896_vm1, %v1140_v2  ;;  %v1212_v3 = vpop.f32.mrb[16].mxu0  ;;  %v1244_v4 = vpop.f32.mrb[16].mxu1 }
  0xfa   :  { %v458_v5 = vadd.f32 %v1212_v3, %v1447_v33  ;;  %v586_v6 = vadd.f32 %v1244_v4, %v1447_v33  ;;  %v449_v7 = vpop.f32.mrb[17].mxu0  ;;  %v577_v8 = vpop.f32.mrb[17].mxu1 }
  0xfb   :  { %v450_v9 = vadd.f32 %v1447_v33, %v449_v7  ;;  %v578_v10 = vadd.f32 %v1447_v33, %v577_v8  ;;  %v1213_v11 = vpop.f32.mrb[18].mxu0  ;;  %v1245_v12 = vpop.f32.mrb[18].mxu1 }
  0xfc   :  { %v1113_v13 = vpack.c.bf16 %v458_v5, %v458_v5  ;;  %v1145_v14 = vpack.c.bf16 %v586_v6, %v586_v6  ;;  %v461_v15 = vadd.f32 %v1213_v11, %v1447_v33  ;;  %v589_v16 = vadd.f32 %v1245_v12, %v1447_v33  ;;  %v452_v17 = vpop.f32.mrb[19].mxu0  ;;  %v580_v18 = vpop.f32.mrb[19].mxu1 }
  0xfd   :  { %v1111_v19 = vpack.c.bf16 %v450_v9, %v450_v9  ;;  %v1143_v20 = vpack.c.bf16 %v578_v10, %v578_v10  ;;  %v453_v21 = vadd.f32 %v1447_v33, %v452_v17  ;;  %v581_v22 = vadd.f32 %v1447_v33, %v580_v18 }
  0xfe   :  { %915 = vst.msk [vmem:[%s1772_s3 + $0x48] sm:$0xf] %vm896_vm1, %v1113_v13  ;;  %947 = vst.msk [vmem:[%s1772_s3 + $0xc8] sm:$0xf] %vm896_vm1, %v1145_v14  ;;  %v1114_v23 = vpack.c.bf16 %v461_v15, %v461_v15  ;;  %v1146_v24 = vpack.c.bf16 %v589_v16, %v589_v16 }
  0xff   :  { %913 = vst.msk [vmem:[%s1772_s3 + $0x40] sm:$0xf] %vm896_vm1, %v1111_v19  ;;  %945 = vst.msk [vmem:[%s1772_s3 + $0xc0] sm:$0xf] %vm896_vm1, %v1143_v20  ;;  %v1112_v25 = vpack.c.bf16 %v453_v21, %v453_v21  ;;  %v1144_v26 = vpack.c.bf16 %v581_v22, %v581_v22 }
 0x100   :  { %916 = vst.msk [vmem:[%s1772_s3 + $0x4c] sm:$0xf] %vm896_vm1, %v1114_v23  ;;  %948 = vst.msk [vmem:[%s1772_s3 + $0xcc] sm:$0xf] %vm896_vm1, %v1146_v24 }
 0x101   :  { %914 = vst.msk [vmem:[%s1772_s3 + $0x44] sm:$0xf] %vm896_vm1, %v1112_v25  ;;  %946 = vst.msk [vmem:[%s1772_s3 + $0xc4] sm:$0xf] %vm896_vm1, %v1144_v26  ;;  %v1216_v27 = vpop.f32.mrb[20].mxu0  ;;  %v1248_v28 = vpop.f32.mrb[20].mxu1 }
 0x102   :  { %v474_v29 = vadd.f32 %v1216_v27, %v1447_v33  ;;  %v602_v30 = vadd.f32 %v1248_v28, %v1447_v33  ;;  %v465_v31 = vpop.f32.mrb[21].mxu0  ;;  %v593_v32 = vpop.f32.mrb[21].mxu1 }
 0x103   :  { %v466_v34 = vadd.f32 %v1447_v33, %v465_v31  ;;  %v594_v35 = vadd.f32 %v1447_v33, %v593_v32  ;;  %v1217_v36 = vpop.f32.mrb[22].mxu0  ;;  %v1249_v37 = vpop.f32.mrb[22].mxu1 }
 0x104   :  { %v1117_v38 = vpack.c.bf16 %v474_v29, %v474_v29  ;;  %v1149_v39 = vpack.c.bf16 %v602_v30, %v602_v30  ;;  %v477_v40 = vadd.f32 %v1217_v36, %v1447_v33  ;;  %v605_v41 = vadd.f32 %v1249_v37, %v1447_v33  ;;  %v468_v42 = vpop.f32.mrb[23].mxu0  ;;  %v596_v43 = vpop.f32.mrb[23].mxu1 }
 0x105   :  { %v1115_v44 = vpack.c.bf16 %v466_v34, %v466_v34  ;;  %v1147_v45 = vpack.c.bf16 %v594_v35, %v594_v35  ;;  %v469_v46 = vadd.f32 %v1447_v33, %v468_v42  ;;  %v597_v47 = vadd.f32 %v1447_v33, %v596_v43 }
 0x106   :  { %919 = vst.msk [vmem:[%s1772_s3 + $0x58] sm:$0xf] %vm896_vm1, %v1117_v38  ;;  %951 = vst.msk [vmem:[%s1772_s3 + $0xd8] sm:$0xf] %vm896_vm1, %v1149_v39  ;;  %v1118_v48 = vpack.c.bf16 %v477_v40, %v477_v40  ;;  %v1150_v49 = vpack.c.bf16 %v605_v41, %v605_v41 }
 0x107   :  { %917 = vst.msk [vmem:[%s1772_s3 + $0x50] sm:$0xf] %vm896_vm1, %v1115_v44  ;;  %949 = vst.msk [vmem:[%s1772_s3 + $0xd0] sm:$0xf] %vm896_vm1, %v1147_v45  ;;  %v1116_v50 = vpack.c.bf16 %v469_v46, %v469_v46  ;;  %v1148_v51 = vpack.c.bf16 %v597_v47, %v597_v47 }
 0x108   :  { %920 = vst.msk [vmem:[%s1772_s3 + $0x5c] sm:$0xf] %vm896_vm1, %v1118_v48  ;;  %952 = vst.msk [vmem:[%s1772_s3 + $0xdc] sm:$0xf] %vm896_vm1, %v1150_v49 }
 0x109   :  { %918 = vst.msk [vmem:[%s1772_s3 + $0x54] sm:$0xf] %vm896_vm1, %v1116_v50  ;;  %950 = vst.msk [vmem:[%s1772_s3 + $0xd4] sm:$0xf] %vm896_vm1, %v1148_v51  ;;  %v1220_v52 = vpop.f32.mrb[24].mxu0  ;;  %v1252_v53 = vpop.f32.mrb[24].mxu1 }
 0x10a   :  { %v490_v54 = vadd.f32 %v1220_v52, %v1447_v33  ;;  %v618_v55 = vadd.f32 %v1252_v53, %v1447_v33  ;;  %v481_v56 = vpop.f32.mrb[25].mxu0  ;;  %v609_v57 = vpop.f32.mrb[25].mxu1 }
 0x10b   :  { %v482_v58 = vadd.f32 %v1447_v33, %v481_v56  ;;  %v610_v59 = vadd.f32 %v1447_v33, %v609_v57  ;;  %v1221_v60 = vpop.f32.mrb[26].mxu0  ;;  %v1253_v61 = vpop.f32.mrb[26].mxu1 }
 0x10c   :  { %v1121_v62 = vpack.c.bf16 %v490_v54, %v490_v54  ;;  %v1153_v63 = vpack.c.bf16 %v618_v55, %v618_v55  ;;  %v493_v0 = vadd.f32 %v1221_v60, %v1447_v33  ;;  %v621_v1 = vadd.f32 %v1253_v61, %v1447_v33  ;;  %v484_v2 = vpop.f32.mrb[27].mxu0  ;;  %v612_v3 = vpop.f32.mrb[27].mxu1 }
 0x10d   :  { %v1119_v4 = vpack.c.bf16 %v482_v58, %v482_v58  ;;  %v1151_v5 = vpack.c.bf16 %v610_v59, %v610_v59  ;;  %v485_v6 = vadd.f32 %v1447_v33, %v484_v2  ;;  %v613_v7 = vadd.f32 %v1447_v33, %v612_v3 }
 0x10e   :  { %923 = vst.msk [vmem:[%s1772_s3 + $0x68] sm:$0xf] %vm896_vm1, %v1121_v62  ;;  %955 = vst.msk [vmem:[%s1772_s3 + $0xe8] sm:$0xf] %vm896_vm1, %v1153_v63  ;;  %v1122_v8 = vpack.c.bf16 %v493_v0, %v493_v0  ;;  %v1154_v9 = vpack.c.bf16 %v621_v1, %v621_v1 }
 0x10f   :  { %921 = vst.msk [vmem:[%s1772_s3 + $0x60] sm:$0xf] %vm896_vm1, %v1119_v4  ;;  %953 = vst.msk [vmem:[%s1772_s3 + $0xe0] sm:$0xf] %vm896_vm1, %v1151_v5  ;;  %v1120_v10 = vpack.c.bf16 %v485_v6, %v485_v6  ;;  %v1152_v11 = vpack.c.bf16 %v613_v7, %v613_v7 }
 0x110   :  { %924 = vst.msk [vmem:[%s1772_s3 + $0x6c] sm:$0xf] %vm896_vm1, %v1122_v8  ;;  %956 = vst.msk [vmem:[%s1772_s3 + $0xec] sm:$0xf] %vm896_vm1, %v1154_v9 }
 0x111   :  { %922 = vst.msk [vmem:[%s1772_s3 + $0x64] sm:$0xf] %vm896_vm1, %v1120_v10  ;;  %954 = vst.msk [vmem:[%s1772_s3 + $0xe4] sm:$0xf] %vm896_vm1, %v1152_v11  ;;  %v1224_v12 = vpop.f32.mrb[28].mxu0  ;;  %v1256_v13 = vpop.f32.mrb[28].mxu1 }
 0x112   :  { %v506_v14 = vadd.f32 %v1224_v12, %v1447_v33  ;;  %v634_v15 = vadd.f32 %v1256_v13, %v1447_v33  ;;  %v497_v16 = vpop.f32.mrb[29].mxu0  ;;  %v625_v17 = vpop.f32.mrb[29].mxu1 }
 0x113   :  { %v498_v18 = vadd.f32 %v1447_v33, %v497_v16  ;;  %v626_v19 = vadd.f32 %v1447_v33, %v625_v17  ;;  %v1225_v20 = vpop.f32.mrb[30].mxu0  ;;  %v1257_v21 = vpop.f32.mrb[30].mxu1 }
 0x114   :  { %v1125_v22 = vpack.c.bf16 %v506_v14, %v506_v14  ;;  %v1157_v23 = vpack.c.bf16 %v634_v15, %v634_v15  ;;  %v509_v24 = vadd.f32 %v1225_v20, %v1447_v33  ;;  %v637_v25 = vadd.f32 %v1257_v21, %v1447_v33  ;;  %v500_v26 = vpop.f32.mrb[31].mxu0  ;;  %v628_v27 = vpop.f32.mrb[31].mxu1 }
 0x115   :  { %v1123_v28 = vpack.c.bf16 %v498_v18, %v498_v18  ;;  %v1155_v29 = vpack.c.bf16 %v626_v19, %v626_v19  ;;  %v501_v30 = vadd.f32 %v1447_v33, %v500_v26  ;;  %v629_v31 = vadd.f32 %v1447_v33, %v628_v27 }
 0x116   :  { %927 = vst.msk [vmem:[%s1772_s3 + $0x78] sm:$0xf] %vm896_vm1, %v1125_v22  ;;  %959 = vst.msk [vmem:[%s1772_s3 + $0xf8] sm:$0xf] %vm896_vm1, %v1157_v23  ;;  %v1126_v32 = vpack.c.bf16 %v509_v24, %v509_v24  ;;  %v1158_v34 = vpack.c.bf16 %v637_v25, %v637_v25 }
 0x117   :  { %925 = vst.msk [vmem:[%s1772_s3 + $0x70] sm:$0xf] %vm896_vm1, %v1123_v28  ;;  %957 = vst.msk [vmem:[%s1772_s3 + $0xf0] sm:$0xf] %vm896_vm1, %v1155_v29  ;;  %v1124_v33 = vpack.c.bf16 %v501_v30, %v501_v30  ;;  %v1156_v35 = vpack.c.bf16 %v629_v31, %v629_v31 }
 0x118   :  { %928 = vst.msk [vmem:[%s1772_s3 + $0x7c] sm:$0xf] %vm896_vm1, %v1126_v32  ;;  %960 = vst.msk [vmem:[%s1772_s3 + $0xfc] sm:$0xf] %vm896_vm1, %v1158_v34 }
 0x119   :  { %926 = vst.msk [vmem:[%s1772_s3 + $0x74] sm:$0xf] %vm896_vm1, %v1124_v33  ;;  %958 = vst.msk [vmem:[%s1772_s3 + $0xf4] sm:$0xf] %vm896_vm1, %v1156_v35 }

// kernel: forward.25
= control target key start
LH: loop header
LB: loop body
LE: loop exit
PB: predicated region body
PF: predicated region fallthrough
CT: control target
= control target key end

     0   :  { %vm257_vm0 = vcmask 130048   ;;  %vm1155_vm1 = vcmask 519168   ;;  %s2544_s1 = inlined_call_operand.vmem [shape: bf16[16,64], index: 1, kind: input, shape index: {}]   ;;  %s2545_s0 = inlined_call_operand.vmem [shape: bf16[512,16], index: 0, kind: input, shape index: {}]   ;;  %s2546_s3 = inlined_call_operand.vmem [shape: bf16[512,64], index: 3, kind: input, shape index: {}]   ;;  %s2547_s2 = inlined_call_operand.vmem [shape: f32[1,64], index: 2, kind: input, shape index: {}]   ;;  %s2548_s4 = inlined_call_operand.vmem [shape: bf16[512,64], index: 4, kind: output, shape index: {}]  }
   0x1   :  { %v1678_v0 = vld [vmem:[%s2544_s1] sm:$0xff]   ;;  %v1681_v3 = vld [vmem:[%s2545_s0 + $0x8] sm:$0xff]   ;;  %v1683_v5 = vld [vmem:[%s2545_s0 + $0x10] sm:$0xff]  }
   0x2   :  { %v1679_v1 = vld [vmem:[%s2545_s0] sm:$0xff]   ;;  %1610 = vmatprep.subr.bf16.mxu0 %v1678_v0  ;;  %1676 = vmatprep.subr.bf16.mxu1 %v1678_v0  ;;  %v1682_v4 = vld [vmem:[%s2545_s0 + $0x88] sm:$0xff]   ;;  %v1684_v6 = vld [vmem:[%s2545_s0 + $0x90] sm:$0xff]  }
   0x3   :  { %v1680_v2 = vld [vmem:[%s2545_s0 + $0x80] sm:$0xff]   ;;  %1611 = vmatpush3.bf16.msra.mxu0 %v1678_v0  ;;  %1677 = vmatpush3.bf16.msra.mxu1 %v1678_v0  ;;  %v1685_v7 = vld [vmem:[%s2545_s0 + $0x18] sm:$0xff]   ;;  %v1689_v11 = vld [vmem:[%s2545_s0 + $0x28] sm:$0xff]  }
   0x4   :  { %1612 = vmatprep.mubr.msk.bf16.mxu0 %vm257_vm0, %v1679_v1  ;;  %1644 = vmatprep.mubr.msk.bf16.mxu1 %vm257_vm0, %v1680_v2  ;;  %v1686_v8 = vld [vmem:[%s2545_s0 + $0x98] sm:$0xff]   ;;  %v1687_v9 = vld [vmem:[%s2545_s0 + $0x20] sm:$0xff]   ;;  %v1690_v12 = vld [vmem:[%s2545_s0 + $0xa8] sm:$0xff]  }
   0x5   :  { %v1688_v10 = vld [vmem:[%s2545_s0 + $0xa0] sm:$0xff]   ;;  %v1691_v13 = vld [vmem:[%s2545_s0 + $0x30] sm:$0xff]   ;;  %v1693_v15 = vld [vmem:[%s2545_s0 + $0x38] sm:$0xff]  }
   0x6   :  { %1613 = vmatmul.mubr.msk.bf16.vlgmr.msra.gmra.mrb[0].mxu0 %vm257_vm0, %v1681_v3  ;;  %1645 = vmatmul.mubr.msk.bf16.vlgmr.msra.gmra.mrb[0].mxu1 %vm257_vm0, %v1682_v4  ;;  %v1692_v14 = vld [vmem:[%s2545_s0 + $0xb0] sm:$0xff]   ;;  %v1694_v16 = vld [vmem:[%s2545_s0 + $0xb8] sm:$0xff]   ;;  %v1695_v17 = vld [vmem:[%s2545_s0 + $0x40] sm:$0xff]  }
   0x7   :  { %1616 = vmatprep.mubr.msk.bf16.mxu0 %vm257_vm0, %v1683_v5  ;;  %1648 = vmatprep.mubr.msk.bf16.mxu1 %vm257_vm0, %v1684_v6  ;;  %v1696_v18 = vld [vmem:[%s2545_s0 + $0xc0] sm:$0xff]   ;;  %v1697_v19 = vld [vmem:[%s2545_s0 + $0x48] sm:$0xff]   ;;  %v1699_v21 = vld [vmem:[%s2545_s0 + $0x50] sm:$0xff]  }
   0x8   :  { %v1698_v20 = vld [vmem:[%s2545_s0 + $0xc8] sm:$0xff]   ;;  %v1700_v22 = vld [vmem:[%s2545_s0 + $0xd0] sm:$0xff]   ;;  %v1701_v23 = vld [vmem:[%s2545_s0 + $0x58] sm:$0xff]  }
   0x9   :  { %v1702_v24 = vld [vmem:[%s2545_s0 + $0xd8] sm:$0xff]   ;;  %v1703_v25 = vld [vmem:[%s2545_s0 + $0x60] sm:$0xff]   ;;  %v1705_v27 = vld [vmem:[%s2545_s0 + $0x68] sm:$0xff]  }
   0xa   :  { %v1704_v26 = vld [vmem:[%s2545_s0 + $0xe0] sm:$0xff]   ;;  %v1706_v28 = vld [vmem:[%s2545_s0 + $0xe8] sm:$0xff]   ;;  %v1707_v29 = vld [vmem:[%s2545_s0 + $0x70] sm:$0xff]  }
   0xb   :  { %v1708_v30 = vld [vmem:[%s2545_s0 + $0xf0] sm:$0xff]   ;;  %v1709_v31 = vld [vmem:[%s2545_s0 + $0x78] sm:$0xff]   ;;  %v1870_v33 = vld [vmem:[%s2546_s3 + $0x8] sm:$0xff]  }
   0xc   :  { %v1710_v32 = vld [vmem:[%s2545_s0 + $0xf8] sm:$0xff]   ;;  %v1875_v34 = vld [vmem:[%s2546_s3 + $0x88] sm:$0xff]   ;;  %v1880_v35 = vld [vmem:[%s2546_s3] sm:$0xff]   ;;  %v1424_v41 = vunpack.c.l.bf16 %v1870_v33  ;;  %v1425_v46 = vunpack.c.h.bf16 %v1870_v33 }
   0xd   :  { %v1885_v36 = vld [vmem:[%s2546_s3 + $0x80] sm:$0xff]   ;;  %v1890_v37 = vld [vmem:[%s2546_s3 + $0x18] sm:$0xff]   ;;  %v1900_v39 = vld [vmem:[%s2546_s3 + $0x10] sm:$0xff]   ;;  %v1488_v42 = vunpack.c.l.bf16 %v1875_v34  ;;  %v1420_v43 = vunpack.c.l.bf16 %v1880_v35  ;;  %v1489_v47 = vunpack.c.h.bf16 %v1875_v34  ;;  %v1421_v48 = vunpack.c.h.bf16 %v1880_v35 }
   0xe   :  { %1617 = vmatmul.mubr.msk.bf16.gmra.mrb[4].mxu0 %vm257_vm0, %v1685_v7  ;;  %1649 = vmatmul.mubr.msk.bf16.gmra.mrb[4].mxu1 %vm257_vm0, %v1686_v8  ;;  %v1895_v38 = vld [vmem:[%s2546_s3 + $0x98] sm:$0xff]   ;;  %v1905_v40 = vld [vmem:[%s2546_s3 + $0x90] sm:$0xff]   ;;  %v1484_v44 = vunpack.c.l.bf16 %v1885_v36  ;;  %v1914_v45 = vld [vmem:[%s2546_s3 + $0x28] sm:$0xff]   ;;  %v1485_v49 = vunpack.c.h.bf16 %v1885_v36  ;;  %v1432_v53 = vunpack.c.l.bf16 %v1890_v37  ;;  %v1428_v55 = vunpack.c.l.bf16 %v1900_v39 }
   0xf   :  { %1620 = vmatprep.mubr.msk.bf16.mxu0 %vm257_vm0, %v1687_v9  ;;  %1652 = vmatprep.mubr.msk.bf16.mxu1 %vm257_vm0, %v1688_v10  ;;  %v1923_v50 = vld [vmem:[%s2546_s3 + $0xa8] sm:$0xff]   ;;  %v1928_v51 = vld [vmem:[%s2546_s3 + $0x20] sm:$0xff]   ;;  %v1496_v54 = vunpack.c.l.bf16 %v1895_v38  ;;  %v1492_v56 = vunpack.c.l.bf16 %v1905_v40  ;;  %v1942_v57 = vld [vmem:[%s2546_s3 + $0x38] sm:$0xff]   ;;  %v1433_v58 = vunpack.c.h.bf16 %v1890_v37  ;;  %v1497_v59 = vunpack.c.h.bf16 %v1895_v38 }
  0x10   :  { %v1933_v52 = vld [vmem:[%s2546_s3 + $0xa0] sm:$0xff]   ;;  %v1951_v62 = vld [vmem:[%s2546_s3 + $0xb8] sm:$0xff]   ;;  %v1956_v63 = vld [vmem:[%s2546_s3 + $0x30] sm:$0xff]  }
  0x11   :  { %v1961_v0 = vld [vmem:[%s2546_s3 + $0xb0] sm:$0xff]   ;;  %v1970_v5 = vld [vmem:[%s2546_s3 + $0x48] sm:$0xff]  }
  0x12   :  { %v1979_v10 = vld [vmem:[%s2546_s3 + $0xc8] sm:$0xff]  }
  0x16   :  { %1621 = vmatmul.mubr.msk.bf16.gmra.mrb[8].mxu0 %vm257_vm0, %v1689_v11  ;;  %1653 = vmatmul.mubr.msk.bf16.gmra.mrb[8].mxu1 %vm257_vm0, %v1690_v12  ;;  %v1984_v11 = vld [vmem:[%s2546_s3 + $0x40] sm:$0xff]  }
  0x17   :  { %1624 = vmatprep.mubr.msk.bf16.mxu0 %vm257_vm0, %v1691_v13  ;;  %1656 = vmatprep.mubr.msk.bf16.mxu1 %vm257_vm0, %v1692_v14  ;;  %v1989_v12 = vld [vmem:[%s2546_s3 + $0xc0] sm:$0xff]  }
  0x1e   :  { %1625 = vmatmul.mubr.msk.bf16.gmra.mrb[12].mxu0 %vm257_vm0, %v1693_v15  ;;  %1657 = vmatmul.mubr.msk.bf16.gmra.mrb[12].mxu1 %vm257_vm0, %v1694_v16 }
  0x1f   :  { %1628 = vmatprep.mubr.msk.bf16.mxu0 %vm257_vm0, %v1695_v17  ;;  %1660 = vmatprep.mubr.msk.bf16.mxu1 %vm257_vm0, %v1696_v18  ;;  %v1998_v17 = vld [vmem:[%s2546_s3 + $0x58] sm:$0xff]   ;;  %v2078_v18 = vld [vmem:[%s2547_s2] ss:$0 sm:$0xff] }
  0x26   :  { %1629 = vmatmul.mubr.msk.bf16.gmra.mrb[16].mxu0 %vm257_vm0, %v1697_v19  ;;  %1661 = vmatmul.mubr.msk.bf16.gmra.mrb[16].mxu1 %vm257_vm0, %v1698_v20  ;;  %v2073_v20 = vld [vmem:[%s2546_s3 + $0xf0] sm:$0xff]  }
  0x27   :  { %1632 = vmatprep.mubr.msk.bf16.mxu0 %vm257_vm0, %v1699_v21  ;;  %1664 = vmatprep.mubr.msk.bf16.mxu1 %vm257_vm0, %v1700_v22  ;;  %v2007_v22 = vld [vmem:[%s2546_s3 + $0xd8] sm:$0xff]  }
  0x2e   :  { %1633 = vmatmul.mubr.msk.bf16.gmra.mrb[20].mxu0 %vm257_vm0, %v1701_v23  ;;  %1665 = vmatmul.mubr.msk.bf16.gmra.mrb[20].mxu1 %vm257_vm0, %v1702_v24  ;;  %v2012_v23 = vld [vmem:[%s2546_s3 + $0x50] sm:$0xff]  }
  0x2f   :  { %1636 = vmatprep.mubr.msk.bf16.mxu0 %vm257_vm0, %v1703_v25  ;;  %1668 = vmatprep.mubr.msk.bf16.mxu1 %vm257_vm0, %v1704_v26  ;;  %v2017_v24 = vld [vmem:[%s2546_s3 + $0xd0] sm:$0xff]   ;;  %v2035_v26 = vld [vmem:[%s2546_s3 + $0xe8] sm:$0xff]   ;;  %v2054_v25 = vld [vmem:[%s2546_s3 + $0x78] sm:$0xff]  }
  0x36   :  { %1637 = vmatmul.mubr.msk.bf16.gmra.mrb[24].mxu0 %vm257_vm0, %v1705_v27  ;;  %1669 = vmatmul.mubr.msk.bf16.gmra.mrb[24].mxu1 %vm257_vm0, %v1706_v28  ;;  %v2040_v28 = vld [vmem:[%s2546_s3 + $0x60] sm:$0xff]   ;;  %v2068_v27 = vld [vmem:[%s2546_s3 + $0x70] sm:$0xff]  }
  0x37   :  { %1640 = vmatprep.mubr.msk.bf16.mxu0 %vm257_vm0, %v1707_v29  ;;  %1672 = vmatprep.mubr.msk.bf16.mxu1 %vm257_vm0, %v1708_v30  ;;  %v2026_v29 = vld [vmem:[%s2546_s3 + $0x68] sm:$0xff]   ;;  %v2045_v30 = vld [vmem:[%s2546_s3 + $0xe0] sm:$0xff]  }
  0x3e   :  { %1641 = vmatmul.mubr.msk.bf16.gmra.mrb[28].mxu0 %vm257_vm0, %v1709_v31  ;;  %1673 = vmatmul.mubr.msk.bf16.gmra.mrb[28].mxu1 %vm257_vm0, %v1710_v32  ;;  %v2063_v32 = vld [vmem:[%s2546_s3 + $0xf8] sm:$0xff]  }
  0xd9   :  { %v1614_v8 = vpop.f32.mrb[0].mxu0  ;;  %v1646_v7 = vpop.f32.mrb[0].mxu1 }
  0xda   :  { %v397_v31 = vadd.f32 %v1614_v8, %v2078_v18  ;;  %v525_v15 = vadd.f32 %v1646_v7, %v2078_v18  ;;  %v388_v4 = vpop.f32.mrb[1].mxu0  ;;  %v516_v14 = vpop.f32.mrb[1].mxu1 }
  0xdb   :  { %v389_v3 = vadd.f32 %v2078_v18, %v388_v4  ;;  %v517_v6 = vadd.f32 %v2078_v18, %v516_v14  ;;  %v1615_v2 = vpop.f32.mrb[2].mxu0  ;;  %v1647_v16 = vpop.f32.mrb[2].mxu1 }
  0xdc   :  { %v773_v8 = vadd.f32 %v1424_v41, %v397_v31  ;;  %v805_v7 = vadd.f32 %v1488_v42, %v525_v15  ;;  %v400_v13 = vadd.f32 %v1615_v2, %v2078_v18  ;;  %v528_v9 = vadd.f32 %v1647_v16, %v2078_v18  ;;  %v391_v1 = vpop.f32.mrb[3].mxu0  ;;  %v519_v4 = vpop.f32.mrb[3].mxu1 }
  0xdd   :  { %v771_v14 = vadd.f32 %v1420_v43, %v389_v3  ;;  %v803_v19 = vadd.f32 %v1484_v44, %v517_v6  ;;  %v392_v21 = vadd.f32 %v2078_v18, %v391_v1  ;;  %v520_v61 = vadd.f32 %v2078_v18, %v519_v4 }
  0xde   :  { %v837_v41 = vmax.f32 %v773_v8, 0.0  ;;  %v869_v31 = vmax.f32 %v805_v7, 0.0  ;;  %v774_v42 = vadd.f32 %v1425_v46, %v400_v13  ;;  %v806_v2 = vadd.f32 %v1489_v47, %v528_v9 }
  0xdf   :  { %v835_v15 = vmax.f32 %v771_v14, 0.0  ;;  %v867_v16 = vmax.f32 %v803_v19, 0.0  ;;  %v772_v43 = vadd.f32 %v1421_v48, %v392_v21  ;;  %v804_v44 = vadd.f32 %v1485_v49, %v520_v61 }
  0xe0   :  { %v1356_v3 = vpack.c.bf16 %v837_v41, %v837_v41  ;;  %v1388_v1 = vpack.c.bf16 %v869_v31, %v869_v31  ;;  %v838_v6 = vmax.f32 %v774_v42, 0.0  ;;  %v870_v4 = vmax.f32 %v806_v2, 0.0 }
  0xe1   :  { %v1354_v8 = vpack.c.bf16 %v835_v15, %v835_v15  ;;  %v1386_v7 = vpack.c.bf16 %v867_v16, %v867_v16  ;;  %v836_v60 = vmax.f32 %v772_v43, 0.0  ;;  %v868_v33 = vmax.f32 %v804_v44, 0.0  ;;  %v1618_v46 = vpop.f32.mrb[4].mxu0  ;;  %v1650_v13 = vpop.f32.mrb[4].mxu1 }
  0xe2   :  { %1158 = vst.msk [vmem:[%s2548_s4 + $0x8] sm:$0xf] %vm1155_vm1, %v1356_v3  ;;  %1190 = vst.msk [vmem:[%s2548_s4 + $0x88] sm:$0xf] %vm1155_vm1, %v1388_v1  ;;  %v1357_v34 = vpack.c.bf16 %v838_v6, %v838_v6  ;;  %v1389_v35 = vpack.c.bf16 %v870_v4, %v870_v4  ;;  %v413_v36 = vadd.f32 %v1618_v46, %v2078_v18  ;;  %v404_v48 = vpop.f32.mrb[5].mxu0  ;;  %v532_v49 = vpop.f32.mrb[5].mxu1  ;;  %v2550_v46 = vunpack.c.h.bf16 %v1905_v40 }
  0xe3   :  { %v541_v47 = vadd.f32 %v1650_v13, %v2078_v18  ;;  %1156 = vst.msk [vmem:[%s2548_s4] sm:$0xf] %vm1155_vm1, %v1354_v8  ;;  %1188 = vst.msk [vmem:[%s2548_s4 + $0x80] sm:$0xf] %vm1155_vm1, %v1386_v7  ;;  %v1355_v61 = vpack.c.bf16 %v836_v60, %v836_v60  ;;  %v1387_v9 = vpack.c.bf16 %v868_v33, %v868_v33  ;;  %v1619_v14 = vpop.f32.mrb[6].mxu0  ;;  %v1651_v41 = vpop.f32.mrb[6].mxu1  ;;  %v2549_v33 = vunpack.c.h.bf16 %v1900_v39 }
  0xe4   :  { %v405_v19 = vadd.f32 %v2078_v18, %v404_v48  ;;  %v533_v21 = vadd.f32 %v2078_v18, %v532_v49  ;;  %1159 = vst.msk [vmem:[%s2548_s4 + $0xc] sm:$0xf] %vm1155_vm1, %v1357_v34  ;;  %1191 = vst.msk [vmem:[%s2548_s4 + $0x8c] sm:$0xf] %vm1155_vm1, %v1389_v35  ;;  %v777_v60 = vadd.f32 %v1432_v53, %v413_v36  ;;  %v407_v15 = vpop.f32.mrb[7].mxu0  ;;  %v535_v16 = vpop.f32.mrb[7].mxu1 }
  0xe5   :  { %v809_v31 = vadd.f32 %v1496_v54, %v541_v47  ;;  %v416_v42 = vadd.f32 %v1619_v14, %v2078_v18  ;;  %v544_v2 = vadd.f32 %v1651_v41, %v2078_v18  ;;  %1157 = vst.msk [vmem:[%s2548_s4 + $0x4] sm:$0xf] %vm1155_vm1, %v1355_v61  ;;  %1189 = vst.msk [vmem:[%s2548_s4 + $0x84] sm:$0xf] %vm1155_vm1, %v1387_v9 }
  0xe6   :  { %v775_v53 = vadd.f32 %v1428_v55, %v405_v19  ;;  %v807_v54 = vadd.f32 %v1492_v56, %v533_v21  ;;  %v408_v43 = vadd.f32 %v2078_v18, %v407_v15  ;;  %v536_v44 = vadd.f32 %v2078_v18, %v535_v16 }
  0xe7   :  { %v841_v3 = vmax.f32 %v777_v60, 0.0  ;;  %v873_v1 = vmax.f32 %v809_v31, 0.0  ;;  %v778_v6 = vadd.f32 %v1433_v58, %v416_v42  ;;  %v810_v4 = vadd.f32 %v1497_v59, %v544_v2 }
  0xe8   :  { %v839_v8 = vmax.f32 %v775_v53, 0.0  ;;  %v871_v7 = vmax.f32 %v807_v54, 0.0  ;;  %v776_v55 = vadd.f32 %v2549_v33, %v408_v43  ;;  %v808_v56 = vadd.f32 %v2550_v46, %v536_v44 }
  0xe9   :  { %v1360_v13 = vpack.c.bf16 %v841_v3, %v841_v3  ;;  %v1392_v34 = vpack.c.bf16 %v873_v1, %v873_v1  ;;  %v842_v35 = vmax.f32 %v778_v6, 0.0  ;;  %v874_v36 = vmax.f32 %v810_v4, 0.0  ;;  %v1622_v58 = vpop.f32.mrb[8].mxu0  ;;  %v1654_v61 = vpop.f32.mrb[8].mxu1 }
  0xea   :  { %v1358_v47 = vpack.c.bf16 %v839_v8, %v839_v8  ;;  %v1390_v48 = vpack.c.bf16 %v871_v7, %v871_v7  ;;  %v840_v49 = vmax.f32 %v776_v55, 0.0  ;;  %v872_v37 = vmax.f32 %v808_v56, 0.0  ;;  %v420_v9 = vpop.f32.mrb[9].mxu0  ;;  %v548_v19 = vpop.f32.mrb[9].mxu1 }
  0xeb   :  { %1162 = vst.msk [vmem:[%s2548_s4 + $0x18] sm:$0xf] %vm1155_vm1, %v1360_v13  ;;  %1194 = vst.msk [vmem:[%s2548_s4 + $0x98] sm:$0xf] %vm1155_vm1, %v1392_v34  ;;  %v1361_v38 = vpack.c.bf16 %v842_v35, %v842_v35  ;;  %v1393_v39 = vpack.c.bf16 %v874_v36, %v874_v36  ;;  %v429_v40 = vadd.f32 %v1622_v58, %v2078_v18  ;;  %v1623_v31 = vpop.f32.mrb[10].mxu0  ;;  %v1655_v42 = vpop.f32.mrb[10].mxu1  ;;  %v2551_v2 = vunpack.c.l.bf16 %v1914_v45 }
  0xec   :  { %v557_v59 = vadd.f32 %v1654_v61, %v2078_v18  ;;  %1160 = vst.msk [vmem:[%s2548_s4 + $0x10] sm:$0xf] %vm1155_vm1, %v1358_v47  ;;  %1192 = vst.msk [vmem:[%s2548_s4 + $0x90] sm:$0xf] %vm1155_vm1, %v1390_v48  ;;  %v1359_v21 = vpack.c.bf16 %v840_v49, %v840_v49  ;;  %v1391_v14 = vpack.c.bf16 %v872_v37, %v872_v37  ;;  %v2552_v16 = vunpack.c.l.bf16 %v1923_v50  ;;  %v423_v44 = vpop.f32.mrb[11].mxu0  ;;  %v551_v3 = vpop.f32.mrb[11].mxu1 }
  0xed   :  { %v421_v41 = vadd.f32 %v2078_v18, %v420_v9  ;;  %v549_v60 = vadd.f32 %v2078_v18, %v548_v19  ;;  %1163 = vst.msk [vmem:[%s2548_s4 + $0x1c] sm:$0xf] %vm1155_vm1, %v1361_v38  ;;  %1195 = vst.msk [vmem:[%s2548_s4 + $0x9c] sm:$0xf] %vm1155_vm1, %v1393_v39  ;;  %v781_v15 = vadd.f32 %v2551_v2, %v429_v40  ;;  %v2553_v1 = vunpack.c.l.bf16 %v1928_v51 }
  0xee   :  { %v813_v53 = vadd.f32 %v2552_v16, %v557_v59  ;;  %v432_v54 = vadd.f32 %v1623_v31, %v2078_v18  ;;  %v560_v43 = vadd.f32 %v1655_v42, %v2078_v18  ;;  %1161 = vst.msk [vmem:[%s2548_s4 + $0x14] sm:$0xf] %vm1155_vm1, %v1359_v21  ;;  %1193 = vst.msk [vmem:[%s2548_s4 + $0x94] sm:$0xf] %vm1155_vm1, %v1391_v14  ;;  %v2554_v4 = vunpack.c.l.bf16 %v1933_v52 }
  0xef   :  { %v779_v6 = vadd.f32 %v2553_v1, %v421_v41  ;;  %v424_v7 = vadd.f32 %v2078_v18, %v423_v44  ;;  %v552_v33 = vadd.f32 %v2078_v18, %v551_v3  ;;  %v845_v55 = vmax.f32 %v781_v15, 0.0 }
  0xf0   :  { %v811_v8 = vadd.f32 %v2554_v4, %v549_v60  ;;  %v877_v46 = vmax.f32 %v813_v53, 0.0  ;;  %v2555_v56 = vunpack.c.h.bf16 %v1914_v45  ;;  %v2556_v34 = vunpack.c.h.bf16 %v1923_v50 }
  0xf1   :  { %v843_v36 = vmax.f32 %v779_v6, 0.0  ;;  %v2557_v48 = vunpack.c.h.bf16 %v1928_v51  ;;  %v2558_v37 = vunpack.c.h.bf16 %v1933_v52  ;;  %v1364_v61 = vpack.c.bf16 %v845_v55, %v845_v55  ;;  %v1626_v21 = vpop.f32.mrb[12].mxu0  ;;  %v1658_v14 = vpop.f32.mrb[12].mxu1 }
  0xf2   :  { %v782_v13 = vadd.f32 %v2555_v56, %v432_v54  ;;  %v814_v35 = vadd.f32 %v2556_v34, %v560_v43  ;;  %v875_v47 = vmax.f32 %v811_v8, 0.0  ;;  %v1396_v38 = vpack.c.bf16 %v877_v46, %v877_v46  ;;  %v436_v60 = vpop.f32.mrb[13].mxu0  ;;  %v564_v31 = vpop.f32.mrb[13].mxu1 }
  0xf3   :  { %v780_v49 = vadd.f32 %v2557_v48, %v424_v7  ;;  %v812_v58 = vadd.f32 %v2558_v37, %v552_v33  ;;  %v1362_v59 = vpack.c.bf16 %v843_v36, %v843_v36  ;;  %1166 = vst.msk [vmem:[%s2548_s4 + $0x28] sm:$0xf] %vm1155_vm1, %v1364_v61  ;;  %v445_v52 = vadd.f32 %v1626_v21, %v2078_v18  ;;  %v1627_v53 = vpop.f32.mrb[14].mxu0  ;;  %v1659_v54 = vpop.f32.mrb[14].mxu1 }
  0xf4   :  { %v846_v39 = vmax.f32 %v782_v13, 0.0  ;;  %v878_v40 = vmax.f32 %v814_v35, 0.0  ;;  %v1394_v9 = vpack.c.bf16 %v875_v47, %v875_v47  ;;  %1198 = vst.msk [vmem:[%s2548_s4 + $0xa8] sm:$0xf] %vm1155_vm1, %v1396_v38  ;;  %v573_v41 = vadd.f32 %v1658_v14, %v2078_v18  ;;  %v439_v8 = vpop.f32.mrb[15].mxu0  ;;  %v567_v7 = vpop.f32.mrb[15].mxu1 }
  0xf5   :  { %v844_v19 = vmax.f32 %v780_v49, 0.0  ;;  %v876_v45 = vmax.f32 %v812_v58, 0.0  ;;  %1164 = vst.msk [vmem:[%s2548_s4 + $0x20] sm:$0xf] %vm1155_vm1, %v1362_v59  ;;  %v437_v15 = vadd.f32 %v2078_v18, %v436_v60  ;;  %v565_v16 = vadd.f32 %v2078_v18, %v564_v31 }
  0xf6   :  { %v1365_v50 = vpack.c.bf16 %v846_v39, %v846_v39  ;;  %v1397_v51 = vpack.c.bf16 %v878_v40, %v878_v40  ;;  %1196 = vst.msk [vmem:[%s2548_s4 + $0xa0] sm:$0xf] %vm1155_vm1, %v1394_v9  ;;  %v2559_v43 = vunpack.c.l.bf16 %v1942_v57  ;;  %v2560_v3 = vunpack.c.l.bf16 %v1951_v62 }
  0xf7   :  { %v1363_v42 = vpack.c.bf16 %v844_v19, %v844_v19  ;;  %v1395_v2 = vpack.c.bf16 %v876_v45, %v876_v45  ;;  %v448_v6 = vadd.f32 %v1627_v53, %v2078_v18  ;;  %v576_v4 = vadd.f32 %v1659_v54, %v2078_v18 }
  0xf8   :  { %1167 = vst.msk [vmem:[%s2548_s4 + $0x2c] sm:$0xf] %vm1155_vm1, %v1365_v50  ;;  %1199 = vst.msk [vmem:[%s2548_s4 + $0xac] sm:$0xf] %vm1155_vm1, %v1397_v51  ;;  %v785_v44 = vadd.f32 %v2559_v43, %v445_v52  ;;  %v817_v1 = vadd.f32 %v2560_v3, %v573_v41  ;;  %v2561_v33 = vunpack.c.l.bf16 %v1956_v63  ;;  %v2562_v46 = vunpack.c.l.bf16 %v1961_v0 }
  0xf9   :  { %1165 = vst.msk [vmem:[%s2548_s4 + $0x24] sm:$0xf] %vm1155_vm1, %v1363_v42  ;;  %1197 = vst.msk [vmem:[%s2548_s4 + $0xa4] sm:$0xf] %vm1155_vm1, %v1395_v2  ;;  %v440_v13 = vadd.f32 %v2078_v18, %v439_v8  ;;  %v568_v34 = vadd.f32 %v2078_v18, %v567_v7  ;;  %v2563_v47 = vunpack.c.h.bf16 %v1942_v57  ;;  %v2564_v49 = vunpack.c.h.bf16 %v1951_v62  ;;  %v1630_v52 = vpop.f32.mrb[16].mxu0  ;;  %v1662_v41 = vpop.f32.mrb[16].mxu1 }
  0xfa   :  { %v783_v55 = vadd.f32 %v2561_v33, %v437_v15  ;;  %v815_v56 = vadd.f32 %v2562_v46, %v565_v16  ;;  %v849_v35 = vmax.f32 %v785_v44, 0.0  ;;  %v881_v36 = vmax.f32 %v817_v1, 0.0  ;;  %v452_v31 = vpop.f32.mrb[17].mxu0  ;;  %v580_v42 = vpop.f32.mrb[17].mxu1 }
  0xfb   :  { %v786_v48 = vadd.f32 %v2563_v47, %v448_v6  ;;  %v818_v37 = vadd.f32 %v2564_v49, %v576_v4  ;;  %v2565_v38 = vunpack.c.h.bf16 %v1956_v63  ;;  %v2566_v40 = vunpack.c.h.bf16 %v1961_v0  ;;  %v1631_v54 = vpop.f32.mrb[18].mxu0  ;;  %v1663_v43 = vpop.f32.mrb[18].mxu1 }
  0xfc   :  { %v847_v58 = vmax.f32 %v783_v55, 0.0  ;;  %v879_v61 = vmax.f32 %v815_v56, 0.0  ;;  %v1368_v9 = vpack.c.bf16 %v849_v35, %v849_v35  ;;  %v1400_v19 = vpack.c.bf16 %v881_v36, %v881_v36  ;;  %v455_v7 = vpop.f32.mrb[19].mxu0  ;;  %v583_v33 = vpop.f32.mrb[19].mxu1 }
  0xfd   :  { %v784_v39 = vadd.f32 %v2565_v38, %v440_v13  ;;  %v816_v59 = vadd.f32 %v2566_v40, %v568_v34  ;;  %v850_v45 = vmax.f32 %v786_v48, 0.0  ;;  %v882_v21 = vmax.f32 %v818_v37, 0.0 }
  0xfe   :  { %v1366_v14 = vpack.c.bf16 %v847_v58, %v847_v58  ;;  %v1398_v50 = vpack.c.bf16 %v879_v61, %v879_v61  ;;  %1170 = vst.msk [vmem:[%s2548_s4 + $0x38] sm:$0xf] %vm1155_vm1, %v1368_v9  ;;  %1202 = vst.msk [vmem:[%s2548_s4 + $0xb8] sm:$0xf] %vm1155_vm1, %v1400_v19  ;;  %v461_v0 = vadd.f32 %v1630_v52, %v2078_v18  ;;  %v2567_v44 = vunpack.c.l.bf16 %v1970_v5 }
  0xff   :  { %v848_v51 = vmax.f32 %v784_v39, 0.0  ;;  %v880_v57 = vmax.f32 %v816_v59, 0.0  ;;  %v1369_v62 = vpack.c.bf16 %v850_v45, %v850_v45  ;;  %v1401_v63 = vpack.c.bf16 %v882_v21, %v882_v21 }
 0x100   :  { %v589_v60 = vadd.f32 %v1662_v41, %v2078_v18  ;;  %1168 = vst.msk [vmem:[%s2548_s4 + $0x30] sm:$0xf] %vm1155_vm1, %v1366_v14  ;;  %1200 = vst.msk [vmem:[%s2548_s4 + $0xb0] sm:$0xf] %vm1155_vm1, %v1398_v50  ;;  %v453_v16 = vadd.f32 %v2078_v18, %v452_v31  ;;  %v581_v53 = vadd.f32 %v2078_v18, %v580_v42  ;;  %v2568_v1 = vunpack.c.l.bf16 %v1979_v10 }
 0x101   :  { %v1367_v2 = vpack.c.bf16 %v848_v51, %v848_v51  ;;  %v1399_v15 = vpack.c.bf16 %v880_v57, %v880_v57  ;;  %1171 = vst.msk [vmem:[%s2548_s4 + $0x3c] sm:$0xf] %vm1155_vm1, %v1369_v62  ;;  %1203 = vst.msk [vmem:[%s2548_s4 + $0xbc] sm:$0xf] %vm1155_vm1, %v1401_v63  ;;  %v789_v3 = vadd.f32 %v2567_v44, %v461_v0  ;;  %v2569_v55 = vunpack.c.l.bf16 %v1984_v11  ;;  %v1634_v52 = vpop.f32.mrb[20].mxu0  ;;  %v1666_v41 = vpop.f32.mrb[20].mxu1 }
 0x102   :  { %v821_v6 = vadd.f32 %v2568_v1, %v589_v60  ;;  %v464_v4 = vadd.f32 %v1631_v54, %v2078_v18  ;;  %v592_v8 = vadd.f32 %v1663_v43, %v2078_v18  ;;  %v2570_v56 = vunpack.c.l.bf16 %v1989_v12  ;;  %v468_v63 = vpop.f32.mrb[21].mxu0  ;;  %v596_v0 = vpop.f32.mrb[21].mxu1 }
 0x103   :  { %1169 = vst.msk [vmem:[%s2548_s4 + $0x34] sm:$0xf] %vm1155_vm1, %v1367_v2  ;;  %1201 = vst.msk [vmem:[%s2548_s4 + $0xb4] sm:$0xf] %vm1155_vm1, %v1399_v15  ;;  %v787_v46 = vadd.f32 %v2569_v55, %v453_v16  ;;  %v456_v34 = vadd.f32 %v2078_v18, %v455_v7  ;;  %v584_v35 = vadd.f32 %v2078_v18, %v583_v33  ;;  %v853_v36 = vmax.f32 %v789_v3, 0.0  ;;  %v1635_v15 = vpop.f32.mrb[22].mxu0 }
 0x104   :  { %v819_v13 = vadd.f32 %v2570_v56, %v581_v53  ;;  %v885_v47 = vmax.f32 %v821_v6, 0.0  ;;  %v2571_v48 = vunpack.c.h.bf16 %v1970_v5  ;;  %v2572_v37 = vunpack.c.h.bf16 %v1979_v10  ;;  %v1667_v16 = vpop.f32.mrb[22].mxu1  ;;  %v471_v6 = vpop.f32.mrb[23].mxu0 }
 0x105   :  { %v851_v61 = vmax.f32 %v787_v46, 0.0  ;;  %v2573_v39 = vunpack.c.h.bf16 %v1984_v11  ;;  %v2574_v59 = vunpack.c.h.bf16 %v1989_v12  ;;  %v1372_v19 = vpack.c.bf16 %v853_v36, %v853_v36 }
 0x106   :  { %v790_v49 = vadd.f32 %v2571_v48, %v464_v4  ;;  %v822_v58 = vadd.f32 %v2572_v37, %v592_v8  ;;  %v883_v38 = vmax.f32 %v819_v13, 0.0  ;;  %v1404_v45 = vpack.c.bf16 %v885_v47, %v885_v47  ;;  %v599_v4 = vpop.f32.mrb[23].mxu1 }
 0x107   :  { %v788_v40 = vadd.f32 %v2573_v39, %v456_v34  ;;  %v820_v9 = vadd.f32 %v2574_v59, %v584_v35  ;;  %v1370_v50 = vpack.c.bf16 %v851_v61, %v851_v61  ;;  %1174 = vst.msk [vmem:[%s2548_s4 + $0x48] sm:$0xf] %vm1155_vm1, %v1372_v19  ;;  %v477_v12 = vadd.f32 %v1634_v52, %v2078_v18 }
 0x108   :  { %v854_v21 = vmax.f32 %v790_v49, 0.0  ;;  %v886_v14 = vmax.f32 %v822_v58, 0.0  ;;  %v1402_v51 = vpack.c.bf16 %v883_v38, %v883_v38  ;;  %1206 = vst.msk [vmem:[%s2548_s4 + $0xc8] sm:$0xf] %vm1155_vm1, %v1404_v45  ;;  %v605_v62 = vadd.f32 %v1666_v41, %v2078_v18 }
 0x109   :  { %v852_v57 = vmax.f32 %v788_v40, 0.0  ;;  %v884_v5 = vmax.f32 %v820_v9, 0.0  ;;  %1172 = vst.msk [vmem:[%s2548_s4 + $0x40] sm:$0xf] %vm1155_vm1, %v1370_v50  ;;  %v469_v42 = vadd.f32 %v2078_v18, %v468_v63  ;;  %v597_v2 = vadd.f32 %v2078_v18, %v596_v0  ;;  %v1638_v50 = vpop.f32.mrb[24].mxu0 }
 0x10a   :  { %v1373_v10 = vpack.c.bf16 %v854_v21, %v854_v21  ;;  %v1405_v11 = vpack.c.bf16 %v886_v14, %v886_v14  ;;  %1204 = vst.msk [vmem:[%s2548_s4 + $0xc0] sm:$0xf] %vm1155_vm1, %v1402_v51  ;;  %v2575_v53 = vunpack.c.l.bf16 %v1998_v17  ;;  %v2576_v43 = vunpack.c.l.bf16 %v2007_v22  ;;  %v1670_v51 = vpop.f32.mrb[24].mxu1 }
 0x10b   :  { %v1371_v60 = vpack.c.bf16 %v852_v57, %v852_v57  ;;  %v1403_v31 = vpack.c.bf16 %v884_v5, %v884_v5  ;;  %v480_v3 = vadd.f32 %v1635_v15, %v2078_v18  ;;  %v608_v1 = vadd.f32 %v1667_v16, %v2078_v18  ;;  %v484_v5 = vpop.f32.mrb[25].mxu0  ;;  %v612_v52 = vpop.f32.mrb[25].mxu1 }
 0x10c   :  { %1175 = vst.msk [vmem:[%s2548_s4 + $0x4c] sm:$0xf] %vm1155_vm1, %v1373_v10  ;;  %1207 = vst.msk [vmem:[%s2548_s4 + $0xcc] sm:$0xf] %vm1155_vm1, %v1405_v11  ;;  %v793_v54 = vadd.f32 %v2575_v53, %v477_v12  ;;  %v825_v44 = vadd.f32 %v2576_v43, %v605_v62  ;;  %v2577_v8 = vunpack.c.l.bf16 %v2012_v23  ;;  %v2578_v33 = vunpack.c.l.bf16 %v2017_v24  ;;  %v1639_v62 = vpop.f32.mrb[26].mxu0  ;;  %v1671_v63 = vpop.f32.mrb[26].mxu1 }
 0x10d   :  { %1173 = vst.msk [vmem:[%s2548_s4 + $0x44] sm:$0xf] %vm1155_vm1, %v1371_v60  ;;  %1205 = vst.msk [vmem:[%s2548_s4 + $0xc4] sm:$0xf] %vm1155_vm1, %v1403_v31  ;;  %v472_v46 = vadd.f32 %v2078_v18, %v471_v6  ;;  %v600_v56 = vadd.f32 %v2078_v18, %v599_v4  ;;  %v2579_v35 = vunpack.c.h.bf16 %v1998_v17  ;;  %v2580_v47 = vunpack.c.h.bf16 %v2007_v22  ;;  %v487_v16 = vpop.f32.mrb[27].mxu0  ;;  %v615_v53 = vpop.f32.mrb[27].mxu1 }
 0x10e   :  { %v791_v7 = vadd.f32 %v2577_v8, %v469_v42  ;;  %v823_v55 = vadd.f32 %v2578_v33, %v597_v2  ;;  %v857_v13 = vmax.f32 %v793_v54, 0.0  ;;  %v889_v34 = vmax.f32 %v825_v44, 0.0 }
 0x10f   :  { %v794_v36 = vadd.f32 %v2579_v35, %v480_v3  ;;  %v826_v48 = vadd.f32 %v2580_v47, %v608_v1  ;;  %v2581_v58 = vunpack.c.h.bf16 %v2012_v23  ;;  %v2582_v38 = vunpack.c.h.bf16 %v2017_v24 }
 0x110   :  { %v855_v49 = vmax.f32 %v791_v7, 0.0  ;;  %v887_v37 = vmax.f32 %v823_v55, 0.0  ;;  %v1376_v40 = vpack.c.bf16 %v857_v13, %v857_v13  ;;  %v1408_v59 = vpack.c.bf16 %v889_v34, %v889_v34 }
 0x111   :  { %v792_v61 = vadd.f32 %v2581_v58, %v472_v46  ;;  %v824_v39 = vadd.f32 %v2582_v38, %v600_v56  ;;  %v858_v9 = vmax.f32 %v794_v36, 0.0  ;;  %v890_v19 = vmax.f32 %v826_v48, 0.0 }
 0x112   :  { %v1374_v45 = vpack.c.bf16 %v855_v49, %v855_v49  ;;  %v1406_v21 = vpack.c.bf16 %v887_v37, %v887_v37  ;;  %1178 = vst.msk [vmem:[%s2548_s4 + $0x58] sm:$0xf] %vm1155_vm1, %v1376_v40  ;;  %1210 = vst.msk [vmem:[%s2548_s4 + $0xd8] sm:$0xf] %vm1155_vm1, %v1408_v59  ;;  %v493_v24 = vadd.f32 %v1638_v50, %v2078_v18  ;;  %v2583_v0 = vunpack.c.l.bf16 %v2026_v29  ;;  %v1642_v40 = vpop.f32.mrb[28].mxu0  ;;  %v1674_v59 = vpop.f32.mrb[28].mxu1 }
 0x113   :  { %v856_v14 = vmax.f32 %v792_v61, 0.0  ;;  %v888_v17 = vmax.f32 %v824_v39, 0.0  ;;  %v1377_v22 = vpack.c.bf16 %v858_v9, %v858_v9  ;;  %v1409_v23 = vpack.c.bf16 %v890_v19, %v890_v19  ;;  %v500_v19 = vpop.f32.mrb[29].mxu0 }
 0x114   :  { %v621_v57 = vadd.f32 %v1670_v51, %v2078_v18  ;;  %1176 = vst.msk [vmem:[%s2548_s4 + $0x50] sm:$0xf] %vm1155_vm1, %v1374_v45  ;;  %1208 = vst.msk [vmem:[%s2548_s4 + $0xd0] sm:$0xf] %vm1155_vm1, %v1406_v21  ;;  %v485_v11 = vadd.f32 %v2078_v18, %v484_v5  ;;  %v613_v12 = vadd.f32 %v2078_v18, %v612_v52  ;;  %v2584_v31 = vunpack.c.l.bf16 %v2035_v26  ;;  %v628_v45 = vpop.f32.mrb[29].mxu1  ;;  %v1643_v51 = vpop.f32.mrb[30].mxu0 }
 0x115   :  { %v1375_v41 = vpack.c.bf16 %v856_v14, %v856_v14  ;;  %v1407_v10 = vpack.c.bf16 %v888_v17, %v888_v17  ;;  %1179 = vst.msk [vmem:[%s2548_s4 + $0x5c] sm:$0xf] %vm1155_vm1, %v1377_v22  ;;  %1211 = vst.msk [vmem:[%s2548_s4 + $0xdc] sm:$0xf] %vm1155_vm1, %v1409_v23  ;;  %v797_v60 = vadd.f32 %v2583_v0, %v493_v24  ;;  %v2585_v54 = vunpack.c.l.bf16 %v2040_v28  ;;  %v1675_v22 = vpop.f32.mrb[30].mxu1 }
 0x116   :  { %v829_v42 = vadd.f32 %v2584_v31, %v621_v57  ;;  %v496_v2 = vadd.f32 %v1639_v62, %v2078_v18  ;;  %v624_v15 = vadd.f32 %v1671_v63, %v2078_v18  ;;  %v2586_v44 = vunpack.c.l.bf16 %v2045_v30 }
 0x117   :  { %1177 = vst.msk [vmem:[%s2548_s4 + $0x54] sm:$0xf] %vm1155_vm1, %v1375_v41  ;;  %1209 = vst.msk [vmem:[%s2548_s4 + $0xd4] sm:$0xf] %vm1155_vm1, %v1407_v10  ;;  %v795_v43 = vadd.f32 %v2585_v54, %v485_v11  ;;  %v488_v1 = vadd.f32 %v2078_v18, %v487_v16  ;;  %v616_v6 = vadd.f32 %v2078_v18, %v615_v53  ;;  %v861_v4 = vmax.f32 %v797_v60, 0.0  ;;  %v503_v10 = vpop.f32.mrb[31].mxu0 }
 0x118   :  { %v827_v3 = vadd.f32 %v2586_v44, %v613_v12  ;;  %v893_v8 = vmax.f32 %v829_v42, 0.0  ;;  %v2587_v7 = vunpack.c.h.bf16 %v2026_v29  ;;  %v2588_v55 = vunpack.c.h.bf16 %v2035_v26  ;;  %v631_v11 = vpop.f32.mrb[31].mxu1 }
 0x119   :  { %v859_v56 = vmax.f32 %v795_v43, 0.0  ;;  %v2589_v34 = vunpack.c.h.bf16 %v2040_v28  ;;  %v2590_v36 = vunpack.c.h.bf16 %v2045_v30  ;;  %v1380_v48 = vpack.c.bf16 %v861_v4, %v861_v4 }
 0x11a   :  { %v798_v33 = vadd.f32 %v2587_v7, %v496_v2  ;;  %v830_v46 = vadd.f32 %v2588_v55, %v624_v15  ;;  %v891_v13 = vmax.f32 %v827_v3, 0.0  ;;  %v1412_v49 = vpack.c.bf16 %v893_v8, %v893_v8 }
 0x11b   :  { %v796_v35 = vadd.f32 %v2589_v34, %v488_v1  ;;  %v828_v47 = vadd.f32 %v2590_v36, %v616_v6  ;;  %v1378_v61 = vpack.c.bf16 %v859_v56, %v859_v56  ;;  %1182 = vst.msk [vmem:[%s2548_s4 + $0x68] sm:$0xf] %vm1155_vm1, %v1380_v48  ;;  %v509_v30 = vadd.f32 %v1642_v40, %v2078_v18 }
 0x11c   :  { %v862_v37 = vmax.f32 %v798_v33, 0.0  ;;  %v894_v58 = vmax.f32 %v830_v46, 0.0  ;;  %v1410_v38 = vpack.c.bf16 %v891_v13, %v891_v13  ;;  %1214 = vst.msk [vmem:[%s2548_s4 + $0xe8] sm:$0xf] %vm1155_vm1, %v1412_v49  ;;  %v637_v9 = vadd.f32 %v1674_v59, %v2078_v18 }
 0x11d   :  { %v860_v39 = vmax.f32 %v796_v35, 0.0  ;;  %v892_v29 = vmax.f32 %v828_v47, 0.0  ;;  %1180 = vst.msk [vmem:[%s2548_s4 + $0x60] sm:$0xf] %vm1155_vm1, %v1378_v61  ;;  %v501_v17 = vadd.f32 %v2078_v18, %v500_v19  ;;  %v629_v50 = vadd.f32 %v2078_v18, %v628_v45 }
 0x11e   :  { %v1381_v26 = vpack.c.bf16 %v862_v37, %v862_v37  ;;  %v1413_v28 = vpack.c.bf16 %v894_v58, %v894_v58  ;;  %1212 = vst.msk [vmem:[%s2548_s4 + $0xe0] sm:$0xf] %vm1155_vm1, %v1410_v38  ;;  %v2591_v23 = vunpack.c.l.bf16 %v2054_v25  ;;  %v2592_v57 = vunpack.c.l.bf16 %v2063_v32 }
 0x11f   :  { %v1379_v21 = vpack.c.bf16 %v860_v39, %v860_v39  ;;  %v1411_v14 = vpack.c.bf16 %v892_v29, %v892_v29  ;;  %v512_v52 = vadd.f32 %v1643_v51, %v2078_v18  ;;  %v640_v41 = vadd.f32 %v1675_v22, %v2078_v18 }
 0x120   :  { %1183 = vst.msk [vmem:[%s2548_s4 + $0x6c] sm:$0xf] %vm1155_vm1, %v1381_v26  ;;  %1215 = vst.msk [vmem:[%s2548_s4 + $0xec] sm:$0xf] %vm1155_vm1, %v1413_v28  ;;  %v801_v24 = vadd.f32 %v2591_v23, %v509_v30  ;;  %v833_v5 = vadd.f32 %v2592_v57, %v637_v9  ;;  %v2593_v12 = vunpack.c.l.bf16 %v2068_v27  ;;  %v2594_v63 = vunpack.c.l.bf16 %v2073_v20 }
 0x121   :  { %1181 = vst.msk [vmem:[%s2548_s4 + $0x64] sm:$0xf] %vm1155_vm1, %v1379_v21  ;;  %1213 = vst.msk [vmem:[%s2548_s4 + $0xe4] sm:$0xf] %vm1155_vm1, %v1411_v14  ;;  %v504_v60 = vadd.f32 %v2078_v18, %v503_v10  ;;  %v632_v31 = vadd.f32 %v2078_v18, %v631_v11  ;;  %v2595_v15 = vunpack.c.h.bf16 %v2054_v25  ;;  %v2596_v53 = vunpack.c.h.bf16 %v2063_v32 }
 0x122   :  { %v799_v62 = vadd.f32 %v2593_v12, %v501_v17  ;;  %v831_v0 = vadd.f32 %v2594_v63, %v629_v50  ;;  %v865_v42 = vmax.f32 %v801_v24, 0.0  ;;  %v897_v2 = vmax.f32 %v833_v5, 0.0 }
 0x123   :  { %v802_v16 = vadd.f32 %v2595_v15, %v512_v52  ;;  %v834_v54 = vadd.f32 %v2596_v53, %v640_v41  ;;  %v2597_v3 = vunpack.c.h.bf16 %v2068_v27  ;;  %v2598_v6 = vunpack.c.h.bf16 %v2073_v20 }
 0x124   :  { %v863_v43 = vmax.f32 %v799_v62, 0.0  ;;  %v895_v44 = vmax.f32 %v831_v0, 0.0  ;;  %v1384_v8 = vpack.c.bf16 %v865_v42, %v865_v42  ;;  %v1416_v7 = vpack.c.bf16 %v897_v2, %v897_v2 }
 0x125   :  { %v800_v1 = vadd.f32 %v2597_v3, %v504_v60  ;;  %v832_v4 = vadd.f32 %v2598_v6, %v632_v31  ;;  %v866_v33 = vmax.f32 %v802_v16, 0.0  ;;  %v898_v18 = vmax.f32 %v834_v54, 0.0 }
 0x126   :  { %v1382_v55 = vpack.c.bf16 %v863_v43, %v863_v43  ;;  %v1414_v46 = vpack.c.bf16 %v895_v44, %v895_v44  ;;  %1186 = vst.msk [vmem:[%s2548_s4 + $0x78] sm:$0xf] %vm1155_vm1, %v1384_v8  ;;  %1218 = vst.msk [vmem:[%s2548_s4 + $0xf8] sm:$0xf] %vm1155_vm1, %v1416_v7 }
 0x127   :  { %v864_v56 = vmax.f32 %v800_v1, 0.0  ;;  %v896_v25 = vmax.f32 %v832_v4, 0.0  ;;  %v1385_v20 = vpack.c.bf16 %v866_v33, %v866_v33  ;;  %v1417_v27 = vpack.c.bf16 %v898_v18, %v898_v18 }
 0x128   :  { %1184 = vst.msk [vmem:[%s2548_s4 + $0x70] sm:$0xf] %vm1155_vm1, %v1382_v55  ;;  %1216 = vst.msk [vmem:[%s2548_s4 + $0xf0] sm:$0xf] %vm1155_vm1, %v1414_v46 }
 0x129   :  { %v1383_v32 = vpack.c.bf16 %v864_v56, %v864_v56  ;;  %v1415_v13 = vpack.c.bf16 %v896_v25, %v896_v25  ;;  %1187 = vst.msk [vmem:[%s2548_s4 + $0x7c] sm:$0xf] %vm1155_vm1, %v1385_v20  ;;  %1219 = vst.msk [vmem:[%s2548_s4 + $0xfc] sm:$0xf] %vm1155_vm1, %v1417_v27 }
 0x12b   :  { %1185 = vst.msk [vmem:[%s2548_s4 + $0x74] sm:$0xf] %vm1155_vm1, %v1383_v32  ;;  %1217 = vst.msk [vmem:[%s2548_s4 + $0xf4] sm:$0xf] %vm1155_vm1, %v1415_v13 }

// kernel: forward.26
= control target key start
LH: loop header
LB: loop body
LE: loop exit
PB: predicated region body
PF: predicated region fallthrough
CT: control target
= control target key end

     0   :  { %vm278_vm0 = vcmask 523264   ;;  %vm984_vm1 = vcmask 257024   ;;  %s1887_s1 = inlined_call_operand.vmem [shape: bf16[64,32], index: 1, kind: input, shape index: {}]   ;;  %s1888_s0 = inlined_call_operand.vmem [shape: bf16[512,64], index: 0, kind: input, shape index: {}]   ;;  %s1889_s2 = inlined_call_operand.vmem [shape: f32[1,32], index: 2, kind: input, shape index: {}]   ;;  %s1890_s3 = inlined_call_operand.vmem [shape: bf16[512,32], index: 3, kind: output, shape index: {}]  }
   0x1   :  { %v1366_v0 = vld [vmem:[%s1887_s1] sm:$0xff]   ;;  %v1367_v1 = vld [vmem:[%s1887_s1 + $0x8] sm:$0xff]   ;;  %v1368_v2 = vld [vmem:[%s1887_s1 + $0x10] sm:$0xff]  }
   0x2   :  { %1286 = vmatprep.subr.bf16.mxu0 %v1366_v0  ;;  %1358 = vmatprep.subr.bf16.mxu1 %v1366_v0  ;;  %v1370_v3 = vld [vmem:[%s1888_s0] sm:$0xff]   ;;  %v1369_v5 = vld [vmem:[%s1887_s1 + $0x18] sm:$0xff]   ;;  %v1372_v6 = vld [vmem:[%s1888_s0 + $0x8] sm:$0xff]  }
   0x3   :  { %1287 = vmatpush3.bf16.msra.mxu0 %v1366_v0  ;;  %1362 = vmatpush3.bf16.msra.mxu1 %v1366_v0  ;;  %v1371_v4 = vld [vmem:[%s1888_s0 + $0x80] sm:$0xff]   ;;  %v1373_v7 = vld [vmem:[%s1888_s0 + $0x88] sm:$0xff]   ;;  %v1374_v8 = vld [vmem:[%s1888_s0 + $0x10] sm:$0xff]  }
   0x4   :  { %1288 = vmatprep.subr.bf16.mxu0 %v1367_v1  ;;  %1359 = vmatprep.subr.bf16.mxu1 %v1367_v1  ;;  %v1375_v9 = vld [vmem:[%s1888_s0 + $0x90] sm:$0xff]   ;;  %v1376_v10 = vld [vmem:[%s1888_s0 + $0x18] sm:$0xff]   ;;  %v1378_v12 = vld [vmem:[%s1888_s0 + $0x20] sm:$0xff]  }
   0x5   :  { %1294 = vmatprep.mubr.msk.bf16.mxu0 %vm278_vm0, %v1370_v3  ;;  %1326 = vmatprep.mubr.msk.bf16.mxu1 %vm278_vm0, %v1371_v4  ;;  %v1377_v11 = vld [vmem:[%s1888_s0 + $0x98] sm:$0xff]   ;;  %v1379_v13 = vld [vmem:[%s1888_s0 + $0xa0] sm:$0xff]   ;;  %v1380_v14 = vld [vmem:[%s1888_s0 + $0x28] sm:$0xff]  }
   0x6   :  { %v1381_v15 = vld [vmem:[%s1888_s0 + $0xa8] sm:$0xff]   ;;  %v1382_v16 = vld [vmem:[%s1888_s0 + $0x30] sm:$0xff]   ;;  %v1384_v18 = vld [vmem:[%s1888_s0 + $0x38] sm:$0xff]  }
   0x7   :  { %1289 = vmatpush3.bf16.msra.mxu0 %v1367_v1  ;;  %1363 = vmatpush3.bf16.msra.mxu1 %v1367_v1  ;;  %v1383_v17 = vld [vmem:[%s1888_s0 + $0xb0] sm:$0xff]   ;;  %v1385_v19 = vld [vmem:[%s1888_s0 + $0xb8] sm:$0xff]   ;;  %v1386_v20 = vld [vmem:[%s1888_s0 + $0x40] sm:$0xff]  }
   0x8   :  { %1290 = vmatprep.subr.bf16.mxu0 %v1368_v2  ;;  %1360 = vmatprep.subr.bf16.mxu1 %v1368_v2  ;;  %v1387_v21 = vld [vmem:[%s1888_s0 + $0xc0] sm:$0xff]   ;;  %v1388_v22 = vld [vmem:[%s1888_s0 + $0x48] sm:$0xff]   ;;  %v1390_v24 = vld [vmem:[%s1888_s0 + $0x50] sm:$0xff]  }
   0x9   :  { %v1389_v23 = vld [vmem:[%s1888_s0 + $0xc8] sm:$0xff]   ;;  %v1391_v25 = vld [vmem:[%s1888_s0 + $0xd0] sm:$0xff]   ;;  %v1392_v26 = vld [vmem:[%s1888_s0 + $0x58] sm:$0xff]  }
   0xa   :  { %v1393_v27 = vld [vmem:[%s1888_s0 + $0xd8] sm:$0xff]   ;;  %v1394_v28 = vld [vmem:[%s1888_s0 + $0x60] sm:$0xff]   ;;  %v1396_v30 = vld [vmem:[%s1888_s0 + $0x68] sm:$0xff]  }
   0xb   :  { %1291 = vmatpush3.bf16.msra.mxu0 %v1368_v2  ;;  %1364 = vmatpush3.bf16.msra.mxu1 %v1368_v2  ;;  %v1395_v29 = vld [vmem:[%s1888_s0 + $0xe0] sm:$0xff]   ;;  %v1397_v31 = vld [vmem:[%s1888_s0 + $0xe8] sm:$0xff]   ;;  %v1398_v32 = vld [vmem:[%s1888_s0 + $0x70] sm:$0xff]  }
   0xc   :  { %1292 = vmatprep.subr.bf16.mxu0 %v1369_v5  ;;  %1361 = vmatprep.subr.bf16.mxu1 %v1369_v5  ;;  %v1399_v33 = vld [vmem:[%s1888_s0 + $0xf0] sm:$0xff]   ;;  %v1400_v34 = vld [vmem:[%s1888_s0 + $0x78] sm:$0xff]   ;;  %v1565_v36 = vld [vmem:[%s1889_s2] ss:$0 sm:$0xff] }
   0xd   :  { %v1401_v35 = vld [vmem:[%s1888_s0 + $0xf8] sm:$0xff]  }
   0xf   :  { %1293 = vmatpush3.bf16.msra.mxu0 %v1369_v5  ;;  %1365 = vmatpush3.bf16.msra.mxu1 %v1369_v5 }
  0x12   :  { %1295 = vmatmul.mubr.msk.bf16.vlgmr.msra.gmra.mrb[0].mxu0 %vm278_vm0, %v1372_v6  ;;  %1327 = vmatmul.mubr.msk.bf16.vlgmr.msra.gmra.mrb[0].mxu1 %vm278_vm0, %v1373_v7 }
  0x13   :  { %1298 = vmatprep.mubr.msk.bf16.mxu0 %vm278_vm0, %v1374_v8  ;;  %1330 = vmatprep.mubr.msk.bf16.mxu1 %vm278_vm0, %v1375_v9 }
  0x1a   :  { %1299 = vmatmul.mubr.msk.bf16.gmra.mrb[4].mxu0 %vm278_vm0, %v1376_v10  ;;  %1331 = vmatmul.mubr.msk.bf16.gmra.mrb[4].mxu1 %vm278_vm0, %v1377_v11 }
  0x1b   :  { %1302 = vmatprep.mubr.msk.bf16.mxu0 %vm278_vm0, %v1378_v12  ;;  %1334 = vmatprep.mubr.msk.bf16.mxu1 %vm278_vm0, %v1379_v13 }
  0x22   :  { %1303 = vmatmul.mubr.msk.bf16.gmra.mrb[8].mxu0 %vm278_vm0, %v1380_v14  ;;  %1335 = vmatmul.mubr.msk.bf16.gmra.mrb[8].mxu1 %vm278_vm0, %v1381_v15 }
  0x23   :  { %1306 = vmatprep.mubr.msk.bf16.mxu0 %vm278_vm0, %v1382_v16  ;;  %1338 = vmatprep.mubr.msk.bf16.mxu1 %vm278_vm0, %v1383_v17 }
  0x2a   :  { %1307 = vmatmul.mubr.msk.bf16.gmra.mrb[12].mxu0 %vm278_vm0, %v1384_v18  ;;  %1339 = vmatmul.mubr.msk.bf16.gmra.mrb[12].mxu1 %vm278_vm0, %v1385_v19 }
  0x2b   :  { %1310 = vmatprep.mubr.msk.bf16.mxu0 %vm278_vm0, %v1386_v20  ;;  %1342 = vmatprep.mubr.msk.bf16.mxu1 %vm278_vm0, %v1387_v21 }
  0x32   :  { %1311 = vmatmul.mubr.msk.bf16.gmra.mrb[16].mxu0 %vm278_vm0, %v1388_v22  ;;  %1343 = vmatmul.mubr.msk.bf16.gmra.mrb[16].mxu1 %vm278_vm0, %v1389_v23 }
  0x33   :  { %1314 = vmatprep.mubr.msk.bf16.mxu0 %vm278_vm0, %v1390_v24  ;;  %1346 = vmatprep.mubr.msk.bf16.mxu1 %vm278_vm0, %v1391_v25 }
  0x3a   :  { %1315 = vmatmul.mubr.msk.bf16.gmra.mrb[20].mxu0 %vm278_vm0, %v1392_v26  ;;  %1347 = vmatmul.mubr.msk.bf16.gmra.mrb[20].mxu1 %vm278_vm0, %v1393_v27 }
  0x3b   :  { %1318 = vmatprep.mubr.msk.bf16.mxu0 %vm278_vm0, %v1394_v28  ;;  %1350 = vmatprep.mubr.msk.bf16.mxu1 %vm278_vm0, %v1395_v29 }
  0x42   :  { %1319 = vmatmul.mubr.msk.bf16.gmra.mrb[24].mxu0 %vm278_vm0, %v1396_v30  ;;  %1351 = vmatmul.mubr.msk.bf16.gmra.mrb[24].mxu1 %vm278_vm0, %v1397_v31 }
  0x43   :  { %1322 = vmatprep.mubr.msk.bf16.mxu0 %vm278_vm0, %v1398_v32  ;;  %1354 = vmatprep.mubr.msk.bf16.mxu1 %vm278_vm0, %v1399_v33 }
  0x4a   :  { %1323 = vmatmul.mubr.msk.bf16.gmra.mrb[28].mxu0 %vm278_vm0, %v1400_v34  ;;  %1355 = vmatmul.mubr.msk.bf16.gmra.mrb[28].mxu1 %vm278_vm0, %v1401_v35 }
  0xe5   :  { %v1296_v37 = vpop.f32.mrb[0].mxu0  ;;  %v1328_v38 = vpop.f32.mrb[0].mxu1 }
  0xe6   :  { %v418_v39 = vadd.f32 %v1296_v37, %v1565_v36  ;;  %v546_v40 = vadd.f32 %v1328_v38, %v1565_v36  ;;  %v409_v41 = vpop.f32.mrb[1].mxu0  ;;  %v537_v42 = vpop.f32.mrb[1].mxu1 }
  0xe7   :  { %v410_v43 = vadd.f32 %v1565_v36, %v409_v41  ;;  %v538_v44 = vadd.f32 %v1565_v36, %v537_v42  ;;  %v1297_v45 = vpop.f32.mrb[2].mxu0  ;;  %v1329_v46 = vpop.f32.mrb[2].mxu1 }
  0xe8   :  { %v666_v47 = vmax.f32 %v418_v39, 0.0  ;;  %v698_v48 = vmax.f32 %v546_v40, 0.0  ;;  %v421_v49 = vadd.f32 %v1297_v45, %v1565_v36  ;;  %v549_v50 = vadd.f32 %v1329_v46, %v1565_v36  ;;  %v412_v51 = vpop.f32.mrb[3].mxu0  ;;  %v540_v52 = vpop.f32.mrb[3].mxu1 }
  0xe9   :  { %v664_v53 = vmax.f32 %v410_v43, 0.0  ;;  %v696_v54 = vmax.f32 %v538_v44, 0.0  ;;  %v413_v55 = vadd.f32 %v1565_v36, %v412_v51  ;;  %v541_v56 = vadd.f32 %v1565_v36, %v540_v52 }
  0xea   :  { %v1188_v57 = vpack.c.bf16 %v666_v47, %v666_v47  ;;  %v1220_v58 = vpack.c.bf16 %v698_v48, %v698_v48  ;;  %v667_v59 = vmax.f32 %v421_v49, 0.0  ;;  %v699_v60 = vmax.f32 %v549_v50, 0.0 }
  0xeb   :  { %v1186_v61 = vpack.c.bf16 %v664_v53, %v664_v53  ;;  %v1218_v62 = vpack.c.bf16 %v696_v54, %v696_v54  ;;  %v665_v63 = vmax.f32 %v413_v55, 0.0  ;;  %v697_v0 = vmax.f32 %v541_v56, 0.0 }
  0xec   :  { %987 = vst.msk [vmem:[%s1890_s3 + $0x8] sm:$0xf] %vm984_vm1, %v1188_v57  ;;  %1019 = vst.msk [vmem:[%s1890_s3 + $0x88] sm:$0xf] %vm984_vm1, %v1220_v58  ;;  %v1189_v1 = vpack.c.bf16 %v667_v59, %v667_v59  ;;  %v1221_v2 = vpack.c.bf16 %v699_v60, %v699_v60 }
  0xed   :  { %985 = vst.msk [vmem:[%s1890_s3] sm:$0xf] %vm984_vm1, %v1186_v61  ;;  %1017 = vst.msk [vmem:[%s1890_s3 + $0x80] sm:$0xf] %vm984_vm1, %v1218_v62  ;;  %v1187_v3 = vpack.c.bf16 %v665_v63, %v665_v63  ;;  %v1219_v4 = vpack.c.bf16 %v697_v0, %v697_v0  ;;  %v1300_v5 = vpop.f32.mrb[4].mxu0  ;;  %v1332_v6 = vpop.f32.mrb[4].mxu1 }
  0xee   :  { %988 = vst.msk [vmem:[%s1890_s3 + $0xc] sm:$0xf] %vm984_vm1, %v1189_v1  ;;  %1020 = vst.msk [vmem:[%s1890_s3 + $0x8c] sm:$0xf] %vm984_vm1, %v1221_v2  ;;  %v434_v7 = vadd.f32 %v1300_v5, %v1565_v36  ;;  %v562_v8 = vadd.f32 %v1332_v6, %v1565_v36  ;;  %v425_v9 = vpop.f32.mrb[5].mxu0  ;;  %v553_v10 = vpop.f32.mrb[5].mxu1 }
  0xef   :  { %986 = vst.msk [vmem:[%s1890_s3 + $0x4] sm:$0xf] %vm984_vm1, %v1187_v3  ;;  %1018 = vst.msk [vmem:[%s1890_s3 + $0x84] sm:$0xf] %vm984_vm1, %v1219_v4  ;;  %v426_v11 = vadd.f32 %v1565_v36, %v425_v9  ;;  %v554_v12 = vadd.f32 %v1565_v36, %v553_v10  ;;  %v1301_v13 = vpop.f32.mrb[6].mxu0  ;;  %v1333_v14 = vpop.f32.mrb[6].mxu1 }
  0xf0   :  { %v670_v15 = vmax.f32 %v434_v7, 0.0  ;;  %v702_v16 = vmax.f32 %v562_v8, 0.0  ;;  %v437_v17 = vadd.f32 %v1301_v13, %v1565_v36  ;;  %v565_v18 = vadd.f32 %v1333_v14, %v1565_v36  ;;  %v428_v19 = vpop.f32.mrb[7].mxu0  ;;  %v556_v20 = vpop.f32.mrb[7].mxu1 }
  0xf1   :  { %v668_v21 = vmax.f32 %v426_v11, 0.0  ;;  %v700_v22 = vmax.f32 %v554_v12, 0.0  ;;  %v429_v23 = vadd.f32 %v1565_v36, %v428_v19  ;;  %v557_v24 = vadd.f32 %v1565_v36, %v556_v20 }
  0xf2   :  { %v1192_v25 = vpack.c.bf16 %v670_v15, %v670_v15  ;;  %v1224_v26 = vpack.c.bf16 %v702_v16, %v702_v16  ;;  %v671_v27 = vmax.f32 %v437_v17, 0.0  ;;  %v703_v28 = vmax.f32 %v565_v18, 0.0 }
  0xf3   :  { %v1190_v29 = vpack.c.bf16 %v668_v21, %v668_v21  ;;  %v1222_v30 = vpack.c.bf16 %v700_v22, %v700_v22  ;;  %v669_v31 = vmax.f32 %v429_v23, 0.0  ;;  %v701_v32 = vmax.f32 %v557_v24, 0.0 }
  0xf4   :  { %991 = vst.msk [vmem:[%s1890_s3 + $0x18] sm:$0xf] %vm984_vm1, %v1192_v25  ;;  %1023 = vst.msk [vmem:[%s1890_s3 + $0x98] sm:$0xf] %vm984_vm1, %v1224_v26  ;;  %v1193_v33 = vpack.c.bf16 %v671_v27, %v671_v27  ;;  %v1225_v34 = vpack.c.bf16 %v703_v28, %v703_v28 }
  0xf5   :  { %989 = vst.msk [vmem:[%s1890_s3 + $0x10] sm:$0xf] %vm984_vm1, %v1190_v29  ;;  %1021 = vst.msk [vmem:[%s1890_s3 + $0x90] sm:$0xf] %vm984_vm1, %v1222_v30  ;;  %v1191_v35 = vpack.c.bf16 %v669_v31, %v669_v31  ;;  %v1223_v37 = vpack.c.bf16 %v701_v32, %v701_v32  ;;  %v1304_v38 = vpop.f32.mrb[8].mxu0  ;;  %v1336_v39 = vpop.f32.mrb[8].mxu1 }
  0xf6   :  { %992 = vst.msk [vmem:[%s1890_s3 + $0x1c] sm:$0xf] %vm984_vm1, %v1193_v33  ;;  %1024 = vst.msk [vmem:[%s1890_s3 + $0x9c] sm:$0xf] %vm984_vm1, %v1225_v34  ;;  %v450_v40 = vadd.f32 %v1304_v38, %v1565_v36  ;;  %v578_v41 = vadd.f32 %v1336_v39, %v1565_v36  ;;  %v441_v42 = vpop.f32.mrb[9].mxu0  ;;  %v569_v43 = vpop.f32.mrb[9].mxu1 }
  0xf7   :  { %990 = vst.msk [vmem:[%s1890_s3 + $0x14] sm:$0xf] %vm984_vm1, %v1191_v35  ;;  %1022 = vst.msk [vmem:[%s1890_s3 + $0x94] sm:$0xf] %vm984_vm1, %v1223_v37  ;;  %v442_v44 = vadd.f32 %v1565_v36, %v441_v42  ;;  %v570_v45 = vadd.f32 %v1565_v36, %v569_v43  ;;  %v1305_v46 = vpop.f32.mrb[10].mxu0  ;;  %v1337_v47 = vpop.f32.mrb[10].mxu1 }
  0xf8   :  { %v674_v48 = vmax.f32 %v450_v40, 0.0  ;;  %v706_v49 = vmax.f32 %v578_v41, 0.0  ;;  %v453_v50 = vadd.f32 %v1305_v46, %v1565_v36  ;;  %v581_v51 = vadd.f32 %v1337_v47, %v1565_v36  ;;  %v444_v52 = vpop.f32.mrb[11].mxu0  ;;  %v572_v53 = vpop.f32.mrb[11].mxu1 }
  0xf9   :  { %v672_v54 = vmax.f32 %v442_v44, 0.0  ;;  %v704_v55 = vmax.f32 %v570_v45, 0.0  ;;  %v445_v56 = vadd.f32 %v1565_v36, %v444_v52  ;;  %v573_v57 = vadd.f32 %v1565_v36, %v572_v53 }
  0xfa   :  { %v1196_v58 = vpack.c.bf16 %v674_v48, %v674_v48  ;;  %v1228_v59 = vpack.c.bf16 %v706_v49, %v706_v49  ;;  %v675_v60 = vmax.f32 %v453_v50, 0.0  ;;  %v707_v61 = vmax.f32 %v581_v51, 0.0 }
  0xfb   :  { %v1194_v62 = vpack.c.bf16 %v672_v54, %v672_v54  ;;  %v1226_v63 = vpack.c.bf16 %v704_v55, %v704_v55  ;;  %v673_v0 = vmax.f32 %v445_v56, 0.0  ;;  %v705_v1 = vmax.f32 %v573_v57, 0.0 }
  0xfc   :  { %995 = vst.msk [vmem:[%s1890_s3 + $0x28] sm:$0xf] %vm984_vm1, %v1196_v58  ;;  %1027 = vst.msk [vmem:[%s1890_s3 + $0xa8] sm:$0xf] %vm984_vm1, %v1228_v59  ;;  %v1197_v2 = vpack.c.bf16 %v675_v60, %v675_v60  ;;  %v1229_v3 = vpack.c.bf16 %v707_v61, %v707_v61 }
  0xfd   :  { %993 = vst.msk [vmem:[%s1890_s3 + $0x20] sm:$0xf] %vm984_vm1, %v1194_v62  ;;  %1025 = vst.msk [vmem:[%s1890_s3 + $0xa0] sm:$0xf] %vm984_vm1, %v1226_v63  ;;  %v1195_v4 = vpack.c.bf16 %v673_v0, %v673_v0  ;;  %v1227_v5 = vpack.c.bf16 %v705_v1, %v705_v1  ;;  %v1308_v6 = vpop.f32.mrb[12].mxu0  ;;  %v1340_v7 = vpop.f32.mrb[12].mxu1 }
  0xfe   :  { %996 = vst.msk [vmem:[%s1890_s3 + $0x2c] sm:$0xf] %vm984_vm1, %v1197_v2  ;;  %1028 = vst.msk [vmem:[%s1890_s3 + $0xac] sm:$0xf] %vm984_vm1, %v1229_v3  ;;  %v466_v8 = vadd.f32 %v1308_v6, %v1565_v36  ;;  %v594_v9 = vadd.f32 %v1340_v7, %v1565_v36  ;;  %v457_v10 = vpop.f32.mrb[13].mxu0  ;;  %v585_v11 = vpop.f32.mrb[13].mxu1 }
  0xff   :  { %994 = vst.msk [vmem:[%s1890_s3 + $0x24] sm:$0xf] %vm984_vm1, %v1195_v4  ;;  %1026 = vst.msk [vmem:[%s1890_s3 + $0xa4] sm:$0xf] %vm984_vm1, %v1227_v5  ;;  %v458_v12 = vadd.f32 %v1565_v36, %v457_v10  ;;  %v586_v13 = vadd.f32 %v1565_v36, %v585_v11  ;;  %v1309_v14 = vpop.f32.mrb[14].mxu0  ;;  %v1341_v15 = vpop.f32.mrb[14].mxu1 }
 0x100   :  { %v678_v16 = vmax.f32 %v466_v8, 0.0  ;;  %v710_v17 = vmax.f32 %v594_v9, 0.0  ;;  %v469_v18 = vadd.f32 %v1309_v14, %v1565_v36  ;;  %v597_v19 = vadd.f32 %v1341_v15, %v1565_v36  ;;  %v460_v20 = vpop.f32.mrb[15].mxu0  ;;  %v588_v21 = vpop.f32.mrb[15].mxu1 }
 0x101   :  { %v676_v22 = vmax.f32 %v458_v12, 0.0  ;;  %v708_v23 = vmax.f32 %v586_v13, 0.0  ;;  %v461_v24 = vadd.f32 %v1565_v36, %v460_v20  ;;  %v589_v25 = vadd.f32 %v1565_v36, %v588_v21 }
 0x102   :  { %v1200_v26 = vpack.c.bf16 %v678_v16, %v678_v16  ;;  %v1232_v27 = vpack.c.bf16 %v710_v17, %v710_v17  ;;  %v679_v28 = vmax.f32 %v469_v18, 0.0  ;;  %v711_v29 = vmax.f32 %v597_v19, 0.0 }
 0x103   :  { %v1198_v30 = vpack.c.bf16 %v676_v22, %v676_v22  ;;  %v1230_v31 = vpack.c.bf16 %v708_v23, %v708_v23  ;;  %v677_v32 = vmax.f32 %v461_v24, 0.0  ;;  %v709_v33 = vmax.f32 %v589_v25, 0.0 }
 0x104   :  { %999 = vst.msk [vmem:[%s1890_s3 + $0x38] sm:$0xf] %vm984_vm1, %v1200_v26  ;;  %1031 = vst.msk [vmem:[%s1890_s3 + $0xb8] sm:$0xf] %vm984_vm1, %v1232_v27  ;;  %v1201_v34 = vpack.c.bf16 %v679_v28, %v679_v28  ;;  %v1233_v35 = vpack.c.bf16 %v711_v29, %v711_v29 }
 0x105   :  { %997 = vst.msk [vmem:[%s1890_s3 + $0x30] sm:$0xf] %vm984_vm1, %v1198_v30  ;;  %1029 = vst.msk [vmem:[%s1890_s3 + $0xb0] sm:$0xf] %vm984_vm1, %v1230_v31  ;;  %v1199_v37 = vpack.c.bf16 %v677_v32, %v677_v32  ;;  %v1231_v38 = vpack.c.bf16 %v709_v33, %v709_v33  ;;  %v1312_v39 = vpop.f32.mrb[16].mxu0  ;;  %v1344_v40 = vpop.f32.mrb[16].mxu1 }
 0x106   :  { %1000 = vst.msk [vmem:[%s1890_s3 + $0x3c] sm:$0xf] %vm984_vm1, %v1201_v34  ;;  %1032 = vst.msk [vmem:[%s1890_s3 + $0xbc] sm:$0xf] %vm984_vm1, %v1233_v35  ;;  %v482_v41 = vadd.f32 %v1312_v39, %v1565_v36  ;;  %v610_v42 = vadd.f32 %v1344_v40, %v1565_v36  ;;  %v473_v43 = vpop.f32.mrb[17].mxu0  ;;  %v601_v44 = vpop.f32.mrb[17].mxu1 }
 0x107   :  { %998 = vst.msk [vmem:[%s1890_s3 + $0x34] sm:$0xf] %vm984_vm1, %v1199_v37  ;;  %1030 = vst.msk [vmem:[%s1890_s3 + $0xb4] sm:$0xf] %vm984_vm1, %v1231_v38  ;;  %v474_v45 = vadd.f32 %v1565_v36, %v473_v43  ;;  %v602_v46 = vadd.f32 %v1565_v36, %v601_v44  ;;  %v1313_v47 = vpop.f32.mrb[18].mxu0  ;;  %v1345_v48 = vpop.f32.mrb[18].mxu1 }
 0x108   :  { %v682_v49 = vmax.f32 %v482_v41, 0.0  ;;  %v714_v50 = vmax.f32 %v610_v42, 0.0  ;;  %v485_v51 = vadd.f32 %v1313_v47, %v1565_v36  ;;  %v613_v52 = vadd.f32 %v1345_v48, %v1565_v36  ;;  %v476_v53 = vpop.f32.mrb[19].mxu0  ;;  %v604_v54 = vpop.f32.mrb[19].mxu1 }
 0x109   :  { %v680_v55 = vmax.f32 %v474_v45, 0.0  ;;  %v712_v56 = vmax.f32 %v602_v46, 0.0  ;;  %v477_v57 = vadd.f32 %v1565_v36, %v476_v53  ;;  %v605_v58 = vadd.f32 %v1565_v36, %v604_v54 }
 0x10a   :  { %v1204_v59 = vpack.c.bf16 %v682_v49, %v682_v49  ;;  %v1236_v60 = vpack.c.bf16 %v714_v50, %v714_v50  ;;  %v683_v61 = vmax.f32 %v485_v51, 0.0  ;;  %v715_v62 = vmax.f32 %v613_v52, 0.0 }
 0x10b   :  { %v1202_v63 = vpack.c.bf16 %v680_v55, %v680_v55  ;;  %v1234_v0 = vpack.c.bf16 %v712_v56, %v712_v56  ;;  %v681_v1 = vmax.f32 %v477_v57, 0.0  ;;  %v713_v2 = vmax.f32 %v605_v58, 0.0 }
 0x10c   :  { %1003 = vst.msk [vmem:[%s1890_s3 + $0x48] sm:$0xf] %vm984_vm1, %v1204_v59  ;;  %1035 = vst.msk [vmem:[%s1890_s3 + $0xc8] sm:$0xf] %vm984_vm1, %v1236_v60  ;;  %v1205_v3 = vpack.c.bf16 %v683_v61, %v683_v61  ;;  %v1237_v4 = vpack.c.bf16 %v715_v62, %v715_v62 }
 0x10d   :  { %1001 = vst.msk [vmem:[%s1890_s3 + $0x40] sm:$0xf] %vm984_vm1, %v1202_v63  ;;  %1033 = vst.msk [vmem:[%s1890_s3 + $0xc0] sm:$0xf] %vm984_vm1, %v1234_v0  ;;  %v1203_v5 = vpack.c.bf16 %v681_v1, %v681_v1  ;;  %v1235_v6 = vpack.c.bf16 %v713_v2, %v713_v2  ;;  %v1316_v7 = vpop.f32.mrb[20].mxu0  ;;  %v1348_v8 = vpop.f32.mrb[20].mxu1 }
 0x10e   :  { %1004 = vst.msk [vmem:[%s1890_s3 + $0x4c] sm:$0xf] %vm984_vm1, %v1205_v3  ;;  %1036 = vst.msk [vmem:[%s1890_s3 + $0xcc] sm:$0xf] %vm984_vm1, %v1237_v4  ;;  %v498_v9 = vadd.f32 %v1316_v7, %v1565_v36  ;;  %v626_v10 = vadd.f32 %v1348_v8, %v1565_v36  ;;  %v489_v11 = vpop.f32.mrb[21].mxu0  ;;  %v617_v12 = vpop.f32.mrb[21].mxu1 }
 0x10f   :  { %1002 = vst.msk [vmem:[%s1890_s3 + $0x44] sm:$0xf] %vm984_vm1, %v1203_v5  ;;  %1034 = vst.msk [vmem:[%s1890_s3 + $0xc4] sm:$0xf] %vm984_vm1, %v1235_v6  ;;  %v490_v13 = vadd.f32 %v1565_v36, %v489_v11  ;;  %v618_v14 = vadd.f32 %v1565_v36, %v617_v12  ;;  %v1317_v15 = vpop.f32.mrb[22].mxu0  ;;  %v1349_v16 = vpop.f32.mrb[22].mxu1 }
 0x110   :  { %v686_v17 = vmax.f32 %v498_v9, 0.0  ;;  %v718_v18 = vmax.f32 %v626_v10, 0.0  ;;  %v501_v19 = vadd.f32 %v1317_v15, %v1565_v36  ;;  %v629_v20 = vadd.f32 %v1349_v16, %v1565_v36  ;;  %v492_v21 = vpop.f32.mrb[23].mxu0  ;;  %v620_v22 = vpop.f32.mrb[23].mxu1 }
 0x111   :  { %v684_v23 = vmax.f32 %v490_v13, 0.0  ;;  %v716_v24 = vmax.f32 %v618_v14, 0.0  ;;  %v493_v25 = vadd.f32 %v1565_v36, %v492_v21  ;;  %v621_v26 = vadd.f32 %v1565_v36, %v620_v22 }
 0x112   :  { %v1208_v27 = vpack.c.bf16 %v686_v17, %v686_v17  ;;  %v1240_v28 = vpack.c.bf16 %v718_v18, %v718_v18  ;;  %v687_v29 = vmax.f32 %v501_v19, 0.0  ;;  %v719_v30 = vmax.f32 %v629_v20, 0.0 }
 0x113   :  { %v1206_v31 = vpack.c.bf16 %v684_v23, %v684_v23  ;;  %v1238_v32 = vpack.c.bf16 %v716_v24, %v716_v24  ;;  %v685_v33 = vmax.f32 %v493_v25, 0.0  ;;  %v717_v34 = vmax.f32 %v621_v26, 0.0 }
 0x114   :  { %1007 = vst.msk [vmem:[%s1890_s3 + $0x58] sm:$0xf] %vm984_vm1, %v1208_v27  ;;  %1039 = vst.msk [vmem:[%s1890_s3 + $0xd8] sm:$0xf] %vm984_vm1, %v1240_v28  ;;  %v1209_v35 = vpack.c.bf16 %v687_v29, %v687_v29  ;;  %v1241_v37 = vpack.c.bf16 %v719_v30, %v719_v30 }
 0x115   :  { %1005 = vst.msk [vmem:[%s1890_s3 + $0x50] sm:$0xf] %vm984_vm1, %v1206_v31  ;;  %1037 = vst.msk [vmem:[%s1890_s3 + $0xd0] sm:$0xf] %vm984_vm1, %v1238_v32  ;;  %v1207_v38 = vpack.c.bf16 %v685_v33, %v685_v33  ;;  %v1239_v39 = vpack.c.bf16 %v717_v34, %v717_v34  ;;  %v1320_v40 = vpop.f32.mrb[24].mxu0  ;;  %v1352_v41 = vpop.f32.mrb[24].mxu1 }
 0x116   :  { %1008 = vst.msk [vmem:[%s1890_s3 + $0x5c] sm:$0xf] %vm984_vm1, %v1209_v35  ;;  %1040 = vst.msk [vmem:[%s1890_s3 + $0xdc] sm:$0xf] %vm984_vm1, %v1241_v37  ;;  %v514_v42 = vadd.f32 %v1320_v40, %v1565_v36  ;;  %v642_v43 = vadd.f32 %v1352_v41, %v1565_v36  ;;  %v505_v44 = vpop.f32.mrb[25].mxu0  ;;  %v633_v45 = vpop.f32.mrb[25].mxu1 }
 0x117   :  { %1006 = vst.msk [vmem:[%s1890_s3 + $0x54] sm:$0xf] %vm984_vm1, %v1207_v38  ;;  %1038 = vst.msk [vmem:[%s1890_s3 + $0xd4] sm:$0xf] %vm984_vm1, %v1239_v39  ;;  %v506_v46 = vadd.f32 %v1565_v36, %v505_v44  ;;  %v634_v47 = vadd.f32 %v1565_v36, %v633_v45  ;;  %v1321_v48 = vpop.f32.mrb[26].mxu0  ;;  %v1353_v49 = vpop.f32.mrb[26].mxu1 }
 0x118   :  { %v690_v50 = vmax.f32 %v514_v42, 0.0  ;;  %v722_v51 = vmax.f32 %v642_v43, 0.0  ;;  %v517_v52 = vadd.f32 %v1321_v48, %v1565_v36  ;;  %v645_v53 = vadd.f32 %v1353_v49, %v1565_v36  ;;  %v508_v54 = vpop.f32.mrb[27].mxu0  ;;  %v636_v55 = vpop.f32.mrb[27].mxu1 }
 0x119   :  { %v688_v56 = vmax.f32 %v506_v46, 0.0  ;;  %v720_v57 = vmax.f32 %v634_v47, 0.0  ;;  %v509_v58 = vadd.f32 %v1565_v36, %v508_v54  ;;  %v637_v59 = vadd.f32 %v1565_v36, %v636_v55 }
 0x11a   :  { %v1212_v60 = vpack.c.bf16 %v690_v50, %v690_v50  ;;  %v1244_v61 = vpack.c.bf16 %v722_v51, %v722_v51  ;;  %v691_v62 = vmax.f32 %v517_v52, 0.0  ;;  %v723_v63 = vmax.f32 %v645_v53, 0.0 }
 0x11b   :  { %v1210_v0 = vpack.c.bf16 %v688_v56, %v688_v56  ;;  %v1242_v1 = vpack.c.bf16 %v720_v57, %v720_v57  ;;  %v689_v2 = vmax.f32 %v509_v58, 0.0  ;;  %v721_v3 = vmax.f32 %v637_v59, 0.0 }
 0x11c   :  { %1011 = vst.msk [vmem:[%s1890_s3 + $0x68] sm:$0xf] %vm984_vm1, %v1212_v60  ;;  %1043 = vst.msk [vmem:[%s1890_s3 + $0xe8] sm:$0xf] %vm984_vm1, %v1244_v61  ;;  %v1213_v4 = vpack.c.bf16 %v691_v62, %v691_v62  ;;  %v1245_v5 = vpack.c.bf16 %v723_v63, %v723_v63 }
 0x11d   :  { %1009 = vst.msk [vmem:[%s1890_s3 + $0x60] sm:$0xf] %vm984_vm1, %v1210_v0  ;;  %1041 = vst.msk [vmem:[%s1890_s3 + $0xe0] sm:$0xf] %vm984_vm1, %v1242_v1  ;;  %v1211_v6 = vpack.c.bf16 %v689_v2, %v689_v2  ;;  %v1243_v7 = vpack.c.bf16 %v721_v3, %v721_v3  ;;  %v1324_v8 = vpop.f32.mrb[28].mxu0  ;;  %v1356_v9 = vpop.f32.mrb[28].mxu1 }
 0x11e   :  { %1012 = vst.msk [vmem:[%s1890_s3 + $0x6c] sm:$0xf] %vm984_vm1, %v1213_v4  ;;  %1044 = vst.msk [vmem:[%s1890_s3 + $0xec] sm:$0xf] %vm984_vm1, %v1245_v5  ;;  %v530_v10 = vadd.f32 %v1324_v8, %v1565_v36  ;;  %v658_v11 = vadd.f32 %v1356_v9, %v1565_v36  ;;  %v521_v12 = vpop.f32.mrb[29].mxu0  ;;  %v649_v13 = vpop.f32.mrb[29].mxu1 }
 0x11f   :  { %1010 = vst.msk [vmem:[%s1890_s3 + $0x64] sm:$0xf] %vm984_vm1, %v1211_v6  ;;  %1042 = vst.msk [vmem:[%s1890_s3 + $0xe4] sm:$0xf] %vm984_vm1, %v1243_v7  ;;  %v522_v14 = vadd.f32 %v1565_v36, %v521_v12  ;;  %v650_v15 = vadd.f32 %v1565_v36, %v649_v13  ;;  %v1325_v16 = vpop.f32.mrb[30].mxu0  ;;  %v1357_v17 = vpop.f32.mrb[30].mxu1 }
 0x120   :  { %v694_v18 = vmax.f32 %v530_v10, 0.0  ;;  %v726_v19 = vmax.f32 %v658_v11, 0.0  ;;  %v533_v20 = vadd.f32 %v1325_v16, %v1565_v36  ;;  %v661_v21 = vadd.f32 %v1357_v17, %v1565_v36  ;;  %v524_v22 = vpop.f32.mrb[31].mxu0  ;;  %v652_v23 = vpop.f32.mrb[31].mxu1 }
 0x121   :  { %v692_v24 = vmax.f32 %v522_v14, 0.0  ;;  %v724_v25 = vmax.f32 %v650_v15, 0.0  ;;  %v525_v26 = vadd.f32 %v1565_v36, %v524_v22  ;;  %v653_v27 = vadd.f32 %v1565_v36, %v652_v23 }
 0x122   :  { %v1216_v28 = vpack.c.bf16 %v694_v18, %v694_v18  ;;  %v1248_v29 = vpack.c.bf16 %v726_v19, %v726_v19  ;;  %v695_v30 = vmax.f32 %v533_v20, 0.0  ;;  %v727_v31 = vmax.f32 %v661_v21, 0.0 }
 0x123   :  { %v1214_v32 = vpack.c.bf16 %v692_v24, %v692_v24  ;;  %v1246_v33 = vpack.c.bf16 %v724_v25, %v724_v25  ;;  %v693_v34 = vmax.f32 %v525_v26, 0.0  ;;  %v725_v35 = vmax.f32 %v653_v27, 0.0 }
 0x124   :  { %1015 = vst.msk [vmem:[%s1890_s3 + $0x78] sm:$0xf] %vm984_vm1, %v1216_v28  ;;  %1047 = vst.msk [vmem:[%s1890_s3 + $0xf8] sm:$0xf] %vm984_vm1, %v1248_v29  ;;  %v1217_v37 = vpack.c.bf16 %v695_v30, %v695_v30  ;;  %v1249_v36 = vpack.c.bf16 %v727_v31, %v727_v31 }
 0x125   :  { %1013 = vst.msk [vmem:[%s1890_s3 + $0x70] sm:$0xf] %vm984_vm1, %v1214_v32  ;;  %1045 = vst.msk [vmem:[%s1890_s3 + $0xf0] sm:$0xf] %vm984_vm1, %v1246_v33  ;;  %v1215_v38 = vpack.c.bf16 %v693_v34, %v693_v34  ;;  %v1247_v39 = vpack.c.bf16 %v725_v35, %v725_v35 }
 0x126   :  { %1016 = vst.msk [vmem:[%s1890_s3 + $0x7c] sm:$0xf] %vm984_vm1, %v1217_v37  ;;  %1048 = vst.msk [vmem:[%s1890_s3 + $0xfc] sm:$0xf] %vm984_vm1, %v1249_v36 }
 0x127   :  { %1014 = vst.msk [vmem:[%s1890_s3 + $0x74] sm:$0xf] %vm984_vm1, %v1215_v38  ;;  %1046 = vst.msk [vmem:[%s1890_s3 + $0xf4] sm:$0xf] %vm984_vm1, %v1247_v39 }

// kernel: forward.23
= control target key start
LH: loop header
LB: loop body
LE: loop exit
PB: predicated region body
PF: predicated region fallthrough
CT: control target
= control target key end

     0   :  { %s5224_s12 = smov 0   ;;  %s6175_s0 = inlined_call_operand.vmem [shape: bf16[2,342,16], index: 0, kind: input, shape index: {}]   ;;  %s6176_s1 = inlined_call_operand.vmem [shape: bf16[9,16,16], index: 1, kind: input, shape index: {}]   ;;  %s6177_s2 = inlined_call_operand.vmem [shape: f32[1,16], index: 2, kind: input, shape index: {}]   ;;  %s6178_s3 = inlined_call_operand.vmem [shape: bf16[2,288,16], index: 3, kind: output, shape index: {}]  }
   0x1 LB: > { %s3970_s13 = sadd.s32 4294967295, %s5202_s12   ;;  %p3974_p0 = scmp.ge.s32.totalorder %s5202_s12, 1  ;;  %s5202_s12 = sphi %s5224_s12, %s13_s12  }
   0x2   : > { %p137_p1 = scmp.lt.s32.totalorder %s5202_s12, 3 }
   0x4   : > { %p138_p2 = pnand %p3974_p0, %p137_p1 }
   0x5   : > { %v5114_v0 = vld [vmem:[%s6176_s1 + $0x20] sm:$0xff] (!%p138_p2)   ;;  %p161_p3 = scmp.lt.s32.totalorder (!%p138_p2), %s3970_s13, 1  ;;  %v5115_v1 = vld [vmem:[%s6176_s1 + $0x8] sm:$0xff] (!%p138_p2)   ;;  %vm307_vm0 = vsmask.f32 (!%p138_p2), 7424  ;;  %vm462_vm1 = vcmask (!%p138_p2), 130048  }
   0x6   : > { %141 = sbr.rel (%p138_p2) target bundleno = 575 (0x23f), region = 32  ;;  %4624 = vmatprep.subr.bf16.mxu0 (!%p138_p2), %v5114_v0  ;;  %v5243_v2 = vld [vmem:[%s6176_s1 + $0x28] sm:$0xff] (!%p138_p2)   ;;  %4472 = vmatprep.subr.bf16.mxu1 (!%p138_p2), %v5115_v1  ;;  %v5124_v3 = vld [vmem:[%s6176_s1] sm:$0xff] (!%p138_p2)   ;;  %vm1681_vm2 = vsmask.f32 (!%p138_p2), 6400  ;;  %v5299_v31 = vld [vmem:[%s6176_s1 + $0x10] sm:$0xff] (!%p138_p2)  }
   0x7   : > { %4625 = vmatpush3.bf16.msra.mxu0 (!%p138_p2), %v5114_v0  ;;  %4473 = vmatpush3.bf16.msra.mxu1 (!%p138_p2), %v5115_v1  ;;  %v5329_v56 = vld [vmem:[%s6176_s1 + $0x30] sm:$0xff] (!%p138_p2)   ;;  %vm2132_vm3 = vcmask (!%p138_p2), 1045504   ;;  %vm920_vm4 = vcmask (!%p138_p2), 1046528   ;;  %vm2893_vm5 = vsmask.f32 (!%p138_p2), 5376  ;;  %vm3344_vm6 = vcmask (!%p138_p2), 1044480  }
   0x8   : > { %4662 = vmatprep.subr.bf16.mxu0 (!%p138_p2), %v5243_v2  ;;  %4510 = vmatprep.subr.bf16.mxu1 (!%p138_p2), %v5124_v3  ;;  %vm3878_vm7 = vcmask (!%p138_p2), 125952  }
   0xd   : > { %s6180_s13 = smov (!%p161_p3, %s3970_s13), 1 }
   0xe   : > { %s5104_s20 = smul.u32 172, %s6180_s13 }
   0xf   : > { %s5105_s15 = smul.u32 144, %s6180_s13 }
  0x10   : > { %s5253_s25 = scalar_lea.vmem %s6175_s0, %s5104_s20 }
  0x11   : > { %v172_v4 = vld [vmem:[%s5253_s25] sm:$0xf]  ;;  %v5257_v5 = vld [vmem:[%s5253_s25 + $0x4] sm:$0xf]  ;;  %v5263_v7 = vld [vmem:[%s5253_s25 + $0x8] sm:$0xff]   ;;  %s6054_s18 = scalar_lea.vmem %s6178_s3, %s5105_s15 }
  0x12   : > { %v5260_v6 = vcombine.low %v172_v4, %v5257_v5  ;;  %v1231_v8 = vld [vmem:[%s5253_s25 + $0x8] sm:$0xe]  ;;  %v5267_v9 = vld [vmem:[%s5253_s25 + $0xc] sm:$0xf]  ;;  %v316_v12 = vshll.u32 %v5263_v7, 16  ;;  %v320_v13 = vshrl.u32 %v5263_v7, 16 }
  0x13   : > { %v5274_v14 = vld [vmem:[%s5253_s25 + $0x10] sm:$0xff]   ;;  %v5280_v16 = vcombine.low %v1231_v8, %v5267_v9  ;;  %v5288_v24 = vld [vmem:[%s5253_s25 + $0x18] sm:$0xff]   ;;  %v5294_v30 = vld [vmem:[%s5253_s25 + $0x20] sm:$0xff]  }
  0x14   : > { %v309_v10 = vshrl.u32 %v5260_v6, 16  ;;  %v311_v11 = vshll.u32 %v5260_v6, 16  ;;  %v5277_v15 = vld [vmem:[%s5253_s25 + $0x10] sm:$0xff]   ;;  %v318_v18 = vrot.slane %v316_v12, 1  ;;  %v1691_v19 = vshrl.u32 %v5274_v14, 16  ;;  %v5291_v29 = vld [vmem:[%s5253_s25 + $0x18] sm:$0xff]  }
  0x15   : > { %v1694_v20 = vshll.u32 %v5274_v14, 16  ;;  %v1683_v21 = vshrl.u32 %v5280_v16, 16  ;;  %v1686_v22 = vshll.u32 %v5280_v16, 16  ;;  %v324_v23 = vshll.u32 %v5277_v15, 16  ;;  %v5309_v44 = vld [vmem:[%s5253_s25 + $0x20] sm:$0xff]   ;;  %v5312_v45 = vld [vmem:[%s5253_s25 + $0x28] sm:$0xff]  }
  0x16   : > { %v313_v17 = vrot.slane %v311_v11, 1  ;;  %v322_v26 = vor.u32 %v320_v13, %v318_v18  ;;  %v1693_v27 = vrot.slane %v1691_v19, 1  ;;  %v1700_v35 = vshrl.u32 %v5288_v24, 16  ;;  %v5318_v50 = vld [vmem:[%s5253_s25 + $0x28] sm:$0xff]   ;;  %v5324_v55 = vld [vmem:[%s5253_s25 + $0x30] sm:$0xff]  }
  0x17   : > { %v1696_v28 = vrot.slane %v1694_v20, 2  ;;  %v1685_v32 = vrot.slane %v1683_v21, 1  ;;  %v1688_v33 = vrot.slane %v1686_v22, 2  ;;  %v326_v34 = vrot.slane %v324_v23, 1  ;;  %v5334_v61 = vld [vmem:[%s5253_s25 + $0x30] sm:$0xff]  }
  0x18   : > { %v314_v25 = vor.u32 %v313_v17, %v309_v10  ;;  %v1703_v38 = vshll.u32 %v5288_v24, 16  ;;  %v328_v39 = vshrl.u32 %v5277_v15, 16  ;;  %v1702_v42 = vrot.slane %v1700_v35, 1 }
  0x19   : > { %v1697_v37 = vor.u32 %v1696_v28, %v1693_v27  ;;  %v1689_v40 = vor.u32 %v1688_v33, %v1685_v32  ;;  %v327_v41 = vsel %vm307_vm0, %v322_v26, %v326_v34  ;;  %v332_v43 = vshll.u32 %v5291_v29, 16  ;;  %v5356_v28 = vld [vmem:[%s5253_s25 + $0x38] sm:$0xff]  }
  0x1a   : > { %v319_v36 = vsel %vm307_vm0, %v314_v25, %v318_v18  ;;  %v1705_v46 = vrot.slane %v1703_v38, 2  ;;  %v330_v47 = vor.u32 %v328_v39, %v326_v34  ;;  %v1709_v48 = vshrl.u32 %v5294_v30, 16  ;;  %v5347_v18 = vld [vmem:[%s5253_s25 + $0x38] sm:$0xff]   ;;  %v5366_v39 = vld [vmem:[%s5253_s25 + $0x40] sm:$0xff]  }
  0x1b   : > { %4474 = vmatprep.mubr.msk.bf16.mxu1 %vm462_vm1, %v319_v36  ;;  %v1712_v49 = vshll.u32 %v5294_v30, 16  ;;  %v1698_v51 = vsel %vm1681_vm2, %v1689_v40, %v1697_v37  ;;  %v334_v52 = vrot.slane %v332_v43, 1  ;;  %v336_v53 = vshrl.u32 %v5291_v29, 16 }
  0x1c   : > { %4475 = vmatmul.mubr.msk.bf16.vlgmr.msra.gmra.mrb[0].mxu1 %vm462_vm1, %v327_v41  ;;  %v340_v54 = vshll.u32 %v5309_v44, 16  ;;  %4626 = vmatprep.mubr.msk.bf16.mxu0 %vm462_vm1, %v1698_v51  ;;  %v1706_v57 = vor.u32 %v1705_v46, %v1702_v42  ;;  %v1711_v58 = vrot.slane %v1709_v48, 1  ;;  %v1718_v60 = vshrl.u32 %v5312_v45, 16  ;;  %v5371_v46 = vld [vmem:[%s5253_s25 + $0x40] sm:$0xff]  }
  0x1d   : > { %4511 = vmatpush3.bf16.msra.mxu1 %v5124_v3  ;;  %v1714_v59 = vrot.slane %v1712_v49, 2  ;;  %v335_v62 = vsel %vm307_vm0, %v330_v47, %v334_v52  ;;  %v338_v63 = vor.u32 %v336_v53, %v334_v52  ;;  %v1721_v1 = vshll.u32 %v5312_v45, 16 }
  0x1e   : > { %4548 = vmatprep.subr.bf16.mxu1 %v5299_v31  ;;  %v342_v0 = vrot.slane %v340_v54, 1  ;;  %v1707_v3 = vsel %vm1681_vm2, %v1697_v37, %v1706_v57  ;;  %4478 = vmatprep.mubr.msk.bf16.mxu1 %vm462_vm1, %v335_v62  ;;  %v1720_v8 = vrot.slane %v1718_v60, 1  ;;  %v344_v10 = vshrl.u32 %v5309_v44, 16 }
  0x1f   : > { %v1715_v4 = vor.u32 %v1714_v59, %v1711_v58  ;;  %4627 = vmatmul.mubr.msk.bf16.vlgmr.msra.gmra.mrb[0].mxu0 %vm462_vm1, %v1707_v3  ;;  %v1723_v12 = vrot.slane %v1721_v1, 2  ;;  %v348_v13 = vshll.u32 %v5318_v50, 16  ;;  %v1727_v17 = vshrl.u32 %v5324_v55, 16  ;;  %v5379_v58 = vld [vmem:[%s5253_s25 + $0x48] sm:$0xff]  }
  0x20   : > { %v343_v11 = vsel %vm307_vm0, %v338_v63, %v342_v0  ;;  %4663 = vmatpush3.bf16.msra.mxu0 %v5243_v2  ;;  %v346_v20 = vor.u32 %v344_v10, %v342_v0  ;;  %v1730_v21 = vshll.u32 %v5324_v55, 16  ;;  %v352_v22 = vshrl.u32 %v5318_v50, 16  ;;  %v5382_v59 = vld [vmem:[%s5253_s25 + $0x48] sm:$0xff]  }
  0x21   : > { %v1716_v19 = vsel %vm1681_vm2, %v1706_v57, %v1715_v4  ;;  %v1724_v23 = vor.u32 %v1723_v12, %v1720_v8  ;;  %v350_v25 = vrot.slane %v348_v13, 1  ;;  %v1729_v26 = vrot.slane %v1727_v17, 1  ;;  %4700 = vmatprep.subr.bf16.mxu0 %v5329_v56 }
  0x22   : > { %4630 = vmatprep.mubr.msk.bf16.mxu0 %vm462_vm1, %v1716_v19  ;;  %v356_v27 = vshll.u32 %v5334_v61, 16  ;;  %v1732_v2 = vrot.slane %v1730_v21, 2  ;;  %v1736_v32 = vshrl.u32 %v5347_v18, 16  ;;  %v1739_v33 = vshll.u32 %v5347_v18, 16  ;;  %v5399_v19 = vld [vmem:[%s5253_s25 + $0x50] sm:$0xff]  }
  0x23   : > { %v360_v34 = vshrl.u32 %v5334_v61, 16  ;;  %v1725_v35 = vsel %vm1681_vm2, %v1715_v4, %v1724_v23  ;;  %v351_v36 = vsel %vm307_vm0, %v346_v20, %v350_v25  ;;  %v354_v37 = vor.u32 %v352_v22, %v350_v25  ;;  %v5391_v4 = vld [vmem:[%s5253_s25 + $0x50] sm:$0xff]   ;;  %v5404_v22 = vld [vmem:[%s5253_s25 + $0x58] sm:$0xff]  }
  0x24   : > { %4479 = vmatmul.mubr.msk.bf16.gmra.mrb[4].mxu1 %vm462_vm1, %v343_v11  ;;  %v358_v38 = vrot.slane %v356_v27, 1  ;;  %v1733_v40 = vor.u32 %v1732_v2, %v1729_v26  ;;  %v1738_v41 = vrot.slane %v1736_v32, 1  ;;  %v1741_v42 = vrot.slane %v1739_v33, 2 }
  0x25   : > { %4482 = vmatprep.mubr.msk.bf16.mxu1 %vm462_vm1, %v351_v36  ;;  %v364_v43 = vshll.u32 %v5356_v28, 16  ;;  %v1745_v49 = vshrl.u32 %v5366_v39, 16  ;;  %v1748_v51 = vshll.u32 %v5366_v39, 16  ;;  %v368_v57 = vshrl.u32 %v5356_v28, 16 }
  0x26   : > { %v359_v47 = vsel %vm307_vm0, %v354_v37, %v358_v38  ;;  %v362_v48 = vor.u32 %v360_v34, %v358_v38  ;;  %v1734_v52 = vsel %vm1681_vm2, %v1724_v23, %v1733_v40  ;;  %v1742_v53 = vor.u32 %v1741_v42, %v1738_v41 }
  0x27   : > { %v366_v54 = vrot.slane %v364_v43, 1  ;;  %4631 = vmatmul.mubr.msk.bf16.gmra.mrb[4].mxu0 %vm462_vm1, %v1725_v35  ;;  %v1747_v60 = vrot.slane %v1745_v49, 1  ;;  %v1750_v62 = vrot.slane %v1748_v51, 2  ;;  %v372_v63 = vshll.u32 %v5371_v46, 16  ;;  %v5409_v35 = vld [vmem:[%s5253_s25 + $0x58] sm:$0xff]  }
  0x28   : > { %v376_v0 = vshrl.u32 %v5371_v46, 16  ;;  %4634 = vmatprep.mubr.msk.bf16.mxu0 %vm462_vm1, %v1734_v52  ;;  %v1754_v3 = vshrl.u32 %v5379_v58, 16  ;;  %v1757_v10 = vshll.u32 %v5379_v58, 16  ;;  %v380_v11 = vshll.u32 %v5382_v59, 16  ;;  %v2125_v51 = vld [vmem:[%s5253_s25 + $0x8] sm:$0xc] }
  0x29   : > { %v367_v1 = vsel %vm307_vm0, %v362_v48, %v366_v54  ;;  %v1751_v8 = vor.u32 %v1750_v62, %v1747_v60  ;;  %v374_v12 = vrot.slane %v372_v63, 1  ;;  %v1763_v13 = vshrl.u32 %v5391_v4, 16  ;;  %v5423_v52 = vld [vmem:[%s5253_s25 + $0x60] sm:$0xff]  }
  0x2a   : > { %v1766_v17 = vshll.u32 %v5391_v4, 16  ;;  %v1743_v20 = vsel %vm1681_vm2, %v1733_v40, %v1742_v53  ;;  %v370_v21 = vor.u32 %v368_v57, %v366_v54  ;;  %v1756_v23 = vrot.slane %v1754_v3, 1 }
  0x2b   : > { %v1759_v25 = vrot.slane %v1757_v10, 2  ;;  %v378_v26 = vor.u32 %v376_v0, %v374_v12  ;;  %v382_v27 = vrot.slane %v380_v11, 1  ;;  %v1752_v2 = vsel %vm1681_vm2, %v1742_v53, %v1751_v8  ;;  %v5428_v0 = vld [vmem:[%s5253_s25 + $0x68] sm:$0xff]  }
  0x2c   : > { %4483 = vmatmul.mubr.msk.bf16.gmra.mrb[8].mxu1 %vm462_vm1, %v359_v47  ;;  %v1765_v32 = vrot.slane %v1763_v13, 1  ;;  %v1768_v33 = vrot.slane %v1766_v17, 2  ;;  %v388_v34 = vshll.u32 %v5399_v19, 16  ;;  %v375_v36 = vsel %vm307_vm0, %v370_v21, %v374_v12 }
  0x2d   : > { %4486 = vmatprep.mubr.msk.bf16.mxu1 %vm462_vm1, %v367_v1  ;;  %v384_v37 = vshrl.u32 %v5382_v59, 16  ;;  %v1772_v38 = vshrl.u32 %v5404_v22, 16  ;;  %v1775_v40 = vshll.u32 %v5404_v22, 16  ;;  %v1760_v41 = vor.u32 %v1759_v25, %v1756_v23  ;;  %v5445_v25 = vld [vmem:[%s5253_s25 + $0x70] sm:$0xff]  }
  0x2e   : > { %v383_v42 = vsel %vm307_vm0, %v378_v26, %v382_v27  ;;  %v392_v43 = vshrl.u32 %v5399_v19, 16  ;;  %v396_v47 = vshll.u32 %v5409_v35, 16  ;;  %v1769_v48 = vor.u32 %v1768_v33, %v1765_v32  ;;  %v5451_v33 = vld [vmem:[%s5253_s25 + $0x78] sm:$0xff]  }
  0x2f   : > { %4635 = vmatmul.mubr.msk.bf16.gmra.mrb[8].mxu0 %vm462_vm1, %v1743_v20  ;;  %v390_v49 = vrot.slane %v388_v34, 1  ;;  %v386_v53 = vor.u32 %v384_v37, %v382_v27  ;;  %v1774_v54 = vrot.slane %v1772_v38, 1  ;;  %v1777_v57 = vrot.slane %v1775_v40, 2 }
  0x30   : > { %4638 = vmatprep.mubr.msk.bf16.mxu0 %vm462_vm1, %v1752_v2  ;;  %v1761_v60 = vsel %vm1681_vm2, %v1751_v8, %v1760_v41  ;;  %v398_v63 = vrot.slane %v396_v47, 1  ;;  %v1770_v1 = vsel %vm1681_vm2, %v1760_v41, %v1769_v48  ;;  %v4122_v3 = vcombine.low %v2125_v51, %v5267_v9 }
  0x31   : > { %v394_v62 = vor.u32 %v392_v43, %v390_v49  ;;  %v404_v10 = vshll.u32 %v5423_v52, 16  ;;  %v391_v11 = vsel %vm307_vm0, %v386_v53, %v390_v49  ;;  %v400_v12 = vshrl.u32 %v5409_v35, 16 }
  0x32   : > { %v5437_v8 = vor.u32 %v1777_v57, %v1774_v54  ;;  %v408_v17 = vshrl.u32 %v5423_v52, 16  ;;  %v412_v20 = vshll.u32 %v5428_v0, 16  ;;  %v2133_v9 = vrot.slane %v4122_v3, 2  ;;  %v5471_v54 = vld [vmem:[%s5253_s25 + $0x88] sm:$0xff]  }
  0x33   : > { %v399_v13 = vsel %vm307_vm0, %v394_v62, %v398_v63  ;;  %v2134_v21 = vrot.slane %v5274_v14, 2  ;;  %v406_v23 = vrot.slane %v404_v10, 1  ;;  %v402_v26 = vor.u32 %v400_v12, %v398_v63 }
  0x34   : > { %4487 = vmatmul.mubr.msk.bf16.gmra.mrb[12].mxu1 %vm462_vm1, %v375_v36  ;;  %v1779_v27 = vsel %vm1681_vm2, %v1769_v48, %v5437_v8  ;;  %v414_v32 = vrot.slane %v412_v20, 1  ;;  %v420_v14 = vshll.u32 %v5445_v25, 16  ;;  %v2136_v37 = vrot.slane %v5288_v24, 2  ;;  %v5466_v48 = vld [vmem:[%s5253_s25 + $0x80] sm:$0xff]  }
  0x35   : > { %4490 = vmatprep.mubr.msk.bf16.mxu1 %vm462_vm1, %v383_v42  ;;  %v410_v2 = vor.u32 %v408_v17, %v406_v23  ;;  %v2135_v34 = vsel %vm2132_vm3, %v2133_v9, %v2134_v21  ;;  %v407_v36 = vsel %vm307_vm0, %v402_v26, %v406_v23  ;;  %v416_v38 = vshrl.u32 %v5428_v0, 16  ;;  %v5494_v17 = vld [vmem:[%s5253_s25 + $0x90] ss:$0 sps:$4 sm:$0x11]  }
  0x36   : > { %v424_v41 = vshrl.u32 %v5445_v25, 16  ;;  %v428_v42 = vshll.u32 %v5451_v33, 16  ;;  %v2138_v43 = vrot.slane %v5294_v30, 2  ;;  %v422_v47 = vrot.slane %v420_v14, 1  ;;  %v5477_v30 = vld [vmem:[%s6176_s1 + $0x38] sm:$0xff]  }
  0x37   : > { %4639 = vmatmul.mubr.msk.bf16.gmra.mrb[12].mxu0 %vm462_vm1, %v1761_v60  ;;  %v415_v40 = vsel %vm307_vm0, %v410_v2, %v414_v32  ;;  %v418_v24 = vor.u32 %v416_v38, %v414_v32  ;;  %v2137_v49 = vsel %vm2132_vm3, %v2134_v21, %v2136_v37  ;;  %v436_v60 = vshll.u32 %v5466_v48, 16 }
  0x38   : > { %4642 = vmatprep.mubr.msk.bf16.mxu0 %vm462_vm1, %v1770_v1  ;;  %v426_v51 = vor.u32 %v424_v41, %v422_v47  ;;  %v430_v53 = vrot.slane %v428_v42, 1  ;;  %v2139_v57 = vsel %vm2132_vm3, %v2136_v37, %v2138_v43  ;;  %v2140_v63 = vrot.slane %v5312_v45, 2  ;;  %v5521_v42 = vld [vmem:[%s5253_s25 + $0x60] sm:$0xff]  }
  0x39   : > { %v423_v62 = vsel %vm307_vm0, %v418_v24, %v422_v47  ;;  %v432_v1 = vshrl.u32 %v5451_v33, 16  ;;  %v440_v10 = vshrl.u32 %v5466_v48, 16  ;;  %v2142_v12 = vrot.slane %v5324_v55, 2  ;;  %v5544_v24 = vld [vmem:[%s5253_s25 + $0x70] sm:$0xff]  }
  0x3a   : > { %v431_v3 = vsel %vm307_vm0, %v426_v51, %v430_v53  ;;  %v448_v23 = vshrl.u32 %v5471_v54, 16  ;;  %v452_v26 = vshll.u32 %v5494_v17, 16  ;;  %v2146_v32 = vrot.slane %v5366_v39, 2 }
  0x3b   : > { %v434_v45 = vor.u32 %v432_v1, %v430_v53  ;;  %v2143_v21 = vsel %vm2132_vm3, %v2140_v63, %v2142_v12  ;;  %v2150_v39 = vrot.slane %v5391_v4, 2  ;;  %v5529_v4 = vld [vmem:[%s6176_s1 + $0x18] sm:$0xff]   ;;  %v2158_v51 = vrot.slane %v5544_v24, 2 }
  0x3c   : > { %4491 = vmatmul.mubr.msk.bf16.gmra.mrb[16].mxu1 %vm462_vm1, %v391_v11  ;;  %v444_v11 = vshll.u32 %v5471_v54, 16  ;;  %v454_v14 = vrot.slane %v452_v26, 1  ;;  %v5556_v53 = vld [vmem:[%s5253_s25 + $0x78] sm:$0xff]  }
  0x3d   : > { %4494 = vmatprep.mubr.msk.bf16.mxu1 %vm462_vm1, %v399_v13  ;;  %v438_v13 = vrot.slane %v436_v60, 1  ;;  %v5560_v60 = vld [vmem:[%s5253_s25 + $0x80] sm:$0xff]  }
  0x3e   : > { %v446_v9 = vrot.slane %v444_v11, 1  ;;  %v5576_v11 = vld [vmem:[%s5253_s25 + $0x90] sm:$0xff]  }
  0x3f   : > { %4643 = vmatmul.mubr.msk.bf16.gmra.mrb[16].mxu0 %vm462_vm1, %v1779_v27  ;;  %v442_v20 = vor.u32 %v440_v10, %v438_v13  ;;  %v439_v55 = vsel %vm307_vm0, %v434_v45, %v438_v13  ;;  %v2144_v27 = vrot.slane %v5347_v18, 2  ;;  %v2148_v18 = vrot.slane %v5379_v58, 2  ;;  %v2443_v45 = vld [vmem:[%s5253_s25 + $0x10] sm:$0xc] }
  0x40   : > { %4664 = vmatprep.mubr.msk.bf16.mxu0 %vm462_vm1, %v2135_v34  ;;  %v450_v34 = vor.u32 %v448_v23, %v446_v9  ;;  %v2152_v58 = vrot.slane %v5404_v22, 2  ;;  %v5539_v22 = vld [vmem:[%s5253_s25 + $0x68] sm:$0xff]   ;;  %v2166_v13 = vrot.slane %v5576_v11, 2  ;;  %v5599_v23 = vld [vmem:[%s5253_s25 + $0x18] sm:$0xff]  }
  0x41   : > { %v447_v2 = vsel %vm307_vm0, %v442_v20, %v446_v9  ;;  %v2147_v37 = vsel %vm2132_vm3, %v2144_v27, %v2146_v32  ;;  %v2151_v41 = vsel %vm2132_vm3, %v2148_v18, %v2150_v39  ;;  %v5592_v9 = vld [vmem:[%s5253_s25 + $0x98] ss:$0 sps:$4 sm:$0x33]  }
  0x42   : > { %v455_v38 = vsel %vm307_vm0, %v450_v34, %v454_v14  ;;  %v2168_v26 = vrot.slane %v5592_v9, 2  ;;  %v5612_v34 = vld [vmem:[%s5253_s25 + $0x20] sm:$0xff]  }
  0x44   : > { %4495 = vmatmul.mubr.msk.bf16.gmra.mrb[20].mxu1 %vm462_vm1, %v407_v36  ;;  %v2145_v36 = vsel %vm2132_vm3, %v2142_v12, %v2144_v27 }
  0x45   : > { %4498 = vmatprep.mubr.msk.bf16.mxu1 %vm462_vm1, %v415_v40  ;;  %v2149_v40 = vsel %vm2132_vm3, %v2146_v32, %v2148_v18  ;;  %v2169_v32 = vsel %vm2132_vm3, %v2166_v13, %v2168_v26 }
  0x47   : > { %4665 = vmatmul.mubr.msk.bf16.vlgmr.msra.gmra.mrb[0].mxu0 %vm462_vm1, %v2137_v49  ;;  %v2156_v49 = vrot.slane %v5539_v22, 2 }
  0x48   : > { %4701 = vmatpush3.bf16.msra.mxu0 %v5329_v56  ;;  %4668 = vmatprep.mubr.msk.bf16.mxu0 %vm462_vm1, %v2139_v57  ;;  %v2141_v56 = vsel %vm2132_vm3, %v2138_v43, %v2140_v63  ;;  %v2153_v43 = vsel %vm2132_vm3, %v2150_v39, %v2152_v58  ;;  %v2162_v63 = vrot.slane %v5560_v60, 2  ;;  %v5628_v39 = vld [vmem:[%s5253_s25 + $0x30] sm:$0xff]  }
  0x49   : > { %4738 = vmatprep.subr.bf16.mxu0 %v5477_v30  ;;  %v2159_v57 = vsel %vm2132_vm3, %v2156_v49, %v2158_v51 }
  0x4c   : > { %4499 = vmatmul.mubr.msk.bf16.gmra.mrb[24].mxu1 %vm462_vm1, %v423_v62  ;;  %v2160_v62 = vrot.slane %v5556_v53, 2 }
  0x4d   : > { %4502 = vmatprep.mubr.msk.bf16.mxu1 %vm462_vm1, %v431_v3  ;;  %v5572_v3 = vld [vmem:[%s5253_s25 + $0x88] sm:$0xff]  }
  0x4e   : > { %v2161_v1 = vsel %vm2132_vm3, %v2158_v51, %v2160_v62  ;;  %v2163_v10 = vsel %vm2132_vm3, %v2160_v62, %v2162_v63  ;;  %v2164_v12 = vrot.slane %v5572_v3, 2  ;;  %v5655_v51 = vld [vmem:[%s5253_s25 + $0x48] sm:$0xff]  }
  0x4f   : > { %4669 = vmatmul.mubr.msk.bf16.gmra.mrb[4].mxu0 %vm462_vm1, %v2141_v56  ;;  %v5586_v56 = vld [vmem:[%s5253_s25 + $0x14] sm:$0xf] }
  0x50   : > { %4672 = vmatprep.mubr.msk.bf16.mxu0 %vm462_vm1, %v2143_v21  ;;  %v2165_v20 = vsel %vm2132_vm3, %v2162_v63, %v2164_v12  ;;  %v2167_v21 = vsel %vm2132_vm3, %v2164_v12, %v2166_v13  ;;  %v2589_v63 = vrot.slane %v5655_v51, 2  ;;  %v922_v13 = vrot.slane %v5263_v7, 1 }
  0x54   : > { %4503 = vmatmul.mubr.msk.bf16.gmra.mrb[28].mxu1 %vm462_vm1, %v439_v55  ;;  %v5596_v55 = vcombine.low %v2443_v45, %v5586_v56 }
  0x55   : > { %4506 = vmatprep.mubr.msk.bf16.mxu1 %vm462_vm1, %v447_v2  ;;  %v2577_v2 = vrot.slane %v5599_v23, 2 }
  0x56   : > { %v2576_v27 = vrot.slane %v5596_v55, 2 }
  0x57   : > { %4673 = vmatmul.mubr.msk.bf16.gmra.mrb[8].mxu0 %vm462_vm1, %v2145_v36  ;;  %v5616_v36 = vld [vmem:[%s5253_s25 + $0x28] sm:$0xff]  }
  0x58   : > { %4676 = vmatprep.mubr.msk.bf16.mxu0 %vm462_vm1, %v2147_v37  ;;  %v2578_v14 = vsel %vm2132_vm3, %v2576_v27, %v2577_v2  ;;  %v2579_v37 = vrot.slane %v5612_v34, 2 }
  0x5a   : > { %v2580_v18 = vsel %vm2132_vm3, %v2577_v2, %v2579_v37  ;;  %v5687_v2 = vld [vmem:[%s5253_s25 + $0x60] sm:$0xff]  }
  0x5c   : > { %4507 = vmatmul.mubr.msk.bf16.gmra.mrb[32].mxu1 %vm462_vm1, %v455_v38  ;;  %v2581_v38 = vrot.slane %v5616_v36, 2 }
  0x5d   : > { %4512 = vmatprep.mubr.msk.bf16.mxu1 %vm462_vm1, %v5260_v6  ;;  %v2154_v6 = vrot.slane %v5521_v42, 2 }
  0x5f   : > { %4677 = vmatmul.mubr.msk.bf16.gmra.mrb[12].mxu0 %vm462_vm1, %v2149_v40  ;;  %v2155_v47 = vsel %vm2132_vm3, %v2152_v58, %v2154_v6  ;;  %v2582_v40 = vsel %vm2132_vm3, %v2579_v37, %v2581_v38  ;;  %v5637_v58 = vld [vmem:[%s6176_s1 + $0x40] sm:$0xff]   ;;  %v5692_v37 = vld [vmem:[%s5253_s25 + $0x68] sm:$0xff]  }
  0x60   : > { %4680 = vmatprep.mubr.msk.bf16.mxu0 %vm462_vm1, %v2151_v41  ;;  %v5632_v41 = vld [vmem:[%s5253_s25 + $0x38] sm:$0xff]  }
  0x64   : > { %4513 = vmatmul.mubr.msk.bf16.vlgmr.msra.gmra.mrb[0].mxu1 %vm462_vm1, %v5263_v7  ;;  %v924_v7 = vrot.slane %v5277_v15, 1 }
  0x65   : > { %4516 = vmatprep.mubr.msk.bf16.mxu1 %vm462_vm1, %v5277_v15  ;;  %4549 = vmatpush3.bf16.msra.mxu1 %v5299_v31  ;;  %v2157_v31 = vsel %vm2132_vm3, %v2154_v6, %v2156_v49  ;;  %v2583_v6 = vrot.slane %v5628_v39, 2  ;;  %v5651_v49 = vld [vmem:[%s5253_s25 + $0x40] sm:$0xff]   ;;  %v2595_v15 = vrot.slane %v5687_v2, 2 }
  0x66   : > { %4586 = vmatprep.subr.bf16.mxu1 %v5529_v4 }
  0x67   : > { %4681 = vmatmul.mubr.msk.bf16.gmra.mrb[16].mxu0 %vm462_vm1, %v2153_v43  ;;  %v2585_v43 = vrot.slane %v5632_v41, 2 }
  0x68   : > { %4684 = vmatprep.mubr.msk.bf16.mxu0 %vm462_vm1, %v2155_v47  ;;  %v2584_v47 = vsel %vm2132_vm3, %v2581_v38, %v2583_v6  ;;  %v925_v38 = vsel %vm920_vm4, %v922_v13, %v924_v7 }
  0x6c   : > { %4517 = vmatmul.mubr.msk.bf16.gmra.mrb[4].mxu1 %vm462_vm1, %v5291_v29 }
  0x6d   : > { %4520 = vmatprep.mubr.msk.bf16.mxu1 %vm462_vm1, %v5309_v44 }
  0x6f   : > { %4685 = vmatmul.mubr.msk.bf16.gmra.mrb[20].mxu0 %vm462_vm1, %v2157_v31  ;;  %v913_v31 = vld [vmem:[%s5253_s25] sm:$0xe] }
  0x70   : > { %4688 = vmatprep.mubr.msk.bf16.mxu0 %vm462_vm1, %v2159_v57  ;;  %v2587_v57 = vrot.slane %v5651_v49, 2  ;;  %v4038_v62 = vcombine.low %v913_v31, %v5257_v5  ;;  %v5674_v5 = vld [vmem:[%s5253_s25 + $0x58] sm:$0xff]  }
  0x71   : > { %v2593_v26 = vrot.slane %v5674_v5, 2 }
  0x72   : > { %v921_v12 = vrot.slane %v4038_v62, 1  ;;  %v2590_v45 = vsel %vm2132_vm3, %v2587_v57, %v2589_v63 }
  0x74   : > { %4521 = vmatmul.mubr.msk.bf16.gmra.mrb[8].mxu1 %vm462_vm1, %v5318_v50 }
  0x75   : > { %4524 = vmatprep.mubr.msk.bf16.mxu1 %vm462_vm1, %v5334_v61 }
  0x77   : > { %4689 = vmatmul.mubr.msk.bf16.gmra.mrb[24].mxu0 %vm462_vm1, %v2161_v1  ;;  %v2588_v1 = vsel %vm2132_vm3, %v2585_v43, %v2587_v57 }
  0x78   : > { %4692 = vmatprep.mubr.msk.bf16.mxu0 %vm462_vm1, %v2163_v10  ;;  %v5669_v10 = vld [vmem:[%s5253_s25 + $0x50] sm:$0xff]  }
  0x7c   : > { %4525 = vmatmul.mubr.msk.bf16.gmra.mrb[12].mxu1 %vm462_vm1, %v5356_v28 }
  0x7d   : > { %4528 = vmatprep.mubr.msk.bf16.mxu1 %vm462_vm1, %v5371_v46 }
  0x7f   : > { %4693 = vmatmul.mubr.msk.bf16.gmra.mrb[28].mxu0 %vm462_vm1, %v2165_v20  ;;  %v2591_v20 = vrot.slane %v5669_v10, 2 }
  0x80   : > { %4696 = vmatprep.mubr.msk.bf16.mxu0 %vm462_vm1, %v2167_v21  ;;  %v923_v21 = vsel %vm920_vm4, %v921_v12, %v922_v13  ;;  %v5730_v12 = vld [vmem:[%s5253_s25 + $0x80] sm:$0xff]   ;;  %v934_v13 = vrot.slane %v5356_v28, 1  ;;  %v936_v28 = vrot.slane %v5371_v46, 1 }
  0x81   : > { %v2592_v27 = vsel %vm2132_vm3, %v2589_v63, %v2591_v20  ;;  %v932_v63 = vrot.slane %v5334_v61, 1  ;;  %v2603_v61 = vrot.slane %v5730_v12, 2 }
  0x84   : > { %4529 = vmatmul.mubr.msk.bf16.gmra.mrb[16].mxu1 %vm462_vm1, %v5382_v59 }
  0x85   : > { %4532 = vmatprep.mubr.msk.bf16.mxu1 %vm462_vm1, %v5399_v19 }
  0x87   : > { %4697 = vmatmul.mubr.msk.bf16.gmra.mrb[32].mxu0 %vm462_vm1, %v2169_v32  ;;  %v926_v32 = vrot.slane %v5291_v29, 1  ;;  %v928_v29 = vrot.slane %v5309_v44, 1  ;;  %v5717_v44 = vld [vmem:[%s5253_s25 + $0x78] sm:$0xff]  }
  0x88   : > { %4702 = vmatprep.mubr.msk.bf16.mxu0 %vm462_vm1, %v2578_v14  ;;  %v2594_v14 = vsel %vm2132_vm3, %v2591_v20, %v2593_v26  ;;  %v2601_v62 = vrot.slane %v5717_v44, 2  ;;  %v5735_v20 = vld [vmem:[%s5253_s25 + $0x88] sm:$0xff]  }
  0x8c   : > { %4533 = vmatmul.mubr.msk.bf16.gmra.mrb[20].mxu1 %vm462_vm1, %v5409_v35 }
  0x8d   : > { %4536 = vmatprep.mubr.msk.bf16.mxu1 %vm462_vm1, %v5423_v52 }
  0x8f   : > { %4703 = vmatmul.mubr.msk.bf16.vlgmr.msra.gmra.mrb[0].mxu0 %vm462_vm1, %v2580_v18  ;;  %v927_v18 = vsel %vm920_vm4, %v924_v7, %v926_v32  ;;  %v2605_v7 = vrot.slane %v5735_v20, 2 }
  0x90   : > { %4739 = vmatpush3.bf16.msra.mxu0 %v5477_v30  ;;  %4706 = vmatprep.mubr.msk.bf16.mxu0 %vm462_vm1, %v2582_v40  ;;  %v2586_v30 = vsel %vm2132_vm3, %v2583_v6, %v2585_v43  ;;  %v2597_v40 = vrot.slane %v5692_v37, 2  ;;  %v2596_v6 = vsel %vm2132_vm3, %v2593_v26, %v2595_v15  ;;  %v5706_v43 = vld [vmem:[%s5253_s25 + $0x70] sm:$0xff]   ;;  %v935_v26 = vsel %vm920_vm4, %v932_v63, %v934_v13 }
  0x91   : > { %4776 = vmatprep.subr.bf16.mxu0 %v5637_v58 }
  0x92   : > { %v2598_v31 = vsel %vm2132_vm3, %v2595_v15, %v2597_v40  ;;  %v2606_v15 = vsel %vm2132_vm3, %v2603_v61, %v2605_v7 }
  0x94   : > { %4537 = vmatmul.mubr.msk.bf16.gmra.mrb[24].mxu1 %vm462_vm1, %v5428_v0 }
  0x95   : > { %4540 = vmatprep.mubr.msk.bf16.mxu1 %vm462_vm1, %v5445_v25 }
  0x97   : > { %4707 = vmatmul.mubr.msk.bf16.gmra.mrb[4].mxu0 %vm462_vm1, %v2584_v47  ;;  %v930_v47 = vrot.slane %v5318_v50, 1  ;;  %v2599_v50 = vrot.slane %v5706_v43, 2 }
  0x98   : > { %4710 = vmatprep.mubr.msk.bf16.mxu0 %vm462_vm1, %v2586_v30  ;;  %v5712_v30 = vld [vmem:[%s6176_s1 + $0x20] sm:$0xff]  }
  0x99   : > { %v931_v57 = vsel %vm920_vm4, %v928_v29, %v930_v47 }
  0x9c   : > { %4541 = vmatmul.mubr.msk.bf16.gmra.mrb[28].mxu1 %vm462_vm1, %v5451_v33 }
  0x9d   : > { %4544 = vmatprep.mubr.msk.bf16.mxu1 %vm462_vm1, %v5466_v48 }
  0x9f   : > { %4711 = vmatmul.mubr.msk.bf16.gmra.mrb[8].mxu0 %vm462_vm1, %v2588_v1  ;;  %v2600_v1 = vsel %vm2132_vm3, %v2597_v40, %v2599_v50 }
  0xa0   : > { %4714 = vmatprep.mubr.msk.bf16.mxu0 %vm462_vm1, %v2590_v45  ;;  %v2602_v45 = vsel %vm2132_vm3, %v2599_v50, %v2601_v62 }
  0xa4   : > { %4545 = vmatmul.mubr.msk.bf16.gmra.mrb[32].mxu1 %vm462_vm1, %v5471_v54 }
  0xa5   : > { %4550 = vmatprep.mubr.msk.bf16.mxu1 %vm462_vm1, %v923_v21  ;;  %v933_v21 = vsel %vm920_vm4, %v930_v47, %v932_v63  ;;  %v2903_v47 = vshrl.u32 %v5599_v23, 16  ;;  %v942_v63 = vrot.slane %v5409_v35, 1  ;;  %v2921_v35 = vshrl.u32 %v5616_v36, 16 }
  0xa7   : > { %4715 = vmatmul.mubr.msk.bf16.gmra.mrb[12].mxu0 %vm462_vm1, %v2592_v27  ;;  %v2604_v27 = vsel %vm2132_vm3, %v2601_v62, %v2603_v61  ;;  %v5180_v62 = vld [vmem:[%s5253_s25 + $0xa0] ss:$0 sps:$4 sm:$0x33]  }
  0xa8   : > { %4718 = vmatprep.mubr.msk.bf16.mxu0 %vm462_vm1, %v2594_v14  ;;  %v938_v14 = vrot.slane %v5382_v59, 1  ;;  %v2898_v59 = vshll.u32 %v5596_v55, 16  ;;  %v2611_v61 = vrot.slane %v5180_v62, 2 }
  0xaa   : > { %v939_v46 = vsel %vm920_vm4, %v936_v28, %v938_v14 }
  0xac   : > { %4551 = vmatmul.mubr.msk.bf16.vlgmr.msra.gmra.mrb[0].mxu1 %vm462_vm1, %v925_v38  ;;  %v5752_v38 = vld [vmem:[%s5253_s25 + $0x98] sm:$0xff]  }
  0xad   : > { %4554 = vmatprep.mubr.msk.bf16.mxu1 %vm462_vm1, %v927_v18  ;;  %4587 = vmatpush3.bf16.msra.mxu1 %v5529_v4  ;;  %v929_v4 = vsel %vm920_vm4, %v926_v32, %v928_v29  ;;  %v5748_v32 = vld [vmem:[%s5253_s25 + $0x90] sm:$0xff]   ;;  %v937_v18 = vsel %vm920_vm4, %v934_v13, %v936_v28  ;;  %v2609_v29 = vrot.slane %v5752_v38, 2  ;;  %v2900_v13 = vrot.slane %v2898_v59, 3 }
  0xae   : > { %4814 = vmatprep.subr.bf16.mxu1 %v5712_v30  ;;  %v2607_v40 = vrot.slane %v5748_v32, 2 }
  0xaf   : > { %4719 = vmatmul.mubr.msk.bf16.gmra.mrb[16].mxu0 %vm462_vm1, %v2596_v6  ;;  %v2895_v6 = vshrl.u32 %v5596_v55, 16  ;;  %v2905_v55 = vrot.slane %v2903_v47, 2  ;;  %v2923_v47 = vrot.slane %v2921_v35, 2  ;;  %v2951_v35 = vshll.u32 %v5651_v49, 16 }
  0xb0   : > { %4722 = vmatprep.mubr.msk.bf16.mxu0 %vm462_vm1, %v2598_v31  ;;  %v2906_v31 = vshll.u32 %v5599_v23, 16  ;;  %v2608_v50 = vsel %vm2132_vm3, %v2605_v7, %v2607_v40  ;;  %v2915_v7 = vshll.u32 %v5612_v34, 16 }
  0xb4   : > { %4555 = vmatmul.mubr.msk.bf16.gmra.mrb[4].mxu1 %vm462_vm1, %v929_v4  ;;  %v940_v4 = vrot.slane %v5399_v19, 1 }
  0xb5   : > { %4558 = vmatprep.mubr.msk.bf16.mxu1 %vm462_vm1, %v931_v57  ;;  %v2610_v57 = vsel %vm2132_vm3, %v2607_v40, %v2609_v29 }
  0xb6   : > { %v943_v19 = vsel %vm920_vm4, %v940_v4, %v942_v63 }
  0xb7   : > { %4723 = vmatmul.mubr.msk.bf16.gmra.mrb[20].mxu0 %vm462_vm1, %v2600_v1  ;;  %v2897_v1 = vrot.slane %v2895_v6, 2  ;;  %v946_v6 = vrot.slane %v5428_v0, 1  ;;  %v2939_v0 = vshrl.u32 %v5632_v41, 16 }
  0xb8   : > { %4726 = vmatprep.mubr.msk.bf16.mxu0 %vm462_vm1, %v2602_v45  ;;  %v2908_v45 = vrot.slane %v2906_v31, 3 }
  0xb9   : > { %v2901_v28 = vor.u32 %v2900_v13, %v2897_v1  ;;  %v2942_v1 = vshll.u32 %v5632_v41, 16 }
  0xbc   : > { %4559 = vmatmul.mubr.msk.bf16.gmra.mrb[8].mxu1 %vm462_vm1, %v933_v21  ;;  %v941_v21 = vsel %vm920_vm4, %v938_v14, %v940_v4  ;;  %v944_v14 = vrot.slane %v5423_v52, 1  ;;  %v2930_v52 = vshrl.u32 %v5628_v39, 16 }
  0xbd   : > { %4562 = vmatprep.mubr.msk.bf16.mxu1 %vm462_vm1, %v935_v26  ;;  %v2912_v26 = vshrl.u32 %v5612_v34, 16 }
  0xbe   : > { %v945_v4 = vsel %vm920_vm4, %v942_v63, %v944_v14  ;;  %v948_v63 = vrot.slane %v5445_v25, 1 }
  0xbf   : > { %4727 = vmatmul.mubr.msk.bf16.gmra.mrb[24].mxu0 %vm462_vm1, %v2604_v27  ;;  %v2909_v27 = vor.u32 %v2908_v45, %v2905_v55  ;;  %v2914_v40 = vrot.slane %v2912_v26, 2  ;;  %v2932_v55 = vrot.slane %v2930_v52, 2  ;;  %v2944_v26 = vrot.slane %v2942_v1, 3 }
  0xc0   : > { %4730 = vmatprep.mubr.msk.bf16.mxu0 %vm462_vm1, %v2606_v15  ;;  %v2924_v15 = vshll.u32 %v5616_v36, 16  ;;  %v2969_v52 = vshll.u32 %v5669_v10, 16 }
  0xc1   : > { %v2910_v59 = vsel %vm2893_vm5, %v2901_v28, %v2909_v27 }
  0xc2   : > { %v2926_v31 = vrot.slane %v2924_v15, 3  ;;  %v2957_v15 = vshrl.u32 %v5655_v51, 16 }
  0xc4   : > { %4563 = vmatmul.mubr.msk.bf16.gmra.mrb[12].mxu1 %vm462_vm1, %v937_v18  ;;  %v2612_v18 = vsel %vm2132_vm3, %v2609_v29, %v2611_v61  ;;  %v2933_v29 = vshll.u32 %v5628_v39, 16  ;;  %v2927_v62 = vor.u32 %v2926_v31, %v2923_v47  ;;  %v2959_v47 = vrot.slane %v2957_v15, 2  ;;  %v5187_v15 = vld [vmem:[%s5253_s25 + $0x18] sm:$0xff]  }
  0xc5   : > { %4566 = vmatprep.mubr.msk.bf16.mxu1 %vm462_vm1, %v939_v46  ;;  %v2917_v46 = vrot.slane %v2915_v7, 3  ;;  %v949_v7 = vsel %vm920_vm4, %v946_v6, %v948_v63 }
  0xc6   : > { %v2935_v45 = vrot.slane %v2933_v29, 3 }
  0xc7   : > { %4731 = vmatmul.mubr.msk.bf16.gmra.mrb[28].mxu0 %vm462_vm1, %v2608_v50  ;;  %v2918_v50 = vor.u32 %v2917_v46, %v2914_v40  ;;  %v2953_v46 = vrot.slane %v2951_v35, 3  ;;  %v2993_v35 = vshrl.u32 %v5692_v37, 16 }
  0xc8   : > { %4734 = vmatprep.mubr.msk.bf16.mxu0 %vm462_vm1, %v2610_v57  ;;  %v947_v57 = vsel %vm920_vm4, %v944_v14, %v946_v6  ;;  %v2936_v28 = vor.u32 %v2935_v45, %v2932_v55  ;;  %v2960_v14 = vshll.u32 %v5655_v51, 16  ;;  %v954_v6 = vrot.slane %v5471_v54, 1  ;;  %v5186_v45 = vld [vmem:[%s5253_s25 + $0x10] sm:$0xff]  }
  0xc9   : > { %v2919_v13 = vsel %vm2893_vm5, %v2909_v27, %v2918_v50  ;;  %v2928_v61 = vsel %vm2893_vm5, %v2918_v50, %v2927_v62  ;;  %v2948_v27 = vshrl.u32 %v5651_v49, 16  ;;  %v2966_v50 = vshrl.u32 %v5669_v10, 16 }
  0xca   : > { %v2962_v31 = vrot.slane %v2960_v14, 3  ;;  %v2975_v54 = vshrl.u32 %v5674_v5, 16  ;;  %v1364_v55 = vrot.slane %v5280_v16, 1  ;;  %v2987_v16 = vshll.u32 %v5687_v2, 16 }
  0xcb   : > { %v2950_v40 = vrot.slane %v2948_v27, 2  ;;  %v2968_v1 = vrot.slane %v2966_v50, 2  ;;  %v1367_v14 = vrot.slane %v5187_v15, 1 }
  0xcc   : > { %4567 = vmatmul.mubr.msk.bf16.gmra.mrb[16].mxu1 %vm462_vm1, %v941_v21  ;;  %v950_v21 = vrot.slane %v5451_v33, 1  ;;  %v2963_v29 = vor.u32 %v2962_v31, %v2959_v47  ;;  %v2995_v47 = vrot.slane %v2993_v35, 2  ;;  %v3032_v35 = vshll.u32 %v5735_v20, 16 }
  0xcd   : > { %4570 = vmatprep.mubr.msk.bf16.mxu1 %vm462_vm1, %v943_v19  ;;  %v2941_v19 = vrot.slane %v2939_v0, 2  ;;  %v956_v0 = vrot.slane %v5494_v17, 1 }
  0xce   : > { %v951_v25 = vsel %vm920_vm4, %v948_v63, %v950_v21 }
  0xcf   : > { %4735 = vmatmul.mubr.msk.bf16.gmra.mrb[32].mxu0 %vm462_vm1, %v2612_v18  ;;  %v2945_v33 = vor.u32 %v2944_v26, %v2941_v19  ;;  %v2937_v18 = vsel %vm2893_vm5, %v2927_v62, %v2936_v28  ;;  %v2978_v62 = vshll.u32 %v5674_v5, 16  ;;  %v2977_v19 = vrot.slane %v2975_v54, 2 }
  0xd0   : > { %4740 = vmatprep.mubr.msk.bf16.mxu0 %vm462_vm1, %v2910_v59  ;;  %v3011_v54 = vshrl.u32 %v5717_v44, 16 }
  0xd1   : > { %v2946_v59 = vsel %vm2893_vm5, %v2936_v28, %v2945_v33  ;;  %v2980_v26 = vrot.slane %v2978_v62, 3  ;;  %v3014_v62 = vshll.u32 %v5717_v44, 16 }
  0xd3   : > { %v2981_v27 = vor.u32 %v2980_v26, %v2977_v19  ;;  %v3013_v19 = vrot.slane %v3011_v54, 2  ;;  %v3016_v26 = vrot.slane %v3014_v62, 3  ;;  %v3050_v54 = vshll.u32 %v5752_v38, 16  ;;  %v5193_v62 = vld [vmem:[%s5253_s25 + $0x48] sm:$0xff]  }
  0xd4   : > { %4571 = vmatmul.mubr.msk.bf16.gmra.mrb[20].mxu1 %vm462_vm1, %v945_v4 }
  0xd5   : > { %4574 = vmatprep.mubr.msk.bf16.mxu1 %vm462_vm1, %v947_v57 }
  0xd7   : > { %4741 = vmatmul.mubr.msk.bf16.vlgmr.msra.gmra.mrb[0].mxu0 %vm462_vm1, %v2919_v13  ;;  %v2971_v13 = vrot.slane %v2969_v52, 3  ;;  %v3005_v52 = vshll.u32 %v5706_v43, 16 }
  0xd8   : > { %4777 = vmatpush3.bf16.msra.mxu0 %v5637_v58  ;;  %4744 = vmatprep.mubr.msk.bf16.mxu0 %vm462_vm1, %v2928_v61  ;;  %v952_v58 = vrot.slane %v5466_v48, 1  ;;  %v2954_v48 = vor.u32 %v2953_v46, %v2950_v40  ;;  %v2989_v40 = vrot.slane %v2987_v16, 3  ;;  %v5188_v46 = vld [vmem:[%s5253_s25 + $0x20] sm:$0xff]   ;;  %v3017_v16 = vor.u32 %v3016_v26, %v3013_v19 }
  0xd9   : > { %v2972_v17 = vor.u32 %v2971_v13, %v2968_v1  ;;  %v3052_v26 = vrot.slane %v3050_v54, 3  ;;  %v3350_v54 = vrot.slane %v5616_v36, 3  ;;  %v3352_v36 = vrot.slane %v5628_v39, 3 }
  0xda   : > { %v953_v4 = vsel %vm920_vm4, %v950_v21, %v952_v58  ;;  %v955_v57 = vsel %vm920_vm4, %v952_v58, %v954_v6  ;;  %v2955_v63 = vsel %vm2893_vm5, %v2945_v33, %v2954_v48  ;;  %v1365_v21 = vrot.slane %v5186_v45, 1  ;;  %v5190_v45 = vld [vmem:[%s5253_s25 + $0x30] sm:$0xff]  }
  0xdb   : > { %v2964_v61 = vsel %vm2893_vm5, %v2954_v48, %v2963_v29  ;;  %v2996_v33 = vshll.u32 %v5692_v37, 16  ;;  %v2973_v58 = vsel %vm2893_vm5, %v2963_v29, %v2972_v17 }
  0xdc   : > { %4575 = vmatmul.mubr.msk.bf16.gmra.mrb[24].mxu1 %vm462_vm1, %v949_v7  ;;  %v957_v7 = vsel %vm920_vm4, %v954_v6, %v956_v0  ;;  %v1366_v28 = vsel %vm920_vm4, %v1364_v55, %v1365_v21  ;;  %v1369_v6 = vrot.slane %v5188_v46, 1  ;;  %v5189_v0 = vld [vmem:[%s5253_s25 + $0x28] sm:$0xff]   ;;  %v3007_v55 = vrot.slane %v3005_v52, 3 }
  0xdd   : > { %4578 = vmatprep.mubr.msk.bf16.mxu1 %vm462_vm1, %v951_v25  ;;  %v2984_v25 = vshrl.u32 %v5687_v2, 16  ;;  %v2998_v31 = vrot.slane %v2996_v33, 3  ;;  %v1371_v1 = vrot.slane %v5189_v0, 1  ;;  %v5191_v33 = vld [vmem:[%s5253_s25 + $0x38] sm:$0xff]   ;;  %v1379_v0 = vrot.slane %v5193_v62, 1 }
  0xde   : > { %v1370_v48 = vsel %vm920_vm4, %v1367_v14, %v1369_v6  ;;  %v1375_v15 = vrot.slane %v5191_v33, 1  ;;  %v1391_v62 = vrot.slane %v5556_v53, 1 }
  0xdf   : > { %4745 = vmatmul.mubr.msk.bf16.gmra.mrb[4].mxu0 %vm462_vm1, %v2937_v18  ;;  %v2986_v18 = vrot.slane %v2984_v25, 2  ;;  %v2999_v29 = vor.u32 %v2998_v31, %v2995_v47  ;;  %v3023_v25 = vshll.u32 %v5730_v12, 16  ;;  %v3034_v47 = vrot.slane %v3032_v35, 3  ;;  %v5195_v35 = vld [vmem:[%s5253_s25 + $0x58] sm:$0xff]  }
  0xe0   : > { %4748 = vmatprep.mubr.msk.bf16.mxu0 %vm462_vm1, %v2946_v59  ;;  %v2982_v59 = vsel %vm2893_vm5, %v2972_v17, %v2981_v27  ;;  %v1383_v33 = vrot.slane %v5195_v35, 1  ;;  %v1790_v35 = vshrl.u32 %v5539_v22, 16 }
  0xe1   : > { %v2990_v50 = vor.u32 %v2989_v40, %v2986_v18  ;;  %v3025_v18 = vrot.slane %v3023_v25, 3  ;;  %v5192_v40 = vld [vmem:[%s5253_s25 + $0x40] sm:$0xff]  }
  0xe2   : > { %v1377_v46 = vrot.slane %v5192_v40, 1 }
  0xe4   : > { %4579 = vmatmul.mubr.msk.bf16.gmra.mrb[28].mxu1 %vm462_vm1, %v953_v4  ;;  %v1368_v4 = vsel %vm920_vm4, %v1365_v21, %v1367_v14  ;;  %v1373_v21 = vrot.slane %v5190_v45, 1 }
  0xe5   : > { %4582 = vmatprep.mubr.msk.bf16.mxu1 %vm462_vm1, %v955_v57  ;;  %v3002_v57 = vshrl.u32 %v5706_v43, 16 }
  0xe6   : > { %v1376_v31 = vsel %vm920_vm4, %v1373_v21, %v1375_v15 }
  0xe7   : > { %4749 = vmatmul.mubr.msk.bf16.gmra.mrb[8].mxu0 %vm462_vm1, %v2955_v63  ;;  %v2991_v63 = vsel %vm2893_vm5, %v2981_v27, %v2990_v50  ;;  %v3004_v13 = vrot.slane %v3002_v57, 2  ;;  %v3029_v27 = vshrl.u32 %v5735_v20, 16  ;;  %v3041_v57 = vshll.u32 %v5748_v32, 16 }
  0xe8   : > { %4752 = vmatprep.mubr.msk.bf16.mxu0 %vm462_vm1, %v2964_v61  ;;  %v3000_v61 = vsel %vm2893_vm5, %v2990_v50, %v2999_v29  ;;  %v1378_v50 = vsel %vm920_vm4, %v1375_v15, %v1377_v46 }
  0xe9   : > { %v3008_v17 = vor.u32 %v3007_v55, %v3004_v13  ;;  %v3043_v13 = vrot.slane %v3041_v57, 3  ;;  %v5194_v55 = vld [vmem:[%s5253_s25 + $0x50] sm:$0xff]  }
  0xea   : > { %v1381_v45 = vrot.slane %v5194_v55, 1  ;;  %v3354_v55 = vrot.slane %v5632_v41, 3 }
  0xeb   : > { %v3009_v14 = vsel %vm2893_vm5, %v2999_v29, %v3008_v17  ;;  %v3047_v29 = vshrl.u32 %v5752_v38, 16 }
  0xec   : > { %4583 = vmatmul.mubr.msk.bf16.gmra.mrb[32].mxu1 %vm462_vm1, %v957_v7  ;;  %v1372_v7 = vsel %vm920_vm4, %v1369_v6, %v1371_v1  ;;  %v3018_v6 = vsel %vm2893_vm5, %v3008_v17, %v3017_v16  ;;  %v3355_v39 = vsel %vm3344_vm6, %v3352_v36, %v3354_v55 }
  0xed   : > { %4588 = vmatprep.mubr.msk.bf16.mxu1 %vm462_vm1, %v1366_v28  ;;  %v3020_v28 = vshrl.u32 %v5730_v12, 16  ;;  %v3049_v19 = vrot.slane %v3047_v29, 2 }
  0xef   : > { %4753 = vmatmul.mubr.msk.bf16.gmra.mrb[12].mxu0 %vm462_vm1, %v2973_v58  ;;  %v3022_v58 = vrot.slane %v3020_v28, 2 }
  0xf0   : > { %4756 = vmatprep.mubr.msk.bf16.mxu0 %vm462_vm1, %v2982_v59  ;;  %v3031_v59 = vrot.slane %v3029_v27, 2  ;;  %v3337_v27 = vld [vmem:[%s5253_s25 + $0x10] sm:$0x8] }
  0xf2   : > { %v3035_v52 = vor.u32 %v3034_v47, %v3031_v59 }
  0xf4   : > { %4589 = vmatmul.mubr.msk.bf16.vlgmr.msra.gmra.mrb[0].mxu1 %vm462_vm1, %v1368_v4  ;;  %v3026_v4 = vor.u32 %v3025_v18, %v3022_v58  ;;  %v1385_v18 = vrot.slane %v5521_v42, 1 }
  0xf5   : > { %4592 = vmatprep.mubr.msk.bf16.mxu1 %vm462_vm1, %v1370_v48  ;;  %4815 = vmatpush3.bf16.msra.mxu1 %v5712_v30  ;;  %v1374_v30 = vsel %vm920_vm4, %v1371_v1, %v1373_v21  ;;  %v3038_v48 = vshrl.u32 %v5748_v32, 16  ;;  %v5887_v21 = vld [vmem:[%s5253_s25 + $0xa0] ss:$0 sps:$4 sm:$0x77]  }
  0xf6   : > { %v3027_v1 = vsel %vm2893_vm5, %v3017_v16, %v3026_v4  ;;  %v3056_v28 = vshrl.u32 %v5887_v21, 16  ;;  %v3059_v25 = vshll.u32 %v5887_v21, 16  ;;  %v3053_v16 = vor.u32 %v3052_v26, %v3049_v19 }
  0xf7   : > { %4757 = vmatmul.mubr.msk.bf16.gmra.mrb[16].mxu0 %vm462_vm1, %v2991_v63  ;;  %v3040_v63 = vrot.slane %v3038_v48, 2  ;;  %v1386_v47 = vsel %vm920_vm4, %v1383_v33, %v1385_v18  ;;  %v1389_v48 = vrot.slane %v5544_v24, 1  ;;  %v1397_v19 = vrot.slane %v5576_v11, 1 }
  0xf8   : > { %4760 = vmatprep.mubr.msk.bf16.mxu0 %vm462_vm1, %v3000_v61  ;;  %v3036_v61 = vsel %vm2893_vm5, %v3026_v4, %v3035_v52  ;;  %v3061_v58 = vrot.slane %v3059_v25, 3  ;;  %v3346_v4 = vrot.slane %v5599_v23, 3  ;;  %v3348_v23 = vrot.slane %v5612_v34, 3 }
  0xf9   : > { %v3044_v17 = vor.u32 %v3043_v13, %v3040_v63  ;;  %v1392_v34 = vsel %vm920_vm4, %v1389_v48, %v1391_v62  ;;  %v1781_v26 = vshrl.u32 %v5521_v42, 16 }
  0xfa   : > { %v3351_v63 = vsel %vm3344_vm6, %v3348_v23, %v3350_v54 }
  0xfb   : > { %v3045_v15 = vsel %vm2893_vm5, %v3035_v52, %v3044_v17  ;;  %v3054_v40 = vsel %vm2893_vm5, %v3044_v17, %v3053_v16  ;;  %v5184_v17 = vld [vmem:[%s5253_s25 + $0x98] ss:$0 sps:$4 sm:$0x11]   ;;  %v1783_v25 = vrot.slane %v1781_v26, 1 }
  0xfc   : > { %4593 = vmatmul.mubr.msk.bf16.gmra.mrb[4].mxu1 %vm462_vm1, %v1372_v7  ;;  %v1380_v7 = vsel %vm920_vm4, %v1377_v46, %v1379_v0  ;;  %v4206_v46 = vcombine.low %v3337_v27, %v5586_v56  ;;  %v3358_v27 = vrot.slane %v5655_v51, 3 }
  0xfd   : > { %4596 = vmatprep.mubr.msk.bf16.mxu1 %vm462_vm1, %v1374_v30  ;;  %v1382_v30 = vsel %vm920_vm4, %v1379_v0, %v1381_v45  ;;  %v3349_v0 = vsel %vm3344_vm6, %v3346_v4, %v3348_v23 }
  0xff   : > { %4761 = vmatmul.mubr.msk.bf16.gmra.mrb[20].mxu0 %vm462_vm1, %v3009_v14  ;;  %v3058_v14 = vrot.slane %v3056_v28, 2 }
 0x100   : > { %4764 = vmatprep.mubr.msk.bf16.mxu0 %vm462_vm1, %v3018_v6  ;;  %v1384_v6 = vsel %vm920_vm4, %v1381_v45, %v1383_v33  ;;  %v1395_v45 = vrot.slane %v5572_v3, 1  ;;  %v1793_v33 = vshll.u32 %v5539_v22, 16 }
 0x101   : > { %v3062_v59 = vor.u32 %v3061_v58, %v3058_v14  ;;  %v1802_v58 = vshll.u32 %v5544_v24, 16 }
 0x102   : > { %v1398_v28 = vsel %vm920_vm4, %v1395_v45, %v1397_v19 }
 0x103   : > { %v3063_v56 = vsel %vm2893_vm5, %v3053_v16, %v3062_v59 }
 0x104   : > { %4597 = vmatmul.mubr.msk.bf16.gmra.mrb[8].mxu1 %vm462_vm1, %v1376_v31  ;;  %v3345_v31 = vrot.slane %v4206_v46, 3  ;;  %v1795_v46 = vrot.slane %v1793_v33, 2 }
 0x105   : > { %4600 = vmatprep.mubr.msk.bf16.mxu1 %vm462_vm1, %v1378_v50  ;;  %v1387_v50 = vrot.slane %v5539_v22, 1 }
 0x106   : > { %v3347_v57 = vsel %vm3344_vm6, %v3345_v31, %v3346_v4  ;;  %v3362_v31 = vrot.slane %v5674_v5, 3  ;;  %v1808_v4 = vshrl.u32 %v5556_v53, 16 }
 0x107   : > { %4765 = vmatmul.mubr.msk.bf16.gmra.mrb[24].mxu0 %vm462_vm1, %v3027_v1  ;;  %v1388_v52 = vsel %vm920_vm4, %v1385_v18, %v1387_v50  ;;  %v1390_v29 = vsel %vm920_vm4, %v1387_v50, %v1389_v48  ;;  %v1393_v1 = vrot.slane %v5560_v60, 1  ;;  %v1811_v50 = vshll.u32 %v5556_v53, 16 }
 0x108   : > { %4768 = vmatprep.mubr.msk.bf16.mxu0 %vm462_vm1, %v3036_v61  ;;  %v3353_v61 = vsel %vm3344_vm6, %v3350_v54, %v3352_v36 }
 0x109   : > { %v1394_v13 = vsel %vm920_vm4, %v1391_v62, %v1393_v1  ;;  %v1396_v41 = vsel %vm920_vm4, %v1393_v1, %v1395_v45  ;;  %v1813_v23 = vrot.slane %v1811_v50, 2  ;;  %v1826_v1 = vshrl.u32 %v5572_v3, 16 }
 0x10b   : > { %v1828_v45 = vrot.slane %v1826_v1, 1 }
 0x10c   : > { %4601 = vmatmul.mubr.msk.bf16.gmra.mrb[12].mxu1 %vm462_vm1, %v1380_v7  ;;  %v1784_v7 = vshll.u32 %v5521_v42, 16  ;;  %v1399_v42 = vrot.slane %v5184_v17, 1  ;;  %v1847_v17 = vshll.u32 %v5592_v9, 16 }
 0x10d   : > { %4604 = vmatprep.mubr.msk.bf16.mxu1 %vm462_vm1, %v1382_v30  ;;  %v3356_v30 = vrot.slane %v5651_v49, 3  ;;  %v1799_v49 = vshrl.u32 %v5544_v24, 16 }
 0x10e   : > { %v1786_v16 = vrot.slane %v1784_v7, 2  ;;  %v1400_v51 = vsel %vm920_vm4, %v1397_v19, %v1399_v42  ;;  %v3368_v19 = vrot.slane %v5706_v43, 3 }
 0x10f   : > { %4769 = vmatmul.mubr.msk.bf16.gmra.mrb[28].mxu0 %vm462_vm1, %v3045_v15  ;;  %v3357_v15 = vsel %vm3344_vm6, %v3354_v55, %v3356_v30  ;;  %v3359_v18 = vsel %vm3344_vm6, %v3356_v30, %v3358_v27  ;;  %v1801_v59 = vrot.slane %v1799_v49, 1  ;;  %v3378_v49 = vrot.slane %v5752_v38, 3 }
 0x110   : > { %4772 = vmatprep.mubr.msk.bf16.mxu0 %vm462_vm1, %v3054_v40  ;;  %v1787_v14 = vor.u32 %v1786_v16, %v1783_v25  ;;  %v1792_v40 = vrot.slane %v1790_v35, 1  ;;  %v3374_v35 = vrot.slane %v5735_v20, 3 }
 0x112   : > { %v1788_v22 = vsel %vm1681_vm2, %v5437_v8, %v1787_v14  ;;  %v1796_v24 = vor.u32 %v1795_v46, %v1792_v40  ;;  %v1820_v8 = vshll.u32 %v5560_v60, 16 }
 0x114   : > { %4605 = vmatmul.mubr.msk.bf16.gmra.mrb[16].mxu1 %vm462_vm1, %v1384_v6  ;;  %v3360_v6 = vrot.slane %v5669_v10, 3  ;;  %v1817_v10 = vshrl.u32 %v5560_v60, 16  ;;  %v1797_v5 = vsel %vm1681_vm2, %v1787_v14, %v1796_v24  ;;  %v1822_v62 = vrot.slane %v1820_v8, 2 }
 0x115   : > { %4608 = vmatprep.mubr.msk.bf16.mxu1 %vm462_vm1, %v1386_v47  ;;  %v1804_v47 = vrot.slane %v1802_v58, 2 }
 0x116   : > { %v1819_v54 = vrot.slane %v1817_v10, 1 }
 0x117   : > { %4773 = vmatmul.mubr.msk.bf16.gmra.mrb[32].mxu0 %vm462_vm1, %v3063_v56  ;;  %v3361_v56 = vsel %vm3344_vm6, %v3358_v27, %v3360_v6  ;;  %v1805_v48 = vor.u32 %v1804_v47, %v1801_v59  ;;  %v3372_v27 = vrot.slane %v5730_v12, 3  ;;  %v3376_v12 = vrot.slane %v5748_v32, 3 }
 0x118   : > { %4778 = vmatprep.mubr.msk.bf16.mxu0 %vm462_vm1, %v3347_v57  ;;  %v3363_v57 = vsel %vm3344_vm6, %v3360_v6, %v3362_v31  ;;  %v1823_v36 = vor.u32 %v1822_v62, %v1819_v54 }
 0x119   : > { %v1806_v53 = vsel %vm1681_vm2, %v1796_v24, %v1805_v48  ;;  %v3377_v20 = vsel %vm3344_vm6, %v3374_v35, %v3376_v12  ;;  %v3379_v58 = vsel %vm3344_vm6, %v3376_v12, %v3378_v49 }
 0x11c   : > { %4609 = vmatmul.mubr.msk.bf16.gmra.mrb[20].mxu1 %vm462_vm1, %v1388_v52  ;;  %v1810_v52 = vrot.slane %v1808_v4, 1 }
 0x11d   : > { %4612 = vmatprep.mubr.msk.bf16.mxu1 %vm462_vm1, %v1390_v29  ;;  %v3364_v29 = vrot.slane %v5687_v2, 3  ;;  %v1835_v2 = vshrl.u32 %v5576_v11, 16 }
 0x11e   : > { %v1814_v60 = vor.u32 %v1813_v23, %v1810_v52 }
 0x11f   : > { %4779 = vmatmul.mubr.msk.bf16.vlgmr.msra.gmra.mrb[0].mxu0 %vm462_vm1, %v3349_v0  ;;  %v3366_v0 = vrot.slane %v5692_v37, 3  ;;  %v1837_v26 = vrot.slane %v1835_v2, 1 }
 0x120   : > { %4782 = vmatprep.mubr.msk.bf16.mxu0 %vm462_vm1, %v3351_v63  ;;  %v1829_v63 = vshll.u32 %v5572_v3, 16  ;;  %v1815_v37 = vsel %vm1681_vm2, %v1805_v48, %v1814_v60  ;;  %v1824_v3 = vsel %vm1681_vm2, %v1814_v60, %v1823_v36 }
 0x121   : > { %v3367_v55 = vsel %vm3344_vm6, %v3364_v29, %v3366_v0  ;;  %v3369_v30 = vsel %vm3344_vm6, %v3366_v0, %v3368_v19 }
 0x124   : > { %4613 = vmatmul.mubr.msk.bf16.gmra.mrb[24].mxu1 %vm462_vm1, %v1392_v34  ;;  %v3365_v34 = vsel %vm3344_vm6, %v3362_v31, %v3364_v29  ;;  %v6045_v29 = vld [vmem:[%s6177_s2] ss:$0 sm:$0xff] }
 0x125   : > { %4616 = vmatprep.mubr.msk.bf16.mxu1 %vm462_vm1, %v1394_v13  ;;  %v1838_v13 = vshll.u32 %v5576_v11, 16 }
 0x127   : > { %4783 = vmatmul.mubr.msk.bf16.gmra.mrb[4].mxu0 %vm462_vm1, %v3353_v61  ;;  %v1831_v61 = vrot.slane %v1829_v63, 2  ;;  %v1840_v7 = vrot.slane %v1838_v13, 2 }
 0x128   : > { %4786 = vmatprep.mubr.msk.bf16.mxu0 %vm462_vm1, %v3355_v39  ;;  %v3370_v39 = vrot.slane %v5717_v44, 3  ;;  %v1849_v44 = vrot.slane %v1847_v17, 2 }
 0x129   : > { %v1832_v11 = vor.u32 %v1831_v61, %v1828_v45 }
 0x12a   : > { %v3371_v43 = vsel %vm3344_vm6, %v3368_v19, %v3370_v39  ;;  %v3373_v33 = vsel %vm3344_vm6, %v3370_v39, %v3372_v27 }
 0x12b   : > { %v1833_v25 = vsel %vm1681_vm2, %v1823_v36, %v1832_v11 }
 0x12c   : > { %4617 = vmatmul.mubr.msk.bf16.gmra.mrb[28].mxu1 %vm462_vm1, %v1396_v41  ;;  %v1844_v41 = vshrl.u32 %v5592_v9, 16 }
 0x12d   : > { %4620 = vmatprep.mubr.msk.bf16.mxu1 %vm462_vm1, %v1398_v28  ;;  %v1841_v28 = vor.u32 %v1840_v7, %v1837_v26 }
 0x12e   : > { %v1846_v16 = vrot.slane %v1844_v41, 1 }
 0x12f   : > { %4787 = vmatmul.mubr.msk.bf16.gmra.mrb[8].mxu0 %vm462_vm1, %v3357_v15  ;;  %v1842_v42 = vsel %vm1681_vm2, %v1832_v11, %v1841_v28  ;;  %v3375_v15 = vsel %vm3344_vm6, %v3372_v27, %v3374_v35 }
 0x130   : > { %4790 = vmatprep.mubr.msk.bf16.mxu0 %vm462_vm1, %v3359_v18  ;;  %v1850_v9 = vor.u32 %v1849_v44, %v1846_v16  ;;  %v3380_v18 = vrot.slane %v5887_v21, 3 }
 0x132   : > { %v1851_v14 = vsel %vm1681_vm2, %v1841_v28, %v1850_v9 }
 0x134   : > { %4621 = vmatmul.mubr.msk.bf16.gmra.mrb[32].mxu1 %vm462_vm1, %v1400_v51  ;;  %v3381_v51 = vsel %vm3344_vm6, %v3378_v49, %v3380_v18 }
 0x135   : > { %4646 = vmatprep.mubr.msk.bf16.mxu1 %vm462_vm1, %v1788_v22 }
 0x137   : > { %4791 = vmatmul.mubr.msk.bf16.gmra.mrb[12].mxu0 %vm462_vm1, %v3361_v56 }
 0x138   : > { %4794 = vmatprep.mubr.msk.bf16.mxu0 %vm462_vm1, %v3363_v57 }
 0x13c   : > { %4647 = vmatmul.mubr.msk.bf16.vlgmr.msra.gmra.mrb[20].mxu1 %vm462_vm1, %v1797_v5 }
 0x13d   : > { %4650 = vmatprep.mubr.msk.bf16.mxu1 %vm462_vm1, %v1806_v53 }
 0x13f   : > { %4795 = vmatmul.mubr.msk.bf16.gmra.mrb[16].mxu0 %vm462_vm1, %v3365_v34 }
 0x140   : > { %4798 = vmatprep.mubr.msk.bf16.mxu0 %vm462_vm1, %v3367_v55 }
 0x144   : > { %4651 = vmatmul.mubr.msk.bf16.gmra.mrb[24].mxu1 %vm462_vm1, %v1815_v37 }
 0x145   : > { %4654 = vmatprep.mubr.msk.bf16.mxu1 %vm462_vm1, %v1824_v3 }
 0x147   : > { %4799 = vmatmul.mubr.msk.bf16.gmra.mrb[20].mxu0 %vm462_vm1, %v3369_v30 }
 0x148   : > { %4802 = vmatprep.mubr.msk.bf16.mxu0 %vm462_vm1, %v3371_v43 }
 0x14c   : > { %4655 = vmatmul.mubr.msk.bf16.gmra.mrb[28].mxu1 %vm462_vm1, %v1833_v25 }
 0x14d   : > { %4658 = vmatprep.mubr.msk.bf16.mxu1 %vm462_vm1, %v1842_v42 }
 0x14f   : > { %4803 = vmatmul.mubr.msk.bf16.gmra.mrb[24].mxu0 %vm462_vm1, %v3373_v33 }
 0x150   : > { %4806 = vmatprep.mubr.msk.bf16.mxu0 %vm462_vm1, %v3375_v15 }
 0x154   : > { %4659 = vmatmul.mubr.msk.bf16.gmra.mrb[32].mxu1 %vm462_vm1, %v1851_v14 }
 0x157   : > { %4807 = vmatmul.mubr.msk.bf16.gmra.mrb[28].mxu0 %vm462_vm1, %v3377_v20 }
 0x158   : > { %4810 = vmatprep.mubr.msk.bf16.mxu0 %vm462_vm1, %v3379_v58 }
 0x15f   : > { %4811 = vmatmul.mubr.msk.bf16.gmra.mrb[32].mxu0 %vm462_vm1, %v3381_v51 }
 0x1c7   : > { %v4590_v40 = vpop.f32.mrb[0].mxu1 }
 0x1c8   : > { %v1495_v32 = vpop.f32.mrb[1].mxu1 }
 0x1c9   : > { %v4591_v46 = vpop.f32.mrb[2].mxu1 }
 0x1ca   : > { %v1498_v38 = vpop.f32.mrb[3].mxu1 }
 0x1cf   : > { %v4594_v6 = vpop.f32.mrb[4].mxu1 }
 0x1d0   : > { %v1511_v22 = vpop.f32.mrb[5].mxu1 }
 0x1d1   : > { %v4595_v59 = vpop.f32.mrb[6].mxu1 }
 0x1d2   : > { %v1514_v47 = vpop.f32.mrb[7].mxu1 }
 0x1d7   : > { %v4598_v31 = vpop.f32.mrb[8].mxu1 }
 0x1d8   : > { %v6020_v24 = vpop.f32.mrb[9].mxu1 }
 0x1d9   : > { %v6022_v4 = vpop.f32.mrb[10].mxu1 }
 0x1da   : > { %v6024_v50 = vpop.f32.mrb[11].mxu1 }
 0x1df   : > { %v6026_v21 = vpop.f32.mrb[12].mxu1 }
 0x1e0   : > { %v6028_v56 = vpop.f32.mrb[13].mxu1 }
 0x1e1   : > { %v6030_v48 = vpop.f32.mrb[14].mxu1 }
 0x1e2   : > { %v6032_v10 = vpop.f32.mrb[15].mxu1 }
 0x1e7   : > { %v6034_v8 = vpop.f32.mrb[16].mxu1 }
 0x1e8   : > { %v6036_v57 = vpop.f32.mrb[17].mxu1 }
 0x1e9   : > { %v6038_v5 = vpop.f32.mrb[18].mxu1 }
 0x1ea   : > { %v6040_v52 = vpop.f32.mrb[19].mxu1 }
 0x1f2   : > { %v4780_v23 = vpop.f32.mrb[0].mxu0 }
 0x1f3   : > { %v4816_v53 = vadd.f32 %v4780_v23, %v4590_v40  ;;  %v3476_v54 = vpop.f32.mrb[1].mxu0 }
 0x1f4   : > { %v4817_v62 = vadd.f32 %v3476_v54, %v1495_v32  ;;  %v4781_v0 = vpop.f32.mrb[2].mxu0 }
 0x1f5   : > { %v3664_v60 = vadd.f32 %v4816_v53, %v6045_v29  ;;  %v4818_v1 = vadd.f32 %v4781_v0, %v4591_v46  ;;  %v3479_v63 = vpop.f32.mrb[3].mxu0 }
 0x1f6   : > { %v3662_v34 = vadd.f32 %v4817_v62, %v6045_v29  ;;  %v4819_v36 = vadd.f32 %v3479_v63, %v1498_v38 }
 0x1f7   : > { %v3700_v2 = vmax.f32 %v3664_v60, 0.0  ;;  %v3665_v13 = vadd.f32 %v4818_v1, %v6045_v29 }
 0x1f8   : > { %v3698_v55 = vmax.f32 %v3662_v34, 0.0  ;;  %v3663_v37 = vadd.f32 %v4819_v36, %v6045_v29 }
 0x1f9   : > { %v4267_v45 = vpack.c.bf16 %v3700_v2, %v3700_v2  ;;  %v3701_v61 = vmax.f32 %v3665_v13, 0.0 }
 0x1fa   : > { %v4265_v19 = vpack.c.bf16 %v3698_v55, %v3698_v55  ;;  %v3699_v3 = vmax.f32 %v3663_v37, 0.0  ;;  %v4784_v26 = vpop.f32.mrb[4].mxu0 }
 0x1fb   : > { %3881 = vst.msk [vmem:[%s6054_s18 + $0x8] sm:$0xf] %vm3878_vm7, %v4267_v45  ;;  %v4268_v7 = vpack.c.bf16 %v3701_v61, %v3701_v61  ;;  %v4820_v39 = vadd.f32 %v4784_v26, %v4594_v6  ;;  %v3492_v11 = vpop.f32.mrb[5].mxu0 }
 0x1fc   : > { %3879 = vst.msk [vmem:[%s6054_s18] sm:$0xf] %vm3878_vm7, %v4265_v19  ;;  %v4266_v41 = vpack.c.bf16 %v3699_v3, %v3699_v3  ;;  %v4821_v17 = vadd.f32 %v3492_v11, %v1511_v22  ;;  %v4785_v30 = vpop.f32.mrb[6].mxu0 }
 0x1fd   : > { %3882 = vst.msk [vmem:[%s6054_s18 + $0xc] sm:$0xf] %vm3878_vm7, %v4268_v7  ;;  %v3668_v28 = vadd.f32 %v4820_v39, %v6045_v29  ;;  %v4822_v43 = vadd.f32 %v4785_v30, %v4595_v59  ;;  %v3495_v25 = vpop.f32.mrb[7].mxu0 }
 0x1fe   : > { %3880 = vst.msk [vmem:[%s6054_s18 + $0x4] sm:$0xf] %vm3878_vm7, %v4266_v41  ;;  %v3666_v16 = vadd.f32 %v4821_v17, %v6045_v29  ;;  %v4823_v44 = vadd.f32 %v3495_v25, %v1514_v47 }
 0x1ff   : > { %v3704_v27 = vmax.f32 %v3668_v28, 0.0  ;;  %v3669_v42 = vadd.f32 %v4822_v43, %v6045_v29 }
 0x200   : > { %v3702_v35 = vmax.f32 %v3666_v16, 0.0  ;;  %v3667_v9 = vadd.f32 %v4823_v44, %v6045_v29 }
 0x201   : > { %v4271_v33 = vpack.c.bf16 %v3704_v27, %v3704_v27  ;;  %v3705_v15 = vmax.f32 %v3669_v42, 0.0 }
 0x202   : > { %v4269_v14 = vpack.c.bf16 %v3702_v35, %v3702_v35  ;;  %v3703_v12 = vmax.f32 %v3667_v9, 0.0  ;;  %v4788_v49 = vpop.f32.mrb[8].mxu0 }
 0x203   : > { %3885 = vst.msk [vmem:[%s6054_s18 + $0x18] sm:$0xf] %vm3878_vm7, %v4271_v33  ;;  %v4272_v20 = vpack.c.bf16 %v3705_v15, %v3705_v15  ;;  %v4824_v58 = vadd.f32 %v4788_v49, %v4598_v31  ;;  %v3508_v18 = vpop.f32.mrb[9].mxu0 }
 0x204   : > { %3883 = vst.msk [vmem:[%s6054_s18 + $0x10] sm:$0xf] %vm3878_vm7, %v4269_v14  ;;  %v4270_v51 = vpack.c.bf16 %v3703_v12, %v3703_v12  ;;  %v4825_v40 = vadd.f32 %v3508_v18, %v6020_v24  ;;  %v4789_v32 = vpop.f32.mrb[10].mxu0 }
 0x205   : > { %3886 = vst.msk [vmem:[%s6054_s18 + $0x1c] sm:$0xf] %vm3878_vm7, %v4272_v20  ;;  %v3672_v46 = vadd.f32 %v4824_v58, %v6045_v29  ;;  %v4826_v38 = vadd.f32 %v4789_v32, %v6022_v4  ;;  %v3511_v6 = vpop.f32.mrb[11].mxu0 }
 0x206   : > { %3884 = vst.msk [vmem:[%s6054_s18 + $0x14] sm:$0xf] %vm3878_vm7, %v4270_v51  ;;  %v3670_v22 = vadd.f32 %v4825_v40, %v6045_v29  ;;  %v4827_v59 = vadd.f32 %v3511_v6, %v6024_v50 }
 0x207   : > { %v3708_v47 = vmax.f32 %v3672_v46, 0.0  ;;  %v3673_v31 = vadd.f32 %v4826_v38, %v6045_v29 }
 0x208   : > { %v3706_v24 = vmax.f32 %v3670_v22, 0.0  ;;  %v3671_v23 = vadd.f32 %v4827_v59, %v6045_v29 }
 0x209   : > { %v4275_v53 = vpack.c.bf16 %v3708_v47, %v3708_v47  ;;  %v3709_v54 = vmax.f32 %v3673_v31, 0.0 }
 0x20a   : > { %v4273_v62 = vpack.c.bf16 %v3706_v24, %v3706_v24  ;;  %v3707_v4 = vmax.f32 %v3671_v23, 0.0  ;;  %v4792_v0 = vpop.f32.mrb[12].mxu0 }
 0x20b   : > { %3889 = vst.msk [vmem:[%s6054_s18 + $0x28] sm:$0xf] %vm3878_vm7, %v4275_v53  ;;  %v4276_v60 = vpack.c.bf16 %v3709_v54, %v3709_v54  ;;  %v4828_v1 = vadd.f32 %v4792_v0, %v6026_v21  ;;  %v3524_v63 = vpop.f32.mrb[13].mxu0 }
 0x20c   : > { %3887 = vst.msk [vmem:[%s6054_s18 + $0x20] sm:$0xf] %vm3878_vm7, %v4273_v62  ;;  %v4274_v50 = vpack.c.bf16 %v3707_v4, %v3707_v4  ;;  %v4829_v34 = vadd.f32 %v3524_v63, %v6028_v56  ;;  %v4793_v36 = vpop.f32.mrb[14].mxu0 }
 0x20d   : > { %3890 = vst.msk [vmem:[%s6054_s18 + $0x2c] sm:$0xf] %vm3878_vm7, %v4276_v60  ;;  %v3676_v2 = vadd.f32 %v4828_v1, %v6045_v29  ;;  %v4830_v13 = vadd.f32 %v4793_v36, %v6030_v48  ;;  %v3527_v55 = vpop.f32.mrb[15].mxu0 }
 0x20e   : > { %3888 = vst.msk [vmem:[%s6054_s18 + $0x24] sm:$0xf] %vm3878_vm7, %v4274_v50  ;;  %v3674_v21 = vadd.f32 %v4829_v34, %v6045_v29  ;;  %v4831_v45 = vadd.f32 %v3527_v55, %v6032_v10 }
 0x20f   : > { %v4648_v37 = vpop.f32.mrb[20].mxu1  ;;  %v3712_v19 = vmax.f32 %v3676_v2, 0.0  ;;  %v3677_v56 = vadd.f32 %v4830_v13, %v6045_v29 }
 0x210   : > { %v2026_v61 = vpop.f32.mrb[21].mxu1  ;;  %v3710_v26 = vmax.f32 %v3674_v21, 0.0  ;;  %v3675_v7 = vadd.f32 %v4831_v45, %v6045_v29 }
 0x211   : > { %v4649_v3 = vpop.f32.mrb[22].mxu1  ;;  %v4279_v39 = vpack.c.bf16 %v3712_v19, %v3712_v19  ;;  %v3713_v11 = vmax.f32 %v3677_v56, 0.0 }
 0x212   : > { %v2029_v48 = vpop.f32.mrb[23].mxu1  ;;  %v4277_v41 = vpack.c.bf16 %v3710_v26, %v3710_v26  ;;  %v3711_v17 = vmax.f32 %v3675_v7, 0.0  ;;  %v4796_v30 = vpop.f32.mrb[16].mxu0 }
 0x213   : > { %3893 = vst.msk [vmem:[%s6054_s18 + $0x38] sm:$0xf] %vm3878_vm7, %v4279_v39  ;;  %v4280_v10 = vpack.c.bf16 %v3713_v11, %v3713_v11  ;;  %v4832_v28 = vadd.f32 %v4796_v30, %v6034_v8  ;;  %v3540_v43 = vpop.f32.mrb[17].mxu0 }
 0x214   : > { %3891 = vst.msk [vmem:[%s6054_s18 + $0x30] sm:$0xf] %vm3878_vm7, %v4277_v41  ;;  %v4278_v25 = vpack.c.bf16 %v3711_v17, %v3711_v17  ;;  %v4833_v16 = vadd.f32 %v3540_v43, %v6036_v57  ;;  %v4797_v44 = vpop.f32.mrb[18].mxu0 }
 0x215   : > { %3894 = vst.msk [vmem:[%s6054_s18 + $0x3c] sm:$0xf] %vm3878_vm7, %v4280_v10  ;;  %v3680_v27 = vadd.f32 %v4832_v28, %v6045_v29  ;;  %v4834_v42 = vadd.f32 %v4797_v44, %v6038_v5  ;;  %v3543_v35 = vpop.f32.mrb[19].mxu0 }
 0x216   : > { %3892 = vst.msk [vmem:[%s6054_s18 + $0x34] sm:$0xf] %vm3878_vm7, %v4278_v25  ;;  %v3678_v8 = vadd.f32 %v4833_v16, %v6045_v29  ;;  %v4835_v33 = vadd.f32 %v3543_v35, %v6040_v52 }
 0x217   : > { %v4652_v9 = vpop.f32.mrb[24].mxu1  ;;  %v3716_v14 = vmax.f32 %v3680_v27, 0.0  ;;  %v3681_v57 = vadd.f32 %v4834_v42, %v6045_v29 }
 0x218   : > { %v2042_v15 = vpop.f32.mrb[25].mxu1  ;;  %v3714_v49 = vmax.f32 %v3678_v8, 0.0  ;;  %v3679_v20 = vadd.f32 %v4835_v33, %v6045_v29 }
 0x219   : > { %v4653_v12 = vpop.f32.mrb[26].mxu1  ;;  %v4283_v58 = vpack.c.bf16 %v3716_v14, %v3716_v14  ;;  %v3717_v18 = vmax.f32 %v3681_v57, 0.0 }
 0x21a   : > { %v2045_v5 = vpop.f32.mrb[27].mxu1  ;;  %v4281_v51 = vpack.c.bf16 %v3714_v49, %v3714_v49  ;;  %v3715_v40 = vmax.f32 %v3679_v20, 0.0  ;;  %v4800_v32 = vpop.f32.mrb[20].mxu0 }
 0x21b   : > { %3897 = vst.msk [vmem:[%s6054_s18 + $0x48] sm:$0xf] %vm3878_vm7, %v4283_v58  ;;  %v4284_v52 = vpack.c.bf16 %v3717_v18, %v3717_v18  ;;  %v4836_v46 = vadd.f32 %v4800_v32, %v4648_v37  ;;  %v3556_v38 = vpop.f32.mrb[21].mxu0 }
 0x21c   : > { %3895 = vst.msk [vmem:[%s6054_s18 + $0x40] sm:$0xf] %vm3878_vm7, %v4281_v51  ;;  %v4282_v6 = vpack.c.bf16 %v3715_v40, %v3715_v40  ;;  %v4837_v22 = vadd.f32 %v3556_v38, %v2026_v61  ;;  %v4801_v59 = vpop.f32.mrb[22].mxu0 }
 0x21d   : > { %3898 = vst.msk [vmem:[%s6054_s18 + $0x4c] sm:$0xf] %vm3878_vm7, %v4284_v52  ;;  %v3684_v47 = vadd.f32 %v4836_v46, %v6045_v29  ;;  %v4838_v31 = vadd.f32 %v4801_v59, %v4649_v3  ;;  %v3559_v24 = vpop.f32.mrb[23].mxu0 }
 0x21e   : > { %3896 = vst.msk [vmem:[%s6054_s18 + $0x44] sm:$0xf] %vm3878_vm7, %v4282_v6  ;;  %v3682_v53 = vadd.f32 %v4837_v22, %v6045_v29  ;;  %v4839_v54 = vadd.f32 %v3559_v24, %v2029_v48 }
 0x21f   : > { %v4656_v23 = vpop.f32.mrb[28].mxu1  ;;  %v3720_v4 = vmax.f32 %v3684_v47, 0.0  ;;  %v3685_v0 = vadd.f32 %v4838_v31, %v6045_v29 }
 0x220   : > { %v2058_v62 = vpop.f32.mrb[29].mxu1  ;;  %v3718_v1 = vmax.f32 %v3682_v53, 0.0  ;;  %v3683_v63 = vadd.f32 %v4839_v54, %v6045_v29 }
 0x221   : > { %v4657_v60 = vpop.f32.mrb[30].mxu1  ;;  %v4287_v34 = vpack.c.bf16 %v3720_v4, %v3720_v4  ;;  %v3721_v36 = vmax.f32 %v3685_v0, 0.0 }
 0x222   : > { %v2061_v50 = vpop.f32.mrb[31].mxu1  ;;  %v4285_v2 = vpack.c.bf16 %v3718_v1, %v3718_v1  ;;  %v3719_v13 = vmax.f32 %v3683_v63, 0.0  ;;  %v4804_v55 = vpop.f32.mrb[24].mxu0 }
 0x223   : > { %3901 = vst.msk [vmem:[%s6054_s18 + $0x58] sm:$0xf] %vm3878_vm7, %v4287_v34  ;;  %v4288_v37 = vpack.c.bf16 %v3721_v36, %v3721_v36  ;;  %v4840_v21 = vadd.f32 %v4804_v55, %v4652_v9  ;;  %v3572_v45 = vpop.f32.mrb[25].mxu0 }
 0x224   : > { %3899 = vst.msk [vmem:[%s6054_s18 + $0x50] sm:$0xf] %vm3878_vm7, %v4285_v2  ;;  %v4286_v61 = vpack.c.bf16 %v3719_v13, %v3719_v13  ;;  %v4841_v19 = vadd.f32 %v3572_v45, %v2042_v15  ;;  %v4805_v56 = vpop.f32.mrb[26].mxu0 }
 0x225   : > { %3902 = vst.msk [vmem:[%s6054_s18 + $0x5c] sm:$0xf] %vm3878_vm7, %v4288_v37  ;;  %v3688_v3 = vadd.f32 %v4840_v21, %v6045_v29  ;;  %v4842_v26 = vadd.f32 %v4805_v56, %v4653_v12  ;;  %v3575_v7 = vpop.f32.mrb[27].mxu0 }
 0x226   : > { %3900 = vst.msk [vmem:[%s6054_s18 + $0x54] sm:$0xf] %vm3878_vm7, %v4286_v61  ;;  %v3686_v39 = vadd.f32 %v4841_v19, %v6045_v29  ;;  %v4843_v11 = vadd.f32 %v3575_v7, %v2045_v5 }
 0x227   : > { %v4660_v48 = vpop.f32.mrb[32].mxu1  ;;  %v3724_v17 = vmax.f32 %v3688_v3, 0.0  ;;  %v3689_v30 = vadd.f32 %v4842_v26, %v6045_v29 }
 0x228   : > { %v2074_v41 = vpop.f32.mrb[33].mxu1  ;;  %v3722_v28 = vmax.f32 %v3686_v39, 0.0  ;;  %v3687_v43 = vadd.f32 %v4843_v11, %v6045_v29 }
 0x229   : > { %v4661_v10 = vpop.f32.mrb[34].mxu1  ;;  %v4291_v16 = vpack.c.bf16 %v3724_v17, %v3724_v17  ;;  %v3725_v44 = vmax.f32 %v3689_v30, 0.0 }
 0x22a   : > { %v2077_v25 = vpop.f32.mrb[35].mxu1  ;;  %v4289_v27 = vpack.c.bf16 %v3722_v28, %v3722_v28  ;;  %v3723_v42 = vmax.f32 %v3687_v43, 0.0  ;;  %v4808_v35 = vpop.f32.mrb[28].mxu0 }
 0x22b   : > { %3905 = vst.msk [vmem:[%s6054_s18 + $0x68] sm:$0xf] %vm3878_vm7, %v4291_v16  ;;  %v4292_v9 = vpack.c.bf16 %v3725_v44, %v3725_v44  ;;  %v4844_v8 = vadd.f32 %v4808_v35, %v4656_v23  ;;  %v3588_v33 = vpop.f32.mrb[29].mxu0 }
 0x22c   : > { %3903 = vst.msk [vmem:[%s6054_s18 + $0x60] sm:$0xf] %vm3878_vm7, %v4289_v27  ;;  %v4290_v15 = vpack.c.bf16 %v3723_v42, %v3723_v42  ;;  %v4845_v14 = vadd.f32 %v3588_v33, %v2058_v62  ;;  %v4809_v57 = vpop.f32.mrb[30].mxu0 }
 0x22d   : > { %3906 = vst.msk [vmem:[%s6054_s18 + $0x6c] sm:$0xf] %vm3878_vm7, %v4292_v9  ;;  %v3692_v12 = vadd.f32 %v4844_v8, %v6045_v29  ;;  %v4846_v49 = vadd.f32 %v4809_v57, %v4657_v60  ;;  %v3591_v20 = vpop.f32.mrb[31].mxu0 }
 0x22e   : > { %3904 = vst.msk [vmem:[%s6054_s18 + $0x64] sm:$0xf] %vm3878_vm7, %v4290_v15  ;;  %v3690_v5 = vadd.f32 %v4845_v14, %v6045_v29  ;;  %v4847_v58 = vadd.f32 %v3591_v20, %v2061_v50 }
 0x22f   : > { %v3728_v18 = vmax.f32 %v3692_v12, 0.0  ;;  %v3693_v51 = vadd.f32 %v4846_v49, %v6045_v29 }
 0x230   : > { %v3726_v40 = vmax.f32 %v3690_v5, 0.0  ;;  %v3691_v32 = vadd.f32 %v4847_v58, %v6045_v29 }
 0x231   : > { %v4295_v52 = vpack.c.bf16 %v3728_v18, %v3728_v18  ;;  %v3729_v46 = vmax.f32 %v3693_v51, 0.0 }
 0x232   : > { %v4293_v38 = vpack.c.bf16 %v3726_v40, %v3726_v40  ;;  %v3727_v6 = vmax.f32 %v3691_v32, 0.0  ;;  %v4812_v22 = vpop.f32.mrb[32].mxu0 }
 0x233   : > { %3909 = vst.msk [vmem:[%s6054_s18 + $0x78] sm:$0xf] %vm3878_vm7, %v4295_v52  ;;  %v4296_v59 = vpack.c.bf16 %v3729_v46, %v3729_v46  ;;  %v4848_v47 = vadd.f32 %v4812_v22, %v4660_v48  ;;  %v3604_v31 = vpop.f32.mrb[33].mxu0 }
 0x234   : > { %3907 = vst.msk [vmem:[%s6054_s18 + $0x70] sm:$0xf] %vm3878_vm7, %v4293_v38  ;;  %v4294_v24 = vpack.c.bf16 %v3727_v6, %v3727_v6  ;;  %v4849_v23 = vadd.f32 %v3604_v31, %v2074_v41  ;;  %v4813_v53 = vpop.f32.mrb[34].mxu0 }
 0x235   : > { %3910 = vst.msk [vmem:[%s6054_s18 + $0x7c] sm:$0xf] %vm3878_vm7, %v4296_v59  ;;  %v3696_v54 = vadd.f32 %v4848_v47, %v6045_v29  ;;  %v4850_v62 = vadd.f32 %v4813_v53, %v4661_v10  ;;  %v3607_v4 = vpop.f32.mrb[35].mxu0 }
 0x236   : > { %3908 = vst.msk [vmem:[%s6054_s18 + $0x74] sm:$0xf] %vm3878_vm7, %v4294_v24  ;;  %v3694_v0 = vadd.f32 %v4849_v23, %v6045_v29  ;;  %v4851_v60 = vadd.f32 %v3607_v4, %v2077_v25 }
 0x237   : > { %v3732_v1 = vmax.f32 %v3696_v54, 0.0  ;;  %v3697_v63 = vadd.f32 %v4850_v62, %v6045_v29 }
 0x238   : > { %v3730_v50 = vmax.f32 %v3694_v0, 0.0  ;;  %v3695_v34 = vadd.f32 %v4851_v60, %v6045_v29 }
 0x239   : > { %v4299_v36 = vpack.c.bf16 %v3732_v1, %v3732_v1  ;;  %v3733_v2 = vmax.f32 %v3697_v63, 0.0 }
 0x23a   : > { %v4297_v13 = vpack.c.bf16 %v3730_v50, %v3730_v50  ;;  %v3731_v55 = vmax.f32 %v3695_v34, 0.0 }
 0x23b   : > { %3913 = vst.msk [vmem:[%s6054_s18 + $0x88] sm:$0xf] %vm3878_vm7, %v4299_v36  ;;  %v4300_v37 = vpack.c.bf16 %v3733_v2, %v3733_v2 }
 0x23c   : > { %3911 = vst.msk [vmem:[%s6054_s18 + $0x80] sm:$0xf] %vm3878_vm7, %v4297_v13  ;;  %v4298_v21 = vpack.c.bf16 %v3731_v55, %v3731_v55 }
 0x23d   : > { %3914 = vst.msk [vmem:[%s6054_s18 + $0x8c] sm:$0xf] %vm3878_vm7, %v4300_v37 }
 0x23e   : > { %3912 = vst.msk [vmem:[%s6054_s18 + $0x84] sm:$0xf] %vm3878_vm7, %v4298_v21 }
 0x23f PF: > { %s13_s12 = sadd.s32 1, %s5202_s12  }
 0x240   : > { %p10_p4 = scmp.ge.s32.totalorder %s13_s12, 4  }
 0x242   :  { %12 = sbr.rel (!%p10_p4) target bundleno = 1 (0x1), region = 70 }

// kernel: forward.28
= control target key start
LH: loop header
LB: loop body
LE: loop exit
PB: predicated region body
PF: predicated region fallthrough
CT: control target
= control target key end

     0   :  { %vm110_vm0 = vcmask 523264   ;;  %s563_s1 = inlined_call_operand.vmem [shape: bf16[64,128], index: 1, kind: input, shape index: {}]   ;;  %s564_s0 = inlined_call_operand.vmem [shape: bf16[128,64], index: 0, kind: input, shape index: {}]   ;;  %s565_s2 = inlined_call_operand.vmem [shape: f32[1,128], index: 2, kind: input, shape index: {}]   ;;  %s566_s3 = inlined_call_operand.vmem [shape: bf16[128,128], index: 3, kind: output, shape index: {}]  }
   0x1   :  { %v460_v0 = vld [vmem:[%s563_s1] sm:$0xff]   ;;  %v461_v1 = vld [vmem:[%s563_s1 + $0x8] sm:$0xff]   ;;  %v462_v2 = vld [vmem:[%s563_s1 + $0x10] sm:$0xff]  }
   0x2   :  { %428 = vmatprep.subr.bf16.mxu0 %v460_v0  ;;  %452 = vmatprep.subr.bf16.mxu1 %v460_v0  ;;  %v464_v3 = vld [vmem:[%s564_s0] sm:$0xff]   ;;  %v463_v5 = vld [vmem:[%s563_s1 + $0x18] sm:$0xff]   ;;  %v466_v6 = vld [vmem:[%s564_s0 + $0x8] sm:$0xff]  }
   0x3   :  { %429 = vmatpush3.bf16.msra.mxu0 %v460_v0  ;;  %456 = vmatpush3.bf16.msra.mxu1 %v460_v0  ;;  %v465_v4 = vld [vmem:[%s564_s0 + $0x20] sm:$0xff]   ;;  %v467_v7 = vld [vmem:[%s564_s0 + $0x28] sm:$0xff]   ;;  %v468_v8 = vld [vmem:[%s564_s0 + $0x10] sm:$0xff]  }
   0x4   :  { %430 = vmatprep.subr.bf16.mxu0 %v461_v1  ;;  %453 = vmatprep.subr.bf16.mxu1 %v461_v1  ;;  %v469_v9 = vld [vmem:[%s564_s0 + $0x30] sm:$0xff]   ;;  %v470_v10 = vld [vmem:[%s564_s0 + $0x18] sm:$0xff]   ;;  %v316_v13 = vld [vmem:[%s565_s2] ss:$0 sm:$0xff] }
   0x5   :  { %436 = vmatprep.mubr.msk.bf16.mxu0 %vm110_vm0, %v464_v3  ;;  %444 = vmatprep.mubr.msk.bf16.mxu1 %vm110_vm0, %v465_v4  ;;  %v471_v11 = vld [vmem:[%s564_s0 + $0x38] sm:$0xff]  }
   0x7   :  { %431 = vmatpush3.bf16.msra.mxu0 %v461_v1  ;;  %457 = vmatpush3.bf16.msra.mxu1 %v461_v1 }
   0x8   :  { %432 = vmatprep.subr.bf16.mxu0 %v462_v2  ;;  %454 = vmatprep.subr.bf16.mxu1 %v462_v2 }
   0xb   :  { %433 = vmatpush3.bf16.msra.mxu0 %v462_v2  ;;  %458 = vmatpush3.bf16.msra.mxu1 %v462_v2 }
   0xc   :  { %434 = vmatprep.subr.bf16.mxu0 %v463_v5  ;;  %455 = vmatprep.subr.bf16.mxu1 %v463_v5 }
   0xf   :  { %435 = vmatpush3.bf16.msra.mxu0 %v463_v5  ;;  %459 = vmatpush3.bf16.msra.mxu1 %v463_v5 }
  0x12   :  { %437 = vmatmul.mubr.msk.bf16.vlgmr.msra.gmra.mrb[0].mxu0 %vm110_vm0, %v466_v6  ;;  %445 = vmatmul.mubr.msk.bf16.vlgmr.msra.gmra.mrb[0].mxu1 %vm110_vm0, %v467_v7 }
  0x13   :  { %440 = vmatprep.mubr.msk.bf16.mxu0 %vm110_vm0, %v468_v8  ;;  %448 = vmatprep.mubr.msk.bf16.mxu1 %vm110_vm0, %v469_v9 }
  0x1a   :  { %441 = vmatmul.mubr.msk.bf16.gmra.mrb[4].mxu0 %vm110_vm0, %v470_v10  ;;  %449 = vmatmul.mubr.msk.bf16.gmra.mrb[4].mxu1 %vm110_vm0, %v471_v11 }
  0xe5   :  { %v438_v12 = vpop.f32.mrb[0].mxu0  ;;  %v446_v14 = vpop.f32.mrb[0].mxu1 }
  0xe6   :  { %v169_v15 = vpop.f32.mrb[1].mxu0  ;;  %v201_v16 = vpop.f32.mrb[1].mxu1  ;;  %v178_v19 = vadd.f32 %v438_v12, %v316_v13  ;;  %v210_v20 = vadd.f32 %v446_v14, %v316_v13 }
  0xe7   :  { %v439_v17 = vpop.f32.mrb[2].mxu0  ;;  %v447_v18 = vpop.f32.mrb[2].mxu1  ;;  %v170_v25 = vadd.f32 %v316_v13, %v169_v15  ;;  %v202_v26 = vadd.f32 %v316_v13, %v201_v16 }
  0xe8   :  { %v181_v21 = vadd.f32 %v439_v17, %v316_v13  ;;  %v213_v22 = vadd.f32 %v447_v18, %v316_v13  ;;  %v172_v23 = vpop.f32.mrb[3].mxu0  ;;  %v204_v24 = vpop.f32.mrb[3].mxu1 }
  0xe9   :  { %v173_v27 = vadd.f32 %v316_v13, %v172_v23  ;;  %v205_v28 = vadd.f32 %v316_v13, %v204_v24 }
  0xea   :  { %v377_v29 = vpack.c.bf16 %v181_v21, %v178_v19  ;;  %v397_v30 = vpack.c.bf16 %v213_v22, %v210_v20 }
  0xeb   :  { %v372_v31 = vpack.c.bf16 %v173_v27, %v170_v25  ;;  %v392_v32 = vpack.c.bf16 %v205_v28, %v202_v26 }
  0xec   :  { %409 = vst [vmem:[%s566_s3 + $0x8] sm:$0xff] %v377_v29   ;;  %413 = vst [vmem:[%s566_s3 + $0x28] sm:$0xff] %v397_v30  }
  0xed   :  { %373 = vst [vmem:[%s566_s3] sm:$0xff] %v372_v31   ;;  %412 = vst [vmem:[%s566_s3 + $0x20] sm:$0xff] %v392_v32   ;;  %v442_v33 = vpop.f32.mrb[4].mxu0  ;;  %v450_v34 = vpop.f32.mrb[4].mxu1 }
  0xee   :  { %v185_v35 = vpop.f32.mrb[5].mxu0  ;;  %v217_v36 = vpop.f32.mrb[5].mxu1  ;;  %v194_v39 = vadd.f32 %v442_v33, %v316_v13  ;;  %v226_v40 = vadd.f32 %v450_v34, %v316_v13 }
  0xef   :  { %v443_v37 = vpop.f32.mrb[6].mxu0  ;;  %v451_v38 = vpop.f32.mrb[6].mxu1  ;;  %v186_v45 = vadd.f32 %v316_v13, %v185_v35  ;;  %v218_v46 = vadd.f32 %v316_v13, %v217_v36 }
  0xf0   :  { %v197_v41 = vadd.f32 %v443_v37, %v316_v13  ;;  %v229_v42 = vadd.f32 %v451_v38, %v316_v13  ;;  %v188_v43 = vpop.f32.mrb[7].mxu0  ;;  %v220_v44 = vpop.f32.mrb[7].mxu1 }
  0xf1   :  { %v189_v47 = vadd.f32 %v316_v13, %v188_v43  ;;  %v221_v48 = vadd.f32 %v316_v13, %v220_v44 }
  0xf2   :  { %v387_v49 = vpack.c.bf16 %v197_v41, %v194_v39  ;;  %v407_v50 = vpack.c.bf16 %v229_v42, %v226_v40 }
  0xf3   :  { %v382_v51 = vpack.c.bf16 %v189_v47, %v186_v45  ;;  %v402_v52 = vpack.c.bf16 %v221_v48, %v218_v46 }
  0xf4   :  { %411 = vst [vmem:[%s566_s3 + $0x18] sm:$0xff] %v387_v49   ;;  %415 = vst [vmem:[%s566_s3 + $0x38] sm:$0xff] %v407_v50  }
  0xf5   :  { %410 = vst [vmem:[%s566_s3 + $0x10] sm:$0xff] %v382_v51   ;;  %414 = vst [vmem:[%s566_s3 + $0x30] sm:$0xff] %v402_v52  }

// kernel: forward.27
= control target key start
LH: loop header
LB: loop body
LE: loop exit
PB: predicated region body
PF: predicated region fallthrough
CT: control target
= control target key end

     0   :  { %vm318_vm0 = vcmask 261120   ;;  %vm617_vm1 = vcmask 257024   ;;  %s1132_s1 = inlined_call_operand.vmem [shape: bf16[288,32], index: 1, kind: input, shape index: {}]   ;;  %s1133_s0 = inlined_call_operand.vmem [shape: bf16[128,288], index: 0, kind: input, shape index: {}]   ;;  %s1134_s2 = inlined_call_operand.vmem [shape: f32[1,32], index: 2, kind: input, shape index: {}]   ;;  %s1135_s3 = inlined_call_operand.vmem [shape: bf16[128,32], index: 3, kind: output, shape index: {}]  }
   0x1   :  { %v831_v0 = vld [vmem:[%s1132_s1 + $0x40] sm:$0xff]   ;;  %v833_v2 = vld [vmem:[%s1132_s1 + $0x48] sm:$0xff]   ;;  %v835_v4 = vld [vmem:[%s1132_s1 + $0x50] sm:$0xff]  }
   0x2   :  { %v832_v1 = vld [vmem:[%s1132_s1] sm:$0xff]   ;;  %721 = vmatprep.subr.bf16.mxu0 %v831_v0  ;;  %815 = vmatprep.subr.bf16.mxu1 %v831_v0  ;;  %v834_v3 = vld [vmem:[%s1132_s1 + $0x8] sm:$0xff]   ;;  %v836_v5 = vld [vmem:[%s1132_s1 + $0x10] sm:$0xff]  }
   0x3   :  { %722 = vmatpush3.bf16.msra.mxu0 %v832_v1  ;;  %823 = vmatpush3.bf16.msra.mxu1 %v832_v1  ;;  %v837_v6 = vld [vmem:[%s1132_s1 + $0x58] sm:$0xff]   ;;  %v839_v8 = vld [vmem:[%s1132_s1 + $0x60] sm:$0xff]   ;;  %v841_v10 = vld [vmem:[%s1132_s1 + $0x68] sm:$0xff]  }
   0x4   :  { %723 = vmatprep.subr.bf16.mxu0 %v833_v2  ;;  %816 = vmatprep.subr.bf16.mxu1 %v833_v2  ;;  %v838_v7 = vld [vmem:[%s1132_s1 + $0x18] sm:$0xff]   ;;  %v840_v9 = vld [vmem:[%s1132_s1 + $0x20] sm:$0xff]   ;;  %v842_v13 = vld [vmem:[%s1132_s1 + $0x28] sm:$0xff]  }
   0x5   :  { %v849_v11 = vld [vmem:[%s1133_s0 + $0x4] ss:$12 sps:$4 sm:$0xff]   ;;  %v852_v12 = vld [vmem:[%s1133_s0 + $0x94] ss:$12 sps:$4 sm:$0xff]   ;;  %v845_v16 = vld [vmem:[%s1132_s1 + $0x78] sm:$0xff]  }
   0x6   :  { %v843_v14 = vld [vmem:[%s1132_s1 + $0x70] sm:$0xff]   ;;  %375 = vmatprep.mubr.bf16.mxu0 %v849_v11  ;;  %423 = vmatprep.mubr.bf16.mxu1 %v852_v12  ;;  %v846_v17 = vld [vmem:[%s1132_s1 + $0x38] sm:$0xff]   ;;  %v847_v18 = vld [vmem:[%s1133_s0] ss:$12 sps:$4 sm:$0xff]  }
   0x7   :  { %724 = vmatpush3.bf16.msra.mxu0 %v834_v3  ;;  %824 = vmatpush3.bf16.msra.mxu1 %v834_v3  ;;  %v844_v15 = vld [vmem:[%s1132_s1 + $0x30] sm:$0xff]   ;;  %v853_v19 = vld [vmem:[%s1132_s1 + $0x80] sm:$0xff]   ;;  %v854_v21 = vld [vmem:[%s1133_s0 + $0x1c] ss:$12 sps:$4 sm:$0xff]  }
   0x8   :  { %725 = vmatprep.subr.bf16.mxu0 %v835_v4  ;;  %817 = vmatprep.subr.bf16.mxu1 %v835_v4  ;;  %v850_v20 = vld [vmem:[%s1133_s0 + $0x90] ss:$12 sps:$4 sm:$0xff]   ;;  %v856_v22 = vld [vmem:[%s1133_s0 + $0xac] ss:$12 sps:$4 sm:$0xff]   ;;  %v859_v25 = vld [vmem:[%s1133_s0 + $0xa8] ss:$12 sps:$4 sm:$0xff]  }
   0x9   :  { %v860_v23 = vld [vmem:[%s1132_s1 + $0x88] sm:$0xff]   ;;  %v858_v24 = vld [vmem:[%s1133_s0 + $0x18] ss:$12 sps:$4 sm:$0xff]   ;;  %v861_v26 = vld [vmem:[%s1133_s0 + $0x34] ss:$12 sps:$4 sm:$0xff]  }
   0xa   :  { %v863_v27 = vld [vmem:[%s1133_s0 + $0x8] ss:$12 sps:$4 sm:$0xff]   ;;  %v864_v28 = vld [vmem:[%s1133_s0 + $0x30] ss:$12 sps:$4 sm:$0xff]   ;;  %v865_v29 = vld [vmem:[%s1133_s0 + $0x20] ss:$12 sps:$4 sm:$0xff]  }
   0xb   :  { %726 = vmatpush3.bf16.msra.mxu0 %v836_v5  ;;  %825 = vmatpush3.bf16.msra.mxu1 %v836_v5  ;;  %v866_v30 = vld [vmem:[%s1133_s0 + $0x4c] ss:$12 sps:$4 sm:$0xff]   ;;  %v869_v32 = vld [vmem:[%s1133_s0 + $0x48] ss:$12 sps:$4 sm:$0xff]   ;;  %v870_v33 = vld [vmem:[%s1133_s0 + $0x50] ss:$12 sps:$4 sm:$0xff]  }
   0xc   :  { %727 = vmatprep.subr.bf16.mxu0 %v837_v6  ;;  %818 = vmatprep.subr.bf16.mxu1 %v837_v6  ;;  %v868_v31 = vld [vmem:[%s1133_s0 + $0x38] ss:$12 sps:$4 sm:$0xff]   ;;  %v873_v35 = vld [vmem:[%s1133_s0 + $0x68] ss:$12 sps:$4 sm:$0xff]   ;;  %v874_v36 = vld [vmem:[%s1133_s0 + $0x60] ss:$12 sps:$4 sm:$0xff]  }
   0xd   :  { %v871_v34 = vld [vmem:[%s1133_s0 + $0x64] ss:$12 sps:$4 sm:$0xff]   ;;  %v875_v37 = vld [vmem:[%s1133_s0 + $0x80] ss:$12 sps:$4 sm:$0xff]   ;;  %v876_v38 = vld [vmem:[%s1133_s0 + $0x7c] ss:$12 sps:$4 sm:$0xff]  }
   0xe   :  { %v878_v39 = vld [vmem:[%s1133_s0 + $0x98] ss:$12 sps:$4 sm:$0xff]   ;;  %v880_v41 = vld [vmem:[%s1133_s0 + $0xb0] ss:$12 sps:$4 sm:$0xff]   ;;  %v1046_v2 = vld [vmem:[%s1134_s2] ss:$0 sm:$0xff] }
   0xf   :  { %728 = vmatpush3.bf16.msra.mxu0 %v838_v7  ;;  %826 = vmatpush3.bf16.msra.mxu1 %v838_v7  ;;  %v879_v40 = vld [vmem:[%s1133_s0 + $0x78] ss:$12 sps:$4 sm:$0xff]  }
  0x10   :  { %729 = vmatprep.subr.bf16.mxu0 %v839_v8  ;;  %819 = vmatprep.subr.bf16.mxu1 %v839_v8 }
  0x13   :  { %730 = vmatpush3.bf16.msra.mxu0 %v840_v9  ;;  %827 = vmatpush3.bf16.msra.mxu1 %v840_v9 }
  0x14   :  { %731 = vmatprep.subr.bf16.mxu0 %v841_v10  ;;  %820 = vmatprep.subr.bf16.mxu1 %v841_v10 }
  0x17   :  { %732 = vmatpush3.bf16.msra.mxu0 %v842_v13  ;;  %828 = vmatpush3.bf16.msra.mxu1 %v842_v13 }
  0x18   :  { %733 = vmatprep.subr.bf16.mxu0 %v843_v14  ;;  %821 = vmatprep.subr.bf16.mxu1 %v843_v14 }
  0x1b   :  { %734 = vmatpush3.bf16.msra.mxu0 %v844_v15  ;;  %829 = vmatpush3.bf16.msra.mxu1 %v844_v15 }
  0x1c   :  { %735 = vmatprep.subr.bf16.mxu0 %v845_v16  ;;  %822 = vmatprep.subr.bf16.mxu1 %v845_v16 }
  0x1f   :  { %736 = vmatpush3.bf16.msra.mxu0 %v846_v17  ;;  %830 = vmatpush3.bf16.msra.mxu1 %v846_v17 }
  0x20   :  { %795 = vmatprep.subr.bf16.mxu1 %v853_v19 }
  0x22   :  { %376 = vmatmul.mubr.bf16.vlgmr.msra.gmra.mrb[0].mxu0 %v847_v18  ;;  %424 = vmatmul.mubr.bf16.vlgmr.msra.gmra.mrb[0].mxu1 %v850_v20 }
  0x23   :  { %796 = vmatpush3.bf16.msra.mxu1 %v853_v19  ;;  %383 = vmatprep.mubr.bf16.mxu0 %v854_v21 }
  0x24   :  { %431 = vmatprep.mubr.bf16.mxu1 %v856_v22  ;;  %797 = vmatprep.subr.bf16.mxu1 %v860_v23 }
  0x27   :  { %798 = vmatpush3.bf16.msra.mxu1 %v860_v23 }
  0x2a   :  { %384 = vmatmul.mubr.bf16.gmra.mrb[4].mxu0 %v858_v24  ;;  %432 = vmatmul.mubr.bf16.gmra.mrb[4].mxu1 %v859_v25 }
  0x2b   :  { %391 = vmatprep.mubr.bf16.mxu0 %v861_v26  ;;  %799 = vmatprep.mubr.msk.bf16.mxu1 %vm318_vm0, %v863_v27 }
  0x32   :  { %392 = vmatmul.mubr.bf16.gmra.mrb[8].mxu0 %v864_v28  ;;  %800 = vmatmul.mubr.msk.bf16.vlgmr.msra.gmra.mrb[8].mxu1 %vm318_vm0, %v865_v29 }
  0x33   :  { %399 = vmatprep.mubr.bf16.mxu0 %v866_v30  ;;  %803 = vmatprep.mubr.msk.bf16.mxu1 %vm318_vm0, %v868_v31 }
  0x3a   :  { %400 = vmatmul.mubr.bf16.gmra.mrb[12].mxu0 %v869_v32  ;;  %804 = vmatmul.mubr.msk.bf16.gmra.mrb[12].mxu1 %vm318_vm0, %v870_v33 }
  0x3b   :  { %407 = vmatprep.mubr.bf16.mxu0 %v871_v34  ;;  %807 = vmatprep.mubr.msk.bf16.mxu1 %vm318_vm0, %v873_v35 }
  0x42   :  { %408 = vmatmul.mubr.bf16.gmra.mrb[16].mxu0 %v874_v36  ;;  %808 = vmatmul.mubr.msk.bf16.gmra.mrb[16].mxu1 %vm318_vm0, %v875_v37 }
  0x43   :  { %415 = vmatprep.mubr.bf16.mxu0 %v876_v38  ;;  %811 = vmatprep.mubr.msk.bf16.mxu1 %vm318_vm0, %v878_v39 }
  0x4a   :  { %416 = vmatmul.mubr.bf16.gmra.mrb[20].mxu0 %v879_v40  ;;  %812 = vmatmul.mubr.msk.bf16.gmra.mrb[20].mxu1 %vm318_vm0, %v880_v41 }
  0xf5   :  { %v737_v42 = vpop.f32.mrb[0].mxu0  ;;  %v773_v43 = vpop.f32.mrb[0].mxu1 }
  0xf6   :  { %v738_v44 = vpop.f32.mrb[1].mxu0  ;;  %v774_v45 = vpop.f32.mrb[1].mxu1 }
  0xf7   :  { %v739_v46 = vadd.f32 %v738_v44, %v737_v42  ;;  %v740_v47 = vpop.f32.mrb[2].mxu0  ;;  %v1035_v48 = vadd.f32 %v774_v45, %v773_v43  ;;  %v776_v49 = vpop.f32.mrb[2].mxu1 }
  0xf8   :  { %v741_v50 = vpop.f32.mrb[3].mxu0  ;;  %v777_v51 = vpop.f32.mrb[3].mxu1 }
  0xf9   :  { %v742_v52 = vadd.f32 %v741_v50, %v740_v47  ;;  %v1037_v53 = vadd.f32 %v777_v51, %v776_v49  ;;  %v378_v6 = vadd.f32 %v739_v46, %v1046_v2 }
  0xfb   :  { %v381_v15 = vadd.f32 %v742_v52, %v1046_v2 }
  0xfd   :  { %v743_v54 = vpop.f32.mrb[4].mxu0  ;;  %v779_v55 = vpop.f32.mrb[4].mxu1 }
  0xfe   :  { %v744_v56 = vpop.f32.mrb[5].mxu0  ;;  %v780_v57 = vpop.f32.mrb[5].mxu1 }
  0xff   :  { %v745_v58 = vadd.f32 %v744_v56, %v743_v54  ;;  %v746_v59 = vpop.f32.mrb[6].mxu0  ;;  %v1039_v60 = vadd.f32 %v780_v57, %v779_v55  ;;  %v782_v61 = vpop.f32.mrb[6].mxu1 }
 0x100   :  { %v747_v62 = vpop.f32.mrb[7].mxu0  ;;  %v783_v63 = vpop.f32.mrb[7].mxu1 }
 0x101   :  { %v748_v0 = vadd.f32 %v747_v62, %v746_v59  ;;  %v1041_v1 = vadd.f32 %v783_v63, %v782_v61  ;;  %v386_v3 = vadd.f32 %v745_v58, %v1046_v2 }
 0x103   :  { %v389_v10 = vadd.f32 %v748_v0, %v1046_v2 }
 0x105   :  { %v749_v4 = vpop.f32.mrb[8].mxu0  ;;  %v801_v5 = vpop.f32.mrb[8].mxu1 }
 0x106   :  { %v483_v7 = vadd.f32 %v801_v5, %v386_v3  ;;  %v750_v8 = vpop.f32.mrb[9].mxu0  ;;  %v474_v9 = vpop.f32.mrb[9].mxu1 }
 0x107   :  { %v751_v11 = vadd.f32 %v750_v8, %v749_v4  ;;  %v475_v12 = vadd.f32 %v474_v9, %v378_v6  ;;  %v752_v13 = vpop.f32.mrb[10].mxu0  ;;  %v802_v14 = vpop.f32.mrb[10].mxu1  ;;  %v434_v9 = vadd.f32 %v1039_v60, %v1046_v2 }
 0x108   :  { %v539_v16 = vmax.f32 %v483_v7, 0.0  ;;  %v486_v17 = vadd.f32 %v802_v14, %v389_v10  ;;  %v753_v18 = vpop.f32.mrb[11].mxu0  ;;  %v477_v19 = vpop.f32.mrb[11].mxu1  ;;  %v426_v14 = vadd.f32 %v1035_v48, %v1046_v2 }
 0x109   :  { %v537_v20 = vmax.f32 %v475_v12, 0.0  ;;  %v754_v21 = vadd.f32 %v753_v18, %v752_v13  ;;  %v478_v22 = vadd.f32 %v477_v19, %v381_v15  ;;  %v394_v31 = vadd.f32 %v751_v11, %v1046_v2 }
 0x10a   :  { %v707_v23 = vpack.c.bf16 %v539_v16, %v539_v16  ;;  %v540_v24 = vmax.f32 %v486_v17, 0.0  ;;  %v437_v18 = vadd.f32 %v1041_v1, %v1046_v2 }
 0x10b   :  { %v705_v25 = vpack.c.bf16 %v537_v20, %v537_v20  ;;  %v538_v26 = vmax.f32 %v478_v22, 0.0  ;;  %v397_v38 = vadd.f32 %v754_v21, %v1046_v2 }
 0x10c   :  { %620 = vst.msk [vmem:[%s1135_s3 + $0x8] sm:$0xf] %vm617_vm1, %v707_v23  ;;  %v708_v27 = vpack.c.bf16 %v540_v24, %v540_v24 }
 0x10d   :  { %618 = vst.msk [vmem:[%s1135_s3] sm:$0xf] %vm617_vm1, %v705_v25  ;;  %v706_v28 = vpack.c.bf16 %v538_v26, %v538_v26  ;;  %v755_v29 = vpop.f32.mrb[12].mxu0  ;;  %v805_v30 = vpop.f32.mrb[12].mxu1 }
 0x10e   :  { %621 = vst.msk [vmem:[%s1135_s3 + $0xc] sm:$0xf] %vm617_vm1, %v708_v27  ;;  %v756_v32 = vpop.f32.mrb[13].mxu0  ;;  %v490_v33 = vpop.f32.mrb[13].mxu1  ;;  %v429_v27 = vadd.f32 %v1037_v53, %v1046_v2 }
 0x10f   :  { %619 = vst.msk [vmem:[%s1135_s3 + $0x4] sm:$0xf] %vm617_vm1, %v706_v28  ;;  %v757_v34 = vadd.f32 %v756_v32, %v755_v29  ;;  %v491_v35 = vadd.f32 %v490_v33, %v394_v31  ;;  %v758_v36 = vpop.f32.mrb[14].mxu0  ;;  %v806_v37 = vpop.f32.mrb[14].mxu1 }
 0x110   :  { %v759_v39 = vpop.f32.mrb[15].mxu0  ;;  %v493_v40 = vpop.f32.mrb[15].mxu1 }
 0x111   :  { %v402_v41 = vadd.f32 %v757_v34, %v1046_v2  ;;  %v541_v42 = vmax.f32 %v491_v35, 0.0  ;;  %v760_v43 = vadd.f32 %v759_v39, %v758_v36  ;;  %v494_v44 = vadd.f32 %v493_v40, %v397_v38 }
 0x113   :  { %v499_v45 = vadd.f32 %v805_v30, %v402_v41  ;;  %v709_v46 = vpack.c.bf16 %v541_v42, %v541_v42  ;;  %v405_v47 = vadd.f32 %v760_v43, %v1046_v2  ;;  %v542_v49 = vmax.f32 %v494_v44, 0.0 }
 0x115   :  { %v543_v50 = vmax.f32 %v499_v45, 0.0  ;;  %622 = vst.msk [vmem:[%s1135_s3 + $0x10] sm:$0xf] %vm617_vm1, %v709_v46  ;;  %v502_v51 = vadd.f32 %v806_v37, %v405_v47  ;;  %v710_v52 = vpack.c.bf16 %v542_v49, %v542_v49  ;;  %v761_v54 = vpop.f32.mrb[16].mxu0  ;;  %v809_v55 = vpop.f32.mrb[16].mxu1 }
 0x116   :  { %v762_v56 = vpop.f32.mrb[17].mxu0  ;;  %v506_v57 = vpop.f32.mrb[17].mxu1 }
 0x117   :  { %v711_v58 = vpack.c.bf16 %v543_v50, %v543_v50  ;;  %v544_v59 = vmax.f32 %v502_v51, 0.0  ;;  %623 = vst.msk [vmem:[%s1135_s3 + $0x14] sm:$0xf] %vm617_vm1, %v710_v52  ;;  %v763_v61 = vadd.f32 %v762_v56, %v761_v54  ;;  %v764_v62 = vpop.f32.mrb[18].mxu0  ;;  %v810_v63 = vpop.f32.mrb[18].mxu1 }
 0x118   :  { %v765_v0 = vpop.f32.mrb[19].mxu0  ;;  %v509_v3 = vpop.f32.mrb[19].mxu1 }
 0x119   :  { %624 = vst.msk [vmem:[%s1135_s3 + $0x18] sm:$0xf] %vm617_vm1, %v711_v58  ;;  %v712_v4 = vpack.c.bf16 %v544_v59, %v544_v59  ;;  %v410_v5 = vadd.f32 %v763_v61, %v1046_v2  ;;  %v766_v6 = vadd.f32 %v765_v0, %v764_v62 }
 0x11b   :  { %625 = vst.msk [vmem:[%s1135_s3 + $0x1c] sm:$0xf] %vm617_vm1, %v712_v4  ;;  %v507_v7 = vadd.f32 %v506_v57, %v410_v5  ;;  %v413_v8 = vadd.f32 %v766_v6, %v1046_v2 }
 0x11d   :  { %v545_v10 = vmax.f32 %v507_v7, 0.0  ;;  %v510_v11 = vadd.f32 %v509_v3, %v413_v8  ;;  %v767_v12 = vpop.f32.mrb[20].mxu0  ;;  %v813_v13 = vpop.f32.mrb[20].mxu1 }
 0x11e   :  { %v531_v15 = vadd.f32 %v813_v13, %v434_v9  ;;  %v768_v16 = vpop.f32.mrb[21].mxu0  ;;  %v522_v17 = vpop.f32.mrb[21].mxu1 }
 0x11f   :  { %v713_v19 = vpack.c.bf16 %v545_v10, %v545_v10  ;;  %v546_v20 = vmax.f32 %v510_v11, 0.0  ;;  %v769_v21 = vadd.f32 %v768_v16, %v767_v12  ;;  %v523_v22 = vadd.f32 %v522_v17, %v426_v14  ;;  %v770_v23 = vpop.f32.mrb[22].mxu0  ;;  %v814_v24 = vpop.f32.mrb[22].mxu1 }
 0x120   :  { %v551_v60 = vmax.f32 %v531_v15, 0.0  ;;  %v534_v25 = vadd.f32 %v814_v24, %v437_v18  ;;  %v771_v26 = vpop.f32.mrb[23].mxu0  ;;  %v525_v28 = vpop.f32.mrb[23].mxu1 }
 0x121   :  { %626 = vst.msk [vmem:[%s1135_s3 + $0x20] sm:$0xf] %vm617_vm1, %v713_v19  ;;  %v714_v48 = vpack.c.bf16 %v546_v20, %v546_v20  ;;  %v418_v1 = vadd.f32 %v769_v21, %v1046_v2  ;;  %v549_v29 = vmax.f32 %v523_v22, 0.0  ;;  %v772_v30 = vadd.f32 %v771_v26, %v770_v23 }
 0x122   :  { %v719_v31 = vpack.c.bf16 %v551_v60, %v551_v60  ;;  %v552_v32 = vmax.f32 %v534_v25, 0.0  ;;  %v526_v33 = vadd.f32 %v525_v28, %v429_v27 }
 0x123   :  { %627 = vst.msk [vmem:[%s1135_s3 + $0x24] sm:$0xf] %vm617_vm1, %v714_v48  ;;  %v515_v53 = vadd.f32 %v809_v55, %v418_v1  ;;  %v717_v34 = vpack.c.bf16 %v549_v29, %v549_v29  ;;  %v421_v35 = vadd.f32 %v772_v30, %v1046_v2 }
 0x124   :  { %632 = vst.msk [vmem:[%s1135_s3 + $0x38] sm:$0xf] %vm617_vm1, %v719_v31  ;;  %v720_v36 = vpack.c.bf16 %v552_v32, %v552_v32  ;;  %v550_v37 = vmax.f32 %v526_v33, 0.0 }
 0x125   :  { %v547_v38 = vmax.f32 %v515_v53, 0.0  ;;  %630 = vst.msk [vmem:[%s1135_s3 + $0x30] sm:$0xf] %vm617_vm1, %v717_v34  ;;  %v518_v39 = vadd.f32 %v810_v63, %v421_v35 }
 0x126   :  { %633 = vst.msk [vmem:[%s1135_s3 + $0x3c] sm:$0xf] %vm617_vm1, %v720_v36  ;;  %v718_v2 = vpack.c.bf16 %v550_v37, %v550_v37 }
 0x127   :  { %v715_v40 = vpack.c.bf16 %v547_v38, %v547_v38  ;;  %v548_v41 = vmax.f32 %v518_v39, 0.0 }
 0x128   :  { %631 = vst.msk [vmem:[%s1135_s3 + $0x34] sm:$0xf] %vm617_vm1, %v718_v2 }
 0x129   :  { %628 = vst.msk [vmem:[%s1135_s3 + $0x28] sm:$0xf] %vm617_vm1, %v715_v40  ;;  %v716_v42 = vpack.c.bf16 %v548_v41, %v548_v41 }
 0x12b   :  { %629 = vst.msk [vmem:[%s1135_s3 + $0x2c] sm:$0xf] %vm617_vm1, %v716_v42 }

// kernel: forward.29
= control target key start
LH: loop header
LB: loop body
LE: loop exit
PB: predicated region body
PF: predicated region fallthrough
CT: control target
= control target key end

     0   :  { %vm97_vm0 = vcmask 261120   ;;  %s696_s1 = inlined_call_operand.vmem [shape: bf16[32,128], index: 1, kind: input, shape index: {}]   ;;  %s697_s0 = inlined_call_operand.vmem [shape: bf16[128,32], index: 0, kind: input, shape index: {}]   ;;  %s698_s3 = inlined_call_operand.vmem [shape: bf16[128,128], index: 3, kind: input, shape index: {}]   ;;  %s699_s2 = inlined_call_operand.vmem [shape: f32[1,128], index: 2, kind: input, shape index: {}]   ;;  %s700_s4 = inlined_call_operand.vmem [shape: bf16[128,128], index: 4, kind: output, shape index: {}]  }
   0x1   :  { %v538_v0 = vld [vmem:[%s696_s1] sm:$0xff]   ;;  %v539_v1 = vld [vmem:[%s696_s1 + $0x8] sm:$0xff]   ;;  %v544_v6 = vld [vmem:[%s697_s0 + $0x10] sm:$0xff]  }
   0x2   :  { %514 = vmatprep.subr.bf16.mxu0 %v538_v0  ;;  %534 = vmatprep.subr.bf16.mxu1 %v538_v0  ;;  %v540_v2 = vld [vmem:[%s697_s0] sm:$0xff]   ;;  %v542_v4 = vld [vmem:[%s697_s0 + $0x8] sm:$0xff]   ;;  %v545_v7 = vld [vmem:[%s697_s0 + $0x30] sm:$0xff]  }
   0x3   :  { %515 = vmatpush3.bf16.msra.mxu0 %v538_v0  ;;  %536 = vmatpush3.bf16.msra.mxu1 %v538_v0  ;;  %v541_v3 = vld [vmem:[%s697_s0 + $0x20] sm:$0xff]   ;;  %v543_v5 = vld [vmem:[%s697_s0 + $0x28] sm:$0xff]   ;;  %v546_v8 = vld [vmem:[%s697_s0 + $0x18] sm:$0xff]  }
   0x4   :  { %516 = vmatprep.subr.bf16.mxu0 %v539_v1  ;;  %535 = vmatprep.subr.bf16.mxu1 %v539_v1  ;;  %v547_v9 = vld [vmem:[%s697_s0 + $0x38] sm:$0xff]   ;;  %v490_v10 = vld [vmem:[%s698_s3 + $0x8] sm:$0xff]   ;;  %v419_v12 = vld [vmem:[%s698_s3] sm:$0xff]  }
   0x5   :  { %518 = vmatprep.mubr.msk.bf16.mxu0 %vm97_vm0, %v540_v2  ;;  %526 = vmatprep.mubr.msk.bf16.mxu1 %vm97_vm0, %v541_v3  ;;  %v494_v11 = vld [vmem:[%s698_s3 + $0x28] sm:$0xff]   ;;  %v493_v13 = vld [vmem:[%s698_s3 + $0x20] sm:$0xff]   ;;  %v631_v15 = vld [vmem:[%s698_s3 + $0x18] sm:$0xff]   ;;  %v424_v17 = vunpack.c.l.bf16 %v490_v10  ;;  %v420_v19 = vunpack.c.l.bf16 %v419_v12  ;;  %v425_v25 = vunpack.c.h.bf16 %v490_v10  ;;  %v421_v27 = vunpack.c.h.bf16 %v419_v12 }
   0x6   :  { %v626_v14 = vld [vmem:[%s699_s2] ss:$0 sm:$0xff]  ;;  %v636_v16 = vld [vmem:[%s698_s3 + $0x38] sm:$0xff]   ;;  %v440_v18 = vunpack.c.l.bf16 %v494_v11  ;;  %v436_v20 = vunpack.c.l.bf16 %v493_v13  ;;  %v641_v21 = vld [vmem:[%s698_s3 + $0x10] sm:$0xff]   ;;  %v441_v26 = vunpack.c.h.bf16 %v494_v11  ;;  %v437_v28 = vunpack.c.h.bf16 %v493_v13 }
   0x7   :  { %517 = vmatpush3.bf16.msra.mxu0 %v539_v1  ;;  %537 = vmatpush3.bf16.msra.mxu1 %v539_v1  ;;  %v646_v22 = vld [vmem:[%s698_s3 + $0x30] sm:$0xff]   ;;  %v432_v33 = vunpack.c.l.bf16 %v631_v15  ;;  %v448_v34 = vunpack.c.l.bf16 %v636_v16  ;;  %v428_v39 = vunpack.c.l.bf16 %v641_v21  ;;  %v433_v53 = vunpack.c.h.bf16 %v631_v15 }
   0x8   :  { %v444_v40 = vunpack.c.l.bf16 %v646_v22  ;;  %v449_v54 = vunpack.c.h.bf16 %v636_v16  ;;  %v429_v57 = vunpack.c.h.bf16 %v641_v21  ;;  %v445_v58 = vunpack.c.h.bf16 %v646_v22 }
   0xa   :  { %519 = vmatmul.mubr.msk.bf16.vlgmr.msra.gmra.mrb[0].mxu0 %vm97_vm0, %v542_v4  ;;  %527 = vmatmul.mubr.msk.bf16.vlgmr.msra.gmra.mrb[0].mxu1 %vm97_vm0, %v543_v5 }
   0xb   :  { %522 = vmatprep.mubr.msk.bf16.mxu0 %vm97_vm0, %v544_v6  ;;  %530 = vmatprep.mubr.msk.bf16.mxu1 %vm97_vm0, %v545_v7 }
  0x12   :  { %523 = vmatmul.mubr.msk.bf16.gmra.mrb[4].mxu0 %vm97_vm0, %v546_v8  ;;  %531 = vmatmul.mubr.msk.bf16.gmra.mrb[4].mxu1 %vm97_vm0, %v547_v9 }
  0xdd   :  { %v520_v23 = vpop.f32.mrb[0].mxu0  ;;  %v528_v24 = vpop.f32.mrb[0].mxu1 }
  0xde   :  { %v165_v29 = vadd.f32 %v520_v23, %v626_v14  ;;  %v197_v30 = vadd.f32 %v528_v24, %v626_v14  ;;  %v156_v31 = vpop.f32.mrb[1].mxu0  ;;  %v188_v32 = vpop.f32.mrb[1].mxu1 }
  0xdf   :  { %v157_v35 = vadd.f32 %v626_v14, %v156_v31  ;;  %v189_v36 = vadd.f32 %v626_v14, %v188_v32  ;;  %v521_v37 = vpop.f32.mrb[2].mxu0  ;;  %v529_v38 = vpop.f32.mrb[2].mxu1 }
  0xe0   :  { %v253_v41 = vadd.f32 %v424_v17, %v165_v29  ;;  %v261_v42 = vadd.f32 %v440_v18, %v197_v30  ;;  %v168_v43 = vadd.f32 %v521_v37, %v626_v14  ;;  %v200_v44 = vadd.f32 %v529_v38, %v626_v14  ;;  %v159_v45 = vpop.f32.mrb[3].mxu0  ;;  %v191_v46 = vpop.f32.mrb[3].mxu1 }
  0xe1   :  { %v251_v47 = vadd.f32 %v420_v19, %v157_v35  ;;  %v259_v48 = vadd.f32 %v436_v20, %v189_v36  ;;  %v160_v49 = vadd.f32 %v626_v14, %v159_v45  ;;  %v192_v50 = vadd.f32 %v626_v14, %v191_v46 }
  0xe2   :  { %v254_v51 = vadd.f32 %v425_v25, %v168_v43  ;;  %v262_v52 = vadd.f32 %v441_v26, %v200_v44  ;;  %v269_v59 = vmax.f32 %v253_v41, 0.0  ;;  %v277_v60 = vmax.f32 %v261_v42, 0.0 }
  0xe3   :  { %v252_v55 = vadd.f32 %v421_v27, %v160_v49  ;;  %v260_v56 = vadd.f32 %v437_v28, %v192_v50  ;;  %v267_v63 = vmax.f32 %v251_v47, 0.0  ;;  %v275_v0 = vmax.f32 %v259_v48, 0.0 }
  0xe4   :  { %v270_v61 = vmax.f32 %v254_v51, 0.0  ;;  %v278_v62 = vmax.f32 %v262_v52, 0.0 }
  0xe5   :  { %v268_v1 = vmax.f32 %v252_v55, 0.0  ;;  %v276_v2 = vmax.f32 %v260_v56, 0.0  ;;  %v524_v3 = vpop.f32.mrb[4].mxu0  ;;  %v532_v4 = vpop.f32.mrb[4].mxu1 }
  0xe6   :  { %v458_v5 = vpack.c.bf16 %v270_v61, %v269_v59  ;;  %v478_v6 = vpack.c.bf16 %v278_v62, %v277_v60  ;;  %v181_v7 = vadd.f32 %v524_v3, %v626_v14  ;;  %v213_v8 = vadd.f32 %v532_v4, %v626_v14  ;;  %v172_v9 = vpop.f32.mrb[5].mxu0  ;;  %v204_v10 = vpop.f32.mrb[5].mxu1 }
  0xe7   :  { %v453_v11 = vpack.c.bf16 %v268_v1, %v267_v63  ;;  %v473_v12 = vpack.c.bf16 %v276_v2, %v275_v0  ;;  %v173_v13 = vadd.f32 %v626_v14, %v172_v9  ;;  %v205_v15 = vadd.f32 %v626_v14, %v204_v10  ;;  %v525_v16 = vpop.f32.mrb[6].mxu0  ;;  %v533_v17 = vpop.f32.mrb[6].mxu1 }
  0xe8   :  { %497 = vst [vmem:[%s700_s4 + $0x8] sm:$0xff] %v458_v5   ;;  %501 = vst [vmem:[%s700_s4 + $0x28] sm:$0xff] %v478_v6   ;;  %v257_v18 = vadd.f32 %v432_v33, %v181_v7  ;;  %v265_v19 = vadd.f32 %v448_v34, %v213_v8  ;;  %v184_v20 = vadd.f32 %v525_v16, %v626_v14  ;;  %v175_v22 = vpop.f32.mrb[7].mxu0  ;;  %v207_v23 = vpop.f32.mrb[7].mxu1 }
  0xe9   :  { %v216_v21 = vadd.f32 %v533_v17, %v626_v14  ;;  %454 = vst [vmem:[%s700_s4] sm:$0xff] %v453_v11   ;;  %500 = vst [vmem:[%s700_s4 + $0x20] sm:$0xff] %v473_v12   ;;  %v255_v24 = vadd.f32 %v428_v39, %v173_v13  ;;  %v263_v25 = vadd.f32 %v444_v40, %v205_v15 }
  0xea   :  { %v176_v26 = vadd.f32 %v626_v14, %v175_v22  ;;  %v208_v27 = vadd.f32 %v626_v14, %v207_v23  ;;  %v258_v28 = vadd.f32 %v433_v53, %v184_v20  ;;  %v273_v32 = vmax.f32 %v257_v18, 0.0 }
  0xeb   :  { %v266_v29 = vadd.f32 %v449_v54, %v216_v21  ;;  %v281_v33 = vmax.f32 %v265_v19, 0.0  ;;  %v271_v36 = vmax.f32 %v255_v24, 0.0  ;;  %v279_v37 = vmax.f32 %v263_v25, 0.0 }
  0xec   :  { %v256_v30 = vadd.f32 %v429_v57, %v176_v26  ;;  %v264_v31 = vadd.f32 %v445_v58, %v208_v27  ;;  %v274_v34 = vmax.f32 %v258_v28, 0.0 }
  0xed   :  { %v282_v35 = vmax.f32 %v266_v29, 0.0 }
  0xee   :  { %v272_v38 = vmax.f32 %v256_v30, 0.0  ;;  %v280_v41 = vmax.f32 %v264_v31, 0.0  ;;  %v468_v42 = vpack.c.bf16 %v274_v34, %v273_v32 }
  0xef   :  { %v488_v43 = vpack.c.bf16 %v282_v35, %v281_v33 }
  0xf0   :  { %v463_v39 = vpack.c.bf16 %v272_v38, %v271_v36  ;;  %v483_v40 = vpack.c.bf16 %v280_v41, %v279_v37  ;;  %499 = vst [vmem:[%s700_s4 + $0x18] sm:$0xff] %v468_v42  }
  0xf1   :  { %503 = vst [vmem:[%s700_s4 + $0x38] sm:$0xff] %v488_v43  }
  0xf2   :  { %498 = vst [vmem:[%s700_s4 + $0x10] sm:$0xff] %v463_v39   ;;  %502 = vst [vmem:[%s700_s4 + $0x30] sm:$0xff] %v483_v40  }

// kernel: forward.30
= control target key start
LH: loop header
LB: loop body
LE: loop exit
PB: predicated region body
PF: predicated region fallthrough
CT: control target
= control target key end

     0   :  { %vm327_vm0 = vcmask 519168   ;;  %s612_s1 = inlined_call_operand.vmem [shape: bf16[128,64], index: 1, kind: input, shape index: {}]   ;;  %s613_s0 = inlined_call_operand.vmem [shape: bf16[128,128], index: 0, kind: input, shape index: {}]   ;;  %s614_s2 = inlined_call_operand.vmem [shape: f32[1,64], index: 2, kind: input, shape index: {}]   ;;  %s615_s3 = inlined_call_operand.vmem [shape: bf16[128,64], index: 3, kind: output, shape index: {}]  }
   0x1   :  { %v461_v0 = vld [vmem:[%s612_s1] sm:$0xff]   ;;  %v462_v1 = vld [vmem:[%s612_s1 + $0x8] sm:$0xff]   ;;  %v463_v2 = vld [vmem:[%s612_s1 + $0x10] sm:$0xff]  }
   0x2   :  { %413 = vmatprep.subr.bf16.mxu0 %v461_v0  ;;  %445 = vmatprep.subr.bf16.mxu1 %v461_v0  ;;  %v464_v3 = vld [vmem:[%s612_s1 + $0x18] sm:$0xff]   ;;  %v469_v4 = vld [vmem:[%s613_s0] sm:$0xff]   ;;  %v466_v7 = vld [vmem:[%s612_s1 + $0x28] sm:$0xff]  }
   0x3   :  { %414 = vmatpush3.bf16.msra.mxu0 %v461_v0  ;;  %453 = vmatpush3.bf16.msra.mxu1 %v461_v0  ;;  %v470_v5 = vld [vmem:[%s613_s0 + $0x20] sm:$0xff]   ;;  %v467_v8 = vld [vmem:[%s612_s1 + $0x30] sm:$0xff]   ;;  %v468_v9 = vld [vmem:[%s612_s1 + $0x38] sm:$0xff]  }
   0x4   :  { %415 = vmatprep.subr.bf16.mxu0 %v462_v1  ;;  %446 = vmatprep.subr.bf16.mxu1 %v462_v1  ;;  %v465_v6 = vld [vmem:[%s612_s1 + $0x20] sm:$0xff]   ;;  %v471_v10 = vld [vmem:[%s613_s0 + $0x8] sm:$0xff]   ;;  %v473_v12 = vld [vmem:[%s613_s0 + $0x10] sm:$0xff]  }
   0x5   :  { %429 = vmatprep.mubr.bf16.mxu0 %v469_v4  ;;  %437 = vmatprep.mubr.bf16.mxu1 %v470_v5  ;;  %v472_v11 = vld [vmem:[%s613_s0 + $0x28] sm:$0xff]   ;;  %v474_v13 = vld [vmem:[%s613_s0 + $0x30] sm:$0xff]   ;;  %v475_v14 = vld [vmem:[%s613_s0 + $0x18] sm:$0xff]  }
   0x6   :  { %v476_v15 = vld [vmem:[%s613_s0 + $0x38] sm:$0xff]   ;;  %v348_v16 = vld [vmem:[%s614_s2] ss:$0 sm:$0xff] }
   0x7   :  { %416 = vmatpush3.bf16.msra.mxu0 %v462_v1  ;;  %454 = vmatpush3.bf16.msra.mxu1 %v462_v1 }
   0x8   :  { %417 = vmatprep.subr.bf16.mxu0 %v463_v2  ;;  %447 = vmatprep.subr.bf16.mxu1 %v463_v2 }
   0xb   :  { %418 = vmatpush3.bf16.msra.mxu0 %v463_v2  ;;  %455 = vmatpush3.bf16.msra.mxu1 %v463_v2 }
   0xc   :  { %419 = vmatprep.subr.bf16.mxu0 %v464_v3  ;;  %448 = vmatprep.subr.bf16.mxu1 %v464_v3 }
   0xf   :  { %420 = vmatpush3.bf16.msra.mxu0 %v464_v3  ;;  %456 = vmatpush3.bf16.msra.mxu1 %v464_v3 }
  0x10   :  { %421 = vmatprep.subr.bf16.mxu0 %v465_v6  ;;  %449 = vmatprep.subr.bf16.mxu1 %v465_v6 }
  0x13   :  { %422 = vmatpush3.bf16.msra.mxu0 %v465_v6  ;;  %457 = vmatpush3.bf16.msra.mxu1 %v465_v6 }
  0x14   :  { %423 = vmatprep.subr.bf16.mxu0 %v466_v7  ;;  %450 = vmatprep.subr.bf16.mxu1 %v466_v7 }
  0x17   :  { %424 = vmatpush3.bf16.msra.mxu0 %v466_v7  ;;  %458 = vmatpush3.bf16.msra.mxu1 %v466_v7 }
  0x18   :  { %425 = vmatprep.subr.bf16.mxu0 %v467_v8  ;;  %451 = vmatprep.subr.bf16.mxu1 %v467_v8 }
  0x1b   :  { %426 = vmatpush3.bf16.msra.mxu0 %v467_v8  ;;  %459 = vmatpush3.bf16.msra.mxu1 %v467_v8 }
  0x1c   :  { %427 = vmatprep.subr.bf16.mxu0 %v468_v9  ;;  %452 = vmatprep.subr.bf16.mxu1 %v468_v9 }
  0x1f   :  { %428 = vmatpush3.bf16.msra.mxu0 %v468_v9  ;;  %460 = vmatpush3.bf16.msra.mxu1 %v468_v9 }
  0x22   :  { %430 = vmatmul.mubr.bf16.vlgmr.msra.gmra.mrb[0].mxu0 %v471_v10  ;;  %438 = vmatmul.mubr.bf16.vlgmr.msra.gmra.mrb[0].mxu1 %v472_v11 }
  0x23   :  { %433 = vmatprep.mubr.bf16.mxu0 %v473_v12  ;;  %441 = vmatprep.mubr.bf16.mxu1 %v474_v13 }
  0x2a   :  { %434 = vmatmul.mubr.bf16.gmra.mrb[4].mxu0 %v475_v14  ;;  %442 = vmatmul.mubr.bf16.gmra.mrb[4].mxu1 %v476_v15 }
  0xf5   :  { %v431_v17 = vpop.f32.mrb[0].mxu0  ;;  %v439_v18 = vpop.f32.mrb[0].mxu1 }
  0xf6   :  { %v193_v19 = vadd.f32 %v431_v17, %v348_v16  ;;  %v225_v20 = vadd.f32 %v439_v18, %v348_v16  ;;  %v184_v21 = vpop.f32.mrb[1].mxu0  ;;  %v216_v22 = vpop.f32.mrb[1].mxu1 }
  0xf7   :  { %v185_v23 = vadd.f32 %v348_v16, %v184_v21  ;;  %v217_v24 = vadd.f32 %v348_v16, %v216_v22  ;;  %v432_v25 = vpop.f32.mrb[2].mxu0  ;;  %v440_v26 = vpop.f32.mrb[2].mxu1 }
  0xf8   :  { %v249_v27 = vmax.f32 %v193_v19, 0.0  ;;  %v257_v28 = vmax.f32 %v225_v20, 0.0  ;;  %v196_v29 = vadd.f32 %v432_v25, %v348_v16  ;;  %v228_v30 = vadd.f32 %v440_v26, %v348_v16  ;;  %v187_v31 = vpop.f32.mrb[3].mxu0  ;;  %v219_v32 = vpop.f32.mrb[3].mxu1 }
  0xf9   :  { %v247_v33 = vmax.f32 %v185_v23, 0.0  ;;  %v255_v34 = vmax.f32 %v217_v24, 0.0  ;;  %v188_v35 = vadd.f32 %v348_v16, %v187_v31  ;;  %v220_v36 = vadd.f32 %v348_v16, %v219_v32 }
  0xfa   :  { %v383_v37 = vpack.c.bf16 %v249_v27, %v249_v27  ;;  %v391_v38 = vpack.c.bf16 %v257_v28, %v257_v28  ;;  %v250_v39 = vmax.f32 %v196_v29, 0.0  ;;  %v258_v40 = vmax.f32 %v228_v30, 0.0 }
  0xfb   :  { %v381_v41 = vpack.c.bf16 %v247_v33, %v247_v33  ;;  %v389_v42 = vpack.c.bf16 %v255_v34, %v255_v34  ;;  %v248_v43 = vmax.f32 %v188_v35, 0.0  ;;  %v256_v44 = vmax.f32 %v220_v36, 0.0 }
  0xfc   :  { %330 = vst.msk [vmem:[%s615_s3 + $0x8] sm:$0xf] %vm327_vm0, %v383_v37  ;;  %338 = vst.msk [vmem:[%s615_s3 + $0x28] sm:$0xf] %vm327_vm0, %v391_v38  ;;  %v384_v45 = vpack.c.bf16 %v250_v39, %v250_v39  ;;  %v392_v46 = vpack.c.bf16 %v258_v40, %v258_v40 }
  0xfd   :  { %328 = vst.msk [vmem:[%s615_s3] sm:$0xf] %vm327_vm0, %v381_v41  ;;  %336 = vst.msk [vmem:[%s615_s3 + $0x20] sm:$0xf] %vm327_vm0, %v389_v42  ;;  %v382_v47 = vpack.c.bf16 %v248_v43, %v248_v43  ;;  %v390_v48 = vpack.c.bf16 %v256_v44, %v256_v44  ;;  %v435_v49 = vpop.f32.mrb[4].mxu0  ;;  %v443_v50 = vpop.f32.mrb[4].mxu1 }
  0xfe   :  { %331 = vst.msk [vmem:[%s615_s3 + $0xc] sm:$0xf] %vm327_vm0, %v384_v45  ;;  %339 = vst.msk [vmem:[%s615_s3 + $0x2c] sm:$0xf] %vm327_vm0, %v392_v46  ;;  %v209_v51 = vadd.f32 %v435_v49, %v348_v16  ;;  %v241_v52 = vadd.f32 %v443_v50, %v348_v16  ;;  %v200_v53 = vpop.f32.mrb[5].mxu0  ;;  %v232_v54 = vpop.f32.mrb[5].mxu1 }
  0xff   :  { %329 = vst.msk [vmem:[%s615_s3 + $0x4] sm:$0xf] %vm327_vm0, %v382_v47  ;;  %337 = vst.msk [vmem:[%s615_s3 + $0x24] sm:$0xf] %vm327_vm0, %v390_v48  ;;  %v201_v55 = vadd.f32 %v348_v16, %v200_v53  ;;  %v233_v56 = vadd.f32 %v348_v16, %v232_v54  ;;  %v436_v57 = vpop.f32.mrb[6].mxu0  ;;  %v444_v58 = vpop.f32.mrb[6].mxu1 }
 0x100   :  { %v253_v59 = vmax.f32 %v209_v51, 0.0  ;;  %v261_v60 = vmax.f32 %v241_v52, 0.0  ;;  %v212_v61 = vadd.f32 %v436_v57, %v348_v16  ;;  %v244_v62 = vadd.f32 %v444_v58, %v348_v16  ;;  %v203_v63 = vpop.f32.mrb[7].mxu0  ;;  %v235_v0 = vpop.f32.mrb[7].mxu1 }
 0x101   :  { %v251_v1 = vmax.f32 %v201_v55, 0.0  ;;  %v259_v2 = vmax.f32 %v233_v56, 0.0  ;;  %v204_v3 = vadd.f32 %v348_v16, %v203_v63  ;;  %v236_v4 = vadd.f32 %v348_v16, %v235_v0 }
 0x102   :  { %v387_v5 = vpack.c.bf16 %v253_v59, %v253_v59  ;;  %v395_v6 = vpack.c.bf16 %v261_v60, %v261_v60  ;;  %v254_v7 = vmax.f32 %v212_v61, 0.0  ;;  %v262_v8 = vmax.f32 %v244_v62, 0.0 }
 0x103   :  { %v385_v9 = vpack.c.bf16 %v251_v1, %v251_v1  ;;  %v393_v10 = vpack.c.bf16 %v259_v2, %v259_v2  ;;  %v252_v11 = vmax.f32 %v204_v3, 0.0  ;;  %v260_v12 = vmax.f32 %v236_v4, 0.0 }
 0x104   :  { %334 = vst.msk [vmem:[%s615_s3 + $0x18] sm:$0xf] %vm327_vm0, %v387_v5  ;;  %342 = vst.msk [vmem:[%s615_s3 + $0x38] sm:$0xf] %vm327_vm0, %v395_v6  ;;  %v388_v13 = vpack.c.bf16 %v254_v7, %v254_v7  ;;  %v396_v14 = vpack.c.bf16 %v262_v8, %v262_v8 }
 0x105   :  { %332 = vst.msk [vmem:[%s615_s3 + $0x10] sm:$0xf] %vm327_vm0, %v385_v9  ;;  %340 = vst.msk [vmem:[%s615_s3 + $0x30] sm:$0xf] %vm327_vm0, %v393_v10  ;;  %v386_v15 = vpack.c.bf16 %v252_v11, %v252_v11  ;;  %v394_v16 = vpack.c.bf16 %v260_v12, %v260_v12 }
 0x106   :  { %335 = vst.msk [vmem:[%s615_s3 + $0x1c] sm:$0xf] %vm327_vm0, %v388_v13  ;;  %343 = vst.msk [vmem:[%s615_s3 + $0x3c] sm:$0xf] %vm327_vm0, %v396_v14 }
 0x107   :  { %333 = vst.msk [vmem:[%s615_s3 + $0x14] sm:$0xf] %vm327_vm0, %v386_v15  ;;  %341 = vst.msk [vmem:[%s615_s3 + $0x34] sm:$0xf] %vm327_vm0, %v394_v16 }

// kernel: forward.31
= control target key start
LH: loop header
LB: loop body
LE: loop exit
PB: predicated region body
PF: predicated region fallthrough
CT: control target
= control target key end

     0   :  { %vm372_vm0 = vcmask 523264   ;;  %vm546_vm1 = vcmask 519168   ;;  %s909_s1 = inlined_call_operand.vmem [shape: bf16[576,64], index: 1, kind: input, shape index: {}]   ;;  %s910_s0 = inlined_call_operand.vmem [shape: bf16[32,576], index: 0, kind: input, shape index: {}]   ;;  %s911_s2 = inlined_call_operand.vmem [shape: f32[1,64], index: 2, kind: input, shape index: {}]   ;;  %s912_s3 = inlined_call_operand.vmem [shape: bf16[32,64], index: 3, kind: output, shape index: {}]  }
   0x1   :  { %v686_v0 = vld [vmem:[%s909_s1 + $0x40] sm:$0xff]   ;;  %v690_v4 = vld [vmem:[%s909_s1 + $0x48] sm:$0xff]   ;;  %v694_v8 = vld [vmem:[%s909_s1 + $0x50] sm:$0xff]  }
   0x2   :  { %v687_v1 = vld [vmem:[%s909_s1] sm:$0xff]   ;;  %612 = vmatprep.subr.bf16.mxu0 %v686_v0  ;;  %v691_v5 = vld [vmem:[%s909_s1 + $0x8] sm:$0xff]   ;;  %v695_v9 = vld [vmem:[%s909_s1 + $0x10] sm:$0xff]  }
   0x3   :  { %v688_v2 = vld [vmem:[%s909_s1 + $0xc0] sm:$0xff]   ;;  %613 = vmatpush3.bf16.msra.mxu0 %v687_v1  ;;  %v692_v6 = vld [vmem:[%s909_s1 + $0xc8] sm:$0xff]   ;;  %v696_v10 = vld [vmem:[%s909_s1 + $0xd0] sm:$0xff]  }
   0x4   :  { %v689_v3 = vld [vmem:[%s909_s1 + $0x80] sm:$0xff]   ;;  %640 = vmatprep.subr.bf16.mxu1 %v688_v2  ;;  %614 = vmatprep.subr.bf16.mxu0 %v690_v4  ;;  %v693_v7 = vld [vmem:[%s909_s1 + $0x88] sm:$0xff]   ;;  %v697_v11 = vld [vmem:[%s909_s1 + $0x90] sm:$0xff]  }
   0x5   :  { %641 = vmatpush3.bf16.msra.mxu1 %v689_v3  ;;  %v698_v12 = vld [vmem:[%s909_s1 + $0x58] sm:$0xff]   ;;  %v702_v16 = vld [vmem:[%s909_s1 + $0x60] sm:$0xff]   ;;  %v706_v20 = vld [vmem:[%s909_s1 + $0x68] sm:$0xff]  }
   0x6   :  { %642 = vmatprep.subr.bf16.mxu1 %v692_v6  ;;  %v699_v13 = vld [vmem:[%s909_s1 + $0x18] sm:$0xff]   ;;  %v703_v17 = vld [vmem:[%s909_s1 + $0x20] sm:$0xff]   ;;  %v707_v21 = vld [vmem:[%s909_s1 + $0x28] sm:$0xff]  }
   0x7   :  { %615 = vmatpush3.bf16.msra.mxu0 %v691_v5  ;;  %v700_v14 = vld [vmem:[%s909_s1 + $0xd8] sm:$0xff]   ;;  %v704_v18 = vld [vmem:[%s909_s1 + $0xe0] sm:$0xff]   ;;  %v708_v22 = vld [vmem:[%s909_s1 + $0xe8] sm:$0xff]  }
   0x8   :  { %616 = vmatprep.subr.bf16.mxu0 %v694_v8  ;;  %v701_v15 = vld [vmem:[%s909_s1 + $0x98] sm:$0xff]   ;;  %v705_v19 = vld [vmem:[%s909_s1 + $0xa0] sm:$0xff]   ;;  %v709_v23 = vld [vmem:[%s909_s1 + $0xa8] sm:$0xff]  }
   0x9   :  { %643 = vmatpush3.bf16.msra.mxu1 %v693_v7  ;;  %v710_v24 = vld [vmem:[%s909_s1 + $0x70] sm:$0xff]   ;;  %v714_v28 = vld [vmem:[%s909_s1 + $0x78] sm:$0xff]   ;;  %v721_v34 = vld [vmem:[%s909_s1 + $0x100] sm:$0xff]  }
   0xa   :  { %644 = vmatprep.subr.bf16.mxu1 %v696_v10  ;;  %v711_v25 = vld [vmem:[%s909_s1 + $0x30] sm:$0xff]   ;;  %v715_v29 = vld [vmem:[%s909_s1 + $0x38] sm:$0xff]   ;;  %v724_v36 = vld [vmem:[%s910_s0 + $0xc] ss:$20 sps:$4 sm:$0xff]  }
   0xb   :  { %617 = vmatpush3.bf16.msra.mxu0 %v695_v9  ;;  %v712_v26 = vld [vmem:[%s909_s1 + $0xf0] sm:$0xff]   ;;  %v716_v30 = vld [vmem:[%s909_s1 + $0xf8] sm:$0xff]   ;;  %v725_v37 = vld [vmem:[%s909_s1 + $0x108] sm:$0xff]   ;;  %460 = vmatprep.mubr.bf16.mxu1 %v724_v36 }
   0xc   :  { %618 = vmatprep.subr.bf16.mxu0 %v698_v12  ;;  %v713_v27 = vld [vmem:[%s909_s1 + $0xb0] sm:$0xff]   ;;  %v719_v32 = vld [vmem:[%s910_s0 + $0x4] ss:$20 sps:$4 sm:$0xff]   ;;  %v722_v35 = vld [vmem:[%s910_s0 + $0x8] ss:$20 sps:$4 sm:$0xff]  }
   0xd   :  { %645 = vmatpush3.bf16.msra.mxu1 %v697_v11  ;;  %v717_v31 = vld [vmem:[%s910_s0] ss:$20 sps:$4 sm:$0xff]   ;;  %v720_v33 = vld [vmem:[%s909_s1 + $0xb8] sm:$0xff]   ;;  %411 = vmatprep.mubr.bf16.mxu0 %v719_v32  ;;  %v732_v42 = vld [vmem:[%s910_s0 + $0x30] ss:$20 sps:$4 sm:$0xff]  }
   0xe   :  { %646 = vmatprep.subr.bf16.mxu1 %v700_v14  ;;  %v726_v38 = vld [vmem:[%s910_s0 + $0x2c] ss:$20 sps:$4 sm:$0xff]   ;;  %v728_v39 = vld [vmem:[%s910_s0 + $0x28] ss:$20 sps:$4 sm:$0xff]   ;;  %v729_v40 = vld [vmem:[%s909_s1 + $0x110] sm:$0xff]  }
   0xf   :  { %619 = vmatpush3.bf16.msra.mxu0 %v699_v13  ;;  %v730_v41 = vld [vmem:[%s910_s0 + $0x34] ss:$20 sps:$4 sm:$0xff]   ;;  %v733_v43 = vld [vmem:[%s909_s1 + $0x118] sm:$0xff]   ;;  %v734_v44 = vld [vmem:[%s910_s0 + $0x10] ss:$20 sps:$4 sm:$0xff]  }
  0x10   :  { %620 = vmatprep.subr.bf16.mxu0 %v702_v16  ;;  %v735_v45 = vld [vmem:[%s910_s0 + $0x38] ss:$20 sps:$4 sm:$0xff]   ;;  %v555_v47 = vld [vmem:[%s911_s2] ss:$0 sm:$0xff] }
  0x11   :  { %647 = vmatpush3.bf16.msra.mxu1 %v701_v15 }
  0x12   :  { %648 = vmatprep.subr.bf16.mxu1 %v704_v18 }
  0x13   :  { %621 = vmatpush3.bf16.msra.mxu0 %v703_v17 }
  0x14   :  { %622 = vmatprep.subr.bf16.mxu0 %v706_v20 }
  0x15   :  { %649 = vmatpush3.bf16.msra.mxu1 %v705_v19 }
  0x16   :  { %650 = vmatprep.subr.bf16.mxu1 %v708_v22 }
  0x17   :  { %623 = vmatpush3.bf16.msra.mxu0 %v707_v21 }
  0x18   :  { %624 = vmatprep.subr.bf16.mxu0 %v710_v24 }
  0x19   :  { %651 = vmatpush3.bf16.msra.mxu1 %v709_v23 }
  0x1a   :  { %652 = vmatprep.subr.bf16.mxu1 %v712_v26 }
  0x1b   :  { %625 = vmatpush3.bf16.msra.mxu0 %v711_v25 }
  0x1c   :  { %626 = vmatprep.subr.bf16.mxu0 %v714_v28 }
  0x1d   :  { %653 = vmatpush3.bf16.msra.mxu1 %v713_v27 }
  0x1e   :  { %654 = vmatprep.subr.bf16.mxu1 %v716_v30 }
  0x1f   :  { %627 = vmatpush3.bf16.msra.mxu0 %v715_v29 }
  0x20   :  { %674 = vmatprep.subr.bf16.mxu0 %v721_v34 }
  0x21   :  { %655 = vmatpush3.bf16.msra.mxu1 %v720_v33 }
  0x22   :  { %412 = vmatmul.mubr.bf16.vlgmr.msra.gmra.mrb[0].mxu0 %v717_v31 }
  0x23   :  { %675 = vmatpush3.bf16.msra.mxu0 %v721_v34  ;;  %419 = vmatprep.mubr.bf16.mxu0 %v726_v38 }
  0x24   :  { %461 = vmatmul.mubr.bf16.vlgmr.msra.gmra.mrb[0].mxu1 %v722_v35  ;;  %676 = vmatprep.subr.bf16.mxu0 %v725_v37 }
  0x25   :  { %468 = vmatprep.mubr.bf16.mxu1 %v730_v41 }
  0x27   :  { %677 = vmatpush3.bf16.msra.mxu0 %v725_v37 }
  0x28   :  { %678 = vmatprep.subr.bf16.mxu0 %v729_v40 }
  0x2a   :  { %420 = vmatmul.mubr.bf16.gmra.mrb[4].mxu0 %v728_v39 }
  0x2b   :  { %682 = vmatprep.mubr.msk.bf16.mxu0 %vm372_vm0, %v734_v44  ;;  %679 = vmatpush3.bf16.msra.mxu0 %v729_v40 }
  0x2c   :  { %469 = vmatmul.mubr.bf16.gmra.mrb[4].mxu1 %v732_v42  ;;  %680 = vmatprep.subr.bf16.mxu0 %v733_v43 }
  0x2f   :  { %681 = vmatpush3.bf16.msra.mxu0 %v733_v43 }
  0x32   :  { %683 = vmatmul.mubr.msk.bf16.vlgmr.msra.gmra.mrb[8].mxu0 %vm372_vm0, %v735_v45 }
  0xf5   :  { %v628_v46 = vpop.f32.mrb[0].mxu0 }
  0xf6   :  { %v629_v48 = vpop.f32.mrb[1].mxu0 }
  0xf7   :  { %v630_v49 = vadd.f32 %v629_v48, %v628_v46  ;;  %v631_v50 = vpop.f32.mrb[2].mxu0  ;;  %v656_v51 = vpop.f32.mrb[0].mxu1 }
  0xf8   :  { %v632_v52 = vpop.f32.mrb[3].mxu0  ;;  %v657_v55 = vpop.f32.mrb[1].mxu1 }
  0xf9   :  { %v414_v53 = vadd.f32 %v630_v49, %v555_v47  ;;  %v633_v54 = vadd.f32 %v632_v52, %v631_v50  ;;  %v658_v56 = vadd.f32 %v657_v55, %v656_v51  ;;  %v659_v57 = vpop.f32.mrb[2].mxu1 }
  0xfa   :  { %v660_v59 = vpop.f32.mrb[3].mxu1 }
  0xfb   :  { %v417_v58 = vadd.f32 %v633_v54, %v555_v47  ;;  %v661_v60 = vadd.f32 %v660_v59, %v659_v57  ;;  %v463_v61 = vadd.f32 %v658_v56, %v414_v53 }
  0xfd   :  { %v634_v62 = vpop.f32.mrb[4].mxu0  ;;  %v466_v0 = vadd.f32 %v661_v60, %v417_v58 }
  0xfe   :  { %v635_v63 = vpop.f32.mrb[5].mxu0 }
  0xff   :  { %v636_v1 = vadd.f32 %v635_v63, %v634_v62  ;;  %v637_v2 = vpop.f32.mrb[6].mxu0  ;;  %v662_v3 = vpop.f32.mrb[4].mxu1 }
 0x100   :  { %v638_v4 = vpop.f32.mrb[7].mxu0  ;;  %v663_v7 = vpop.f32.mrb[5].mxu1 }
 0x101   :  { %v422_v5 = vadd.f32 %v636_v1, %v555_v47  ;;  %v639_v6 = vadd.f32 %v638_v4, %v637_v2  ;;  %v664_v8 = vadd.f32 %v663_v7, %v662_v3  ;;  %v665_v9 = vpop.f32.mrb[6].mxu1 }
 0x102   :  { %v666_v11 = vpop.f32.mrb[7].mxu1 }
 0x103   :  { %v425_v10 = vadd.f32 %v639_v6, %v555_v47  ;;  %v667_v12 = vadd.f32 %v666_v11, %v665_v9  ;;  %v471_v13 = vadd.f32 %v664_v8, %v422_v5 }
 0x105   :  { %v684_v14 = vpop.f32.mrb[8].mxu0  ;;  %v474_v15 = vadd.f32 %v667_v12, %v425_v10 }
 0x106   :  { %v520_v16 = vadd.f32 %v684_v14, %v471_v13  ;;  %v511_v17 = vpop.f32.mrb[9].mxu0 }
 0x107   :  { %v512_v18 = vadd.f32 %v511_v17, %v463_v61  ;;  %v685_v19 = vpop.f32.mrb[10].mxu0 }
 0x108   :  { %v528_v20 = vmax.f32 %v520_v16, 0.0  ;;  %v523_v21 = vadd.f32 %v685_v19, %v474_v15  ;;  %v514_v22 = vpop.f32.mrb[11].mxu0 }
 0x109   :  { %v526_v23 = vmax.f32 %v512_v18, 0.0  ;;  %v515_v24 = vadd.f32 %v514_v22, %v466_v0 }
 0x10a   :  { %v610_v25 = vpack.c.bf16 %v528_v20, %v528_v20  ;;  %v529_v26 = vmax.f32 %v523_v21, 0.0 }
 0x10b   :  { %v608_v27 = vpack.c.bf16 %v526_v23, %v526_v23  ;;  %v527_v28 = vmax.f32 %v515_v24, 0.0 }
 0x10c   :  { %549 = vst.msk [vmem:[%s912_s3 + $0x8] sm:$0xf] %vm546_vm1, %v610_v25  ;;  %v611_v29 = vpack.c.bf16 %v529_v26, %v529_v26 }
 0x10d   :  { %547 = vst.msk [vmem:[%s912_s3] sm:$0xf] %vm546_vm1, %v608_v27  ;;  %v609_v30 = vpack.c.bf16 %v527_v28, %v527_v28 }
 0x10e   :  { %550 = vst.msk [vmem:[%s912_s3 + $0xc] sm:$0xf] %vm546_vm1, %v611_v29 }
 0x10f   :  { %548 = vst.msk [vmem:[%s912_s3 + $0x4] sm:$0xf] %vm546_vm1, %v609_v30 }

// kernel: forward.33
= control target key start
LH: loop header
LB: loop body
LE: loop exit
PB: predicated region body
PF: predicated region fallthrough
CT: control target
= control target key end

     0   :  { %v255_v1 = vmov 0   ;;  %vm92_vm0 = vcmask 523264   ;;  %v32_v11 = vlaneseq  ;;  %s338_s1 = inlined_call_operand.vmem [shape: bf16[64,256], index: 1, kind: input, shape index: {}]   ;;  %s339_s0 = inlined_call_operand.vmem [shape: bf16[32,64], index: 0, kind: input, shape index: {}]   ;;  %s340_s2 = inlined_call_operand.vmem [shape: f32[1,256], index: 2, kind: input, shape index: {}]   ;;  %s341_s3 = inlined_call_operand.vmem [shape: bf16[32,256], index: 3, kind: input, shape index: {}]   ;;  %s342_s4 = inlined_call_operand.vmem [shape: bf16[32,256], index: 4, kind: output, shape index: {}]  }
   0x1   :  { %v241_v0 = vld [vmem:[%s338_s1 + $0x4] ss:$8 sps:$4 sm:$0xff]   ;;  %131 = vmatprep.mubr.bf16.mxu0 %v255_v1  ;;  %141 = vmatprep.mubr.bf16.mxu1 %v255_v1  ;;  %v243_v2 = vld [vmem:[%s338_s1] ss:$8 sps:$4 sm:$0xff]   ;;  %v244_v3 = vld [vmem:[%s338_s1 + $0x14] ss:$8 sps:$4 sm:$0xff]  }
   0x2   :  { %99 = vmatprep.subr.bf16.mxu0 %v241_v0  ;;  %232 = vmatprep.subr.bf16.mxu1 %v241_v0  ;;  %v246_v4 = vld [vmem:[%s338_s1 + $0x10] ss:$8 sps:$4 sm:$0xff]   ;;  %v247_v5 = vld [vmem:[%s338_s1 + $0x24] ss:$8 sps:$4 sm:$0xff]   ;;  %v249_v6 = vld [vmem:[%s338_s1 + $0x20] ss:$8 sps:$4 sm:$0xff]  }
   0x3   :  { %100 = vmatpush1.bf16.msra.mxu0 %v243_v2  ;;  %236 = vmatpush1.bf16.msra.mxu1 %v243_v2  ;;  %v250_v7 = vld [vmem:[%s338_s1 + $0x34] ss:$8 sps:$4 sm:$0xff]   ;;  %v252_v8 = vld [vmem:[%s338_s1 + $0x30] ss:$8 sps:$4 sm:$0xff]   ;;  %v253_v9 = vld [vmem:[%s339_s0] sm:$0xff]   ;;  %v33_v12 = vshrl.u32 %v32_v11, 7 }
   0x4   :  { %101 = vmatprep.subr.bf16.mxu0 %v244_v3  ;;  %233 = vmatprep.subr.bf16.mxu1 %v244_v3  ;;  %v254_v10 = vld [vmem:[%s339_s0 + $0x8] sm:$0xff]   ;;  %v30_v14 = vld [vmem:[%s340_s2] sm:$0x3]  ;;  %v154_v17 = vld [vmem:[%s341_s3 + $0x10] sm:$0xff] }
   0x5   :  { %v34_v13 = vsub.s32 0, %v33_v12  ;;  %v38_v15 = vsub.s32 1, %v33_v12  ;;  %v152_v16 = vld [vmem:[%s341_s3] sm:$0xff]  ;;  %v153_v20 = vld [vmem:[%s341_s3 + $0x8] sm:$0xff]  ;;  %v155_v21 = vld [vmem:[%s341_s3 + $0x18] sm:$0xff]  ;;  %v160_v23 = vunpack.c.l.bf16 %v154_v17  ;;  %v161_v27 = vunpack.c.h.bf16 %v154_v17 }
   0x6   :  { %v156_v22 = vunpack.c.l.bf16 %v152_v16  ;;  %v157_v26 = vunpack.c.h.bf16 %v152_v16  ;;  %v158_v32 = vunpack.c.l.bf16 %v153_v20  ;;  %v162_v33 = vunpack.c.l.bf16 %v155_v21 }
   0x7   :  { %102 = vmatpush1.bf16.msra.mxu0 %v246_v4  ;;  %237 = vmatpush1.bf16.msra.mxu1 %v246_v4  ;;  %v35_v18 = vrot.slane %v30_v14, %v34_v13  ;;  %v39_v19 = vrot.slane %v30_v14, %v38_v15  ;;  %v159_v38 = vunpack.c.h.bf16 %v153_v20  ;;  %v163_v39 = vunpack.c.h.bf16 %v155_v21 }
   0x8   :  { %103 = vmatprep.subr.bf16.mxu0 %v247_v5  ;;  %234 = vmatprep.subr.bf16.mxu1 %v247_v5 }
   0xb   :  { %104 = vmatpush1.bf16.msra.mxu0 %v249_v6  ;;  %238 = vmatpush1.bf16.msra.mxu1 %v249_v6 }
   0xc   :  { %105 = vmatprep.subr.bf16.mxu0 %v250_v7  ;;  %235 = vmatprep.subr.bf16.mxu1 %v250_v7 }
   0xf   :  { %106 = vmatpush1.bf16.msra.mxu0 %v252_v8  ;;  %239 = vmatpush1.bf16.msra.mxu1 %v252_v8 }
  0x12   :  { %222 = vmatmul.mubr.msk.bf16.vlgmr.msra.gmra.mrb[0].mxu0 %vm92_vm0, %v253_v9  ;;  %223 = vmatmul.mubr.msk.bf16.vlgmr.msra.gmra.mrb[0].mxu1 %vm92_vm0, %v254_v10 }
  0xe5   :  { %v133_v24 = vpop.f32.mrb[0].mxu0  ;;  %v143_v25 = vpop.f32.mrb[0].mxu1 }
  0xe6   :  { %v134_v28 = vadd.f32 %v133_v24, %v35_v18  ;;  %v144_v29 = vadd.f32 %v143_v25, %v35_v18  ;;  %v135_v30 = vpop.f32.mrb[1].mxu0  ;;  %v145_v31 = vpop.f32.mrb[1].mxu1 }
  0xe7   :  { %v136_v34 = vadd.f32 %v135_v30, %v39_v19  ;;  %v146_v35 = vadd.f32 %v145_v31, %v39_v19  ;;  %v137_v36 = vpop.f32.mrb[2].mxu0  ;;  %v147_v37 = vpop.f32.mrb[2].mxu1 }
  0xe8   :  { %v164_v40 = vadd.f32 %v156_v22, %v134_v28  ;;  %v168_v41 = vadd.f32 %v160_v23, %v144_v29  ;;  %v138_v42 = vadd.f32 %v137_v36, %v35_v18  ;;  %v148_v43 = vadd.f32 %v147_v37, %v35_v18  ;;  %v139_v44 = vpop.f32.mrb[3].mxu0  ;;  %v149_v45 = vpop.f32.mrb[3].mxu1 }
  0xe9   :  { %v165_v46 = vadd.f32 %v157_v26, %v136_v34  ;;  %v169_v47 = vadd.f32 %v161_v27, %v146_v35  ;;  %v140_v48 = vadd.f32 %v139_v44, %v39_v19  ;;  %v150_v49 = vadd.f32 %v149_v45, %v39_v19 }
  0xea   :  { %v172_v50 = vmax.f32 %v164_v40, 0.0  ;;  %v176_v51 = vmax.f32 %v168_v41, 0.0  ;;  %v166_v52 = vadd.f32 %v158_v32, %v138_v42  ;;  %v170_v53 = vadd.f32 %v162_v33, %v148_v43 }
  0xeb   :  { %v173_v54 = vmax.f32 %v165_v46, 0.0  ;;  %v177_v55 = vmax.f32 %v169_v47, 0.0  ;;  %v167_v56 = vadd.f32 %v159_v38, %v140_v48  ;;  %v171_v57 = vadd.f32 %v163_v39, %v150_v49 }
  0xec   :  { %v174_v58 = vmax.f32 %v166_v52, 0.0  ;;  %v178_v59 = vmax.f32 %v170_v53, 0.0 }
  0xed   :  { %v228_v60 = vpack.c.bf16 %v173_v54, %v172_v50  ;;  %v230_v61 = vpack.c.bf16 %v177_v55, %v176_v51  ;;  %v175_v62 = vmax.f32 %v167_v56, 0.0  ;;  %v179_v63 = vmax.f32 %v171_v57, 0.0 }
  0xef   :  { %204 = vst [vmem:[%s342_s4] sm:$0xff] %v228_v60  ;;  %206 = vst [vmem:[%s342_s4 + $0x10] sm:$0xff] %v230_v61  ;;  %v229_v0 = vpack.c.bf16 %v175_v62, %v174_v58  ;;  %v231_v1 = vpack.c.bf16 %v179_v63, %v178_v59 }
  0xf1   :  { %205 = vst [vmem:[%s342_s4 + $0x8] sm:$0xff] %v229_v0  ;;  %207 = vst [vmem:[%s342_s4 + $0x18] sm:$0xff] %v231_v1 }

// kernel: forward.32
= control target key start
LH: loop header
LB: loop body
LE: loop exit
PB: predicated region body
PF: predicated region fallthrough
CT: control target
= control target key end

     0   :  { %v293_v1 = vmov 0   ;;  %v37_v19 = vlaneseq  ;;  %s383_s1 = inlined_call_operand.vmem [shape: bf16[128,256], index: 1, kind: input, shape index: {}]   ;;  %s384_s0 = inlined_call_operand.vmem [shape: bf16[32,128], index: 0, kind: input, shape index: {}]   ;;  %s385_s2 = inlined_call_operand.vmem [shape: f32[1,256], index: 2, kind: input, shape index: {}]   ;;  %s386_s3 = inlined_call_operand.vmem [shape: bf16[32,256], index: 3, kind: output, shape index: {}]  }
   0x1   :  { %v267_v0 = vld [vmem:[%s383_s1 + $0x4] ss:$8 sps:$4 sm:$0xff]   ;;  %171 = vmatprep.mubr.bf16.mxu0 %v293_v1  ;;  %181 = vmatprep.mubr.bf16.mxu1 %v293_v1  ;;  %v269_v2 = vld [vmem:[%s383_s1] ss:$8 sps:$4 sm:$0xff]   ;;  %v270_v3 = vld [vmem:[%s383_s1 + $0x14] ss:$8 sps:$4 sm:$0xff]  }
   0x2   :  { %139 = vmatprep.subr.bf16.mxu0 %v267_v0  ;;  %250 = vmatprep.subr.bf16.mxu1 %v267_v0  ;;  %v272_v4 = vld [vmem:[%s383_s1 + $0x10] ss:$8 sps:$4 sm:$0xff]   ;;  %v273_v5 = vld [vmem:[%s383_s1 + $0x24] ss:$8 sps:$4 sm:$0xff]   ;;  %v275_v6 = vld [vmem:[%s383_s1 + $0x20] ss:$8 sps:$4 sm:$0xff]  }
   0x3   :  { %140 = vmatpush1.bf16.msra.mxu0 %v269_v2  ;;  %258 = vmatpush1.bf16.msra.mxu1 %v269_v2  ;;  %v276_v7 = vld [vmem:[%s383_s1 + $0x34] ss:$8 sps:$4 sm:$0xff]   ;;  %v278_v8 = vld [vmem:[%s383_s1 + $0x30] ss:$8 sps:$4 sm:$0xff]   ;;  %v279_v9 = vld [vmem:[%s383_s1 + $0x44] ss:$8 sps:$4 sm:$0xff]  }
   0x4   :  { %141 = vmatprep.subr.bf16.mxu0 %v270_v3  ;;  %251 = vmatprep.subr.bf16.mxu1 %v270_v3  ;;  %v281_v10 = vld [vmem:[%s383_s1 + $0x40] ss:$8 sps:$4 sm:$0xff]   ;;  %v282_v11 = vld [vmem:[%s383_s1 + $0x54] ss:$8 sps:$4 sm:$0xff]   ;;  %v284_v12 = vld [vmem:[%s383_s1 + $0x50] ss:$8 sps:$4 sm:$0xff]  }
   0x5   :  { %v285_v13 = vld [vmem:[%s383_s1 + $0x64] ss:$8 sps:$4 sm:$0xff]   ;;  %v287_v14 = vld [vmem:[%s383_s1 + $0x60] ss:$8 sps:$4 sm:$0xff]   ;;  %v288_v15 = vld [vmem:[%s383_s1 + $0x74] ss:$8 sps:$4 sm:$0xff]  }
   0x6   :  { %v290_v16 = vld [vmem:[%s383_s1 + $0x70] ss:$8 sps:$4 sm:$0xff]   ;;  %v291_v17 = vld [vmem:[%s384_s0] sm:$0xff]   ;;  %v292_v18 = vld [vmem:[%s384_s0 + $0x8] sm:$0xff]   ;;  %v38_v20 = vshrl.u32 %v37_v19, 7 }
   0x7   :  { %142 = vmatpush1.bf16.msra.mxu0 %v272_v4  ;;  %259 = vmatpush1.bf16.msra.mxu1 %v272_v4  ;;  %v35_v22 = vld [vmem:[%s385_s2] sm:$0x3] }
   0x8   :  { %143 = vmatprep.subr.bf16.mxu0 %v273_v5  ;;  %252 = vmatprep.subr.bf16.mxu1 %v273_v5  ;;  %v39_v21 = vsub.s32 0, %v38_v20  ;;  %v43_v23 = vsub.s32 1, %v38_v20 }
   0xa   :  { %v40_v24 = vrot.slane %v35_v22, %v39_v21  ;;  %v44_v25 = vrot.slane %v35_v22, %v43_v23 }
   0xb   :  { %144 = vmatpush1.bf16.msra.mxu0 %v275_v6  ;;  %260 = vmatpush1.bf16.msra.mxu1 %v275_v6 }
   0xc   :  { %145 = vmatprep.subr.bf16.mxu0 %v276_v7  ;;  %253 = vmatprep.subr.bf16.mxu1 %v276_v7 }
   0xf   :  { %146 = vmatpush1.bf16.msra.mxu0 %v278_v8  ;;  %261 = vmatpush1.bf16.msra.mxu1 %v278_v8 }
  0x10   :  { %147 = vmatprep.subr.bf16.mxu0 %v279_v9  ;;  %254 = vmatprep.subr.bf16.mxu1 %v279_v9 }
  0x13   :  { %148 = vmatpush1.bf16.msra.mxu0 %v281_v10  ;;  %262 = vmatpush1.bf16.msra.mxu1 %v281_v10 }
  0x14   :  { %149 = vmatprep.subr.bf16.mxu0 %v282_v11  ;;  %255 = vmatprep.subr.bf16.mxu1 %v282_v11 }
  0x17   :  { %150 = vmatpush1.bf16.msra.mxu0 %v284_v12  ;;  %263 = vmatpush1.bf16.msra.mxu1 %v284_v12 }
  0x18   :  { %151 = vmatprep.subr.bf16.mxu0 %v285_v13  ;;  %256 = vmatprep.subr.bf16.mxu1 %v285_v13 }
  0x1b   :  { %152 = vmatpush1.bf16.msra.mxu0 %v287_v14  ;;  %264 = vmatpush1.bf16.msra.mxu1 %v287_v14 }
  0x1c   :  { %153 = vmatprep.subr.bf16.mxu0 %v288_v15  ;;  %257 = vmatprep.subr.bf16.mxu1 %v288_v15 }
  0x1f   :  { %154 = vmatpush1.bf16.msra.mxu0 %v290_v16  ;;  %265 = vmatpush1.bf16.msra.mxu1 %v290_v16 }
  0x22   :  { %172 = vmatmul.mubr.bf16.vlgmr.msra.gmra.mrb[0].mxu0 %v291_v17  ;;  %182 = vmatmul.mubr.bf16.vlgmr.msra.gmra.mrb[0].mxu1 %v292_v18 }
  0xf5   :  { %v173_v26 = vpop.f32.mrb[0].mxu0  ;;  %v183_v27 = vpop.f32.mrb[0].mxu1 }
  0xf6   :  { %v174_v28 = vadd.f32 %v173_v26, %v40_v24  ;;  %v184_v29 = vadd.f32 %v183_v27, %v40_v24  ;;  %v175_v30 = vpop.f32.mrb[1].mxu0  ;;  %v185_v31 = vpop.f32.mrb[1].mxu1 }
  0xf7   :  { %v176_v32 = vadd.f32 %v175_v30, %v44_v25  ;;  %v186_v33 = vadd.f32 %v185_v31, %v44_v25  ;;  %v177_v34 = vpop.f32.mrb[2].mxu0  ;;  %v187_v35 = vpop.f32.mrb[2].mxu1 }
  0xf8   :  { %v178_v36 = vadd.f32 %v177_v34, %v40_v24  ;;  %v188_v37 = vadd.f32 %v187_v35, %v40_v24  ;;  %v179_v38 = vpop.f32.mrb[3].mxu0  ;;  %v189_v39 = vpop.f32.mrb[3].mxu1 }
  0xf9   :  { %v246_v40 = vpack.c.bf16 %v176_v32, %v174_v28  ;;  %v248_v41 = vpack.c.bf16 %v186_v33, %v184_v29  ;;  %v180_v42 = vadd.f32 %v179_v38, %v44_v25  ;;  %v190_v43 = vadd.f32 %v189_v39, %v44_v25 }
  0xfb   :  { %216 = vst [vmem:[%s386_s3] sm:$0xff] %v246_v40  ;;  %218 = vst [vmem:[%s386_s3 + $0x10] sm:$0xff] %v248_v41  ;;  %v247_v44 = vpack.c.bf16 %v180_v42, %v178_v36  ;;  %v249_v45 = vpack.c.bf16 %v190_v43, %v188_v37 }
  0xfd   :  { %217 = vst [vmem:[%s386_s3 + $0x8] sm:$0xff] %v247_v44  ;;  %219 = vst [vmem:[%s386_s3 + $0x18] sm:$0xff] %v249_v45 }

// kernel: forward.34
= control target key start
LH: loop header
LB: loop body
LE: loop exit
PB: predicated region body
PF: predicated region fallthrough
CT: control target
= control target key end

     0   :  { %vm243_vm0 = vcmask 519168   ;;  %s442_s1 = inlined_call_operand.vmem [shape: bf16[256,64], index: 1, kind: input, shape index: {}]   ;;  %s443_s0 = inlined_call_operand.vmem [shape: bf16[32,256], index: 0, kind: input, shape index: {}]   ;;  %s444_s2 = inlined_call_operand.vmem [shape: f32[1,64], index: 2, kind: input, shape index: {}]   ;;  %s445_s3 = inlined_call_operand.vmem [shape: bf16[32,64], index: 3, kind: output, shape index: {}]  }
   0x1   :  { %v325_v0 = vld [vmem:[%s442_s1 + $0x40] sm:$0xff]   ;;  %v327_v2 = vld [vmem:[%s442_s1 + $0x48] sm:$0xff]   ;;  %v329_v4 = vld [vmem:[%s442_s1 + $0x50] sm:$0xff]  }
   0x2   :  { %v326_v1 = vld [vmem:[%s442_s1] sm:$0xff]   ;;  %281 = vmatprep.subr.bf16.mxu0 %v325_v0  ;;  %309 = vmatprep.subr.bf16.mxu1 %v325_v0  ;;  %v328_v3 = vld [vmem:[%s442_s1 + $0x8] sm:$0xff]   ;;  %v330_v5 = vld [vmem:[%s442_s1 + $0x10] sm:$0xff]  }
   0x3   :  { %282 = vmatpush3.bf16.msra.mxu0 %v326_v1  ;;  %317 = vmatpush3.bf16.msra.mxu1 %v326_v1  ;;  %v331_v6 = vld [vmem:[%s442_s1 + $0x58] sm:$0xff]   ;;  %v333_v8 = vld [vmem:[%s442_s1 + $0x60] sm:$0xff]   ;;  %v335_v10 = vld [vmem:[%s442_s1 + $0x68] sm:$0xff]  }
   0x4   :  { %283 = vmatprep.subr.bf16.mxu0 %v327_v2  ;;  %310 = vmatprep.subr.bf16.mxu1 %v327_v2  ;;  %v332_v7 = vld [vmem:[%s442_s1 + $0x18] sm:$0xff]   ;;  %v334_v9 = vld [vmem:[%s442_s1 + $0x20] sm:$0xff]   ;;  %v336_v13 = vld [vmem:[%s442_s1 + $0x28] sm:$0xff]  }
   0x5   :  { %v343_v11 = vld [vmem:[%s443_s0 + $0x4] ss:$8 sps:$4 sm:$0xff]   ;;  %v346_v12 = vld [vmem:[%s443_s0 + $0x14] ss:$8 sps:$4 sm:$0xff]   ;;  %v341_v18 = vld [vmem:[%s443_s0] ss:$8 sps:$4 sm:$0xff]  }
   0x6   :  { %v337_v14 = vld [vmem:[%s442_s1 + $0x70] sm:$0xff]   ;;  %206 = vmatprep.mubr.bf16.mxu0 %v343_v11  ;;  %214 = vmatprep.mubr.bf16.mxu1 %v346_v12  ;;  %v339_v16 = vld [vmem:[%s442_s1 + $0x78] sm:$0xff]   ;;  %v252_v22 = vld [vmem:[%s444_s2] ss:$0 sm:$0xff] }
   0x7   :  { %284 = vmatpush3.bf16.msra.mxu0 %v328_v3  ;;  %318 = vmatpush3.bf16.msra.mxu1 %v328_v3  ;;  %v338_v15 = vld [vmem:[%s442_s1 + $0x30] sm:$0xff]   ;;  %v340_v17 = vld [vmem:[%s442_s1 + $0x38] sm:$0xff]  }
   0x8   :  { %285 = vmatprep.subr.bf16.mxu0 %v329_v4  ;;  %311 = vmatprep.subr.bf16.mxu1 %v329_v4  ;;  %v344_v19 = vld [vmem:[%s443_s0 + $0x10] ss:$8 sps:$4 sm:$0xff]  }
   0xb   :  { %286 = vmatpush3.bf16.msra.mxu0 %v330_v5  ;;  %319 = vmatpush3.bf16.msra.mxu1 %v330_v5 }
   0xc   :  { %287 = vmatprep.subr.bf16.mxu0 %v331_v6  ;;  %312 = vmatprep.subr.bf16.mxu1 %v331_v6 }
   0xf   :  { %288 = vmatpush3.bf16.msra.mxu0 %v332_v7  ;;  %320 = vmatpush3.bf16.msra.mxu1 %v332_v7 }
  0x10   :  { %289 = vmatprep.subr.bf16.mxu0 %v333_v8  ;;  %313 = vmatprep.subr.bf16.mxu1 %v333_v8 }
  0x13   :  { %290 = vmatpush3.bf16.msra.mxu0 %v334_v9  ;;  %321 = vmatpush3.bf16.msra.mxu1 %v334_v9 }
  0x14   :  { %291 = vmatprep.subr.bf16.mxu0 %v335_v10  ;;  %314 = vmatprep.subr.bf16.mxu1 %v335_v10 }
  0x17   :  { %292 = vmatpush3.bf16.msra.mxu0 %v336_v13  ;;  %322 = vmatpush3.bf16.msra.mxu1 %v336_v13 }
  0x18   :  { %293 = vmatprep.subr.bf16.mxu0 %v337_v14  ;;  %315 = vmatprep.subr.bf16.mxu1 %v337_v14 }
  0x1b   :  { %294 = vmatpush3.bf16.msra.mxu0 %v338_v15  ;;  %323 = vmatpush3.bf16.msra.mxu1 %v338_v15 }
  0x1c   :  { %295 = vmatprep.subr.bf16.mxu0 %v339_v16  ;;  %316 = vmatprep.subr.bf16.mxu1 %v339_v16 }
  0x1f   :  { %296 = vmatpush3.bf16.msra.mxu0 %v340_v17  ;;  %324 = vmatpush3.bf16.msra.mxu1 %v340_v17 }
  0x22   :  { %207 = vmatmul.mubr.bf16.vlgmr.msra.gmra.mrb[0].mxu0 %v341_v18  ;;  %215 = vmatmul.mubr.bf16.vlgmr.msra.gmra.mrb[0].mxu1 %v344_v19 }
  0xf5   :  { %v297_v20 = vpop.f32.mrb[0].mxu0  ;;  %v303_v21 = vpop.f32.mrb[0].mxu1 }
  0xf6   :  { %v298_v23 = vpop.f32.mrb[1].mxu0  ;;  %v304_v24 = vpop.f32.mrb[1].mxu1 }
  0xf7   :  { %v299_v25 = vadd.f32 %v298_v23, %v297_v20  ;;  %v305_v26 = vadd.f32 %v304_v24, %v303_v21  ;;  %v300_v27 = vpop.f32.mrb[2].mxu0  ;;  %v306_v28 = vpop.f32.mrb[2].mxu1 }
  0xf8   :  { %v301_v29 = vpop.f32.mrb[3].mxu0  ;;  %v307_v30 = vpop.f32.mrb[3].mxu1 }
  0xf9   :  { %v209_v31 = vadd.f32 %v299_v25, %v252_v22  ;;  %v217_v32 = vadd.f32 %v305_v26, %v252_v22  ;;  %v302_v33 = vadd.f32 %v301_v29, %v300_v27  ;;  %v308_v34 = vadd.f32 %v307_v30, %v306_v28 }
  0xfb   :  { %v223_v35 = vmax.f32 %v209_v31, 0.0  ;;  %v225_v36 = vmax.f32 %v217_v32, 0.0  ;;  %v212_v37 = vadd.f32 %v302_v33, %v252_v22  ;;  %v220_v38 = vadd.f32 %v308_v34, %v252_v22 }
  0xfd   :  { %v277_v39 = vpack.c.bf16 %v223_v35, %v223_v35  ;;  %v279_v40 = vpack.c.bf16 %v225_v36, %v225_v36  ;;  %v224_v41 = vmax.f32 %v212_v37, 0.0  ;;  %v226_v42 = vmax.f32 %v220_v38, 0.0 }
  0xff   :  { %244 = vst.msk [vmem:[%s445_s3] sm:$0xf] %vm243_vm0, %v277_v39  ;;  %246 = vst.msk [vmem:[%s445_s3 + $0x8] sm:$0xf] %vm243_vm0, %v279_v40  ;;  %v278_v43 = vpack.c.bf16 %v224_v41, %v224_v41  ;;  %v280_v44 = vpack.c.bf16 %v226_v42, %v226_v42 }
 0x101   :  { %245 = vst.msk [vmem:[%s445_s3 + $0x4] sm:$0xf] %vm243_vm0, %v278_v43  ;;  %247 = vst.msk [vmem:[%s445_s3 + $0xc] sm:$0xf] %vm243_vm0, %v280_v44 }

// kernel: forward.35
= control target key start
LH: loop header
LB: loop body
LE: loop exit
PB: predicated region body
PF: predicated region fallthrough
CT: control target
= control target key end

     0   :  { %s1578_s12 = smov 0   ;;  %s1781_s0 = inlined_call_operand.vmem [shape: bf16[2,42,64], index: 0, kind: input, shape index: {}]   ;;  %s1782_s1 = inlined_call_operand.vmem [shape: bf16[9,64,64], index: 1, kind: input, shape index: {}]   ;;  %s1783_s2 = inlined_call_operand.vmem [shape: f32[1,64], index: 2, kind: input, shape index: {}]   ;;  %s1784_s3 = inlined_call_operand.vmem [shape: bf16[2,24,64], index: 3, kind: output, shape index: {}]  }
   0x1 LB: > { %s1182_s13 = sadd.s32 4294967295, %s1556_s12   ;;  %p1186_p0 = scmp.ge.s32.totalorder %s1556_s12, 1  ;;  %s1556_s12 = sphi %s1578_s12, %s13_s12  }
   0x2   : > { %p137_p1 = scmp.lt.s32.totalorder %s1556_s12, 3 }
   0x4   : > { %p138_p2 = pnand %p1186_p0, %p137_p1 }
   0x5   : > { %v1501_v0 = vld [vmem:[%s1782_s1 + $0x20] sm:$0xff] (!%p138_p2)   ;;  %p161_p3 = scmp.lt.s32.totalorder (!%p138_p2), %s1182_s13, 1  ;;  %v1503_v2 = vld [vmem:[%s1782_s1 + $0x28] sm:$0xff] (!%p138_p2)   ;;  %v1505_v4 = vld [vmem:[%s1782_s1 + $0x30] sm:$0xff] (!%p138_p2)   ;;  %vm243_vm0 = vcmask (!%p138_p2), 523264   ;;  %vm389_vm2 = vcmask (!%p138_p2), 1046528  }
   0x6   : > { %141 = sbr.rel (%p138_p2) target bundleno = 316 (0x13c), region = 32  ;;  %v1502_v1 = vld [vmem:[%s1782_s1] sm:$0xff] (!%p138_p2)   ;;  %1383 = vmatprep.subr.bf16.mxu0 (!%p138_p2), %v1501_v0  ;;  %v1504_v3 = vld [vmem:[%s1782_s1 + $0x8] sm:$0xff] (!%p138_p2)   ;;  %v1506_v5 = vld [vmem:[%s1782_s1 + $0x10] sm:$0xff] (!%p138_p2)   ;;  %vm203_vm1 = vsmask.f32 (!%p138_p2), 7424 }
   0x7   : > { %1395 = vmatprep.subr.bf16.mxu1 (!%p138_p2), %v1502_v1  ;;  %1384 = vmatpush3.bf16.msra.mxu0 (!%p138_p2), %v1501_v0  ;;  %v1507_v6 = vld [vmem:[%s1782_s1 + $0x38] sm:$0xff] (!%p138_p2)   ;;  %v1512_v16 = vld [vmem:[%s1782_s1 + $0x40] sm:$0xff] (!%p138_p2)   ;;  %v1514_v25 = vld [vmem:[%s1782_s1 + $0x48] sm:$0xff] (!%p138_p2)   ;;  %vm491_vm3 = vcmask (!%p138_p2), 1044480   ;;  %vm589_vm4 = vsmask.f32 (!%p138_p2), 4352 }
   0x8   : > { %1396 = vmatpush3.bf16.msra.mxu1 (!%p138_p2), %v1502_v1  ;;  %1385 = vmatprep.subr.bf16.mxu0 (!%p138_p2), %v1503_v2  ;;  %v1508_v10 = vld [vmem:[%s1782_s1 + $0x18] sm:$0xff] (!%p138_p2)   ;;  %v1513_v20 = vld [vmem:[%s1782_s1 + $0x60] sm:$0xff] (!%p138_p2)   ;;  %v1515_v27 = vld [vmem:[%s1782_s1 + $0x68] sm:$0xff] (!%p138_p2)   ;;  %vm803_vm5 = vcmask (!%p138_p2), 1045504   ;;  %vm901_vm6 = vsmask.f32 (!%p138_p2), 5376 }
   0x9   : > { %1397 = vmatprep.subr.bf16.mxu1 (!%p138_p2), %v1504_v3  ;;  %v1516_v33 = vld [vmem:[%s1782_s1 + $0x50] sm:$0xff] (!%p138_p2)   ;;  %v1518_v42 = vld [vmem:[%s1782_s1 + $0x58] sm:$0xff] (!%p138_p2)   ;;  %v1521_v46 = vld [vmem:[%s1782_s1 + $0x80] sm:$0xff] (!%p138_p2)   ;;  %vm1123_vm7 = vcmask (!%p138_p2), 519168  }
   0xa   : > { %v1517_v36 = vld [vmem:[%s1782_s1 + $0x70] sm:$0xff] (!%p138_p2)   ;;  %v1519_v45 = vld [vmem:[%s1782_s1 + $0x78] sm:$0xff] (!%p138_p2)   ;;  %v1524_v51 = vld [vmem:[%s1782_s1 + $0xa0] sm:$0xff] (!%p138_p2)  }
   0xb   : > { %1386 = vmatpush3.bf16.msra.mxu0 (!%p138_p2), %v1503_v2  ;;  %v1525_v54 = vld [vmem:[%s1782_s1 + $0x88] sm:$0xff] (!%p138_p2)   ;;  %v1527_v61 = vld [vmem:[%s1782_s1 + $0x90] sm:$0xff] (!%p138_p2)  }
   0xc   : > { %1398 = vmatpush3.bf16.msra.mxu1 (!%p138_p2), %v1504_v3  ;;  %1387 = vmatprep.subr.bf16.mxu0 (!%p138_p2), %v1505_v4  ;;  %v1526_v55 = vld [vmem:[%s1782_s1 + $0xa8] sm:$0xff] (!%p138_p2)   ;;  %v1528_v63 = vld [vmem:[%s1782_s1 + $0xb0] sm:$0xff] (!%p138_p2)  }
   0xd   : > { %s1786_s13 = smov (!%p161_p3, %s1182_s13), 1  ;;  %1399 = vmatprep.subr.bf16.mxu1 %v1506_v5 }
   0xe   : > { %s1491_s24 = smul.u32 24, %s1786_s13 }
   0xf   : > { %1388 = vmatpush3.bf16.msra.mxu0 %v1505_v4  ;;  %s1492_s18 = smul.u32 12, %s1786_s13 }
  0x10   : > { %s1610_s29 = scalar_lea.vmem %s1781_s0, %s1491_s24  ;;  %1400 = vmatpush3.bf16.msra.mxu1 %v1506_v5  ;;  %1389 = vmatprep.subr.bf16.mxu0 %v1507_v6 }
  0x11   : > { %v172_v7 = vld [vmem:[%s1610_s29] sm:$0xf]  ;;  %v1617_v8 = vld [vmem:[%s1610_s29 + $0x4] sm:$0xf]  ;;  %v1620_v9 = vld [vmem:[%s1610_s29 + $0x8] sm:$0xf]  ;;  %1401 = vmatprep.subr.bf16.mxu1 %v1508_v10  ;;  %s170_s21 = scalar_lea.vmem %s1784_s3, %s1492_s18 }
  0x12   : > { %v183_v11 = vld [vmem:[%s1610_s29 + $0xc] sm:$0x1]  ;;  %v1197_v12 = vcombine.low %v172_v7, %v1617_v8  ;;  %v1205_v23 = vcombine.low %v1620_v9, %v1620_v9  ;;  %v376_v28 = vld [vmem:[%s1610_s29] sm:$0xe]  ;;  %v1266_v60 = vcombine.low %v1617_v8, %v1620_v9  ;;  %v780_v62 = vld [vmem:[%s1610_s29 + $0x4] sm:$0xc] }
  0x13   : > { %v1628_v13 = vcombine.low %v1620_v9, %v183_v11  ;;  %1390 = vmatpush3.bf16.msra.mxu0 %v1507_v6  ;;  %v1220_v29 = vcombine.low %v376_v28, %v1617_v8  ;;  %v474_v31 = vld [vmem:[%s1610_s29] sm:$0x8]  ;;  %v475_v32 = vld [vmem:[%s1610_s29 + $0xc] sm:$0x7]  ;;  %v1703_v1 = vld [vmem:[%s1610_s29 + $0x8] sm:$0xf] }
  0x14   : > { %v205_v14 = vshrl.u32 %v1197_v12, 16  ;;  %v207_v15 = vshll.u32 %v1197_v12, 16  ;;  %1403 = vmatprep.mubr.msk.bf16.mxu1 %vm243_vm0, %v1197_v12  ;;  %1402 = vmatpush3.bf16.msra.mxu1 %v1508_v10  ;;  %v1235_v34 = vcombine.low %v474_v31, %v1617_v8  ;;  %v1236_v35 = vcombine.low %v1620_v9, %v475_v32  ;;  %v1678_v47 = vld [vmem:[%s1610_s29 + $0xc] sm:$0xf]  ;;  %v888_v4 = vld [vmem:[%s1610_s29 + $0x10] sm:$0x7] }
  0x15   : > { %v212_v17 = vshll.u32 %v1628_v13, 16  ;;  %v216_v18 = vshrl.u32 %v1628_v13, 16  ;;  %1407 = vmatprep.subr.bf16.mxu0 %v1512_v16  ;;  %1419 = vmatprep.subr.bf16.mxu1 %v1513_v20  ;;  %v391_v30 = vrot.slane %v1628_v13, 1  ;;  %v390_v37 = vrot.slane %v1220_v29, 1  ;;  %v782_v2 = vld [vmem:[%s1610_s29 + $0xc] sm:$0xf] }
  0x16   : > { %v209_v19 = vrot.slane %v207_v15, 1  ;;  %v492_v38 = vrot.slane %v1235_v34, 3  ;;  %v493_v39 = vrot.slane %v1236_v35, 3  ;;  %v591_v41 = vshrl.u32 %v1235_v34, 16  ;;  %v783_v6 = vld [vmem:[%s1610_s29 + $0x10] sm:$0x3] }
  0x17   : > { %v214_v21 = vrot.slane %v212_v17, 1  ;;  %1404 = vmatmul.mubr.msk.bf16.vlgmr.msra.gmra.mrb[0].mxu1 %vm243_vm0, %v1205_v23  ;;  %v392_v40 = vsel %vm389_vm2, %v390_v37, %v391_v30  ;;  %v594_v44 = vshll.u32 %v1235_v34, 16  ;;  %v1251_v50 = vcombine.low %v1620_v9, %v1678_v47  ;;  %v1529_v11 = vld [vmem:[%s1782_s1 + $0x98] sm:$0xff]   ;;  %v1538_v29 = vld [vmem:[%s1782_s1 + $0xd0] sm:$0xff]   ;;  %v1000_v31 = vld [vmem:[%s1610_s29 + $0x4] sm:$0x8] }
  0x18   : > { %v210_v22 = vor.u32 %v209_v19, %v205_v14  ;;  %1420 = vmatpush3.bf16.msra.mxu1 %v1513_v20  ;;  %v494_v43 = vsel %vm491_vm3, %v492_v38, %v493_v39  ;;  %v593_v48 = vrot.slane %v591_v41, 3  ;;  %v1282_v3 = vcombine.low %v780_v62, %v1703_v1  ;;  %v1530_v12 = vld [vmem:[%s1782_s1 + $0xb8] sm:$0xff]   ;;  %v1535_v19 = vld [vmem:[%s1782_s1 + $0xe0] sm:$0xff]   ;;  %v1546_v38 = vld [vmem:[%s1782_s1 + $0x108] sm:$0xff]  }
  0x19   : > { %v218_v24 = vor.u32 %v216_v18, %v214_v21  ;;  %1421 = vmatprep.subr.bf16.mxu1 %v1515_v27  ;;  %1427 = vmatprep.mubr.msk.bf16.mxu1 %vm243_vm0, %v494_v43  ;;  %v596_v49 = vrot.slane %v594_v44, 4  ;;  %v599_v52 = vshrl.u32 %v1251_v50, 16  ;;  %v602_v53 = vshll.u32 %v1251_v50, 16  ;;  %v1532_v18 = vld [vmem:[%s1782_s1 + $0xc0] sm:$0xff]   ;;  %v1540_v32 = vld [vmem:[%s1782_s1 + $0xd8] sm:$0xff]  }
  0x1a   : > { %v215_v26 = vsel %vm203_vm1, %v210_v22, %v214_v21  ;;  %v1710_v5 = vcombine.low %v782_v2, %v888_v4  ;;  %v903_v7 = vshrl.u32 %v1282_v3, 16  ;;  %v906_v8 = vshll.u32 %v1282_v3, 16  ;;  %v1545_v35 = vld [vmem:[%s1782_s1 + $0x100] sm:$0xff]   ;;  %v1548_v41 = vld [vmem:[%s1782_s1 + $0x118] sm:$0xff]  }
  0x1b   : > { %1391 = vmatprep.mubr.msk.bf16.mxu0 %vm243_vm0, %v215_v26  ;;  %v597_v56 = vor.u32 %v596_v49, %v593_v48  ;;  %v601_v57 = vrot.slane %v599_v52, 3  ;;  %v604_v58 = vrot.slane %v602_v53, 4  ;;  %v1283_v13 = vcombine.low %v782_v2, %v783_v6  ;;  %v1537_v26 = vld [vmem:[%s1782_s1 + $0xe8] sm:$0xff]  }
  0x1c   : > { %1392 = vmatmul.mubr.msk.bf16.vlgmr.msra.gmra.mrb[0].mxu0 %vm243_vm0, %v218_v24  ;;  %1422 = vmatpush3.bf16.msra.mxu1 %v1515_v27  ;;  %v911_v9 = vshrl.u32 %v1710_v5, 16  ;;  %v914_v10 = vshll.u32 %v1710_v5, 16  ;;  %v905_v14 = vrot.slane %v903_v7, 2  ;;  %v908_v15 = vrot.slane %v906_v8, 3 }
  0x1d   : > { %1408 = vmatpush3.bf16.msra.mxu0 %v1512_v16  ;;  %1423 = vmatprep.subr.bf16.mxu1 %v1517_v36  ;;  %v605_v59 = vor.u32 %v604_v58, %v601_v57  ;;  %v1267_v20 = vcombine.low %v1678_v47, %v1678_v47  ;;  %v804_v21 = vrot.slane %v1282_v3, 2  ;;  %v805_v22 = vrot.slane %v1283_v13, 2 }
  0x1e   : > { %1409 = vmatprep.subr.bf16.mxu0 %v1514_v25  ;;  %1415 = vmatprep.mubr.msk.bf16.mxu0 %vm243_vm0, %v392_v40  ;;  %v913_v16 = vrot.slane %v911_v9, 2  ;;  %v916_v17 = vrot.slane %v914_v10, 3  ;;  %v909_v23 = vor.u32 %v908_v15, %v905_v14  ;;  %v1313_v34 = vcombine.low %v1000_v31, %v1703_v1  ;;  %v1547_v40 = vld [vmem:[%s1782_s1 + $0x110] sm:$0xff]  }
  0x1f   : > { %v606_v0 = vsel %vm589_vm4, %v597_v56, %v605_v59  ;;  %v806_v27 = vsel %vm803_vm5, %v804_v21, %v805_v22  ;;  %v1014_v37 = vrot.slane %v1710_v5, 3 }
  0x20   : > { %1424 = vmatpush3.bf16.msra.mxu1 %v1517_v36  ;;  %v917_v24 = vor.u32 %v916_v17, %v913_v16  ;;  %v1013_v36 = vrot.slane %v1313_v34, 3 }
  0x21   : > { %1410 = vmatpush3.bf16.msra.mxu0 %v1514_v25  ;;  %1425 = vmatprep.subr.bf16.mxu1 %v1519_v45  ;;  %v1536_v25 = vld [vmem:[%s1782_s1 + $0xc8] sm:$0xff]  }
  0x22   : > { %1411 = vmatprep.subr.bf16.mxu0 %v1516_v33  ;;  %v918_v28 = vsel %vm901_vm6, %v909_v23, %v917_v24 }
  0x24   : > { %1426 = vmatpush3.bf16.msra.mxu1 %v1519_v45 }
  0x25   : > { %1412 = vmatpush3.bf16.msra.mxu0 %v1516_v33  ;;  %1443 = vmatprep.subr.bf16.mxu1 %v1524_v51  ;;  %v1541_v33 = vld [vmem:[%s1782_s1 + $0xf8] sm:$0xff]  }
  0x26   : > { %1413 = vmatprep.subr.bf16.mxu0 %v1518_v42 }
  0x27   : > { %1428 = vmatmul.mubr.msk.bf16.vlgmr.msra.gmra.mrb[4].mxu1 %vm243_vm0, %v493_v39  ;;  %v1015_v39 = vsel %vm491_vm3, %v1013_v36, %v1014_v37 }
  0x28   : > { %1444 = vmatpush3.bf16.msra.mxu1 %v1524_v51  ;;  %1451 = vmatprep.mubr.msk.bf16.mxu1 %vm243_vm0, %v1266_v60 }
  0x29   : > { %1414 = vmatpush3.bf16.msra.mxu0 %v1518_v42  ;;  %1445 = vmatprep.subr.bf16.mxu1 %v1526_v55 }
  0x2a   : > { %1431 = vmatprep.subr.bf16.mxu0 %v1521_v46 }
  0x2c   : > { %1416 = vmatmul.mubr.msk.bf16.vlgmr.msra.gmra.mrb[4].mxu0 %vm243_vm0, %v391_v30  ;;  %1446 = vmatpush3.bf16.msra.mxu1 %v1526_v55  ;;  %v1539_v30 = vld [vmem:[%s1782_s1 + $0xf0] sm:$0xff]  }
  0x2d   : > { %1432 = vmatpush3.bf16.msra.mxu0 %v1521_v46  ;;  %1439 = vmatprep.mubr.msk.bf16.mxu0 %vm243_vm0, %v606_v0 }
  0x2e   : > { %1433 = vmatprep.subr.bf16.mxu0 %v1525_v54  ;;  %1447 = vmatprep.subr.bf16.mxu1 %v1528_v63 }
  0x30   : > { %1448 = vmatpush3.bf16.msra.mxu1 %v1528_v63 }
  0x31   : > { %1434 = vmatpush3.bf16.msra.mxu0 %v1525_v54  ;;  %1449 = vmatprep.subr.bf16.mxu1 %v1530_v12 }
  0x32   : > { %1435 = vmatprep.subr.bf16.mxu0 %v1527_v61 }
  0x34   : > { %1450 = vmatpush3.bf16.msra.mxu1 %v1530_v12 }
  0x35   : > { %1436 = vmatpush3.bf16.msra.mxu0 %v1527_v61  ;;  %1467 = vmatprep.subr.bf16.mxu1 %v1535_v19 }
  0x36   : > { %1437 = vmatprep.subr.bf16.mxu0 %v1529_v11 }
  0x37   : > { %1452 = vmatmul.mubr.msk.bf16.vlgmr.msra.gmra.mrb[8].mxu1 %vm243_vm0, %v1267_v20 }
  0x38   : > { %1468 = vmatpush3.bf16.msra.mxu1 %v1535_v19  ;;  %1475 = vmatprep.mubr.msk.bf16.mxu1 %vm243_vm0, %v918_v28 }
  0x39   : > { %1438 = vmatpush3.bf16.msra.mxu0 %v1529_v11  ;;  %1469 = vmatprep.subr.bf16.mxu1 %v1537_v26 }
  0x3a   : > { %1455 = vmatprep.subr.bf16.mxu0 %v1532_v18 }
  0x3c   : > { %1440 = vmatmul.mubr.msk.bf16.vlgmr.msra.gmra.mrb[8].mxu0 %vm243_vm0, %v605_v59  ;;  %1470 = vmatpush3.bf16.msra.mxu1 %v1537_v26 }
  0x3d   : > { %1456 = vmatpush3.bf16.msra.mxu0 %v1532_v18  ;;  %1463 = vmatprep.mubr.msk.bf16.mxu0 %vm243_vm0, %v806_v27 }
  0x3e   : > { %1457 = vmatprep.subr.bf16.mxu0 %v1536_v25  ;;  %1471 = vmatprep.subr.bf16.mxu1 %v1539_v30 }
  0x40   : > { %1472 = vmatpush3.bf16.msra.mxu1 %v1539_v30 }
  0x41   : > { %1458 = vmatpush3.bf16.msra.mxu0 %v1536_v25  ;;  %1473 = vmatprep.subr.bf16.mxu1 %v1541_v33 }
  0x42   : > { %1459 = vmatprep.subr.bf16.mxu0 %v1538_v29 }
  0x44   : > { %1474 = vmatpush3.bf16.msra.mxu1 %v1541_v33 }
  0x45   : > { %1460 = vmatpush3.bf16.msra.mxu0 %v1538_v29 }
  0x46   : > { %1461 = vmatprep.subr.bf16.mxu0 %v1540_v32 }
  0x47   : > { %1476 = vmatmul.mubr.msk.bf16.vlgmr.msra.gmra.mrb[12].mxu1 %vm243_vm0, %v917_v24 }
  0x49   : > { %1462 = vmatpush3.bf16.msra.mxu0 %v1540_v32  ;;  %v1320_v32 = vld [vmem:[%s1783_s2] ss:$0 sm:$0xff] }
  0x4a   : > { %1479 = vmatprep.subr.bf16.mxu0 %v1545_v35 }
  0x4c   : > { %1464 = vmatmul.mubr.msk.bf16.vlgmr.msra.gmra.mrb[12].mxu0 %vm243_vm0, %v805_v22 }
  0x4d   : > { %1480 = vmatpush3.bf16.msra.mxu0 %v1545_v35  ;;  %1487 = vmatprep.mubr.msk.bf16.mxu0 %vm243_vm0, %v1015_v39 }
  0x4e   : > { %1481 = vmatprep.subr.bf16.mxu0 %v1546_v38 }
  0x51   : > { %1482 = vmatpush3.bf16.msra.mxu0 %v1546_v38 }
  0x52   : > { %1483 = vmatprep.subr.bf16.mxu0 %v1547_v40 }
  0x55   : > { %1484 = vmatpush3.bf16.msra.mxu0 %v1547_v40 }
  0x56   : > { %1485 = vmatprep.subr.bf16.mxu0 %v1548_v41 }
  0x59   : > { %1486 = vmatpush3.bf16.msra.mxu0 %v1548_v41 }
  0x5c   : > { %1488 = vmatmul.mubr.msk.bf16.vlgmr.msra.gmra.mrb[16].mxu0 %vm243_vm0, %v1014_v37 }
  0xea   : > { %v1405_v43 = vpop.f32.mrb[0].mxu1 }
  0xeb   : > { %v362_v46 = vpop.f32.mrb[1].mxu1 }
  0xec   : > { %v1406_v49 = vpop.f32.mrb[2].mxu1 }
  0xed   : > { %v365_v51 = vpop.f32.mrb[3].mxu1 }
  0xef   : > { %v1393_v42 = vpop.f32.mrb[0].mxu0 }
  0xf0   : > { %v371_v44 = vadd.f32 %v1405_v43, %v1393_v42  ;;  %v284_v45 = vpop.f32.mrb[1].mxu0 }
  0xf1   : > { %v363_v47 = vadd.f32 %v362_v46, %v284_v45  ;;  %v1394_v48 = vpop.f32.mrb[2].mxu0 }
  0xf2   : > { %v287_v50 = vpop.f32.mrb[3].mxu0 }
  0xf3   : > { %v366_v52 = vadd.f32 %v365_v51, %v287_v50 }
  0xfa   : > { %v1429_v54 = vpop.f32.mrb[4].mxu1 }
  0xfb   : > { %v559_v57 = vpop.f32.mrb[5].mxu1 }
  0xfc   : > { %v1430_v60 = vpop.f32.mrb[6].mxu1 }
  0xfd   : > { %v562_v63 = vpop.f32.mrb[7].mxu1 }
  0xff   : > { %v1417_v53 = vpop.f32.mrb[4].mxu0 }
 0x100   : > { %v473_v55 = vadd.f32 %v1417_v53, %v371_v44  ;;  %v457_v56 = vpop.f32.mrb[5].mxu0 }
 0x101   : > { %v471_v58 = vadd.f32 %v457_v56, %v363_v47  ;;  %v1418_v59 = vpop.f32.mrb[6].mxu0 }
 0x102   : > { %v575_v61 = vadd.f32 %v1429_v54, %v473_v55  ;;  %v460_v62 = vpop.f32.mrb[7].mxu0 }
 0x103   : > { %v472_v0 = vadd.f32 %v460_v62, %v366_v52  ;;  %v573_v1 = vadd.f32 %v559_v57, %v471_v58 }
 0x105   : > { %v574_v2 = vadd.f32 %v562_v63, %v472_v0 }
 0x10a   : > { %v1453_v4 = vpop.f32.mrb[8].mxu1 }
 0x10b   : > { %v763_v7 = vpop.f32.mrb[9].mxu1 }
 0x10c   : > { %v1454_v10 = vpop.f32.mrb[10].mxu1 }
 0x10d   : > { %v766_v13 = vpop.f32.mrb[11].mxu1 }
 0x10f   : > { %v1441_v3 = vpop.f32.mrb[8].mxu0 }
 0x110   : > { %v687_v5 = vadd.f32 %v1441_v3, %v575_v61  ;;  %v671_v6 = vpop.f32.mrb[9].mxu0 }
 0x111   : > { %v685_v8 = vadd.f32 %v671_v6, %v573_v1  ;;  %v1442_v9 = vpop.f32.mrb[10].mxu0 }
 0x112   : > { %v779_v11 = vadd.f32 %v1453_v4, %v687_v5  ;;  %v674_v12 = vpop.f32.mrb[11].mxu0 }
 0x113   : > { %v686_v14 = vadd.f32 %v674_v12, %v574_v2  ;;  %v777_v15 = vadd.f32 %v763_v7, %v685_v8 }
 0x115   : > { %v778_v16 = vadd.f32 %v766_v13, %v686_v14 }
 0x11a   : > { %v1477_v18 = vpop.f32.mrb[12].mxu1 }
 0x11b   : > { %v983_v21 = vpop.f32.mrb[13].mxu1 }
 0x11c   : > { %v1478_v24 = vpop.f32.mrb[14].mxu1 }
 0x11d   : > { %v986_v27 = vpop.f32.mrb[15].mxu1 }
 0x11f   : > { %v1465_v17 = vpop.f32.mrb[12].mxu0 }
 0x120   : > { %v887_v19 = vadd.f32 %v1465_v17, %v779_v11  ;;  %v871_v20 = vpop.f32.mrb[13].mxu0 }
 0x121   : > { %v885_v22 = vadd.f32 %v871_v20, %v777_v15  ;;  %v1466_v23 = vpop.f32.mrb[14].mxu0 }
 0x122   : > { %v999_v25 = vadd.f32 %v1477_v18, %v887_v19  ;;  %v874_v26 = vpop.f32.mrb[15].mxu0 }
 0x123   : > { %v886_v28 = vadd.f32 %v874_v26, %v778_v16  ;;  %v997_v29 = vadd.f32 %v983_v21, %v885_v22 }
 0x125   : > { %v998_v30 = vadd.f32 %v986_v27, %v886_v28 }
 0x12f   : > { %v1489_v31 = vpop.f32.mrb[16].mxu0 }
 0x130   : > { %v1096_v33 = vadd.f32 %v1489_v31, %v999_v25  ;;  %v1080_v34 = vpop.f32.mrb[17].mxu0 }
 0x131   : > { %v1094_v35 = vadd.f32 %v1080_v34, %v997_v29  ;;  %v1490_v36 = vpop.f32.mrb[18].mxu0 }
 0x132   : > { %v1106_v37 = vadd.f32 %v1320_v32, %v1096_v33  ;;  %v1083_v38 = vpop.f32.mrb[19].mxu0 }
 0x133   : > { %v1104_v39 = vadd.f32 %v1320_v32, %v1094_v35  ;;  %v1095_v40 = vadd.f32 %v1083_v38, %v998_v30 }
 0x134   : > { %v1109_v41 = vmax.f32 %v1106_v37, 0.0 }
 0x135   : > { %v1107_v42 = vmax.f32 %v1104_v39, 0.0  ;;  %v1105_v43 = vadd.f32 %v1320_v32, %v1095_v40 }
 0x136   : > { %v1328_v44 = vpack.c.bf16 %v1109_v41, %v1109_v41 }
 0x137   : > { %v1326_v45 = vpack.c.bf16 %v1107_v42, %v1107_v42  ;;  %v1108_v46 = vmax.f32 %v1105_v43, 0.0 }
 0x138   : > { %1126 = vst.msk [vmem:[%s170_s21 + $0x8] sm:$0xf] %vm1123_vm7, %v1328_v44 }
 0x139   : > { %1124 = vst.msk [vmem:[%s170_s21] sm:$0xf] %vm1123_vm7, %v1326_v45  ;;  %v1327_v47 = vpack.c.bf16 %v1108_v46, %v1108_v46 }
 0x13b   : > { %1125 = vst.msk [vmem:[%s170_s21 + $0x4] sm:$0xf] %vm1123_vm7, %v1327_v47 }
 0x13c PF: > { %s13_s12 = sadd.s32 1, %s1556_s12  }
 0x13d   : > { %p10_p4 = scmp.ge.s32.totalorder %s13_s12, 4  }
 0x13f   :  { %12 = sbr.rel (!%p10_p4) target bundleno = 1 (0x1), region = 70 }

// kernel: forward.37
= control target key start
LH: loop header
LB: loop body
LE: loop exit
PB: predicated region body
PF: predicated region fallthrough
CT: control target
= control target key end

     0   :  { %s446_s1 = inlined_call_operand.vmem [shape: bf16[256,128], index: 1, kind: input, shape index: {}]   ;;  %s447_s0 = inlined_call_operand.vmem [shape: bf16[32,256], index: 0, kind: input, shape index: {}]   ;;  %s448_s2 = inlined_call_operand.vmem [shape: f32[1,128], index: 2, kind: input, shape index: {}]   ;;  %s449_s3 = inlined_call_operand.vmem [shape: bf16[32,128], index: 3, kind: output, shape index: {}]  }
   0x1   :  { %v335_v0 = vld [vmem:[%s446_s1 + $0x40] sm:$0xff]   ;;  %v337_v2 = vld [vmem:[%s446_s1 + $0x48] sm:$0xff]   ;;  %v339_v4 = vld [vmem:[%s446_s1 + $0x50] sm:$0xff]  }
   0x2   :  { %v336_v1 = vld [vmem:[%s446_s1] sm:$0xff]   ;;  %291 = vmatprep.subr.bf16.mxu0 %v335_v0  ;;  %319 = vmatprep.subr.bf16.mxu1 %v335_v0  ;;  %v338_v3 = vld [vmem:[%s446_s1 + $0x8] sm:$0xff]   ;;  %v340_v5 = vld [vmem:[%s446_s1 + $0x10] sm:$0xff]  }
   0x3   :  { %292 = vmatpush3.bf16.msra.mxu0 %v336_v1  ;;  %327 = vmatpush3.bf16.msra.mxu1 %v336_v1  ;;  %v341_v6 = vld [vmem:[%s446_s1 + $0x58] sm:$0xff]   ;;  %v343_v8 = vld [vmem:[%s446_s1 + $0x60] sm:$0xff]   ;;  %v345_v10 = vld [vmem:[%s446_s1 + $0x68] sm:$0xff]  }
   0x4   :  { %293 = vmatprep.subr.bf16.mxu0 %v337_v2  ;;  %320 = vmatprep.subr.bf16.mxu1 %v337_v2  ;;  %v342_v7 = vld [vmem:[%s446_s1 + $0x18] sm:$0xff]   ;;  %v344_v9 = vld [vmem:[%s446_s1 + $0x20] sm:$0xff]   ;;  %v346_v13 = vld [vmem:[%s446_s1 + $0x28] sm:$0xff]  }
   0x5   :  { %v353_v11 = vld [vmem:[%s447_s0 + $0x4] ss:$8 sps:$4 sm:$0xff]   ;;  %v356_v12 = vld [vmem:[%s447_s0 + $0x14] ss:$8 sps:$4 sm:$0xff]   ;;  %v351_v18 = vld [vmem:[%s447_s0] ss:$8 sps:$4 sm:$0xff]  }
   0x6   :  { %v347_v14 = vld [vmem:[%s446_s1 + $0x70] sm:$0xff]   ;;  %206 = vmatprep.mubr.bf16.mxu0 %v353_v11  ;;  %214 = vmatprep.mubr.bf16.mxu1 %v356_v12  ;;  %v349_v16 = vld [vmem:[%s446_s1 + $0x78] sm:$0xff]   ;;  %v251_v22 = vld [vmem:[%s448_s2] ss:$0 sm:$0xff] }
   0x7   :  { %294 = vmatpush3.bf16.msra.mxu0 %v338_v3  ;;  %328 = vmatpush3.bf16.msra.mxu1 %v338_v3  ;;  %v348_v15 = vld [vmem:[%s446_s1 + $0x30] sm:$0xff]   ;;  %v350_v17 = vld [vmem:[%s446_s1 + $0x38] sm:$0xff]  }
   0x8   :  { %295 = vmatprep.subr.bf16.mxu0 %v339_v4  ;;  %321 = vmatprep.subr.bf16.mxu1 %v339_v4  ;;  %v354_v19 = vld [vmem:[%s447_s0 + $0x10] ss:$8 sps:$4 sm:$0xff]  }
   0xb   :  { %296 = vmatpush3.bf16.msra.mxu0 %v340_v5  ;;  %329 = vmatpush3.bf16.msra.mxu1 %v340_v5 }
   0xc   :  { %297 = vmatprep.subr.bf16.mxu0 %v341_v6  ;;  %322 = vmatprep.subr.bf16.mxu1 %v341_v6 }
   0xf   :  { %298 = vmatpush3.bf16.msra.mxu0 %v342_v7  ;;  %330 = vmatpush3.bf16.msra.mxu1 %v342_v7 }
  0x10   :  { %299 = vmatprep.subr.bf16.mxu0 %v343_v8  ;;  %323 = vmatprep.subr.bf16.mxu1 %v343_v8 }
  0x13   :  { %300 = vmatpush3.bf16.msra.mxu0 %v344_v9  ;;  %331 = vmatpush3.bf16.msra.mxu1 %v344_v9 }
  0x14   :  { %301 = vmatprep.subr.bf16.mxu0 %v345_v10  ;;  %324 = vmatprep.subr.bf16.mxu1 %v345_v10 }
  0x17   :  { %302 = vmatpush3.bf16.msra.mxu0 %v346_v13  ;;  %332 = vmatpush3.bf16.msra.mxu1 %v346_v13 }
  0x18   :  { %303 = vmatprep.subr.bf16.mxu0 %v347_v14  ;;  %325 = vmatprep.subr.bf16.mxu1 %v347_v14 }
  0x1b   :  { %304 = vmatpush3.bf16.msra.mxu0 %v348_v15  ;;  %333 = vmatpush3.bf16.msra.mxu1 %v348_v15 }
  0x1c   :  { %305 = vmatprep.subr.bf16.mxu0 %v349_v16  ;;  %326 = vmatprep.subr.bf16.mxu1 %v349_v16 }
  0x1f   :  { %306 = vmatpush3.bf16.msra.mxu0 %v350_v17  ;;  %334 = vmatpush3.bf16.msra.mxu1 %v350_v17 }
  0x22   :  { %207 = vmatmul.mubr.bf16.vlgmr.msra.gmra.mrb[0].mxu0 %v351_v18  ;;  %215 = vmatmul.mubr.bf16.vlgmr.msra.gmra.mrb[0].mxu1 %v354_v19 }
  0xf5   :  { %v307_v20 = vpop.f32.mrb[0].mxu0  ;;  %v313_v21 = vpop.f32.mrb[0].mxu1 }
  0xf6   :  { %v308_v23 = vpop.f32.mrb[1].mxu0  ;;  %v314_v24 = vpop.f32.mrb[1].mxu1 }
  0xf7   :  { %v309_v25 = vadd.f32 %v308_v23, %v307_v20  ;;  %v315_v26 = vadd.f32 %v314_v24, %v313_v21  ;;  %v310_v27 = vpop.f32.mrb[2].mxu0  ;;  %v316_v28 = vpop.f32.mrb[2].mxu1 }
  0xf8   :  { %v311_v29 = vpop.f32.mrb[3].mxu0  ;;  %v317_v30 = vpop.f32.mrb[3].mxu1 }
  0xf9   :  { %v209_v31 = vadd.f32 %v309_v25, %v251_v22  ;;  %v217_v32 = vadd.f32 %v315_v26, %v251_v22  ;;  %v312_v33 = vadd.f32 %v311_v29, %v310_v27  ;;  %v318_v34 = vadd.f32 %v317_v30, %v316_v28 }
  0xfb   :  { %v212_v35 = vadd.f32 %v312_v33, %v251_v22  ;;  %v220_v36 = vadd.f32 %v318_v34, %v251_v22  ;;  %v223_v37 = vmax.f32 %v209_v31, 0.0  ;;  %v225_v38 = vmax.f32 %v217_v32, 0.0 }
  0xfd   :  { %v224_v39 = vmax.f32 %v212_v35, 0.0  ;;  %v226_v40 = vmax.f32 %v220_v36, 0.0 }
  0xff   :  { %v283_v41 = vpack.c.bf16 %v224_v39, %v223_v37  ;;  %v288_v42 = vpack.c.bf16 %v226_v40, %v225_v38 }
 0x101   :  { %284 = vst [vmem:[%s449_s3] sm:$0xff] %v283_v41   ;;  %290 = vst [vmem:[%s449_s3 + $0x8] sm:$0xff] %v288_v42  }

// kernel: forward.39
= control target key start
LH: loop header
LB: loop body
LE: loop exit
PB: predicated region body
PF: predicated region fallthrough
CT: control target
= control target key end

     0   :  { %s924_s1 = inlined_call_operand.vmem [shape: bf16[256,512], index: 1, kind: input, shape index: {}]   ;;  %s925_s0 = inlined_call_operand.vmem [shape: bf16[8,256], index: 0, kind: input, shape index: {}]   ;;  %s926_s2 = inlined_call_operand.vmem [shape: f32[1,512], index: 2, kind: input, shape index: {}]   ;;  %s927_s3 = inlined_call_operand.vmem [shape: bf16[8,512], index: 3, kind: output, shape index: {}]  }
   0x1   :  { %v602_v0 = vld [vmem:[%s924_s1 + $0x4] ss:$16 sps:$4 sm:$0xff]   ;;  %v604_v1 = vld [vmem:[%s924_s1 + $0xc] ss:$16 sps:$4 sm:$0xff]   ;;  %v606_v2 = vld [vmem:[%s924_s1] ss:$16 sps:$4 sm:$0xff]  }
   0x2   :  { %428 = vmatprep.subr.bf16.mxu0 %v602_v0  ;;  %v607_v3 = vld [vmem:[%s924_s1 + $0x8] ss:$16 sps:$4 sm:$0xff]   ;;  %469 = vmatprep.subr.bf16.mxu1 %v604_v1  ;;  %v608_v4 = vld [vmem:[%s924_s1 + $0x24] ss:$16 sps:$4 sm:$0xff]   ;;  %v610_v5 = vld [vmem:[%s924_s1 + $0x2c] ss:$16 sps:$4 sm:$0xff]  }
   0x3   :  { %429 = vmatpush1.bf16.msra.mxu0 %v606_v2  ;;  %470 = vmatpush1.bf16.msra.mxu1 %v607_v3  ;;  %v612_v6 = vld [vmem:[%s924_s1 + $0x20] ss:$16 sps:$4 sm:$0xff]   ;;  %v613_v7 = vld [vmem:[%s924_s1 + $0x28] ss:$16 sps:$4 sm:$0xff]   ;;  %v614_v8 = vld [vmem:[%s924_s1 + $0x44] ss:$16 sps:$4 sm:$0xff]   ;;  %v81_v3 = vlaneseq }
   0x4   :  { %430 = vmatprep.subr.bf16.mxu0 %v608_v4  ;;  %471 = vmatprep.subr.bf16.mxu1 %v610_v5  ;;  %v616_v9 = vld [vmem:[%s924_s1 + $0x4c] ss:$16 sps:$4 sm:$0xff]   ;;  %v618_v10 = vld [vmem:[%s924_s1 + $0x40] ss:$16 sps:$4 sm:$0xff]   ;;  %v619_v11 = vld [vmem:[%s924_s1 + $0x48] ss:$16 sps:$4 sm:$0xff]  }
   0x5   :  { %v620_v12 = vld [vmem:[%s924_s1 + $0x64] ss:$16 sps:$4 sm:$0xff]   ;;  %v622_v13 = vld [vmem:[%s924_s1 + $0x6c] ss:$16 sps:$4 sm:$0xff]   ;;  %v624_v14 = vld [vmem:[%s924_s1 + $0x60] ss:$16 sps:$4 sm:$0xff]  }
   0x6   :  { %v625_v15 = vld [vmem:[%s924_s1 + $0x68] ss:$16 sps:$4 sm:$0xff]   ;;  %v626_v16 = vld [vmem:[%s924_s1 + $0x84] ss:$16 sps:$4 sm:$0xff]   ;;  %v628_v17 = vld [vmem:[%s924_s1 + $0x8c] ss:$16 sps:$4 sm:$0xff]  }
   0x7   :  { %431 = vmatpush1.bf16.msra.mxu0 %v612_v6  ;;  %472 = vmatpush1.bf16.msra.mxu1 %v613_v7  ;;  %v630_v18 = vld [vmem:[%s924_s1 + $0x80] ss:$16 sps:$4 sm:$0xff]   ;;  %v631_v19 = vld [vmem:[%s924_s1 + $0x88] ss:$16 sps:$4 sm:$0xff]   ;;  %v632_v20 = vld [vmem:[%s924_s1 + $0xa4] ss:$16 sps:$4 sm:$0xff]  }
   0x8   :  { %432 = vmatprep.subr.bf16.mxu0 %v614_v8  ;;  %473 = vmatprep.subr.bf16.mxu1 %v616_v9  ;;  %v634_v21 = vld [vmem:[%s924_s1 + $0xac] ss:$16 sps:$4 sm:$0xff]   ;;  %v636_v22 = vld [vmem:[%s924_s1 + $0xa0] ss:$16 sps:$4 sm:$0xff]   ;;  %v637_v23 = vld [vmem:[%s924_s1 + $0xa8] ss:$16 sps:$4 sm:$0xff]  }
   0x9   :  { %v638_v24 = vld [vmem:[%s924_s1 + $0xc4] ss:$16 sps:$4 sm:$0xff]   ;;  %v640_v25 = vld [vmem:[%s924_s1 + $0xcc] ss:$16 sps:$4 sm:$0xff]   ;;  %v642_v26 = vld [vmem:[%s924_s1 + $0xc0] ss:$16 sps:$4 sm:$0xff]  }
   0xa   :  { %v643_v27 = vld [vmem:[%s924_s1 + $0xc8] ss:$16 sps:$4 sm:$0xff]   ;;  %v644_v28 = vld [vmem:[%s924_s1 + $0xe4] ss:$16 sps:$4 sm:$0xff]   ;;  %v646_v29 = vld [vmem:[%s924_s1 + $0xec] ss:$16 sps:$4 sm:$0xff]  }
   0xb   :  { %433 = vmatpush1.bf16.msra.mxu0 %v618_v10  ;;  %474 = vmatpush1.bf16.msra.mxu1 %v619_v11  ;;  %v648_v30 = vld [vmem:[%s924_s1 + $0xe0] ss:$16 sps:$4 sm:$0xff]   ;;  %v649_v31 = vld [vmem:[%s924_s1 + $0xe8] ss:$16 sps:$4 sm:$0xff]   ;;  %v650_v32 = vld [vmem:[%s924_s1 + $0x104] ss:$16 sps:$4 sm:$0xff]  }
   0xc   :  { %434 = vmatprep.subr.bf16.mxu0 %v620_v12  ;;  %475 = vmatprep.subr.bf16.mxu1 %v622_v13  ;;  %v652_v33 = vld [vmem:[%s924_s1 + $0x10c] ss:$16 sps:$4 sm:$0xff]   ;;  %v654_v34 = vld [vmem:[%s924_s1 + $0x100] ss:$16 sps:$4 sm:$0xff]   ;;  %v655_v35 = vld [vmem:[%s924_s1 + $0x108] ss:$16 sps:$4 sm:$0xff]  }
   0xd   :  { %v656_v36 = vld [vmem:[%s924_s1 + $0x124] ss:$16 sps:$4 sm:$0xff]   ;;  %v658_v37 = vld [vmem:[%s924_s1 + $0x12c] ss:$16 sps:$4 sm:$0xff]   ;;  %v660_v38 = vld [vmem:[%s924_s1 + $0x120] ss:$16 sps:$4 sm:$0xff]  }
   0xe   :  { %v661_v39 = vld [vmem:[%s924_s1 + $0x128] ss:$16 sps:$4 sm:$0xff]   ;;  %v662_v40 = vld [vmem:[%s924_s1 + $0x144] ss:$16 sps:$4 sm:$0xff]   ;;  %v664_v41 = vld [vmem:[%s924_s1 + $0x14c] ss:$16 sps:$4 sm:$0xff]  }
   0xf   :  { %435 = vmatpush1.bf16.msra.mxu0 %v624_v14  ;;  %476 = vmatpush1.bf16.msra.mxu1 %v625_v15  ;;  %v666_v42 = vld [vmem:[%s924_s1 + $0x140] ss:$16 sps:$4 sm:$0xff]   ;;  %v667_v43 = vld [vmem:[%s924_s1 + $0x148] ss:$16 sps:$4 sm:$0xff]   ;;  %v668_v44 = vld [vmem:[%s924_s1 + $0x164] ss:$16 sps:$4 sm:$0xff]  }
  0x10   :  { %436 = vmatprep.subr.bf16.mxu0 %v626_v16  ;;  %477 = vmatprep.subr.bf16.mxu1 %v628_v17  ;;  %v670_v45 = vld [vmem:[%s924_s1 + $0x16c] ss:$16 sps:$4 sm:$0xff]   ;;  %v14_v46 = vld [vmem:[%s925_s0] sm:$0xff]  ;;  %v673_v49 = vld [vmem:[%s924_s1 + $0x168] ss:$16 sps:$4 sm:$0xff]   ;;  %v82_v4 = vshrl.u32 %v81_v3, 7 }
  0x11   :  { %v533_v47 = vcombine.high %v14_v46, %v14_v46  ;;  %v672_v48 = vld [vmem:[%s924_s1 + $0x160] ss:$16 sps:$4 sm:$0xff]   ;;  %v674_v50 = vld [vmem:[%s924_s1 + $0x184] ss:$16 sps:$4 sm:$0xff]   ;;  %v676_v51 = vld [vmem:[%s924_s1 + $0x18c] ss:$16 sps:$4 sm:$0xff]   ;;  %v532_v2 = vcombine.low %v14_v46, %v14_v46 }
  0x12   :  { %v678_v52 = vld [vmem:[%s924_s1 + $0x180] ss:$16 sps:$4 sm:$0xff]   ;;  %v679_v53 = vld [vmem:[%s924_s1 + $0x188] ss:$16 sps:$4 sm:$0xff]   ;;  %v680_v54 = vld [vmem:[%s924_s1 + $0x1a4] ss:$16 sps:$4 sm:$0xff]  }
  0x13   :  { %437 = vmatpush1.bf16.msra.mxu0 %v630_v18  ;;  %478 = vmatpush1.bf16.msra.mxu1 %v631_v19  ;;  %v682_v55 = vld [vmem:[%s924_s1 + $0x1ac] ss:$16 sps:$4 sm:$0xff]   ;;  %v684_v56 = vld [vmem:[%s924_s1 + $0x1a0] ss:$16 sps:$4 sm:$0xff]   ;;  %v685_v57 = vld [vmem:[%s924_s1 + $0x1a8] ss:$16 sps:$4 sm:$0xff]  }
  0x14   :  { %438 = vmatprep.subr.bf16.mxu0 %v632_v20  ;;  %479 = vmatprep.subr.bf16.mxu1 %v634_v21  ;;  %v686_v58 = vld [vmem:[%s924_s1 + $0x1c4] ss:$16 sps:$4 sm:$0xff]   ;;  %v688_v59 = vld [vmem:[%s924_s1 + $0x1cc] ss:$16 sps:$4 sm:$0xff]   ;;  %v690_v60 = vld [vmem:[%s924_s1 + $0x1c0] ss:$16 sps:$4 sm:$0xff]  }
  0x15   :  { %460 = vmatprep.mubr.bf16.mxu0 %v533_v47  ;;  %501 = vmatprep.mubr.bf16.mxu1 %v533_v47  ;;  %v691_v61 = vld [vmem:[%s924_s1 + $0x1c8] ss:$16 sps:$4 sm:$0xff]   ;;  %v692_v62 = vld [vmem:[%s924_s1 + $0x1e4] ss:$16 sps:$4 sm:$0xff]   ;;  %v694_v63 = vld [vmem:[%s924_s1 + $0x1ec] ss:$16 sps:$4 sm:$0xff]  }
  0x16   :  { %v696_v0 = vld [vmem:[%s924_s1 + $0x1e0] ss:$16 sps:$4 sm:$0xff]   ;;  %v697_v1 = vld [vmem:[%s924_s1 + $0x1e8] ss:$16 sps:$4 sm:$0xff]   ;;  %v83_v5 = vsub.s32 0, %v82_v4  ;;  %v91_v6 = vsub.s32 2, %v82_v4 }
  0x17   :  { %439 = vmatpush1.bf16.msra.mxu0 %v636_v22  ;;  %480 = vmatpush1.bf16.msra.mxu1 %v637_v23  ;;  %v79_v7 = vld [vmem:[%s926_s2] sm:$0xf]  ;;  %v87_v8 = vsub.s32 1, %v82_v4  ;;  %v95_v9 = vsub.s32 3, %v82_v4 }
  0x18   :  { %440 = vmatprep.subr.bf16.mxu0 %v638_v24  ;;  %481 = vmatprep.subr.bf16.mxu1 %v640_v25  ;;  %v84_v10 = vrot.slane %v79_v7, %v83_v5  ;;  %v92_v11 = vrot.slane %v79_v7, %v91_v6 }
  0x19   :  { %v88_v12 = vrot.slane %v79_v7, %v87_v8  ;;  %v96_v13 = vrot.slane %v79_v7, %v95_v9 }
  0x1b   :  { %441 = vmatpush1.bf16.msra.mxu0 %v642_v26  ;;  %482 = vmatpush1.bf16.msra.mxu1 %v643_v27 }
  0x1c   :  { %442 = vmatprep.subr.bf16.mxu0 %v644_v28  ;;  %483 = vmatprep.subr.bf16.mxu1 %v646_v29 }
  0x1f   :  { %443 = vmatpush1.bf16.msra.mxu0 %v648_v30  ;;  %484 = vmatpush1.bf16.msra.mxu1 %v649_v31 }
  0x20   :  { %444 = vmatprep.subr.bf16.mxu0 %v650_v32  ;;  %485 = vmatprep.subr.bf16.mxu1 %v652_v33 }
  0x23   :  { %445 = vmatpush1.bf16.msra.mxu0 %v654_v34  ;;  %486 = vmatpush1.bf16.msra.mxu1 %v655_v35 }
  0x24   :  { %446 = vmatprep.subr.bf16.mxu0 %v656_v36  ;;  %487 = vmatprep.subr.bf16.mxu1 %v658_v37 }
  0x27   :  { %447 = vmatpush1.bf16.msra.mxu0 %v660_v38  ;;  %488 = vmatpush1.bf16.msra.mxu1 %v661_v39 }
  0x28   :  { %448 = vmatprep.subr.bf16.mxu0 %v662_v40  ;;  %489 = vmatprep.subr.bf16.mxu1 %v664_v41 }
  0x2b   :  { %449 = vmatpush1.bf16.msra.mxu0 %v666_v42  ;;  %490 = vmatpush1.bf16.msra.mxu1 %v667_v43 }
  0x2c   :  { %450 = vmatprep.subr.bf16.mxu0 %v668_v44  ;;  %491 = vmatprep.subr.bf16.mxu1 %v670_v45 }
  0x2f   :  { %451 = vmatpush1.bf16.msra.mxu0 %v672_v48  ;;  %492 = vmatpush1.bf16.msra.mxu1 %v673_v49 }
  0x30   :  { %452 = vmatprep.subr.bf16.mxu0 %v674_v50  ;;  %493 = vmatprep.subr.bf16.mxu1 %v676_v51 }
  0x33   :  { %453 = vmatpush1.bf16.msra.mxu0 %v678_v52  ;;  %494 = vmatpush1.bf16.msra.mxu1 %v679_v53 }
  0x34   :  { %454 = vmatprep.subr.bf16.mxu0 %v680_v54  ;;  %495 = vmatprep.subr.bf16.mxu1 %v682_v55 }
  0x37   :  { %455 = vmatpush1.bf16.msra.mxu0 %v684_v56  ;;  %496 = vmatpush1.bf16.msra.mxu1 %v685_v57 }
  0x38   :  { %456 = vmatprep.subr.bf16.mxu0 %v686_v58  ;;  %497 = vmatprep.subr.bf16.mxu1 %v688_v59 }
  0x3b   :  { %457 = vmatpush1.bf16.msra.mxu0 %v690_v60  ;;  %498 = vmatpush1.bf16.msra.mxu1 %v691_v61 }
  0x3c   :  { %458 = vmatprep.subr.bf16.mxu0 %v692_v62  ;;  %499 = vmatprep.subr.bf16.mxu1 %v694_v63 }
  0x3f   :  { %459 = vmatpush1.bf16.msra.mxu0 %v696_v0  ;;  %500 = vmatpush1.bf16.msra.mxu1 %v697_v1 }
  0x42   :  { %461 = vmatmul.mubr.bf16.vlgmr.msra.gmra.mrb[0].mxu0 %v532_v2  ;;  %502 = vmatmul.mubr.bf16.vlgmr.msra.gmra.mrb[0].mxu1 %v532_v2 }
 0x115   :  { %v462_v14 = vpop.f32.mrb[0].mxu0  ;;  %v503_v15 = vpop.f32.mrb[0].mxu1 }
 0x116   :  { %v463_v16 = vadd.f32 %v462_v14, %v84_v10  ;;  %v504_v17 = vadd.f32 %v503_v15, %v92_v11  ;;  %v464_v18 = vpop.f32.mrb[1].mxu0  ;;  %v505_v19 = vpop.f32.mrb[1].mxu1 }
 0x117   :  { %v465_v20 = vadd.f32 %v464_v18, %v88_v12  ;;  %v506_v21 = vadd.f32 %v505_v19, %v96_v13  ;;  %v466_v22 = vpop.f32.mrb[2].mxu0  ;;  %v507_v23 = vpop.f32.mrb[2].mxu1 }
 0x118   :  { %v467_v24 = vpop.f32.mrb[3].mxu0  ;;  %v508_v25 = vpop.f32.mrb[3].mxu1 }
 0x119   :  { %v600_v26 = vpack.c.bf16 %v465_v20, %v463_v16  ;;  %v601_v27 = vpack.c.bf16 %v506_v21, %v504_v17 }
 0x11b   :  { %526 = vst [vmem:[%s927_s3] sm:$0xff] %v600_v26  ;;  %527 = vst [vmem:[%s927_s3 + $0x8] sm:$0xff] %v601_v27 }

// kernel: forward.40
= control target key start
LH: loop header
LB: loop body
LE: loop exit
PB: predicated region body
PF: predicated region fallthrough
CT: control target
= control target key end

     0   :  { %v436_v1 = vmov 0   ;;  %v53_v34 = vlaneseq  ;;  %s576_s1 = inlined_call_operand.vmem [shape: bf16[128,512], index: 1, kind: input, shape index: {}]   ;;  %s577_s0 = inlined_call_operand.vmem [shape: bf16[8,128], index: 0, kind: input, shape index: {}]   ;;  %s578_s2 = inlined_call_operand.vmem [shape: f32[1,512], index: 2, kind: input, shape index: {}]   ;;  %s579_s3 = inlined_call_operand.vmem [shape: bf16[8,512], index: 3, kind: input, shape index: {}]   ;;  %s580_s4 = inlined_call_operand.vmem [shape: bf16[8,512], index: 4, kind: output, shape index: {}]  }
   0x1   :  { %v388_v0 = vld [vmem:[%s576_s1 + $0x4] ss:$16 sps:$4 sm:$0xff]   ;;  %265 = vmatprep.mubr.bf16.mxu0 %v436_v1  ;;  %306 = vmatprep.mubr.bf16.mxu1 %v436_v1  ;;  %v390_v2 = vld [vmem:[%s576_s1 + $0xc] ss:$16 sps:$4 sm:$0xff]   ;;  %v392_v3 = vld [vmem:[%s576_s1] ss:$16 sps:$4 sm:$0xff]  }
   0x2   :  { %233 = vmatprep.subr.bf16.mxu0 %v388_v0  ;;  %v393_v4 = vld [vmem:[%s576_s1 + $0x8] ss:$16 sps:$4 sm:$0xff]   ;;  %274 = vmatprep.subr.bf16.mxu1 %v390_v2  ;;  %v394_v5 = vld [vmem:[%s576_s1 + $0x24] ss:$16 sps:$4 sm:$0xff]   ;;  %v396_v6 = vld [vmem:[%s576_s1 + $0x2c] ss:$16 sps:$4 sm:$0xff]  }
   0x3   :  { %234 = vmatpush1.bf16.msra.mxu0 %v392_v3  ;;  %275 = vmatpush1.bf16.msra.mxu1 %v393_v4  ;;  %v398_v7 = vld [vmem:[%s576_s1 + $0x20] ss:$16 sps:$4 sm:$0xff]   ;;  %v399_v8 = vld [vmem:[%s576_s1 + $0x28] ss:$16 sps:$4 sm:$0xff]   ;;  %v400_v9 = vld [vmem:[%s576_s1 + $0x44] ss:$16 sps:$4 sm:$0xff]  }
   0x4   :  { %235 = vmatprep.subr.bf16.mxu0 %v394_v5  ;;  %276 = vmatprep.subr.bf16.mxu1 %v396_v6  ;;  %v402_v10 = vld [vmem:[%s576_s1 + $0x4c] ss:$16 sps:$4 sm:$0xff]   ;;  %v404_v11 = vld [vmem:[%s576_s1 + $0x40] ss:$16 sps:$4 sm:$0xff]   ;;  %v405_v12 = vld [vmem:[%s576_s1 + $0x48] ss:$16 sps:$4 sm:$0xff]  }
   0x5   :  { %v406_v13 = vld [vmem:[%s576_s1 + $0x64] ss:$16 sps:$4 sm:$0xff]   ;;  %v408_v14 = vld [vmem:[%s576_s1 + $0x6c] ss:$16 sps:$4 sm:$0xff]   ;;  %v410_v15 = vld [vmem:[%s576_s1 + $0x60] ss:$16 sps:$4 sm:$0xff]  }
   0x6   :  { %v411_v16 = vld [vmem:[%s576_s1 + $0x68] ss:$16 sps:$4 sm:$0xff]   ;;  %v412_v17 = vld [vmem:[%s576_s1 + $0x84] ss:$16 sps:$4 sm:$0xff]   ;;  %v414_v18 = vld [vmem:[%s576_s1 + $0x8c] ss:$16 sps:$4 sm:$0xff]  }
   0x7   :  { %236 = vmatpush1.bf16.msra.mxu0 %v398_v7  ;;  %277 = vmatpush1.bf16.msra.mxu1 %v399_v8  ;;  %v416_v19 = vld [vmem:[%s576_s1 + $0x80] ss:$16 sps:$4 sm:$0xff]   ;;  %v417_v20 = vld [vmem:[%s576_s1 + $0x88] ss:$16 sps:$4 sm:$0xff]   ;;  %v418_v21 = vld [vmem:[%s576_s1 + $0xa4] ss:$16 sps:$4 sm:$0xff]  }
   0x8   :  { %237 = vmatprep.subr.bf16.mxu0 %v400_v9  ;;  %278 = vmatprep.subr.bf16.mxu1 %v402_v10  ;;  %v420_v22 = vld [vmem:[%s576_s1 + $0xac] ss:$16 sps:$4 sm:$0xff]   ;;  %v422_v23 = vld [vmem:[%s576_s1 + $0xa0] ss:$16 sps:$4 sm:$0xff]   ;;  %v423_v24 = vld [vmem:[%s576_s1 + $0xa8] ss:$16 sps:$4 sm:$0xff]  }
   0x9   :  { %v424_v25 = vld [vmem:[%s576_s1 + $0xc4] ss:$16 sps:$4 sm:$0xff]   ;;  %v426_v26 = vld [vmem:[%s576_s1 + $0xcc] ss:$16 sps:$4 sm:$0xff]   ;;  %v428_v27 = vld [vmem:[%s576_s1 + $0xc0] ss:$16 sps:$4 sm:$0xff]  }
   0xa   :  { %v429_v28 = vld [vmem:[%s576_s1 + $0xc8] ss:$16 sps:$4 sm:$0xff]   ;;  %v430_v29 = vld [vmem:[%s576_s1 + $0xe4] ss:$16 sps:$4 sm:$0xff]   ;;  %v432_v30 = vld [vmem:[%s576_s1 + $0xec] ss:$16 sps:$4 sm:$0xff]  }
   0xb   :  { %238 = vmatpush1.bf16.msra.mxu0 %v404_v11  ;;  %279 = vmatpush1.bf16.msra.mxu1 %v405_v12  ;;  %v434_v31 = vld [vmem:[%s576_s1 + $0xe0] ss:$16 sps:$4 sm:$0xff]   ;;  %v435_v32 = vld [vmem:[%s576_s1 + $0xe8] ss:$16 sps:$4 sm:$0xff]   ;;  %v54_v35 = vshrl.u32 %v53_v34, 7 }
   0xc   :  { %239 = vmatprep.subr.bf16.mxu0 %v406_v13  ;;  %280 = vmatprep.subr.bf16.mxu1 %v408_v14  ;;  %v18_v33 = vld [vmem:[%s577_s0] sm:$0xf]  ;;  %v316_v42 = vld [vmem:[%s579_s3 + $0x8] sm:$0xff] }
   0xd   :  { %v55_v36 = vsub.s32 0, %v54_v35  ;;  %v63_v37 = vsub.s32 2, %v54_v35  ;;  %v51_v38 = vld [vmem:[%s578_s2] sm:$0xf]  ;;  %v59_v39 = vsub.s32 1, %v54_v35  ;;  %v67_v40 = vsub.s32 3, %v54_v35 }
   0xe   :  { %v315_v41 = vld [vmem:[%s579_s3] sm:$0xff]  ;;  %v319_v48 = vunpack.c.l.bf16 %v316_v42  ;;  %v320_v52 = vunpack.c.h.bf16 %v316_v42 }
   0xf   :  { %240 = vmatpush1.bf16.msra.mxu0 %v410_v15  ;;  %281 = vmatpush1.bf16.msra.mxu1 %v411_v16  ;;  %v56_v43 = vrot.slane %v51_v38, %v55_v36  ;;  %v64_v44 = vrot.slane %v51_v38, %v63_v37  ;;  %v60_v45 = vrot.slane %v51_v38, %v59_v39  ;;  %v317_v47 = vunpack.c.l.bf16 %v315_v41 }
  0x10   :  { %241 = vmatprep.subr.bf16.mxu0 %v412_v17  ;;  %282 = vmatprep.subr.bf16.mxu1 %v414_v18  ;;  %v68_v46 = vrot.slane %v51_v38, %v67_v40  ;;  %v318_v51 = vunpack.c.h.bf16 %v315_v41 }
  0x13   :  { %242 = vmatpush1.bf16.msra.mxu0 %v416_v19  ;;  %283 = vmatpush1.bf16.msra.mxu1 %v417_v20 }
  0x14   :  { %243 = vmatprep.subr.bf16.mxu0 %v418_v21  ;;  %284 = vmatprep.subr.bf16.mxu1 %v420_v22 }
  0x17   :  { %244 = vmatpush1.bf16.msra.mxu0 %v422_v23  ;;  %285 = vmatpush1.bf16.msra.mxu1 %v423_v24 }
  0x18   :  { %245 = vmatprep.subr.bf16.mxu0 %v424_v25  ;;  %286 = vmatprep.subr.bf16.mxu1 %v426_v26 }
  0x1b   :  { %246 = vmatpush1.bf16.msra.mxu0 %v428_v27  ;;  %287 = vmatpush1.bf16.msra.mxu1 %v429_v28 }
  0x1c   :  { %247 = vmatprep.subr.bf16.mxu0 %v430_v29  ;;  %288 = vmatprep.subr.bf16.mxu1 %v432_v30 }
  0x1f   :  { %248 = vmatpush1.bf16.msra.mxu0 %v434_v31  ;;  %289 = vmatpush1.bf16.msra.mxu1 %v435_v32 }
  0x22   :  { %266 = vmatmul.mubr.bf16.vlgmr.msra.gmra.mrb[0].mxu0 %v18_v33  ;;  %307 = vmatmul.mubr.bf16.vlgmr.msra.gmra.mrb[0].mxu1 %v18_v33 }
  0xf5   :  { %v267_v49 = vpop.f32.mrb[0].mxu0  ;;  %v308_v50 = vpop.f32.mrb[0].mxu1 }
  0xf6   :  { %v268_v53 = vadd.f32 %v267_v49, %v56_v43  ;;  %v309_v54 = vadd.f32 %v308_v50, %v64_v44  ;;  %v269_v55 = vpop.f32.mrb[1].mxu0  ;;  %v310_v56 = vpop.f32.mrb[1].mxu1 }
  0xf7   :  { %v270_v57 = vadd.f32 %v269_v55, %v60_v45  ;;  %v311_v58 = vadd.f32 %v310_v56, %v68_v46  ;;  %v271_v59 = vpop.f32.mrb[2].mxu0  ;;  %v312_v60 = vpop.f32.mrb[2].mxu1 }
  0xf8   :  { %v321_v61 = vadd.f32 %v317_v47, %v268_v53  ;;  %v323_v62 = vadd.f32 %v319_v48, %v309_v54  ;;  %v272_v63 = vpop.f32.mrb[3].mxu0  ;;  %v313_v0 = vpop.f32.mrb[3].mxu1 }
  0xf9   :  { %v322_v1 = vadd.f32 %v318_v51, %v270_v57  ;;  %v324_v2 = vadd.f32 %v320_v52, %v311_v58 }
  0xfa   :  { %v325_v3 = vmax.f32 %v321_v61, 0.0  ;;  %v327_v4 = vmax.f32 %v323_v62, 0.0 }
  0xfb   :  { %v326_v5 = vmax.f32 %v322_v1, 0.0  ;;  %v328_v6 = vmax.f32 %v324_v2, 0.0 }
  0xfd   :  { %v385_v7 = vpack.c.bf16 %v326_v5, %v325_v3  ;;  %v386_v8 = vpack.c.bf16 %v328_v6, %v327_v4 }
  0xff   :  { %345 = vst [vmem:[%s580_s4] sm:$0xff] %v385_v7  ;;  %346 = vst [vmem:[%s580_s4 + $0x8] sm:$0xff] %v386_v8 }

// kernel: forward.38
= control target key start
LH: loop header
LB: loop body
LE: loop exit
PB: predicated region body
PF: predicated region fallthrough
CT: control target
= control target key end

     0   :  { %vm1125_vm0 = vmmov 0   ;;  %s1383_s1 = inlined_call_operand.vmem [shape: bf16[1152,128], index: 1, kind: input, shape index: {}]   ;;  %s1384_s0 = inlined_call_operand.vmem [shape: bf16[8,1152], index: 0, kind: input, shape index: {}]   ;;  %s1385_s2 = inlined_call_operand.vmem [shape: f32[1,128], index: 2, kind: input, shape index: {}]   ;;  %s1386_s3 = inlined_call_operand.vmem [shape: bf16[8,128], index: 3, kind: output, shape index: {}]  }
   0x1   :  { %v1043_v0 = vld [vmem:[%s1383_s1 + $0x40] sm:$0xff]   ;;  %v1047_v4 = vld [vmem:[%s1383_s1 + $0x48] sm:$0xff]   ;;  %v1051_v8 = vld [vmem:[%s1383_s1 + $0x50] sm:$0xff]  }
   0x2   :  { %v1044_v1 = vld [vmem:[%s1383_s1] sm:$0xff]   ;;  %924 = vmatprep.subr.bf16.mxu0 %v1043_v0  ;;  %v1048_v5 = vld [vmem:[%s1383_s1 + $0x8] sm:$0xff]   ;;  %v1052_v9 = vld [vmem:[%s1383_s1 + $0x10] sm:$0xff]  }
   0x3   :  { %v1045_v2 = vld [vmem:[%s1383_s1 + $0xc0] sm:$0xff]   ;;  %925 = vmatpush3.bf16.msra.mxu0 %v1044_v1  ;;  %v1049_v6 = vld [vmem:[%s1383_s1 + $0xc8] sm:$0xff]   ;;  %v1053_v10 = vld [vmem:[%s1383_s1 + $0xd0] sm:$0xff]  }
   0x4   :  { %v1046_v3 = vld [vmem:[%s1383_s1 + $0x80] sm:$0xff]   ;;  %946 = vmatprep.subr.bf16.mxu1 %v1045_v2  ;;  %926 = vmatprep.subr.bf16.mxu0 %v1047_v4  ;;  %v1050_v7 = vld [vmem:[%s1383_s1 + $0x88] sm:$0xff]   ;;  %v1054_v11 = vld [vmem:[%s1383_s1 + $0x90] sm:$0xff]  }
   0x5   :  { %947 = vmatpush3.bf16.msra.mxu1 %v1046_v3  ;;  %v1055_v12 = vld [vmem:[%s1383_s1 + $0x58] sm:$0xff]   ;;  %v1059_v16 = vld [vmem:[%s1383_s1 + $0x60] sm:$0xff]   ;;  %v1063_v20 = vld [vmem:[%s1383_s1 + $0x68] sm:$0xff]  }
   0x6   :  { %948 = vmatprep.subr.bf16.mxu1 %v1049_v6  ;;  %v1056_v13 = vld [vmem:[%s1383_s1 + $0x18] sm:$0xff]   ;;  %v1060_v17 = vld [vmem:[%s1383_s1 + $0x20] sm:$0xff]   ;;  %v1064_v21 = vld [vmem:[%s1383_s1 + $0x28] sm:$0xff]  }
   0x7   :  { %927 = vmatpush3.bf16.msra.mxu0 %v1048_v5  ;;  %v1057_v14 = vld [vmem:[%s1383_s1 + $0xd8] sm:$0xff]   ;;  %v1061_v18 = vld [vmem:[%s1383_s1 + $0xe0] sm:$0xff]   ;;  %v1065_v22 = vld [vmem:[%s1383_s1 + $0xe8] sm:$0xff]  }
   0x8   :  { %928 = vmatprep.subr.bf16.mxu0 %v1051_v8  ;;  %v1058_v15 = vld [vmem:[%s1383_s1 + $0x98] sm:$0xff]   ;;  %v1062_v19 = vld [vmem:[%s1383_s1 + $0xa0] sm:$0xff]   ;;  %v1066_v23 = vld [vmem:[%s1383_s1 + $0xa8] sm:$0xff]  }
   0x9   :  { %949 = vmatpush3.bf16.msra.mxu1 %v1050_v7  ;;  %v1067_v24 = vld [vmem:[%s1383_s1 + $0x70] sm:$0xff]   ;;  %v1071_v28 = vld [vmem:[%s1383_s1 + $0x78] sm:$0xff]   ;;  %v15_v31 = vld [vmem:[%s1384_s0] sm:$0xff] }
   0xa   :  { %950 = vmatprep.subr.bf16.mxu1 %v1053_v10  ;;  %v1068_v25 = vld [vmem:[%s1383_s1 + $0x30] sm:$0xff]   ;;  %v1072_v29 = vld [vmem:[%s1383_s1 + $0x38] sm:$0xff]   ;;  %v843_v32 = vcombine.low %v15_v31, %v15_v31  ;;  %v844_v33 = vcombine.high %v15_v31, %v15_v31  ;;  %v1077_v35 = vld [vmem:[%s1383_s1 + $0x140] sm:$0xff]  }
   0xb   :  { %929 = vmatpush3.bf16.msra.mxu0 %v1052_v9  ;;  %v1069_v26 = vld [vmem:[%s1383_s1 + $0xf0] sm:$0xff]   ;;  %v1073_v30 = vld [vmem:[%s1383_s1 + $0xf8] sm:$0xff]   ;;  %v16_v36 = vld [vmem:[%s1384_s0 + $0x8] sm:$0xff]  ;;  %v1124_v9 = vmov 0.0  }
   0xc   :  { %930 = vmatprep.subr.bf16.mxu0 %v1055_v12  ;;  %v1070_v27 = vld [vmem:[%s1383_s1 + $0xb0] sm:$0xff]   ;;  %v1076_v34 = vld [vmem:[%s1383_s1 + $0xb8] sm:$0xff]   ;;  %667 = vmatprep.mubr.bf16.mxu0 %v844_v33  ;;  %v845_v37 = vcombine.low %v16_v36, %v16_v36  ;;  %v846_v38 = vcombine.high %v16_v36, %v16_v36  ;;  %v1080_v39 = vld [vmem:[%s1383_s1 + $0x100] sm:$0xff]  }
   0xd   :  { %951 = vmatpush3.bf16.msra.mxu1 %v1054_v11  ;;  %v1081_v40 = vld [vmem:[%s1383_s1 + $0x1c0] sm:$0xff]   ;;  %v1083_v42 = vld [vmem:[%s1383_s1 + $0x148] sm:$0xff]   ;;  %v1087_v46 = vld [vmem:[%s1383_s1 + $0x150] sm:$0xff]  }
   0xe   :  { %952 = vmatprep.subr.bf16.mxu1 %v1057_v14  ;;  %707 = vmatprep.mubr.bf16.mxu1 %v846_v38  ;;  %v1082_v41 = vld [vmem:[%s1383_s1 + $0x180] sm:$0xff]   ;;  %v1084_v43 = vld [vmem:[%s1383_s1 + $0x108] sm:$0xff]   ;;  %v1088_v47 = vld [vmem:[%s1383_s1 + $0x110] sm:$0xff]  }
   0xf   :  { %931 = vmatpush3.bf16.msra.mxu0 %v1056_v13  ;;  %v1085_v44 = vld [vmem:[%s1383_s1 + $0x1c8] sm:$0xff]   ;;  %v1089_v48 = vld [vmem:[%s1383_s1 + $0x1d0] sm:$0xff]   ;;  %v1091_v50 = vld [vmem:[%s1383_s1 + $0x158] sm:$0xff]  }
  0x10   :  { %932 = vmatprep.subr.bf16.mxu0 %v1059_v16  ;;  %v1086_v45 = vld [vmem:[%s1383_s1 + $0x188] sm:$0xff]   ;;  %v1090_v49 = vld [vmem:[%s1383_s1 + $0x190] sm:$0xff]   ;;  %v1092_v51 = vld [vmem:[%s1383_s1 + $0x118] sm:$0xff]  }
  0x11   :  { %953 = vmatpush3.bf16.msra.mxu1 %v1058_v15  ;;  %v1093_v52 = vld [vmem:[%s1383_s1 + $0x1d8] sm:$0xff]   ;;  %v1095_v54 = vld [vmem:[%s1383_s1 + $0x160] sm:$0xff]   ;;  %v1099_v58 = vld [vmem:[%s1383_s1 + $0x168] sm:$0xff]  }
  0x12   :  { %954 = vmatprep.subr.bf16.mxu1 %v1061_v18  ;;  %v1094_v53 = vld [vmem:[%s1383_s1 + $0x198] sm:$0xff]   ;;  %v1096_v55 = vld [vmem:[%s1383_s1 + $0x120] sm:$0xff]   ;;  %v1100_v59 = vld [vmem:[%s1383_s1 + $0x128] sm:$0xff]  }
  0x13   :  { %933 = vmatpush3.bf16.msra.mxu0 %v1060_v17  ;;  %v1097_v56 = vld [vmem:[%s1383_s1 + $0x1e0] sm:$0xff]   ;;  %v1101_v60 = vld [vmem:[%s1383_s1 + $0x1e8] sm:$0xff]   ;;  %v1103_v62 = vld [vmem:[%s1383_s1 + $0x170] sm:$0xff]  }
  0x14   :  { %934 = vmatprep.subr.bf16.mxu0 %v1063_v20  ;;  %v1098_v57 = vld [vmem:[%s1383_s1 + $0x1a0] sm:$0xff]   ;;  %v1102_v61 = vld [vmem:[%s1383_s1 + $0x1a8] sm:$0xff]   ;;  %v1104_v63 = vld [vmem:[%s1383_s1 + $0x130] sm:$0xff]  }
  0x15   :  { %955 = vmatpush3.bf16.msra.mxu1 %v1062_v19  ;;  %v1105_v0 = vld [vmem:[%s1383_s1 + $0x1f0] sm:$0xff]   ;;  %v1107_v2 = vld [vmem:[%s1383_s1 + $0x178] sm:$0xff]   ;;  %v1115_v13 = vld [vmem:[%s1383_s1 + $0x200] sm:$0xff]  }
  0x16   :  { %956 = vmatprep.subr.bf16.mxu1 %v1065_v22  ;;  %v1106_v1 = vld [vmem:[%s1383_s1 + $0x1b0] sm:$0xff]   ;;  %v1108_v3 = vld [vmem:[%s1383_s1 + $0x138] sm:$0xff]   ;;  %v1116_v14 = vld [vmem:[%s1383_s1 + $0x208] sm:$0xff]  }
  0x17   :  { %935 = vmatpush3.bf16.msra.mxu0 %v1064_v21  ;;  %v1109_v4 = vld [vmem:[%s1383_s1 + $0x1f8] sm:$0xff]   ;;  %v17_v5 = vld [vmem:[%s1384_s0 + $0x10] sm:$0xff]  ;;  %v1119_v17 = vld [vmem:[%s1383_s1 + $0x220] sm:$0xff]  }
  0x18   :  { %936 = vmatprep.subr.bf16.mxu0 %v1067_v24  ;;  %v847_v6 = vcombine.low %v17_v5, %v17_v5  ;;  %v848_v7 = vcombine.high %v17_v5, %v17_v5  ;;  %v1112_v8 = vld [vmem:[%s1383_s1 + $0x1b8] sm:$0xff]   ;;  %v1117_v15 = vld [vmem:[%s1383_s1 + $0x210] sm:$0xff]   ;;  %v1120_v18 = vld [vmem:[%s1383_s1 + $0x228] sm:$0xff]  }
  0x19   :  { %957 = vmatpush3.bf16.msra.mxu1 %v1066_v23  ;;  %v18_v10 = vld [vmem:[%s1384_s0 + $0x18] sm:$0xff]  ;;  %v1121_v19 = vld [vmem:[%s1383_s1 + $0x230] sm:$0xff]   ;;  %v1123_v21 = vld [vmem:[%s1384_s0 + $0x20] ss:$0 sps:$4 sm:$0xff]  }
  0x1a   :  { %958 = vmatprep.subr.bf16.mxu1 %v1069_v26  ;;  %v849_v11 = vcombine.low %v18_v10, %v18_v10  ;;  %v850_v12 = vcombine.high %v18_v10, %v18_v10  ;;  %v1118_v16 = vld [vmem:[%s1383_s1 + $0x218] sm:$0xff]   ;;  %v842_v23 = vld [vmem:[%s1385_s2] ss:$0 sm:$0xff] }
  0x1b   :  { %937 = vmatpush3.bf16.msra.mxu0 %v1068_v25  ;;  %v1122_v20 = vld [vmem:[%s1383_s1 + $0x238] sm:$0xff]  }
  0x1c   :  { %938 = vmatprep.subr.bf16.mxu0 %v1071_v28 }
  0x1d   :  { %959 = vmatpush3.bf16.msra.mxu1 %v1070_v27 }
  0x1e   :  { %960 = vmatprep.subr.bf16.mxu1 %v1073_v30 }
  0x1f   :  { %939 = vmatpush3.bf16.msra.mxu0 %v1072_v29 }
  0x20   :  { %968 = vmatprep.subr.bf16.mxu0 %v1077_v35 }
  0x21   :  { %961 = vmatpush3.bf16.msra.mxu1 %v1076_v34 }
  0x22   :  { %668 = vmatmul.mubr.bf16.vlgmr.msra.gmra.mrb[0].mxu0 %v843_v32  ;;  %990 = vmatprep.subr.bf16.mxu1 %v1081_v40 }
  0x23   :  { %969 = vmatpush3.bf16.msra.mxu0 %v1080_v39  ;;  %747 = vmatprep.mubr.bf16.mxu0 %v848_v7 }
  0x24   :  { %708 = vmatmul.mubr.bf16.vlgmr.msra.gmra.mrb[0].mxu1 %v845_v37  ;;  %970 = vmatprep.subr.bf16.mxu0 %v1083_v42 }
  0x25   :  { %991 = vmatpush3.bf16.msra.mxu1 %v1082_v41  ;;  %787 = vmatprep.mubr.bf16.mxu1 %v850_v12 }
  0x26   :  { %992 = vmatprep.subr.bf16.mxu1 %v1085_v44 }
  0x27   :  { %971 = vmatpush3.bf16.msra.mxu0 %v1084_v43 }
  0x28   :  { %972 = vmatprep.subr.bf16.mxu0 %v1087_v46 }
  0x29   :  { %993 = vmatpush3.bf16.msra.mxu1 %v1086_v45 }
  0x2a   :  { %994 = vmatprep.subr.bf16.mxu1 %v1089_v48 }
  0x2b   :  { %973 = vmatpush3.bf16.msra.mxu0 %v1088_v47 }
  0x2c   :  { %974 = vmatprep.subr.bf16.mxu0 %v1091_v50 }
  0x2d   :  { %995 = vmatpush3.bf16.msra.mxu1 %v1090_v49 }
  0x2e   :  { %996 = vmatprep.subr.bf16.mxu1 %v1093_v52 }
  0x2f   :  { %975 = vmatpush3.bf16.msra.mxu0 %v1092_v51 }
  0x30   :  { %976 = vmatprep.subr.bf16.mxu0 %v1095_v54 }
  0x31   :  { %997 = vmatpush3.bf16.msra.mxu1 %v1094_v53 }
  0x32   :  { %998 = vmatprep.subr.bf16.mxu1 %v1097_v56 }
  0x33   :  { %977 = vmatpush3.bf16.msra.mxu0 %v1096_v55 }
  0x34   :  { %978 = vmatprep.subr.bf16.mxu0 %v1099_v58 }
  0x35   :  { %999 = vmatpush3.bf16.msra.mxu1 %v1098_v57 }
  0x36   :  { %1000 = vmatprep.subr.bf16.mxu1 %v1101_v60 }
  0x37   :  { %979 = vmatpush3.bf16.msra.mxu0 %v1100_v59 }
  0x38   :  { %980 = vmatprep.subr.bf16.mxu0 %v1103_v62 }
  0x39   :  { %1001 = vmatpush3.bf16.msra.mxu1 %v1102_v61 }
  0x3a   :  { %1002 = vmatprep.subr.bf16.mxu1 %v1105_v0 }
  0x3b   :  { %981 = vmatpush3.bf16.msra.mxu0 %v1104_v63 }
  0x3c   :  { %982 = vmatprep.subr.bf16.mxu0 %v1107_v2 }
  0x3d   :  { %1003 = vmatpush3.bf16.msra.mxu1 %v1106_v1 }
  0x3e   :  { %1004 = vmatprep.subr.bf16.mxu1 %v1109_v4 }
  0x3f   :  { %983 = vmatpush3.bf16.msra.mxu0 %v1108_v3 }
  0x40   :  { %1021 = vmatprep.subr.bf16.mxu0 %v1124_v9 }
  0x41   :  { %1005 = vmatpush3.bf16.msra.mxu1 %v1112_v8 }
  0x42   :  { %748 = vmatmul.mubr.bf16.vlgmr.msra.gmra.mrb[4].mxu0 %v847_v6 }
  0x43   :  { %1022 = vmatpush3.bf16.msra.mxu0 %v1115_v13  ;;  %1037 = vmatprep.mubr.msk.bf16.mxu0 %vm1125_vm0, %v1124_v9 }
  0x44   :  { %788 = vmatmul.mubr.bf16.vlgmr.msra.gmra.mrb[4].mxu1 %v849_v11  ;;  %1023 = vmatprep.subr.bf16.mxu0 %v1124_v9 }
  0x47   :  { %1024 = vmatpush3.bf16.msra.mxu0 %v1116_v14 }
  0x48   :  { %1025 = vmatprep.subr.bf16.mxu0 %v1124_v9 }
  0x4b   :  { %1026 = vmatpush3.bf16.msra.mxu0 %v1117_v15 }
  0x4c   :  { %1027 = vmatprep.subr.bf16.mxu0 %v1124_v9 }
  0x4f   :  { %1028 = vmatpush3.bf16.msra.mxu0 %v1118_v16 }
  0x50   :  { %1029 = vmatprep.subr.bf16.mxu0 %v1124_v9 }
  0x53   :  { %1030 = vmatpush3.bf16.msra.mxu0 %v1119_v17 }
  0x54   :  { %1031 = vmatprep.subr.bf16.mxu0 %v1124_v9 }
  0x57   :  { %1032 = vmatpush3.bf16.msra.mxu0 %v1120_v18 }
  0x58   :  { %1033 = vmatprep.subr.bf16.mxu0 %v1124_v9 }
  0x5b   :  { %1034 = vmatpush3.bf16.msra.mxu0 %v1121_v19 }
  0x5c   :  { %1035 = vmatprep.subr.bf16.mxu0 %v1124_v9 }
  0x5f   :  { %1036 = vmatpush3.bf16.msra.mxu0 %v1122_v20 }
  0x62   :  { %1038 = vmatmul.mubr.bf16.vlgmr.msra.gmra.mrb[8].mxu0 %v1123_v21 }
  0xf5   :  { %v940_v22 = vpop.f32.mrb[0].mxu0 }
  0xf6   :  { %v941_v24 = vpop.f32.mrb[1].mxu0 }
  0xf7   :  { %v942_v25 = vadd.f32 %v941_v24, %v940_v22  ;;  %v943_v26 = vpop.f32.mrb[2].mxu0  ;;  %v962_v27 = vpop.f32.mrb[0].mxu1 }
  0xf8   :  { %v944_v28 = vpop.f32.mrb[3].mxu0  ;;  %v963_v29 = vpop.f32.mrb[1].mxu1 }
  0xf9   :  { %v670_v30 = vadd.f32 %v942_v25, %v842_v23  ;;  %v964_v31 = vadd.f32 %v963_v29, %v962_v27  ;;  %v965_v32 = vpop.f32.mrb[2].mxu1 }
  0xfa   :  { %v966_v33 = vpop.f32.mrb[3].mxu1 }
  0xfb   :  { %v710_v34 = vadd.f32 %v964_v31, %v670_v30 }
 0x115   :  { %v984_v35 = vpop.f32.mrb[4].mxu0 }
 0x116   :  { %v985_v36 = vpop.f32.mrb[5].mxu0 }
 0x117   :  { %v986_v37 = vadd.f32 %v985_v36, %v984_v35  ;;  %v987_v38 = vpop.f32.mrb[6].mxu0  ;;  %v1006_v39 = vpop.f32.mrb[4].mxu1 }
 0x118   :  { %v988_v40 = vpop.f32.mrb[7].mxu0  ;;  %v1007_v41 = vpop.f32.mrb[5].mxu1 }
 0x119   :  { %v750_v42 = vadd.f32 %v986_v37, %v710_v34  ;;  %v1008_v43 = vadd.f32 %v1007_v41, %v1006_v39  ;;  %v1009_v44 = vpop.f32.mrb[6].mxu1 }
 0x11a   :  { %v1010_v45 = vpop.f32.mrb[7].mxu1 }
 0x11b   :  { %v790_v46 = vadd.f32 %v1008_v43, %v750_v42 }
 0x135   :  { %v829_v47 = vpop.f32.mrb[8].mxu0 }
 0x136   :  { %v830_v48 = vadd.f32 %v829_v47, %v790_v46  ;;  %v1039_v49 = vpop.f32.mrb[9].mxu0 }
 0x137   :  { %v832_v50 = vpop.f32.mrb[10].mxu0 }
 0x138   :  { %v835_v51 = vmax.f32 %v830_v48, 0.0  ;;  %v1040_v52 = vpop.f32.mrb[11].mxu0 }
 0x13a   :  { %v836_v53 = vpack.c.bf16 %v835_v51, %v835_v51 }
 0x13c   :  { %837 = vst [vmem:[%s1386_s3] sm:$0xf] %v836_v53 }

// kernel: forward.41
= control target key start
LH: loop header
LB: loop body
LE: loop exit
PB: predicated region body
PF: predicated region fallthrough
CT: control target
= control target key end

     0   :  { %vm33_vm0 = vcmask 1043456   ;;  %s758_s0 = inlined_call_operand.vmem [shape: bf16[2,4,512], index: 0, kind: input, shape index: {}]   ;;  %s759_s1 = inlined_call_operand.vmem [shape: f32[512,10], index: 1, kind: input, shape index: {}]   ;;  %s760_s2 = inlined_call_operand.vmem [shape: f32[1,10], index: 2, kind: input, shape index: {}]   ;;  %s761_s3 = inlined_call_operand.hbm [shape: f32[2,10], index: 3, kind: output, shape index: {}]  }
   0x1   :  { %v115_v0 = vld [vmem:[%s759_s1 + $0x80] sm:$0xff]  ;;  %v116_v1 = vld [vmem:[%s759_s1 + $0x88] sm:$0xff]  ;;  %v117_v11 = vld [vmem:[%s759_s1 + $0x90] sm:$0xff] }
   0x2   :  { %v99_v2 = vld [vmem:[%s759_s1] sm:$0xff]  ;;  %v414_v3 = vpack.c.bf16 %v116_v1, %v115_v0  ;;  %v100_v4 = vld [vmem:[%s759_s1 + $0x8] sm:$0xff]  ;;  %v118_v13 = vld [vmem:[%s759_s1 + $0x98] sm:$0xff] }
   0x3   :  { %v147_v5 = vld [vmem:[%s759_s1 + $0x180] sm:$0xff]  ;;  %v148_v6 = vld [vmem:[%s759_s1 + $0x188] sm:$0xff]  ;;  %v416_v7 = vpack.c.bf16 %v100_v4, %v99_v2  ;;  %v101_v14 = vld [vmem:[%s759_s1 + $0x10] sm:$0xff]  ;;  %v418_v16 = vpack.c.bf16 %v118_v13, %v117_v11 }
   0x4   :  { %v446_v8 = vpack.c.bf16 %v148_v6, %v147_v5  ;;  %v131_v9 = vld [vmem:[%s759_s1 + $0x100] sm:$0xff]  ;;  %v132_v10 = vld [vmem:[%s759_s1 + $0x108] sm:$0xff]  ;;  %415 = vmatprep.subr.bf16.mxu0 %v414_v3  ;;  %v102_v15 = vld [vmem:[%s759_s1 + $0x18] sm:$0xff] }
   0x5   :  { %v448_v12 = vpack.c.bf16 %v132_v10, %v131_v9  ;;  %417 = vmatpush3.bf16.msra.mxu0 %v416_v7  ;;  %v420_v17 = vpack.c.bf16 %v102_v15, %v101_v14  ;;  %v149_v18 = vld [vmem:[%s759_s1 + $0x190] sm:$0xff]  ;;  %v150_v19 = vld [vmem:[%s759_s1 + $0x198] sm:$0xff]  ;;  %v119_v23 = vld [vmem:[%s759_s1 + $0xa0] sm:$0xff] }
   0x6   :  { %447 = vmatprep.subr.bf16.mxu1 %v446_v8  ;;  %v133_v20 = vld [vmem:[%s759_s1 + $0x110] sm:$0xff]  ;;  %v450_v21 = vpack.c.bf16 %v150_v19, %v149_v18  ;;  %v134_v22 = vld [vmem:[%s759_s1 + $0x118] sm:$0xff]  ;;  %v120_v24 = vld [vmem:[%s759_s1 + $0xa8] sm:$0xff]  ;;  %419 = vmatprep.subr.bf16.mxu0 %v418_v16 }
   0x7   :  { %449 = vmatpush3.bf16.msra.mxu1 %v448_v12  ;;  %v452_v25 = vpack.c.bf16 %v134_v22, %v133_v20  ;;  %v422_v26 = vpack.c.bf16 %v120_v24, %v119_v23  ;;  %v103_v27 = vld [vmem:[%s759_s1 + $0x20] sm:$0xff]  ;;  %v104_v28 = vld [vmem:[%s759_s1 + $0x28] sm:$0xff]  ;;  %v121_v35 = vld [vmem:[%s759_s1 + $0xb0] sm:$0xff] }
   0x8   :  { %v151_v29 = vld [vmem:[%s759_s1 + $0x1a0] sm:$0xff]  ;;  %451 = vmatprep.subr.bf16.mxu1 %v450_v21  ;;  %v152_v30 = vld [vmem:[%s759_s1 + $0x1a8] sm:$0xff]  ;;  %v424_v33 = vpack.c.bf16 %v104_v28, %v103_v27  ;;  %v122_v36 = vld [vmem:[%s759_s1 + $0xb8] sm:$0xff] }
   0x9   :  { %v135_v31 = vld [vmem:[%s759_s1 + $0x120] sm:$0xff]  ;;  %v136_v32 = vld [vmem:[%s759_s1 + $0x128] sm:$0xff]  ;;  %421 = vmatpush3.bf16.msra.mxu0 %v420_v17  ;;  %v454_v34 = vpack.c.bf16 %v152_v30, %v151_v29  ;;  %v105_v37 = vld [vmem:[%s759_s1 + $0x30] sm:$0xff]  ;;  %v426_v39 = vpack.c.bf16 %v122_v36, %v121_v35 }
   0xa   :  { %423 = vmatprep.subr.bf16.mxu0 %v422_v26  ;;  %v456_v38 = vpack.c.bf16 %v136_v32, %v135_v31  ;;  %v106_v40 = vld [vmem:[%s759_s1 + $0x38] sm:$0xff]  ;;  %v153_v41 = vld [vmem:[%s759_s1 + $0x1b0] sm:$0xff]  ;;  %v123_v46 = vld [vmem:[%s759_s1 + $0xc0] sm:$0xff] }
   0xb   :  { %453 = vmatpush3.bf16.msra.mxu1 %v452_v25  ;;  %v154_v42 = vld [vmem:[%s759_s1 + $0x1b8] sm:$0xff]  ;;  %v137_v44 = vld [vmem:[%s759_s1 + $0x130] sm:$0xff]  ;;  %v124_v47 = vld [vmem:[%s759_s1 + $0xc8] sm:$0xff]  ;;  %v428_v48 = vpack.c.bf16 %v106_v40, %v105_v37 }
   0xc   :  { %455 = vmatprep.subr.bf16.mxu1 %v454_v34  ;;  %v458_v43 = vpack.c.bf16 %v154_v42, %v153_v41  ;;  %v138_v45 = vld [vmem:[%s759_s1 + $0x138] sm:$0xff]  ;;  %v107_v49 = vld [vmem:[%s759_s1 + $0x40] sm:$0xff]  ;;  %v156_v51 = vld [vmem:[%s759_s1 + $0x1c8] sm:$0xff]  ;;  %v430_v53 = vpack.c.bf16 %v124_v47, %v123_v46 }
   0xd   :  { %425 = vmatpush3.bf16.msra.mxu0 %v424_v33  ;;  %v155_v50 = vld [vmem:[%s759_s1 + $0x1c0] sm:$0xff]  ;;  %v460_v52 = vpack.c.bf16 %v138_v45, %v137_v44  ;;  %v108_v54 = vld [vmem:[%s759_s1 + $0x48] sm:$0xff]  ;;  %v125_v58 = vld [vmem:[%s759_s1 + $0xd0] sm:$0xff] }
   0xe   :  { %427 = vmatprep.subr.bf16.mxu0 %v426_v39  ;;  %v139_v55 = vld [vmem:[%s759_s1 + $0x140] sm:$0xff]  ;;  %v140_v56 = vld [vmem:[%s759_s1 + $0x148] sm:$0xff]  ;;  %v462_v57 = vpack.c.bf16 %v156_v51, %v155_v50  ;;  %v126_v59 = vld [vmem:[%s759_s1 + $0xd8] sm:$0xff]  ;;  %v432_v2 = vpack.c.bf16 %v108_v54, %v107_v49 }
   0xf   :  { %457 = vmatpush3.bf16.msra.mxu1 %v456_v38  ;;  %v157_v60 = vld [vmem:[%s759_s1 + $0x1d0] sm:$0xff]  ;;  %v110_v62 = vld [vmem:[%s759_s1 + $0x58] sm:$0xff]  ;;  %v127_v3 = vld [vmem:[%s759_s1 + $0xe0] sm:$0xff]  ;;  %v464_v6 = vpack.c.bf16 %v140_v56, %v139_v55  ;;  %v434_v7 = vpack.c.bf16 %v126_v59, %v125_v58 }
  0x10   :  { %459 = vmatprep.subr.bf16.mxu1 %v458_v43  ;;  %v109_v61 = vld [vmem:[%s759_s1 + $0x50] sm:$0xff]  ;;  %v158_v63 = vld [vmem:[%s759_s1 + $0x1d8] sm:$0xff]  ;;  %v128_v4 = vld [vmem:[%s759_s1 + $0xe8] sm:$0xff] }
  0x11   :  { %v141_v0 = vld [vmem:[%s759_s1 + $0x150] sm:$0xff]  ;;  %v142_v1 = vld [vmem:[%s759_s1 + $0x158] sm:$0xff]  ;;  %429 = vmatpush3.bf16.msra.mxu0 %v428_v48  ;;  %v111_v5 = vld [vmem:[%s759_s1 + $0x60] sm:$0xff]  ;;  %v466_v11 = vpack.c.bf16 %v158_v63, %v157_v60  ;;  %v436_v18 = vpack.c.bf16 %v110_v62, %v109_v61  ;;  %v438_v20 = vpack.c.bf16 %v128_v4, %v127_v3 }
  0x12   :  { %431 = vmatprep.subr.bf16.mxu0 %v430_v53  ;;  %v112_v8 = vld [vmem:[%s759_s1 + $0x68] sm:$0xff]  ;;  %v159_v9 = vld [vmem:[%s759_s1 + $0x1e0] sm:$0xff]  ;;  %v129_v14 = vld [vmem:[%s759_s1 + $0xf0] sm:$0xff]  ;;  %v468_v19 = vpack.c.bf16 %v142_v1, %v141_v0 }
  0x13   :  { %461 = vmatpush3.bf16.msra.mxu1 %v460_v52  ;;  %v160_v10 = vld [vmem:[%s759_s1 + $0x1e8] sm:$0xff]  ;;  %v143_v12 = vld [vmem:[%s759_s1 + $0x160] sm:$0xff]  ;;  %v130_v15 = vld [vmem:[%s759_s1 + $0xf8] sm:$0xff]  ;;  %v440_v24 = vpack.c.bf16 %v112_v8, %v111_v5 }
  0x14   :  { %463 = vmatprep.subr.bf16.mxu1 %v462_v57  ;;  %v144_v13 = vld [vmem:[%s759_s1 + $0x168] sm:$0xff]  ;;  %v701_v16 = vld [vmem:[%s759_s1 + $0x70] sm:$0xff]  ;;  %v706_v17 = vld [vmem:[%s759_s1 + $0x78] sm:$0xff]  ;;  %v470_v25 = vpack.c.bf16 %v160_v10, %v159_v9  ;;  %v442_v30 = vpack.c.bf16 %v130_v15, %v129_v14 }
  0x15   :  { %433 = vmatpush3.bf16.msra.mxu0 %v432_v2  ;;  %v161_v21 = vld [vmem:[%s759_s1 + $0x1f0] sm:$0xff]  ;;  %v162_v22 = vld [vmem:[%s759_s1 + $0x1f8] sm:$0xff]  ;;  %v472_v26 = vpack.c.bf16 %v144_v13, %v143_v12  ;;  %v15_v28 = vld [vmem:[%s758_s0] sm:$0xff] }
  0x16   :  { %v717_v23 = vld [vmem:[%s759_s1 + $0x170] sm:$0xff]  ;;  %435 = vmatprep.subr.bf16.mxu0 %v434_v7  ;;  %v146_v27 = vld [vmem:[%s759_s1 + $0x178] sm:$0xff]  ;;  %v16_v29 = vld [vmem:[%s758_s0 + $0x8] sm:$0xff]  ;;  %v17_v31 = vunpack.c.l.bf16 %v15_v28  ;;  %v18_v33 = vunpack.c.h.bf16 %v15_v28 }
  0x17   :  { %465 = vmatpush3.bf16.msra.mxu1 %v464_v6  ;;  %v19_v32 = vunpack.c.l.bf16 %v16_v29 }
  0x18   :  { %467 = vmatprep.subr.bf16.mxu1 %v466_v11 }
  0x19   :  { %8 = vsyncpa [#allocation3], 0  ;;  %v444_v34 = vpack.c.bf16 %v706_v17, %v701_v16  ;;  %v474_v35 = vpack.c.bf16 %v162_v22, %v161_v21  ;;  %v476_v36 = vpack.c.bf16 %v146_v27, %v717_v23  ;;  %v20_v37 = vunpack.c.h.bf16 %v16_v29  ;;  %437 = vmatpush3.bf16.msra.mxu0 %v436_v18  ;;  %s503_s9 = smov [#allocation2]  }
  0x1a   :  { %v25_v38 = vcombine.high %v17_v31, %v17_v31  ;;  %v27_v39 = vcombine.high %v19_v32, %v19_v32  ;;  %v34_v40 = vsel %vm33_vm0, %v17_v31, 0.0  ;;  %v62_v41 = vsel %vm33_vm0, %v19_v32, 0.0  ;;  %439 = vmatprep.subr.bf16.mxu0 %v438_v20  ;;  %s335_s10 = sshll.u32 %s503_s9, 4  ;;  %s336_s10 = int_to_ptr.vmem [resolvable:$true] %s335_s10 }
  0x1b   :  { %469 = vmatpush3.bf16.msra.mxu1 %v468_v19  ;;  %v35_v42 = vrot.slane %v34_v40, 4  ;;  %v63_v43 = vrot.slane %v62_v41, 4  ;;  %v26_v44 = vcombine.high %v18_v33, %v18_v33  ;;  %v28_v45 = vcombine.high %v20_v37, %v20_v37  ;;  %s479_s11 = scalar_lea.vmem %s336_s10, 32  ;;  %p484_p1 = scmp.lt.s32.totalorder %s336_s10, %s336_s10 }
  0x1c   :  { %471 = vmatprep.subr.bf16.mxu1 %v470_v25  ;;  %v41_v46 = vsel %vm33_vm0, %v25_v38, 0.0  ;;  %v69_v47 = vsel %vm33_vm0, %v27_v39, 0.0  ;;  %v48_v48 = vsel %vm33_vm0, %v18_v33, 0.0  ;;  %v76_v49 = vsel %vm33_vm0, %v20_v37, 0.0  ;;  %p480_p0 = scmp.ne.s32.totalorder %s336_s10, %s479_s11  ;;  %p485_p2 = scmp.lt.s32.totalorder %s479_s11, %s479_s11 }
  0x1d   :  { %v42_v50 = vrot.slane %v41_v46, 4  ;;  %v70_v51 = vrot.slane %v69_v47, 4  ;;  %v36_v52 = vadd.f32 %v35_v42, %v34_v40  ;;  %v64_v53 = vadd.f32 %v63_v43, %v62_v41  ;;  %441 = vmatpush3.bf16.msra.mxu0 %v440_v24 }
  0x1e   :  { %vm178_vm1 = vcmask 1041409   ;;  %v55_v54 = vsel %vm33_vm0, %v26_v44, 0.0  ;;  %v83_v55 = vsel %vm33_vm0, %v28_v45, 0.0  ;;  %v49_v56 = vrot.slane %v48_v48, 4  ;;  %443 = vmatprep.subr.bf16.mxu0 %v442_v30  ;;  %p486_p3 = por %p485_p2, %p484_p1 }
  0x1f   :  { %v77_v57 = vrot.slane %v76_v49, 4  ;;  %473 = vmatpush3.bf16.msra.mxu1 %v472_v26  ;;  %v43_v58 = vadd.f32 %v42_v50, %v41_v46  ;;  %v71_v59 = vadd.f32 %v70_v51, %v69_v47  ;;  %v37_v60 = vrot.slane %v36_v52, 2  ;;  %v343_v47 = vld [vmem:[%s760_s2] ss:$0 sm:$0xff] }
  0x20   :  { %v65_v61 = vrot.slane %v64_v53, 2  ;;  %475 = vmatprep.subr.bf16.mxu1 %v474_v35  ;;  %v56_v62 = vrot.slane %v55_v54, 4  ;;  %v84_v63 = vrot.slane %v83_v55, 4  ;;  %v50_v0 = vadd.f32 %v49_v56, %v48_v48  ;;  %p487_p4 = pnand %p486_p3, %p480_p0 }
  0x21   :  { %v78_v1 = vadd.f32 %v77_v57, %v76_v49  ;;  %v44_v2 = vrot.slane %v43_v58, 2  ;;  %v72_v3 = vrot.slane %v71_v59, 2  ;;  %v38_v4 = vadd.f32 %v37_v60, %v36_v52  ;;  %445 = vmatpush3.bf16.msra.mxu0 %v444_v34 }
  0x22   :  { %v66_v5 = vadd.f32 %v65_v61, %v64_v53  ;;  %v57_v6 = vadd.f32 %v56_v62, %v55_v54  ;;  %v85_v7 = vadd.f32 %v84_v63, %v83_v55  ;;  %v51_v8 = vrot.slane %v50_v0, 2 }
  0x23   :  { %v79_v9 = vrot.slane %v78_v1, 2  ;;  %477 = vmatpush3.bf16.msra.mxu1 %v476_v36  ;;  %v45_v10 = vadd.f32 %v44_v2, %v43_v58  ;;  %v73_v11 = vadd.f32 %v72_v3, %v71_v59  ;;  %v39_v12 = vrot.slane %v38_v4, 1 }
  0x24   :  { %v67_v13 = vrot.slane %v66_v5, 1  ;;  %v58_v14 = vrot.slane %v57_v6, 2  ;;  %v86_v15 = vrot.slane %v85_v7, 2  ;;  %v52_v16 = vadd.f32 %v51_v8, %v50_v0 }
  0x25   :  { %v80_v17 = vadd.f32 %v79_v9, %v78_v1  ;;  %v46_v18 = vrot.slane %v45_v10, 1  ;;  %v74_v19 = vrot.slane %v73_v11, 1  ;;  %v40_v20 = vadd.f32 %v39_v12, %v38_v4 }
  0x26   :  { %v68_v21 = vadd.f32 %v67_v13, %v66_v5  ;;  %v59_v22 = vadd.f32 %v58_v14, %v57_v6  ;;  %v87_v23 = vadd.f32 %v86_v15, %v85_v7  ;;  %v53_v24 = vrot.slane %v52_v16, 1 }
  0x27   :  { %v81_v25 = vrot.slane %v80_v17, 1  ;;  %v47_v26 = vadd.f32 %v46_v18, %v45_v10  ;;  %v75_v27 = vadd.f32 %v74_v19, %v73_v11  ;;  %v91_v28 = vmul.f32 0.25, %v40_v20 }
  0x28   :  { %v95_v29 = vmul.f32 0.25, %v68_v21  ;;  %v60_v30 = vrot.slane %v59_v22, 1  ;;  %v88_v31 = vrot.slane %v87_v23, 1  ;;  %v54_v32 = vadd.f32 %v53_v24, %v52_v16 }
  0x29   :  { %v82_v33 = vadd.f32 %v81_v25, %v80_v17  ;;  %v92_v34 = vmul.f32 0.25, %v47_v26  ;;  %v96_v35 = vmul.f32 0.25, %v75_v27  ;;  %vm327_vm2 = vcmask 74752  }
  0x2a   :  { %v179_v36 = vsel %vm178_vm1, %v95_v29, %v91_v28  ;;  %v61_v37 = vadd.f32 %v60_v30, %v59_v22  ;;  %v89_v38 = vadd.f32 %v88_v31, %v87_v23  ;;  %v93_v39 = vmul.f32 0.25, %v54_v32 }
  0x2b   :  { %v97_v40 = vmul.f32 0.25, %v82_v33  ;;  %v180_v41 = vsel %vm178_vm1, %v96_v35, %v92_v34 }
  0x2c   :  { %251 = vmatprep.mubr.f32.mxu0 %v180_v41  ;;  %v94_v42 = vmul.f32 0.25, %v61_v37  ;;  %v98_v43 = vmul.f32 0.25, %v89_v38 }
  0x2d   :  { %252 = vmatmul.mubr.f32.vlgmr.msra.gmra.mrb[0].mxu0 %v179_v36  ;;  %v181_v44 = vsel %vm178_vm1, %v97_v40, %v93_v39 }
  0x2e   :  { %v182_v45 = vsel %vm178_vm1, %v98_v43, %v94_v42 }
  0x2f   :  { %321 = vmatprep.mubr.f32.mxu1 %v182_v45 }
  0x30   :  { %322 = vmatmul.mubr.f32.vlgmr.msra.gmra.mrb[0].mxu1 %v181_v44 }
 0x100   :  { %v376_v46 = vpop.f32.mrb[0].mxu0 }
 0x101   :  { %v377_v48 = vpop.f32.mrb[1].mxu0 }
 0x102   :  { %v378_v49 = vadd.f32 %v377_v48, %v376_v46 }
 0x103   :  { %v411_v50 = vpop.f32.mrb[0].mxu1 }
 0x104   :  { %v254_v51 = vadd.f32 %v378_v49, %v343_v47  ;;  %v412_v52 = vpop.f32.mrb[1].mxu1 }
 0x105   :  { %v413_v53 = vadd.f32 %v412_v52, %v411_v50 }
 0x107   :  { %v324_v54 = vadd.f32 %v413_v53, %v254_v51 }
 0x109   :  { %328 = vst.msk [vmem:[#allocation2] sm:$0x3] %vm327_vm2, %v324_v54 }
 0x10a   :  { %490 = shalt.err (!%p487_p4)
}
 0x10b   :  { %s491_s13 = scalar_lea.hbm %s761_s3, 32 }
 0x10c   :  { %p492_p5 = scmp.ne.s32.totalorder %s761_s3, %s491_s13  ;;  %p495_p6 = scmp.lt.u32.totalorder %s491_s13, %s761_s3 }
 0x10e   :  { %p497_p7 = pnand %p495_p6, %p492_p5 }
 0x110   :  { %500 = shalt.err (!%p497_p7)
}
 0x111   :  { %338 = dma.vmem_to_hbm [thread:$0]  %s336_s10, 32, %s761_s3, [#allocation3]  }
 0x112   :  { %501 = dma.done.wait [#allocation3], 32  }
 0x113   :  { %502 = vsyncadd [#allocation3], 4294967264 }
 0x114   :  { %342 = vsyncpa [#allocation3], 1 }

</bundles_post_ra>
